<compile_context>
chip_gen: v5e
topology: v5e:2x2
jax: 0.10.0
libtpu: 0.0.40
codegen_flags: <defaults>
</compile_context>

<pallas_src>
import functools

import jax
import jax.numpy as jnp
from jax.experimental import pallas as pl
from jax.experimental.pallas import tpu as pltpu


# ----------------------------------------------------------------------------
# Fused per-level kernel (one group of images per grid step)
# ----------------------------------------------------------------------------
def _level_kernel(rgb_ref, lwir_ref, gt_ref, rowm_ref, colm_ref,
                  w_main_r, w_main_l, b_main,
                  w_short_r, w_short_l, b_short,
                  w_b1, b_b1, w_b2, b_b2,
                  w_fin_m, w_fin_s, b_fin,
                  w_m1, b_m1, w_m2, b_m2, w_m3,
                  w_sg, b_sg,
                  out_ref, lpart_ref,
                  *, W, N):
    """All activations live in dense (channels, N) layout, N = images*H*W."""
    f32, bf16 = jnp.float32, jnp.bfloat16

    def mm(w_r, x_bf):                         # bf16 MXU matmul, f32 accumulation
        return jnp.dot(w_r[...], x_bf, preferred_element_type=f32)

    def conv_kxk(x, w_r, K):
        """KxK 'same' conv in dense layout: XLU rolls + boundary masks build a
        (K*K*cin, N) stacked operand, evaluated as ONE MXU matmul."""
        R = K // 2
        # column shifts (dx): mask is periodic in W, so it survives row rolls
        cols = []
        for dx in range(-R, R + 1):
            t = x if dx == 0 else pltpu.roll(x, shift=(-dx) % N, axis=1)
            if dx != 0:
                t = t * colm_ref[3 + dx:4 + dx, :]
            cols.append(t)
        xcols = jnp.concatenate(cols, axis=0)            # (K*cin, N) f32
        # row shifts (dy)
        rows = []
        for dy in range(-R, R + 1):
            t = xcols if dy == 0 else pltpu.roll(xcols, shift=(-dy * W) % N, axis=1)
            if dy != 0:
                t = t * rowm_ref[3 + dy:4 + dy, :]
            rows.append(t)
        stk = jnp.concatenate(rows, axis=0).astype(bf16)  # (K*K*cin, N) bf16
        return jnp.dot(w_r[...], stk, preferred_element_type=f32)

    rgb = rgb_ref[...]                                    # (C, N) bf16
    lwir = lwir_ref[...]                                  # (C, N) bf16
    gt = gt_ref[...]                                      # (1, N) f32

    # ---- CSPLayer(cat([rgb, lwir]) -> C): split-weight 1x1 convs -------------
    x_main = jnp.maximum(mm(w_main_r, rgb) + mm(w_main_l, lwir) + b_main[...], 0.0)
    x_short = jnp.maximum(mm(w_short_r, rgb) + mm(w_short_l, lwir) + b_short[...], 0.0)
    b1 = jnp.maximum(mm(w_b1, x_main.astype(bf16)) + b_b1[...], 0.0)
    b2 = jnp.maximum(conv_kxk(b1, w_b2, 3) + b_b2[...], 0.0)
    x_main2 = b2 + x_main                                 # DarknetBottleneck identity add
    fused = jnp.maximum(mm(w_fin_m, x_main2.astype(bf16))
                        + mm(w_fin_s, x_short.astype(bf16)) + b_fin[...], 0.0)

    # ---- mask head ------------------------------------------------------------
    m1 = jnp.maximum(conv_kxk(fused, w_m1, 3) + b_m1[...], 0.0)
    m2 = jnp.maximum(conv_kxk(m1, w_m2, 3) + b_m2[...], 0.0)
    z = mm(w_m3, m2.astype(bf16))                         # (1, N) mask logits
    pm = jax.nn.sigmoid(z)                                # pred_mask
    refined = fused * pm                                  # (C, N)

    # ---- Dice + BCE partial sums (all N pixels are valid in dense layout) -----
    lpart_ref[0, 0] = jnp.sum(pm * gt)                    # intersection
    lpart_ref[0, 1] = jnp.sum(pm)                         # sum(pred)
    lpart_ref[0, 2] = jnp.sum(gt)                         # sum(target)
    softplus = jnp.maximum(z, 0.0) + jnp.log(1.0 + jnp.exp(-jnp.abs(z)))
    lpart_ref[0, 3] = jnp.sum(softplus - gt * z)          # BCE-from-logits sum

    # ---- SpatialGate: ChannelPool -> 7x7 conv(+folded BN) -> sigmoid -> * -----
    cmax = jnp.max(refined, axis=0, keepdims=True)
    cmean = jnp.mean(refined, axis=0, keepdims=True)
    pool = jnp.concatenate([cmax, cmean], axis=0)         # (2, N)
    att = jax.nn.sigmoid(conv_kxk(pool, w_sg, 7) + b_sg[...])   # (1, N)

    # ---- gated output: single lane-dense store ---------------------------------
    out_ref[...] = (refined * att).astype(out_ref.dtype)


# ----------------------------------------------------------------------------
# pallas_call builder / wrappers
# ----------------------------------------------------------------------------
def _choose_group(B, HW):
    """Images folded into one grid step (stacked along the pixel/lane axis)."""
    G = min(B, max(1, 512 // HW))
    while G > 1 and B % G != 0:
        G -= 1
    if (G * HW) % 128 != 0 and G != B:
        G = B          # fall back to full fold so blocks equal full array dims
    return G


def _vmem_limit(C, N):
    """Derive the VMEM budget from the actual working set (not a flat constant)."""
    M = max(C // 2, 1)
    bf, f4 = 2, 4
    widest = max(M, C, 64)
    acts_in = 2 * (2 * C * N * bf + N * f4 + 2 * 7 * N * f4)          # double-buffered blocks
    weights = (4 * M * C + M * M + 9 * M * M + 2 * C * M
               + 64 * 9 * C + 64 * 9 * 64 + 64 + 98) * bf * 2
    biases = (4 * M + 2 * C + 2 * 64 + 2) * f4 * 2
    stacked = 9 * widest * N * (f4 + bf)                              # f32 stack + bf16 copy
    live = (4 * C + 3 * M + 2 * 64 + 8) * N * f4                      # f32 intermediates
    out = 2 * C * N * bf
    total = acts_in + weights + biases + stacked + live + out + (2 << 20)
    return int(min(max(total, 8 << 20), 100 << 20))


def _boundary_masks(H, W, G):
    """Row / column validity masks for kernel offsets d in [-3, 3], tiled per image."""
    pix = jnp.arange(H * W, dtype=jnp.int32)
    yy = (pix // W)[None, :]
    xx = (pix % W)[None, :]
    d = jnp.arange(-3, 4, dtype=jnp.int32)[:, None]
    rowm = ((yy + d >= 0) & (yy + d < H)).astype(jnp.float32)
    colm = ((xx + d >= 0) & (xx + d < W)).astype(jnp.float32)
    return jnp.tile(rowm, (1, G)), jnp.tile(colm, (1, G))


def _build_level_call(B, C, H, W, G):
    HW = H * W
    N = G * HW
    NG = B // G
    M = C // 2
    kern = functools.partial(_level_kernel, W=W, N=N)

    dmap = lambda g: (0, g)
    w2 = lambda s: pl.BlockSpec(s, lambda g: (0, 0))

    in_specs = [
        pl.BlockSpec((C, N), dmap),                       # rgb   (C, B*HW) bf16
        pl.BlockSpec((C, N), dmap),                       # lwir
        pl.BlockSpec((1, N), dmap),                       # gt    (1, B*HW) f32
        w2((7, N)),                                       # row boundary masks
        w2((7, N)),                                       # col boundary masks
        w2((M, C)), w2((M, C)), w2((M, 1)),               # main conv (split halves) + bias
        w2((M, C)), w2((M, C)), w2((M, 1)),               # short conv
        w2((M, M)), w2((M, 1)),                           # bottleneck 1x1
        w2((M, 9 * M)), w2((M, 1)),                       # bottleneck 3x3 (cout, 9*cin)
        w2((C, M)), w2((C, M)), w2((C, 1)),               # final conv (split halves)
        w2((64, 9 * C)), w2((64, 1)),                     # mask conv1 3x3
        w2((64, 9 * 64)), w2((64, 1)),                    # mask conv2 3x3
        w2((1, 64)),                                      # mask conv3 1x1 (sigmoid)
        w2((1, 98)), w2((1, 1)),                          # SpatialGate 7x7 + folded BN bias
    ]
    out_specs = [
        pl.BlockSpec((C, N), dmap),
        pl.BlockSpec((1, 4), lambda g: (g, 0),
                     memory_space=pltpu.MemorySpace.SMEM),
    ]
    return pl.pallas_call(
        kern,
        out_shape=[
            jax.ShapeDtypeStruct((C, B * HW), jnp.bfloat16),
            jax.ShapeDtypeStruct((NG, 4), jnp.float32),
        ],
        grid=(NG,),
        in_specs=in_specs,
        out_specs=out_specs,
        compiler_params=pltpu.CompilerParams(
            dimension_semantics=("parallel",),            # megacore over image groups
            vmem_limit_bytes=_vmem_limit(C, N),
        ),
    )


def _level_forward(rgb, lwir, gt, p):
    B, C, H, W = rgb.shape
    HW = H * W
    G = _choose_group(B, HW)
    call = _build_level_call(B, C, H, W, G)

    def to_cn(x, dt):      # (B, c, H, W) -> (c, B*HW): images stacked on pixel axis
        c = x.shape[1]
        return x.reshape(B, c, HW).transpose(1, 0, 2).reshape(c, B * HW).astype(dt)

    rowm, colm = _boundary_masks(H, W, G)
    out_cn, parts = call(
        to_cn(rgb, jnp.bfloat16), to_cn(lwir, jnp.bfloat16), to_cn(gt, jnp.float32),
        rowm, colm,
        p["w_main_r"], p["w_main_l"], p["b_main"],
        p["w_short_r"], p["w_short_l"], p["b_short"],
        p["w_b1"], p["b_b1"], p["w_b2"], p["b_b2"],
        p["w_fin_m"], p["w_fin_s"], p["b_fin"],
        p["w_m1"], p["b_m1"], p["w_m2"], p["b_m2"], p["w_m3"],
        p["w_sg"], p["b_sg"],
    )
    out = out_cn.reshape(C, B, H, W).transpose(1, 0, 2, 3)
    return out, parts


def target_aware_fusion_forward(rgb_x, lwir_x, gt_masks, params,
                                dice_weight=1.0, smooth=1.0):
    """rgb_x / lwir_x: lists of NCHW feature maps; gt_masks: list of (B,1,H,W)
    binary masks already resized to each level's resolution.
    # TODO(synk): get_batch_mask + PIL nearest-neighbour mask resizing is host-side
    # preprocessing with no Pallas equivalent; pre-resized masks are passed in.
    """
    assert len(rgb_x) == len(lwir_x) == len(gt_masks) == len(params)
    outs = []
    loss = jnp.float32(0.0)
    for rgb, lwir, gt, p in zip(rgb_x, lwir_x, gt_masks, params):
        B, C, H, W = rgb.shape
        out, parts = _level_forward(rgb, lwir, gt, p)
        inter = parts[:, 0].sum()
        sum_p = parts[:, 1].sum()
        sum_t = parts[:, 2].sum()
        bce_sum = parts[:, 3].sum()
        dice = 1.0 - (2.0 * inter + smooth) / (sum_p + sum_t + smooth)
        bce = bce_sum / (B * H * W)
        loss = loss + (bce + dice) * dice_weight
        outs.append(out)
    return loss / len(params), outs


# ----------------------------------------------------------------------------
# Synthetic parameters (eval-mode BN folded into conv weights / bias)
# ----------------------------------------------------------------------------
def _bn_fold(key, c):
    kg, kb = jax.random.split(key)
    gamma = 1.0 + 0.05 * jax.random.normal(kg, (c,), jnp.float32)
    beta = 0.05 * jax.random.normal(kb, (c,), jnp.float32)
    scale = gamma / jnp.sqrt(1.0 + 1e-5)   # running_mean = 0, running_var = 1
    return scale, beta


def init_level_params(key, in_c):
    mid = in_c // 2                         # CSPLayer expand_ratio = 0.5
    ks = jax.random.split(key, 17)
    f1 = lambda w, s: (w * s[:, None]).astype(jnp.bfloat16)            # (cout, cin)

    def f3(w, s):                                                       # (9,cout,cin)->(cout,9*cin)
        w = w * s[None, :, None]
        return jnp.transpose(w, (1, 0, 2)).reshape(w.shape[1], -1).astype(jnp.bfloat16)

    bv = lambda b: b.reshape(-1, 1).astype(jnp.float32)
    p = {}
    # act_cfg is assumed ReLU for all ConvModules that carry an activation.
    s, b = _bn_fold(ks[0], mid)
    wm = 0.1 * jax.random.normal(ks[1], (mid, 2 * in_c), jnp.float32)
    p["w_main_r"], p["w_main_l"], p["b_main"] = f1(wm[:, :in_c], s), f1(wm[:, in_c:], s), bv(b)
    s, b = _bn_fold(ks[2], mid)
    wsh = 0.1 * jax.random.normal(ks[3], (mid, 2 * in_c), jnp.float32)
    p["w_short_r"], p["w_short_l"], p["b_short"] = f1(wsh[:, :in_c], s), f1(wsh[:, in_c:], s), bv(b)
    s, b = _bn_fold(ks[4], mid)
    p["w_b1"], p["b_b1"] = f1(0.1 * jax.random.normal(ks[5], (mid, mid), jnp.float32), s), bv(b)
    s, b = _bn_fold(ks[6], mid)
    p["w_b2"], p["b_b2"] = f3(0.1 * jax.random.normal(ks[7], (9, mid, mid), jnp.float32), s), bv(b)
    s, b = _bn_fold(ks[8], in_c)
    wf = 0.1 * jax.random.normal(ks[9], (in_c, 2 * mid), jnp.float32)
    p["w_fin_m"], p["w_fin_s"], p["b_fin"] = f1(wf[:, :mid], s), f1(wf[:, mid:], s), bv(b)
    s, b = _bn_fold(ks[10], 64)
    p["w_m1"], p["b_m1"] = f3(0.1 * jax.random.normal(ks[11], (9, 64, in_c), jnp.float32), s), bv(b)
    s, b = _bn_fold(ks[12], 64)
    p["w_m2"], p["b_m2"] = f3(0.1 * jax.random.normal(ks[13], (9, 64, 64), jnp.float32), s), bv(b)
    p["w_m3"] = (0.1 * jax.random.normal(ks[14], (1, 64), jnp.float32)).astype(jnp.bfloat16)
    # SpatialGate 7x7 conv (2->1, bias=False) + BN(1): fold scale into weights
    s, b = _bn_fold(ks[15], 1)
    w7 = 0.1 * jax.random.normal(ks[16], (7, 7, 2), jnp.float32) * s[0]   # (ky, kx, c)
    p["w_sg"] = w7.reshape(1, 98).astype(jnp.bfloat16)
    p["b_sg"] = b.reshape(1, 1).astype(jnp.float32)
    return p


# ----------------------------------------------------------------------------
if __name__ == "__main__":
    key = jax.random.PRNGKey(0)
    in_channels = [8]
    B, H, W = 2, 16, 16

    k_rgb, k_lwir, k_gt, k_par = jax.random.split(key, 4)
    rgb_x = [jax.random.normal(k_rgb, (B, in_channels[0], H, W), jnp.float32)]
    lwir_x = [jax.random.normal(k_lwir, (B, in_channels[0], H, W), jnp.float32)]
    gt_masks = [(jax.random.uniform(k_gt, (B, 1, H, W)) > 0.5).astype(jnp.float32)]
    params = [init_level_params(k_par, in_channels[0])]

    loss, outs = target_aware_fusion_forward(rgb_x, lwir_x, gt_masks, params, dice_weight=1.0)
    jax.block_until_ready((loss, outs))
    assert outs[0].shape == (B, in_channels[0], H, W)
    assert loss.shape == ()
    assert bool(jnp.isfinite(loss))
    print("KERNEL_OK")
</pallas_src>

<mosaic_0001>
module attributes {stable_mosaic.version = 11 : i64} {
  func.func @_level_kernel(%arg0: i32, %arg1: memref<8x512xbf16, #tpu.memory_space<vmem>>, %arg2: memref<8x512xbf16, #tpu.memory_space<vmem>>, %arg3: memref<1x512xf32, #tpu.memory_space<vmem>>, %arg4: memref<7x512xf32, #tpu.memory_space<vmem>>, %arg5: memref<7x512xf32, #tpu.memory_space<vmem>>, %arg6: memref<4x8xbf16, #tpu.memory_space<vmem>>, %arg7: memref<4x8xbf16, #tpu.memory_space<vmem>>, %arg8: memref<4x1xf32, #tpu.memory_space<vmem>>, %arg9: memref<4x8xbf16, #tpu.memory_space<vmem>>, %arg10: memref<4x8xbf16, #tpu.memory_space<vmem>>, %arg11: memref<4x1xf32, #tpu.memory_space<vmem>>, %arg12: memref<4x4xbf16, #tpu.memory_space<vmem>>, %arg13: memref<4x1xf32, #tpu.memory_space<vmem>>, %arg14: memref<4x36xbf16, #tpu.memory_space<vmem>>, %arg15: memref<4x1xf32, #tpu.memory_space<vmem>>, %arg16: memref<8x4xbf16, #tpu.memory_space<vmem>>, %arg17: memref<8x4xbf16, #tpu.memory_space<vmem>>, %arg18: memref<8x1xf32, #tpu.memory_space<vmem>>, %arg19: memref<64x72xbf16, #tpu.memory_space<vmem>>, %arg20: memref<64x1xf32, #tpu.memory_space<vmem>>, %arg21: memref<64x576xbf16, #tpu.memory_space<vmem>>, %arg22: memref<64x1xf32, #tpu.memory_space<vmem>>, %arg23: memref<1x64xbf16, #tpu.memory_space<vmem>>, %arg24: memref<1x98xbf16, #tpu.memory_space<vmem>>, %arg25: memref<1x1xf32, #tpu.memory_space<vmem>>, %arg26: memref<8x512xbf16, #tpu.memory_space<vmem>>, %arg27: memref<1x4xf32, #tpu.memory_space<smem>>) attributes {dimension_semantics = [#tpu.dimension_semantics<parallel>], iteration_bounds = array<i64: 1>, scalar_prefetch = 0 : i64, scratch_operands = 0 : i64, tpu.core_type = #tpu.core_type<tc>, window_params = [{transform_indices = @transform_0, window_bounds = array<i64: 8, 512>}, {transform_indices = @transform_1, window_bounds = array<i64: 8, 512>}, {transform_indices = @transform_2, window_bounds = array<i64: 1, 512>}, {pipeline_mode = #tpu.pipeline_mode<synchronous>, transform_indices = @transform_3, window_bounds = array<i64: 7, 512>}, {pipeline_mode = #tpu.pipeline_mode<synchronous>, transform_indices = @transform_4, window_bounds = array<i64: 7, 512>}, {pipeline_mode = #tpu.pipeline_mode<synchronous>, transform_indices = @transform_5, window_bounds = array<i64: 4, 8>}, {pipeline_mode = #tpu.pipeline_mode<synchronous>, transform_indices = @transform_6, window_bounds = array<i64: 4, 8>}, {pipeline_mode = #tpu.pipeline_mode<synchronous>, transform_indices = @transform_7, window_bounds = array<i64: 4, 1>}, {pipeline_mode = #tpu.pipeline_mode<synchronous>, transform_indices = @transform_8, window_bounds = array<i64: 4, 8>}, {pipeline_mode = #tpu.pipeline_mode<synchronous>, transform_indices = @transform_9, window_bounds = array<i64: 4, 8>}, {pipeline_mode = #tpu.pipeline_mode<synchronous>, transform_indices = @transform_10, window_bounds = array<i64: 4, 1>}, {pipeline_mode = #tpu.pipeline_mode<synchronous>, transform_indices = @transform_11, window_bounds = array<i64: 4, 4>}, {pipeline_mode = #tpu.pipeline_mode<synchronous>, transform_indices = @transform_12, window_bounds = array<i64: 4, 1>}, {pipeline_mode = #tpu.pipeline_mode<synchronous>, transform_indices = @transform_13, window_bounds = array<i64: 4, 36>}, {pipeline_mode = #tpu.pipeline_mode<synchronous>, transform_indices = @transform_14, window_bounds = array<i64: 4, 1>}, {pipeline_mode = #tpu.pipeline_mode<synchronous>, transform_indices = @transform_15, window_bounds = array<i64: 8, 4>}, {pipeline_mode = #tpu.pipeline_mode<synchronous>, transform_indices = @transform_16, window_bounds = array<i64: 8, 4>}, {pipeline_mode = #tpu.pipeline_mode<synchronous>, transform_indices = @transform_17, window_bounds = array<i64: 8, 1>}, {pipeline_mode = #tpu.pipeline_mode<synchronous>, transform_indices = @transform_18, window_bounds = array<i64: 64, 72>}, {pipeline_mode = #tpu.pipeline_mode<synchronous>, transform_indices = @transform_19, window_bounds = array<i64: 64, 1>}, {pipeline_mode = #tpu.pipeline_mode<synchronous>, transform_indices = @transform_20, window_bounds = array<i64: 64, 576>}, {pipeline_mode = #tpu.pipeline_mode<synchronous>, transform_indices = @transform_21, window_bounds = array<i64: 64, 1>}, {pipeline_mode = #tpu.pipeline_mode<synchronous>, transform_indices = @transform_22, window_bounds = array<i64: 1, 64>}, {pipeline_mode = #tpu.pipeline_mode<synchronous>, transform_indices = @transform_23, window_bounds = array<i64: 1, 98>}, {pipeline_mode = #tpu.pipeline_mode<synchronous>, transform_indices = @transform_24, window_bounds = array<i64: 1, 1>}, {transform_indices = @transform_25, window_bounds = array<i64: 8, 512>}, {transform_indices = @transform_26, window_bounds = array<i64: 1, 4>}]} {
    %c0 = arith.constant 0 : index
    %c0_0 = arith.constant 0 : index
    %0 = vector.load %arg1[%c0, %c0_0] : memref<8x512xbf16, #tpu.memory_space<vmem>>, vector<8x512xbf16>
    %c0_1 = arith.constant 0 : index
    %c0_2 = arith.constant 0 : index
    %1 = vector.load %arg2[%c0_1, %c0_2] : memref<8x512xbf16, #tpu.memory_space<vmem>>, vector<8x512xbf16>
    %c0_3 = arith.constant 0 : index
    %c0_4 = arith.constant 0 : index
    %2 = vector.load %arg3[%c0_3, %c0_4] : memref<1x512xf32, #tpu.memory_space<vmem>>, vector<1x512xf32>
    %c0_5 = arith.constant 0 : index
    %c0_6 = arith.constant 0 : index
    %3 = vector.load %arg6[%c0_5, %c0_6] : memref<4x8xbf16, #tpu.memory_space<vmem>>, vector<4x8xbf16>
    %cst = arith.constant dense<0.000000e+00> : vector<4x512xf32>
    %4 = tpu.matmul %3, %0, %cst {dimension_numbers = #tpu.dot_dimension_numbers<[1], [0], [0], [1], [0, 0, 1, 1], [], []>} : vector<4x8xbf16>, vector<8x512xbf16>, vector<4x512xf32> -> vector<4x512xf32>
    %c0_7 = arith.constant 0 : index
    %c0_8 = arith.constant 0 : index
    %5 = vector.load %arg7[%c0_7, %c0_8] : memref<4x8xbf16, #tpu.memory_space<vmem>>, vector<4x8xbf16>
    %cst_9 = arith.constant dense<0.000000e+00> : vector<4x512xf32>
    %6 = tpu.matmul %5, %1, %cst_9 {dimension_numbers = #tpu.dot_dimension_numbers<[1], [0], [0], [1], [0, 0, 1, 1], [], []>} : vector<4x8xbf16>, vector<8x512xbf16>, vector<4x512xf32> -> vector<4x512xf32>
    %7 = arith.addf %4, %6 : vector<4x512xf32>
    %c0_10 = arith.constant 0 : index
    %c0_11 = arith.constant 0 : index
    %8 = vector.load %arg8[%c0_10, %c0_11] : memref<4x1xf32, #tpu.memory_space<vmem>>, vector<4x1xf32>
    %9 = vector.broadcast %8 : vector<4x1xf32> to vector<4x512xf32>
    %10 = arith.addf %7, %9 : vector<4x512xf32>
    %cst_12 = arith.constant 0.000000e+00 : f32
    %11 = vector.broadcast %cst_12 : f32 to vector<4x512xf32>
    %12 = arith.maximumf %10, %11 : vector<4x512xf32>
    %c0_13 = arith.constant 0 : index
    %c0_14 = arith.constant 0 : index
    %13 = vector.load %arg9[%c0_13, %c0_14] : memref<4x8xbf16, #tpu.memory_space<vmem>>, vector<4x8xbf16>
    %cst_15 = arith.constant dense<0.000000e+00> : vector<4x512xf32>
    %14 = tpu.matmul %13, %0, %cst_15 {dimension_numbers = #tpu.dot_dimension_numbers<[1], [0], [0], [1], [0, 0, 1, 1], [], []>} : vector<4x8xbf16>, vector<8x512xbf16>, vector<4x512xf32> -> vector<4x512xf32>
    %c0_16 = arith.constant 0 : index
    %c0_17 = arith.constant 0 : index
    %15 = vector.load %arg10[%c0_16, %c0_17] : memref<4x8xbf16, #tpu.memory_space<vmem>>, vector<4x8xbf16>
    %cst_18 = arith.constant dense<0.000000e+00> : vector<4x512xf32>
    %16 = tpu.matmul %15, %1, %cst_18 {dimension_numbers = #tpu.dot_dimension_numbers<[1], [0], [0], [1], [0, 0, 1, 1], [], []>} : vector<4x8xbf16>, vector<8x512xbf16>, vector<4x512xf32> -> vector<4x512xf32>
    %17 = arith.addf %14, %16 : vector<4x512xf32>
    %c0_19 = arith.constant 0 : index
    %c0_20 = arith.constant 0 : index
    %18 = vector.load %arg11[%c0_19, %c0_20] : memref<4x1xf32, #tpu.memory_space<vmem>>, vector<4x1xf32>
    %19 = vector.broadcast %18 : vector<4x1xf32> to vector<4x512xf32>
    %20 = arith.addf %17, %19 : vector<4x512xf32>
    %cst_21 = arith.constant 0.000000e+00 : f32
    %21 = vector.broadcast %cst_21 : f32 to vector<4x512xf32>
    %22 = arith.maximumf %20, %21 : vector<4x512xf32>
    %23 = arith.truncf %12 : vector<4x512xf32> to vector<4x512xbf16>
    %c0_22 = arith.constant 0 : index
    %c0_23 = arith.constant 0 : index
    %24 = vector.load %arg12[%c0_22, %c0_23] : memref<4x4xbf16, #tpu.memory_space<vmem>>, vector<4x4xbf16>
    %cst_24 = arith.constant dense<0.000000e+00> : vector<4x512xf32>
    %25 = tpu.matmul %24, %23, %cst_24 {dimension_numbers = #tpu.dot_dimension_numbers<[1], [0], [0], [1], [0, 0, 1, 1], [], []>} : vector<4x4xbf16>, vector<4x512xbf16>, vector<4x512xf32> -> vector<4x512xf32>
    %c0_25 = arith.constant 0 : index
    %c0_26 = arith.constant 0 : index
    %26 = vector.load %arg13[%c0_25, %c0_26] : memref<4x1xf32, #tpu.memory_space<vmem>>, vector<4x1xf32>
    %27 = vector.broadcast %26 : vector<4x1xf32> to vector<4x512xf32>
    %28 = arith.addf %25, %27 : vector<4x512xf32>
    %cst_27 = arith.constant 0.000000e+00 : f32
    %29 = vector.broadcast %cst_27 : f32 to vector<4x512xf32>
    %30 = arith.maximumf %28, %29 : vector<4x512xf32>
    %c1_i32 = arith.constant 1 : i32
    %31 = tpu.dynamic_rotate %30 by %c1_i32 dim 1 : vector<4x512xf32>, i32 -> vector<4x512xf32>
    %c2 = arith.constant 2 : index
    %c0_28 = arith.constant 0 : index
    %32 = vector.load %arg5[%c2, %c0_28] : memref<7x512xf32, #tpu.memory_space<vmem>>, vector<1x512xf32>
    %33 = vector.broadcast %32 : vector<1x512xf32> to vector<4x512xf32>
    %34 = arith.mulf %31, %33 : vector<4x512xf32>
    %c511_i32 = arith.constant 511 : i32
    %35 = tpu.dynamic_rotate %30 by %c511_i32 dim 1 : vector<4x512xf32>, i32 -> vector<4x512xf32>
    %c4 = arith.constant 4 : index
    %c0_29 = arith.constant 0 : index
    %36 = vector.load %arg5[%c4, %c0_29] : memref<7x512xf32, #tpu.memory_space<vmem>>, vector<1x512xf32>
    %37 = vector.broadcast %36 : vector<1x512xf32> to vector<4x512xf32>
    %38 = arith.mulf %35, %37 : vector<4x512xf32>
    %39 = tpu.concatenate %34, %30, %38 in 0 : vector<4x512xf32>, vector<4x512xf32>, vector<4x512xf32> -> vector<12x512xf32>
    %c16_i32 = arith.constant 16 : i32
    %40 = tpu.dynamic_rotate %39 by %c16_i32 dim 1 : vector<12x512xf32>, i32 -> vector<12x512xf32>
    %c2_30 = arith.constant 2 : index
    %c0_31 = arith.constant 0 : index
    %41 = vector.load %arg4[%c2_30, %c0_31] : memref<7x512xf32, #tpu.memory_space<vmem>>, vector<1x512xf32>
    %42 = vector.broadcast %41 : vector<1x512xf32> to vector<12x512xf32>
    %43 = arith.mulf %40, %42 : vector<12x512xf32>
    %c496_i32 = arith.constant 496 : i32
    %44 = tpu.dynamic_rotate %39 by %c496_i32 dim 1 : vector<12x512xf32>, i32 -> vector<12x512xf32>
    %c4_32 = arith.constant 4 : index
    %c0_33 = arith.constant 0 : index
    %45 = vector.load %arg4[%c4_32, %c0_33] : memref<7x512xf32, #tpu.memory_space<vmem>>, vector<1x512xf32>
    %46 = vector.broadcast %45 : vector<1x512xf32> to vector<12x512xf32>
    %47 = arith.mulf %44, %46 : vector<12x512xf32>
    %48 = tpu.concatenate %43, %39, %47 in 0 : vector<12x512xf32>, vector<12x512xf32>, vector<12x512xf32> -> vector<36x512xf32>
    %49 = arith.truncf %48 : vector<36x512xf32> to vector<36x512xbf16>
    %c0_34 = arith.constant 0 : index
    %c0_35 = arith.constant 0 : index
    %50 = vector.load %arg14[%c0_34, %c0_35] : memref<4x36xbf16, #tpu.memory_space<vmem>>, vector<4x36xbf16>
    %cst_36 = arith.constant dense<0.000000e+00> : vector<4x512xf32>
    %51 = tpu.matmul %50, %49, %cst_36 {dimension_numbers = #tpu.dot_dimension_numbers<[1], [0], [0], [1], [0, 0, 1, 1], [], []>} : vector<4x36xbf16>, vector<36x512xbf16>, vector<4x512xf32> -> vector<4x512xf32>
    %c0_37 = arith.constant 0 : index
    %c0_38 = arith.constant 0 : index
    %52 = vector.load %arg15[%c0_37, %c0_38] : memref<4x1xf32, #tpu.memory_space<vmem>>, vector<4x1xf32>
    %53 = vector.broadcast %52 : vector<4x1xf32> to vector<4x512xf32>
    %54 = arith.addf %51, %53 : vector<4x512xf32>
    %cst_39 = arith.constant 0.000000e+00 : f32
    %55 = vector.broadcast %cst_39 : f32 to vector<4x512xf32>
    %56 = arith.maximumf %54, %55 : vector<4x512xf32>
    %57 = arith.addf %56, %12 : vector<4x512xf32>
    %58 = arith.truncf %57 : vector<4x512xf32> to vector<4x512xbf16>
    %c0_40 = arith.constant 0 : index
    %c0_41 = arith.constant 0 : index
    %59 = vector.load %arg16[%c0_40, %c0_41] : memref<8x4xbf16, #tpu.memory_space<vmem>>, vector<8x4xbf16>
    %cst_42 = arith.constant dense<0.000000e+00> : vector<8x512xf32>
    %60 = tpu.matmul %59, %58, %cst_42 {dimension_numbers = #tpu.dot_dimension_numbers<[1], [0], [0], [1], [0, 0, 1, 1], [], []>} : vector<8x4xbf16>, vector<4x512xbf16>, vector<8x512xf32> -> vector<8x512xf32>
    %61 = arith.truncf %22 : vector<4x512xf32> to vector<4x512xbf16>
    %c0_43 = arith.constant 0 : index
    %c0_44 = arith.constant 0 : index
    %62 = vector.load %arg17[%c0_43, %c0_44] : memref<8x4xbf16, #tpu.memory_space<vmem>>, vector<8x4xbf16>
    %cst_45 = arith.constant dense<0.000000e+00> : vector<8x512xf32>
    %63 = tpu.matmul %62, %61, %cst_45 {dimension_numbers = #tpu.dot_dimension_numbers<[1], [0], [0], [1], [0, 0, 1, 1], [], []>} : vector<8x4xbf16>, vector<4x512xbf16>, vector<8x512xf32> -> vector<8x512xf32>
    %64 = arith.addf %60, %63 : vector<8x512xf32>
    %c0_46 = arith.constant 0 : index
    %c0_47 = arith.constant 0 : index
    %65 = vector.load %arg18[%c0_46, %c0_47] : memref<8x1xf32, #tpu.memory_space<vmem>>, vector<8x1xf32>
    %66 = vector.broadcast %65 : vector<8x1xf32> to vector<8x512xf32>
    %67 = arith.addf %64, %66 : vector<8x512xf32>
    %cst_48 = arith.constant 0.000000e+00 : f32
    %68 = vector.broadcast %cst_48 : f32 to vector<8x512xf32>
    %69 = arith.maximumf %67, %68 : vector<8x512xf32>
    %c1_i32_49 = arith.constant 1 : i32
    %70 = tpu.dynamic_rotate %69 by %c1_i32_49 dim 1 : vector<8x512xf32>, i32 -> vector<8x512xf32>
    %c2_50 = arith.constant 2 : index
    %c0_51 = arith.constant 0 : index
    %71 = vector.load %arg5[%c2_50, %c0_51] : memref<7x512xf32, #tpu.memory_space<vmem>>, vector<1x512xf32>
    %72 = vector.broadcast %71 : vector<1x512xf32> to vector<8x512xf32>
    %73 = arith.mulf %70, %72 : vector<8x512xf32>
    %c511_i32_52 = arith.constant 511 : i32
    %74 = tpu.dynamic_rotate %69 by %c511_i32_52 dim 1 : vector<8x512xf32>, i32 -> vector<8x512xf32>
    %c4_53 = arith.constant 4 : index
    %c0_54 = arith.constant 0 : index
    %75 = vector.load %arg5[%c4_53, %c0_54] : memref<7x512xf32, #tpu.memory_space<vmem>>, vector<1x512xf32>
    %76 = vector.broadcast %75 : vector<1x512xf32> to vector<8x512xf32>
    %77 = arith.mulf %74, %76 : vector<8x512xf32>
    %78 = tpu.concatenate %73, %69, %77 in 0 : vector<8x512xf32>, vector<8x512xf32>, vector<8x512xf32> -> vector<24x512xf32>
    %c16_i32_55 = arith.constant 16 : i32
    %79 = tpu.dynamic_rotate %78 by %c16_i32_55 dim 1 : vector<24x512xf32>, i32 -> vector<24x512xf32>
    %c2_56 = arith.constant 2 : index
    %c0_57 = arith.constant 0 : index
    %80 = vector.load %arg4[%c2_56, %c0_57] : memref<7x512xf32, #tpu.memory_space<vmem>>, vector<1x512xf32>
    %81 = vector.broadcast %80 : vector<1x512xf32> to vector<24x512xf32>
    %82 = arith.mulf %79, %81 : vector<24x512xf32>
    %c496_i32_58 = arith.constant 496 : i32
    %83 = tpu.dynamic_rotate %78 by %c496_i32_58 dim 1 : vector<24x512xf32>, i32 -> vector<24x512xf32>
    %c4_59 = arith.constant 4 : index
    %c0_60 = arith.constant 0 : index
    %84 = vector.load %arg4[%c4_59, %c0_60] : memref<7x512xf32, #tpu.memory_space<vmem>>, vector<1x512xf32>
    %85 = vector.broadcast %84 : vector<1x512xf32> to vector<24x512xf32>
    %86 = arith.mulf %83, %85 : vector<24x512xf32>
    %87 = tpu.concatenate %82, %78, %86 in 0 : vector<24x512xf32>, vector<24x512xf32>, vector<24x512xf32> -> vector<72x512xf32>
    %88 = arith.truncf %87 : vector<72x512xf32> to vector<72x512xbf16>
    %c0_61 = arith.constant 0 : index
    %c0_62 = arith.constant 0 : index
    %89 = vector.load %arg19[%c0_61, %c0_62] : memref<64x72xbf16, #tpu.memory_space<vmem>>, vector<64x72xbf16>
    %cst_63 = arith.constant dense<0.000000e+00> : vector<64x512xf32>
    %90 = tpu.matmul %89, %88, %cst_63 {dimension_numbers = #tpu.dot_dimension_numbers<[1], [0], [0], [1], [0, 0, 1, 1], [], []>} : vector<64x72xbf16>, vector<72x512xbf16>, vector<64x512xf32> -> vector<64x512xf32>
    %c0_64 = arith.constant 0 : index
    %c0_65 = arith.constant 0 : index
    %91 = vector.load %arg20[%c0_64, %c0_65] : memref<64x1xf32, #tpu.memory_space<vmem>>, vector<64x1xf32>
    %92 = vector.broadcast %91 : vector<64x1xf32> to vector<64x512xf32>
    %93 = arith.addf %90, %92 : vector<64x512xf32>
    %cst_66 = arith.constant 0.000000e+00 : f32
    %94 = vector.broadcast %cst_66 : f32 to vector<64x512xf32>
    %95 = arith.maximumf %93, %94 : vector<64x512xf32>
    %c1_i32_67 = arith.constant 1 : i32
    %96 = tpu.dynamic_rotate %95 by %c1_i32_67 dim 1 : vector<64x512xf32>, i32 -> vector<64x512xf32>
    %c2_68 = arith.constant 2 : index
    %c0_69 = arith.constant 0 : index
    %97 = vector.load %arg5[%c2_68, %c0_69] : memref<7x512xf32, #tpu.memory_space<vmem>>, vector<1x512xf32>
    %98 = vector.broadcast %97 : vector<1x512xf32> to vector<64x512xf32>
    %99 = arith.mulf %96, %98 : vector<64x512xf32>
    %c511_i32_70 = arith.constant 511 : i32
    %100 = tpu.dynamic_rotate %95 by %c511_i32_70 dim 1 : vector<64x512xf32>, i32 -> vector<64x512xf32>
    %c4_71 = arith.constant 4 : index
    %c0_72 = arith.constant 0 : index
    %101 = vector.load %arg5[%c4_71, %c0_72] : memref<7x512xf32, #tpu.memory_space<vmem>>, vector<1x512xf32>
    %102 = vector.broadcast %101 : vector<1x512xf32> to vector<64x512xf32>
    %103 = arith.mulf %100, %102 : vector<64x512xf32>
    %104 = tpu.concatenate %99, %95, %103 in 0 : vector<64x512xf32>, vector<64x512xf32>, vector<64x512xf32> -> vector<192x512xf32>
    %c16_i32_73 = arith.constant 16 : i32
    %105 = tpu.dynamic_rotate %104 by %c16_i32_73 dim 1 : vector<192x512xf32>, i32 -> vector<192x512xf32>
    %c2_74 = arith.constant 2 : index
    %c0_75 = arith.constant 0 : index
    %106 = vector.load %arg4[%c2_74, %c0_75] : memref<7x512xf32, #tpu.memory_space<vmem>>, vector<1x512xf32>
    %107 = vector.broadcast %106 : vector<1x512xf32> to vector<192x512xf32>
    %108 = arith.mulf %105, %107 : vector<192x512xf32>
    %c496_i32_76 = arith.constant 496 : i32
    %109 = tpu.dynamic_rotate %104 by %c496_i32_76 dim 1 : vector<192x512xf32>, i32 -> vector<192x512xf32>
    %c4_77 = arith.constant 4 : index
    %c0_78 = arith.constant 0 : index
    %110 = vector.load %arg4[%c4_77, %c0_78] : memref<7x512xf32, #tpu.memory_space<vmem>>, vector<1x512xf32>
    %111 = vector.broadcast %110 : vector<1x512xf32> to vector<192x512xf32>
    %112 = arith.mulf %109, %111 : vector<192x512xf32>
    %113 = tpu.concatenate %108, %104, %112 in 0 : vector<192x512xf32>, vector<192x512xf32>, vector<192x512xf32> -> vector<576x512xf32>
    %114 = arith.truncf %113 : vector<576x512xf32> to vector<576x512xbf16>
    %c0_79 = arith.constant 0 : index
    %c0_80 = arith.constant 0 : index
    %115 = vector.load %arg21[%c0_79, %c0_80] : memref<64x576xbf16, #tpu.memory_space<vmem>>, vector<64x576xbf16>
    %cst_81 = arith.constant dense<0.000000e+00> : vector<64x512xf32>
    %116 = tpu.matmul %115, %114, %cst_81 {dimension_numbers = #tpu.dot_dimension_numbers<[1], [0], [0], [1], [0, 0, 1, 1], [], []>} : vector<64x576xbf16>, vector<576x512xbf16>, vector<64x512xf32> -> vector<64x512xf32>
    %c0_82 = arith.constant 0 : index
    %c0_83 = arith.constant 0 : index
    %117 = vector.load %arg22[%c0_82, %c0_83] : memref<64x1xf32, #tpu.memory_space<vmem>>, vector<64x1xf32>
    %118 = vector.broadcast %117 : vector<64x1xf32> to vector<64x512xf32>
    %119 = arith.addf %116, %118 : vector<64x512xf32>
    %cst_84 = arith.constant 0.000000e+00 : f32
    %120 = vector.broadcast %cst_84 : f32 to vector<64x512xf32>
    %121 = arith.maximumf %119, %120 : vector<64x512xf32>
    %122 = arith.truncf %121 : vector<64x512xf32> to vector<64x512xbf16>
    %c0_85 = arith.constant 0 : index
    %c0_86 = arith.constant 0 : index
    %123 = vector.load %arg23[%c0_85, %c0_86] : memref<1x64xbf16, #tpu.memory_space<vmem>>, vector<1x64xbf16>
    %cst_87 = arith.constant dense<0.000000e+00> : vector<1x512xf32>
    %124 = tpu.matmul %123, %122, %cst_87 {dimension_numbers = #tpu.dot_dimension_numbers<[1], [0], [0], [1], [0, 0, 1, 1], [], []>} : vector<1x64xbf16>, vector<64x512xbf16>, vector<1x512xf32> -> vector<1x512xf32>
    %125 = arith.negf %124 : vector<1x512xf32>
    %126 = math.exp %125 : vector<1x512xf32>
    %cst_88 = arith.constant 1.000000e+00 : f32
    %127 = vector.broadcast %cst_88 : f32 to vector<1x512xf32>
    %128 = arith.addf %127, %126 : vector<1x512xf32>
    %129 = arith.divf %127, %128 : vector<1x512xf32>
    %130 = vector.broadcast %129 : vector<1x512xf32> to vector<8x512xf32>
    %131 = arith.mulf %69, %130 : vector<8x512xf32>
    %132 = arith.mulf %129, %2 : vector<1x512xf32>
    %133 = vector.shape_cast %132 : vector<1x512xf32> to vector<1x1x512xf32>
    %cst_89 = arith.constant dense<0.000000e+00> : vector<1xf32>
    %134 = vector.multi_reduction <add>, %133, %cst_89 [1, 2] : vector<1x1x512xf32> to vector<1xf32>
    %135 = vector.shape_cast %134 : vector<1xf32> to vector<1x1x1xf32>
    %136 = vector.extract %135[0, 0, 0] : f32 from vector<1x1x1xf32>
    %c0_90 = arith.constant 0 : index
    %c0_91 = arith.constant 0 : index
    %137 = memref.load %arg27[%c0_90, %c0_91] : memref<1x4xf32, #tpu.memory_space<smem>>
    memref.store %136, %arg27[%c0_90, %c0_91] : memref<1x4xf32, #tpu.memory_space<smem>>
    %138 = vector.shape_cast %129 : vector<1x512xf32> to vector<1x1x512xf32>
    %cst_92 = arith.constant dense<0.000000e+00> : vector<1xf32>
    %139 = vector.multi_reduction <add>, %138, %cst_92 [1, 2] : vector<1x1x512xf32> to vector<1xf32>
    %140 = vector.shape_cast %139 : vector<1xf32> to vector<1x1x1xf32>
    %141 = vector.extract %140[0, 0, 0] : f32 from vector<1x1x1xf32>
    %c0_93 = arith.constant 0 : index
    %c1 = arith.constant 1 : index
    %142 = memref.load %arg27[%c0_93, %c1] : memref<1x4xf32, #tpu.memory_space<smem>>
    memref.store %141, %arg27[%c0_93, %c1] : memref<1x4xf32, #tpu.memory_space<smem>>
    %143 = vector.shape_cast %2 : vector<1x512xf32> to vector<1x1x512xf32>
    %cst_94 = arith.constant dense<0.000000e+00> : vector<1xf32>
    %144 = vector.multi_reduction <add>, %143, %cst_94 [1, 2] : vector<1x1x512xf32> to vector<1xf32>
    %145 = vector.shape_cast %144 : vector<1xf32> to vector<1x1x1xf32>
    %146 = vector.extract %145[0, 0, 0] : f32 from vector<1x1x1xf32>
    %c0_95 = arith.constant 0 : index
    %c2_96 = arith.constant 2 : index
    %147 = memref.load %arg27[%c0_95, %c2_96] : memref<1x4xf32, #tpu.memory_space<smem>>
    memref.store %146, %arg27[%c0_95, %c2_96] : memref<1x4xf32, #tpu.memory_space<smem>>
    %cst_97 = arith.constant 0.000000e+00 : f32
    %148 = vector.broadcast %cst_97 : f32 to vector<1x512xf32>
    %149 = arith.maximumf %124, %148 : vector<1x512xf32>
    %150 = math.absf %124 : vector<1x512xf32>
    %cst_98 = arith.constant 0.000000e+00 : f32
    %151 = vector.broadcast %cst_98 : f32 to vector<1x512xf32>
    %152 = arith.subf %151, %150 : vector<1x512xf32>
    %153 = math.exp %152 : vector<1x512xf32>
    %cst_99 = arith.constant 1.000000e+00 : f32
    %154 = vector.broadcast %cst_99 : f32 to vector<1x512xf32>
    %155 = arith.addf %154, %153 : vector<1x512xf32>
    %156 = math.log %155 : vector<1x512xf32>
    %157 = arith.addf %149, %156 : vector<1x512xf32>
    %158 = arith.mulf %2, %124 : vector<1x512xf32>
    %159 = arith.subf %157, %158 : vector<1x512xf32>
    %160 = vector.shape_cast %159 : vector<1x512xf32> to vector<1x1x512xf32>
    %cst_100 = arith.constant dense<0.000000e+00> : vector<1xf32>
    %161 = vector.multi_reduction <add>, %160, %cst_100 [1, 2] : vector<1x1x512xf32> to vector<1xf32>
    %162 = vector.shape_cast %161 : vector<1xf32> to vector<1x1x1xf32>
    %163 = vector.extract %162[0, 0, 0] : f32 from vector<1x1x1xf32>
    %c0_101 = arith.constant 0 : index
    %c3 = arith.constant 3 : index
    %164 = memref.load %arg27[%c0_101, %c3] : memref<1x4xf32, #tpu.memory_space<smem>>
    memref.store %163, %arg27[%c0_101, %c3] : memref<1x4xf32, #tpu.memory_space<smem>>
    %cst_102 = arith.constant dense<0xFF800000> : vector<512xf32>
    %165 = vector.multi_reduction <maximumf>, %131, %cst_102 [0] : vector<8x512xf32> to vector<512xf32>
    %166 = vector.shape_cast %165 : vector<512xf32> to vector<1x512xf32>
    %cst_103 = arith.constant dense<0.000000e+00> : vector<512xf32>
    %167 = vector.multi_reduction <add>, %131, %cst_103 [0] : vector<8x512xf32> to vector<512xf32>
    %168 = vector.shape_cast %167 : vector<512xf32> to vector<1x512xf32>
    %cst_104 = arith.constant 8.000000e+00 : f32
    %169 = vector.broadcast %cst_104 : f32 to vector<1x512xf32>
    %170 = arith.divf %168, %169 : vector<1x512xf32>
    %171 = tpu.concatenate %166, %170 in 0 : vector<1x512xf32>, vector<1x512xf32> -> vector<2x512xf32>
    %c3_i32 = arith.constant 3 : i32
    %172 = tpu.dynamic_rotate %171 by %c3_i32 dim 1 : vector<2x512xf32>, i32 -> vector<2x512xf32>
    %c0_105 = arith.constant 0 : index
    %c0_106 = arith.constant 0 : index
    %173 = vector.load %arg5[%c0_105, %c0_106] : memref<7x512xf32, #tpu.memory_space<vmem>>, vector<1x512xf32>
    %174 = vector.broadcast %173 : vector<1x512xf32> to vector<2x512xf32>
    %175 = arith.mulf %172, %174 : vector<2x512xf32>
    %c2_i32 = arith.constant 2 : i32
    %176 = tpu.dynamic_rotate %171 by %c2_i32 dim 1 : vector<2x512xf32>, i32 -> vector<2x512xf32>
    %c1_107 = arith.constant 1 : index
    %c0_108 = arith.constant 0 : index
    %177 = vector.load %arg5[%c1_107, %c0_108] : memref<7x512xf32, #tpu.memory_space<vmem>>, vector<1x512xf32>
    %178 = vector.broadcast %177 : vector<1x512xf32> to vector<2x512xf32>
    %179 = arith.mulf %176, %178 : vector<2x512xf32>
    %c1_i32_109 = arith.constant 1 : i32
    %180 = tpu.dynamic_rotate %171 by %c1_i32_109 dim 1 : vector<2x512xf32>, i32 -> vector<2x512xf32>
    %c2_110 = arith.constant 2 : index
    %c0_111 = arith.constant 0 : index
    %181 = vector.load %arg5[%c2_110, %c0_111] : memref<7x512xf32, #tpu.memory_space<vmem>>, vector<1x512xf32>
    %182 = vector.broadcast %181 : vector<1x512xf32> to vector<2x512xf32>
    %183 = arith.mulf %180, %182 : vector<2x512xf32>
    %c511_i32_112 = arith.constant 511 : i32
    %184 = tpu.dynamic_rotate %171 by %c511_i32_112 dim 1 : vector<2x512xf32>, i32 -> vector<2x512xf32>
    %c4_113 = arith.constant 4 : index
    %c0_114 = arith.constant 0 : index
    %185 = vector.load %arg5[%c4_113, %c0_114] : memref<7x512xf32, #tpu.memory_space<vmem>>, vector<1x512xf32>
    %186 = vector.broadcast %185 : vector<1x512xf32> to vector<2x512xf32>
    %187 = arith.mulf %184, %186 : vector<2x512xf32>
    %c510_i32 = arith.constant 510 : i32
    %188 = tpu.dynamic_rotate %171 by %c510_i32 dim 1 : vector<2x512xf32>, i32 -> vector<2x512xf32>
    %c5 = arith.constant 5 : index
    %c0_115 = arith.constant 0 : index
    %189 = vector.load %arg5[%c5, %c0_115] : memref<7x512xf32, #tpu.memory_space<vmem>>, vector<1x512xf32>
    %190 = vector.broadcast %189 : vector<1x512xf32> to vector<2x512xf32>
    %191 = arith.mulf %188, %190 : vector<2x512xf32>
    %c509_i32 = arith.constant 509 : i32
    %192 = tpu.dynamic_rotate %171 by %c509_i32 dim 1 : vector<2x512xf32>, i32 -> vector<2x512xf32>
    %c6 = arith.constant 6 : index
    %c0_116 = arith.constant 0 : index
    %193 = vector.load %arg5[%c6, %c0_116] : memref<7x512xf32, #tpu.memory_space<vmem>>, vector<1x512xf32>
    %194 = vector.broadcast %193 : vector<1x512xf32> to vector<2x512xf32>
    %195 = arith.mulf %192, %194 : vector<2x512xf32>
    %196 = tpu.concatenate %175, %179, %183, %171, %187, %191, %195 in 0 : vector<2x512xf32>, vector<2x512xf32>, vector<2x512xf32>, vector<2x512xf32>, vector<2x512xf32>, vector<2x512xf32>, vector<2x512xf32> -> vector<14x512xf32>
    %c48_i32 = arith.constant 48 : i32
    %197 = tpu.dynamic_rotate %196 by %c48_i32 dim 1 : vector<14x512xf32>, i32 -> vector<14x512xf32>
    %c0_117 = arith.constant 0 : index
    %c0_118 = arith.constant 0 : index
    %198 = vector.load %arg4[%c0_117, %c0_118] : memref<7x512xf32, #tpu.memory_space<vmem>>, vector<1x512xf32>
    %199 = vector.broadcast %198 : vector<1x512xf32> to vector<14x512xf32>
    %200 = arith.mulf %197, %199 : vector<14x512xf32>
    %c32_i32 = arith.constant 32 : i32
    %201 = tpu.dynamic_rotate %196 by %c32_i32 dim 1 : vector<14x512xf32>, i32 -> vector<14x512xf32>
    %c1_119 = arith.constant 1 : index
    %c0_120 = arith.constant 0 : index
    %202 = vector.load %arg4[%c1_119, %c0_120] : memref<7x512xf32, #tpu.memory_space<vmem>>, vector<1x512xf32>
    %203 = vector.broadcast %202 : vector<1x512xf32> to vector<14x512xf32>
    %204 = arith.mulf %201, %203 : vector<14x512xf32>
    %c16_i32_121 = arith.constant 16 : i32
    %205 = tpu.dynamic_rotate %196 by %c16_i32_121 dim 1 : vector<14x512xf32>, i32 -> vector<14x512xf32>
    %c2_122 = arith.constant 2 : index
    %c0_123 = arith.constant 0 : index
    %206 = vector.load %arg4[%c2_122, %c0_123] : memref<7x512xf32, #tpu.memory_space<vmem>>, vector<1x512xf32>
    %207 = vector.broadcast %206 : vector<1x512xf32> to vector<14x512xf32>
    %208 = arith.mulf %205, %207 : vector<14x512xf32>
    %c496_i32_124 = arith.constant 496 : i32
    %209 = tpu.dynamic_rotate %196 by %c496_i32_124 dim 1 : vector<14x512xf32>, i32 -> vector<14x512xf32>
    %c4_125 = arith.constant 4 : index
    %c0_126 = arith.constant 0 : index
    %210 = vector.load %arg4[%c4_125, %c0_126] : memref<7x512xf32, #tpu.memory_space<vmem>>, vector<1x512xf32>
    %211 = vector.broadcast %210 : vector<1x512xf32> to vector<14x512xf32>
    %212 = arith.mulf %209, %211 : vector<14x512xf32>
    %c480_i32 = arith.constant 480 : i32
    %213 = tpu.dynamic_rotate %196 by %c480_i32 dim 1 : vector<14x512xf32>, i32 -> vector<14x512xf32>
    %c5_127 = arith.constant 5 : index
    %c0_128 = arith.constant 0 : index
    %214 = vector.load %arg4[%c5_127, %c0_128] : memref<7x512xf32, #tpu.memory_space<vmem>>, vector<1x512xf32>
    %215 = vector.broadcast %214 : vector<1x512xf32> to vector<14x512xf32>
    %216 = arith.mulf %213, %215 : vector<14x512xf32>
    %c464_i32 = arith.constant 464 : i32
    %217 = tpu.dynamic_rotate %196 by %c464_i32 dim 1 : vector<14x512xf32>, i32 -> vector<14x512xf32>
    %c6_129 = arith.constant 6 : index
    %c0_130 = arith.constant 0 : index
    %218 = vector.load %arg4[%c6_129, %c0_130] : memref<7x512xf32, #tpu.memory_space<vmem>>, vector<1x512xf32>
    %219 = vector.broadcast %218 : vector<1x512xf32> to vector<14x512xf32>
    %220 = arith.mulf %217, %219 : vector<14x512xf32>
    %221 = tpu.concatenate %200, %204, %208, %196, %212, %216, %220 in 0 : vector<14x512xf32>, vector<14x512xf32>, vector<14x512xf32>, vector<14x512xf32>, vector<14x512xf32>, vector<14x512xf32>, vector<14x512xf32> -> vector<98x512xf32>
    %222 = arith.truncf %221 : vector<98x512xf32> to vector<98x512xbf16>
    %c0_131 = arith.constant 0 : index
    %c0_132 = arith.constant 0 : index
    %223 = vector.load %arg24[%c0_131, %c0_132] : memref<1x98xbf16, #tpu.memory_space<vmem>>, vector<1x98xbf16>
    %cst_133 = arith.constant dense<0.000000e+00> : vector<1x512xf32>
    %224 = tpu.matmul %223, %222, %cst_133 {dimension_numbers = #tpu.dot_dimension_numbers<[1], [0], [0], [1], [0, 0, 1, 1], [], []>} : vector<1x98xbf16>, vector<98x512xbf16>, vector<1x512xf32> -> vector<1x512xf32>
    %c0_134 = arith.constant 0 : index
    %c0_135 = arith.constant 0 : index
    %225 = vector.load %arg25[%c0_134, %c0_135] : memref<1x1xf32, #tpu.memory_space<vmem>>, vector<1x1xf32>
    %226 = vector.broadcast %225 : vector<1x1xf32> to vector<1x512xf32>
    %227 = arith.addf %224, %226 : vector<1x512xf32>
    %228 = arith.negf %227 : vector<1x512xf32>
    %229 = math.exp %228 : vector<1x512xf32>
    %cst_136 = arith.constant 1.000000e+00 : f32
    %230 = vector.broadcast %cst_136 : f32 to vector<1x512xf32>
    %231 = arith.addf %230, %229 : vector<1x512xf32>
    %232 = arith.divf %230, %231 : vector<1x512xf32>
    %233 = vector.broadcast %232 : vector<1x512xf32> to vector<8x512xf32>
    %234 = arith.mulf %131, %233 : vector<8x512xf32>
    %235 = arith.truncf %234 : vector<8x512xf32> to vector<8x512xbf16>
    %c0_137 = arith.constant 0 : index
    %c0_138 = arith.constant 0 : index
    %236 = vector.load %arg26[%c0_137, %c0_138] : memref<8x512xbf16, #tpu.memory_space<vmem>>, vector<8x512xbf16>
    tpu.vector_store %arg26[%c0_137, %c0_138], %235 {strides = array<i32>} : memref<8x512xbf16, #tpu.memory_space<vmem>>, vector<8x512xbf16>,
    return
  }
  func.func @transform_0(%arg0: i32) -> (i32, i32) {
    %c0_i32 = arith.constant 0 : i32
    %c0_i32_0 = arith.constant 0 : i32
    return %c0_i32, %arg0 : i32, i32
  }
  func.func @transform_1(%arg0: i32) -> (i32, i32) {
    %c0_i32 = arith.constant 0 : i32
    %c0_i32_0 = arith.constant 0 : i32
    return %c0_i32, %arg0 : i32, i32
  }
  func.func @transform_2(%arg0: i32) -> (i32, i32) {
    %c0_i32 = arith.constant 0 : i32
    %c0_i32_0 = arith.constant 0 : i32
    return %c0_i32, %arg0 : i32, i32
  }
  func.func @transform_3(%arg0: i32) -> (i32, i32) {
    %c0_i32 = arith.constant 0 : i32
    %c0_i32_0 = arith.constant 0 : i32
    %c0_i32_1 = arith.constant 0 : i32
    return %c0_i32, %c0_i32_0 : i32, i32
  }
  func.func @transform_4(%arg0: i32) -> (i32, i32) {
    %c0_i32 = arith.constant 0 : i32
    %c0_i32_0 = arith.constant 0 : i32
    %c0_i32_1 = arith.constant 0 : i32
    return %c0_i32, %c0_i32_0 : i32, i32
  }
  func.func @transform_5(%arg0: i32) -> (i32, i32) {
    %c0_i32 = arith.constant 0 : i32
    %c0_i32_0 = arith.constant 0 : i32
    %c0_i32_1 = arith.constant 0 : i32
    return %c0_i32, %c0_i32_0 : i32, i32
  }
  func.func @transform_6(%arg0: i32) -> (i32, i32) {
    %c0_i32 = arith.constant 0 : i32
    %c0_i32_0 = arith.constant 0 : i32
    %c0_i32_1 = arith.constant 0 : i32
    return %c0_i32, %c0_i32_0 : i32, i32
  }
  func.func @transform_7(%arg0: i32) -> (i32, i32) {
    %c0_i32 = arith.constant 0 : i32
    %c0_i32_0 = arith.constant 0 : i32
    %c0_i32_1 = arith.constant 0 : i32
    return %c0_i32, %c0_i32_0 : i32, i32
  }
  func.func @transform_8(%arg0: i32) -> (i32, i32) {
    %c0_i32 = arith.constant 0 : i32
    %c0_i32_0 = arith.constant 0 : i32
    %c0_i32_1 = arith.constant 0 : i32
    return %c0_i32, %c0_i32_0 : i32, i32
  }
  func.func @transform_9(%arg0: i32) -> (i32, i32) {
    %c0_i32 = arith.constant 0 : i32
    %c0_i32_0 = arith.constant 0 : i32
    %c0_i32_1 = arith.constant 0 : i32
    return %c0_i32, %c0_i32_0 : i32, i32
  }
  func.func @transform_10(%arg0: i32) -> (i32, i32) {
    %c0_i32 = arith.constant 0 : i32
    %c0_i32_0 = arith.constant 0 : i32
    %c0_i32_1 = arith.constant 0 : i32
    return %c0_i32, %c0_i32_0 : i32, i32
  }
  func.func @transform_11(%arg0: i32) -> (i32, i32) {
    %c0_i32 = arith.constant 0 : i32
    %c0_i32_0 = arith.constant 0 : i32
    %c0_i32_1 = arith.constant 0 : i32
    return %c0_i32, %c0_i32_0 : i32, i32
  }
  func.func @transform_12(%arg0: i32) -> (i32, i32) {
    %c0_i32 = arith.constant 0 : i32
    %c0_i32_0 = arith.constant 0 : i32
    %c0_i32_1 = arith.constant 0 : i32
    return %c0_i32, %c0_i32_0 : i32, i32
  }
  func.func @transform_13(%arg0: i32) -> (i32, i32) {
    %c0_i32 = arith.constant 0 : i32
    %c0_i32_0 = arith.constant 0 : i32
    %c0_i32_1 = arith.constant 0 : i32
    return %c0_i32, %c0_i32_0 : i32, i32
  }
  func.func @transform_14(%arg0: i32) -> (i32, i32) {
    %c0_i32 = arith.constant 0 : i32
    %c0_i32_0 = arith.constant 0 : i32
    %c0_i32_1 = arith.constant 0 : i32
    return %c0_i32, %c0_i32_0 : i32, i32
  }
  func.func @transform_15(%arg0: i32) -> (i32, i32) {
    %c0_i32 = arith.constant 0 : i32
    %c0_i32_0 = arith.constant 0 : i32
    %c0_i32_1 = arith.constant 0 : i32
    return %c0_i32, %c0_i32_0 : i32, i32
  }
  func.func @transform_16(%arg0: i32) -> (i32, i32) {
    %c0_i32 = arith.constant 0 : i32
    %c0_i32_0 = arith.constant 0 : i32
    %c0_i32_1 = arith.constant 0 : i32
    return %c0_i32, %c0_i32_0 : i32, i32
  }
  func.func @transform_17(%arg0: i32) -> (i32, i32) {
    %c0_i32 = arith.constant 0 : i32
    %c0_i32_0 = arith.constant 0 : i32
    %c0_i32_1 = arith.constant 0 : i32
    return %c0_i32, %c0_i32_0 : i32, i32
  }
  func.func @transform_18(%arg0: i32) -> (i32, i32) {
    %c0_i32 = arith.constant 0 : i32
    %c0_i32_0 = arith.constant 0 : i32
    %c0_i32_1 = arith.constant 0 : i32
    return %c0_i32, %c0_i32_0 : i32, i32
  }
  func.func @transform_19(%arg0: i32) -> (i32, i32) {
    %c0_i32 = arith.constant 0 : i32
    %c0_i32_0 = arith.constant 0 : i32
    %c0_i32_1 = arith.constant 0 : i32
    return %c0_i32, %c0_i32_0 : i32, i32
  }
  func.func @transform_20(%arg0: i32) -> (i32, i32) {
    %c0_i32 = arith.constant 0 : i32
    %c0_i32_0 = arith.constant 0 : i32
    %c0_i32_1 = arith.constant 0 : i32
    return %c0_i32, %c0_i32_0 : i32, i32
  }
  func.func @transform_21(%arg0: i32) -> (i32, i32) {
    %c0_i32 = arith.constant 0 : i32
    %c0_i32_0 = arith.constant 0 : i32
    %c0_i32_1 = arith.constant 0 : i32
    return %c0_i32, %c0_i32_0 : i32, i32
  }
  func.func @transform_22(%arg0: i32) -> (i32, i32) {
    %c0_i32 = arith.constant 0 : i32
    %c0_i32_0 = arith.constant 0 : i32
    %c0_i32_1 = arith.constant 0 : i32
    return %c0_i32, %c0_i32_0 : i32, i32
  }
  func.func @transform_23(%arg0: i32) -> (i32, i32) {
    %c0_i32 = arith.constant 0 : i32
    %c0_i32_0 = arith.constant 0 : i32
    %c0_i32_1 = arith.constant 0 : i32
    return %c0_i32, %c0_i32_0 : i32, i32
  }
  func.func @transform_24(%arg0: i32) -> (i32, i32) {
    %c0_i32 = arith.constant 0 : i32
    %c0_i32_0 = arith.constant 0 : i32
    %c0_i32_1 = arith.constant 0 : i32
    return %c0_i32, %c0_i32_0 : i32, i32
  }
  func.func @transform_25(%arg0: i32) -> (i32, i32) {
    %c0_i32 = arith.constant 0 : i32
    %c0_i32_0 = arith.constant 0 : i32
    return %c0_i32, %arg0 : i32, i32
  }
  func.func @transform_26(%arg0: i32) -> (i32, i32) {
    %c0_i32 = arith.constant 0 : i32
    %c0_i32_0 = arith.constant 0 : i32
    return %arg0, %c0_i32 : i32, i32
  }
}

</mosaic_0001>

<bundles_post_ra>
// kernel: tpu_custom_call.1
= control target key start
LH: loop header
LB: loop body
LE: loop exit
PB: predicated region body
PF: predicated region fallthrough
CT: control target
= control target key end

     0   :  { %s9742_s0 = inlined_call_operand.vmem [shape: bf16[8,512], index: 0, kind: input, shape index: {}]   ;;  %s9743_s1 = inlined_call_operand.vmem [shape: bf16[8,512], index: 1, kind: input, shape index: {}]   ;;  %s9744_s2 = inlined_call_operand.vmem [shape: f32[1,512], index: 2, kind: input, shape index: {}]   ;;  %s9745_s3 = inlined_call_operand.vmem [shape: f32[7,512], index: 3, kind: input, shape index: {}]   ;;  %s9746_s4 = inlined_call_operand.vmem [shape: f32[7,512], index: 4, kind: input, shape index: {}]   ;;  %s9747_s5 = inlined_call_operand.vmem [shape: bf16[4,8], index: 5, kind: input, shape index: {}]   ;;  %s9748_s6 = inlined_call_operand.vmem [shape: bf16[4,8], index: 6, kind: input, shape index: {}]   ;;  %s9749_s7 = inlined_call_operand.vmem [shape: f32[4,1], index: 7, kind: input, shape index: {}]   ;;  %s9750_s8 = inlined_call_operand.vmem [shape: bf16[4,8], index: 8, kind: input, shape index: {}]   ;;  %s9751_s9 = inlined_call_operand.vmem [shape: bf16[4,8], index: 9, kind: input, shape index: {}]   ;;  %s9752_s10 = inlined_call_operand.vmem [shape: f32[4,1], index: 10, kind: input, shape index: {}]   ;;  %s9753_s11 = inlined_call_operand.vmem [shape: bf16[4,4], index: 11, kind: input, shape index: {}]   ;;  %s9754_s12 = inlined_call_operand.vmem [shape: f32[4,1], index: 12, kind: input, shape index: {}]   ;;  %s9755_s13 = inlined_call_operand.vmem [shape: bf16[4,36], index: 13, kind: input, shape index: {}]   ;;  %s9756_s14 = inlined_call_operand.vmem [shape: f32[4,1], index: 14, kind: input, shape index: {}]   ;;  %s9757_s15 = inlined_call_operand.vmem [shape: bf16[8,4], index: 15, kind: input, shape index: {}]   ;;  %s9758_s16 = inlined_call_operand.vmem [shape: bf16[8,4], index: 16, kind: input, shape index: {}]   ;;  %s9759_s17 = inlined_call_operand.vmem [shape: f32[8,1], index: 17, kind: input, shape index: {}]   ;;  %s9760_s18 = inlined_call_operand.vmem [shape: bf16[64,72], index: 18, kind: input, shape index: {}]   ;;  %s9761_s19 = inlined_call_operand.vmem [shape: f32[64,1], index: 19, kind: input, shape index: {}]   ;;  %s9762_s20 = inlined_call_operand.hbm [shape: bf16[64,576], index: 20, kind: input, shape index: {}]   ;;  %s9763_s21 = inlined_call_operand.vmem [shape: f32[64,1], index: 21, kind: input, shape index: {}]   ;;  %s9764_s22 = inlined_call_operand.vmem [shape: bf16[1,64], index: 22, kind: input, shape index: {}]   ;;  %s9765_s23 = inlined_call_operand.vmem [shape: bf16[1,98], index: 23, kind: input, shape index: {}]   ;;  %s9766_s24 = inlined_call_operand.<no memory space> [shape: f32[1,1], index: 24, kind: input, shape index: {}]   ;;  %s9767_s25 = inlined_call_operand.hbm [shape: bf16[8,512], index: 25, kind: output, shape index: {0}]   ;;  %s9768_s26 = inlined_call_operand.hbm [shape: f32[1,4], index: 26, kind: output, shape index: {1}]  }
   0x1   :  { %10107 = sst [smem:[#allocation187_spill]] %s9742_s0  ;;  %v32_v0 = vstv %s9766_s24 }
   0x2   :  { %10108 = sst [smem:[#allocation188_spill]] %s9743_s1  ;;  %33 = vst [vmem:[#allocation2] sm:$0x1] %v32_v0 }
   0x3   :  { %10109 = sst [smem:[#allocation189_spill]] %s9744_s2 }
   0x4   :  { %10110 = sst [smem:[#allocation190_spill]] %s9745_s3 }
   0x5   :  { %10111 = sst [smem:[#allocation191_spill]] %s9746_s4 }
   0x6   :  { %10112 = sst [smem:[#allocation192_spill]] %s9747_s5 }
   0x7   :  { %10113 = sst [smem:[#allocation193_spill]] %s9748_s6 }
   0x8   :  { %10114 = sst [smem:[#allocation194_spill]] %s9749_s7 }
   0x9   :  { %10115 = sst [smem:[#allocation195_spill]] %s9750_s8 }
   0xa   :  { %10116 = sst [smem:[#allocation196_spill]] %s9751_s9 }
   0xb   :  { %10117 = sst [smem:[#allocation197_spill]] %s9752_s10 }
   0xc   :  { %34 = vsyncpa [#allocation4], 0 }
   0xd   :  { %35 = vsyncpa [#allocation5], 0 }
   0xe   :  { %36 = vsyncpa [#allocation6], 0  ;;  %s81_s8 = sshll.u32 %s9762_s20, 4  ;;  %s4929_s4 = smov [#allocation3]   ;;  %s82_s8 = int_to_ptr.hbm [resolvable:$true] %s81_s8 }
   0xf   :  { %s83_s29 = sshll.u32 %s4929_s4, 4  ;;  %s4930_s0 = smov 320   ;;  %s84_s29 = int_to_ptr.vmem [resolvable:$true] %s83_s29 }
  0x10   :  { %s4931_s9 = smov 20  }
  0x11   :  { %89 = dma.hbm_to_vmem [thread:$0]  %s82_s8, 2560, %s84_s29, [#allocation4], %s4930_s0, %s4930_s0, %s4931_s9  }
  0x12   :  { %4923 = dma.done.wait [#allocation4], 2560  }
  0x13   :  { %4924 = vsyncadd [#allocation4], 4294964736  ;;  %v4932_v1 = vmov 0   ;;  %s10118_s2 = sld [smem:[#allocation188_spill]]  ;;  %vm124_vm0 = vcmask 1043456   ;;  %vm120_vm1 = vcmask 64512  }
  0x14   :  { %4810 = vset.pattern.permute.xlu0 %v4932_v1  ;;  %4811 = vset.pattern.permute.xlu2 %v4932_v1  ;;  %s10119_s1 = sld [smem:[#allocation187_spill]]  ;;  %v411_v32 = vld [vmem:[%s9754_s12] sm:$0xf]  ;;  %vm421_vm2 = vcmask 1041408   ;;  %vm417_vm3 = vcmask 31744   ;;  %s4934_s28 = smov 127  }
  0x15   :  { %4812 = vset.pattern.permute.xlu1 %v4932_v1  ;;  %s10120_s8 = sld [smem:[#allocation194_spill]]  ;;  %v410_v1 = vld [vmem:[%s9753_s11] sm:$0x3]  ;;  %s4933_s11 = smov 1   ;;  %vm703_vm8 = vcmask 293888   ;;  %vm1161_vm9 = vcmask 588800  }
  0x16   :  { %s10121_s0 = sld [smem:[#allocation193_spill]]  ;;  %s4936_s30 = smov 16   ;;  %vm2674_vm10 = vcmask 523264   ;;  %vm3468_vm11 = vcmask 1040384  }
  0x17   :  { %s10122_s5 = sld [smem:[#allocation192_spill]]  ;;  %s4941_s3 = smov 2  }
  0x18   :  { %s10123_s10 = sld [smem:[#allocation196_spill]]  ;;  %s4943_s20 = smov 96  }
  0x19   :  { %v105_v2 = vld [vmem:[%s10118_s2] sm:$0xff]  ;;  %v106_v3 = vld [vmem:[%s10118_s2 + $0x8] sm:$0xff]  ;;  %s10124_s27 = sld [smem:[#allocation195_spill]] }
  0x1a   :  { %v112_v4 = vunpack.c.l.b16 %v105_v2  ;;  %v113_v5 = vunpack.c.h.b16 %v105_v2  ;;  %v114_v6 = vunpack.c.l.b16 %v106_v3  ;;  %v115_v7 = vunpack.c.h.b16 %v106_v3  ;;  %v103_v8 = vld [vmem:[%s10119_s1] sm:$0xff]  ;;  %v104_v9 = vld [vmem:[%s10119_s1 + $0x8] sm:$0xff]  ;;  %s10125_s29 = sld [smem:[#allocation191_spill]]  ;;  %s4938_s1 = smov 125  }
  0x1b   :  { %v191_v10 = vunpack.c.l.b16 %v103_v8  ;;  %v192_v11 = vunpack.c.h.b16 %v103_v8  ;;  %v193_v12 = vunpack.c.l.b16 %v104_v9  ;;  %v194_v13 = vunpack.c.h.b16 %v104_v9  ;;  %v266_v14 = vld [vmem:[%s10120_s8] sm:$0xf]  ;;  %s10129_s8 = sld [smem:[#allocation190_spill]] }
  0x1c   :  { %v116_v15 = vpack.c.b16 %v112_v4, %v112_v4  ;;  %v117_v16 = vpack.c.b16 %v113_v5, %v113_v5  ;;  %v118_v17 = vpack.c.b16 %v114_v6, %v114_v6  ;;  %v119_v18 = vpack.c.b16 %v115_v7, %v115_v7  ;;  %269 = vperm.xlu0 %4810, %v266_v14   ;;  %v109_v27 = vld [vmem:[%s10121_s0] sm:$0x3]  ;;  %s4935_s0 = smov 112   ;;  %s10763_s6 = sld [smem:[#allocation189_spill]] }
  0x1d   :  { %v195_v19 = vpack.c.b16 %v191_v10, %v191_v10  ;;  %v196_v20 = vpack.c.b16 %v192_v11, %v192_v11  ;;  %v197_v21 = vpack.c.b16 %v193_v12, %v193_v12  ;;  %v198_v22 = vpack.c.b16 %v194_v13, %v194_v13  ;;  %v108_v33 = vld [vmem:[%s10122_s5] sm:$0x3]  ;;  %s4946_s5 = smov [#allocation8]  }
  0x1e   :  { %v126_v23 = vsel %vm124_vm0, %v116_v15, 0  ;;  %v129_v24 = vsel %vm124_vm0, %v117_v16, 0  ;;  %v132_v25 = vsel %vm124_vm0, %v118_v17, 0  ;;  %v135_v26 = vsel %vm124_vm0, %v119_v18, 0  ;;  %v281_v34 = vld [vmem:[%s10123_s10] sm:$0x3] }
  0x1f   :  { %144 = vmatpush.bf16.msra.mxu0 %v126_v23  ;;  %157 = vmatpush.bf16.msra.mxu1 %v129_v24  ;;  %v203_v28 = vsel %vm124_vm0, %v195_v19, 0  ;;  %v206_v29 = vsel %vm124_vm0, %v196_v20, 0  ;;  %v209_v30 = vsel %vm124_vm0, %v197_v21, 0  ;;  %v212_v31 = vsel %vm124_vm0, %v198_v22, 0  ;;  %v280_v35 = vld [vmem:[%s10124_s27] sm:$0x3] }
  0x20   :  { %170 = vmatpush.bf16.msra.mxu2 %v132_v25  ;;  %183 = vmatpush.bf16.msra.mxu3 %v135_v26  ;;  %s10128_s10 = sld [smem:[#allocation197_spill]]  ;;  %s4940_s27 = smov 3  }
  0x22   :  { %4569 = vmatmul.msk.bf16.vlgmr.msra.gmra.mxu0 %vm120_vm1, %v109_v27  ;;  %4570 = vmatmul.msk.bf16.vlgmr.msra.gmra.mxu1 %vm120_vm1, %v109_v27 }
  0x23   :  { %221 = vmatpush.bf16.msrb.mxu0 %v203_v28  ;;  %234 = vmatpush.bf16.msrb.mxu1 %v206_v29 }
  0x24   :  { %4571 = vmatmul.msk.bf16.vlgmr.msra.gmra.mxu2 %vm120_vm1, %v109_v27  ;;  %4572 = vmatmul.msk.bf16.vlgmr.msra.gmra.mxu3 %vm120_vm1, %v109_v27 }
  0x25   :  { %247 = vmatpush.bf16.msrb.mxu2 %v209_v30  ;;  %260 = vmatpush.bf16.msrb.mxu3 %v212_v31 }
  0x26   :  { %414 = vperm.xlu0 %4810, %v411_v32  }
  0x27   :  { %292 = vmatpush.bf16.msra.mxu0 %v126_v23  ;;  %305 = vmatpush.bf16.msra.mxu1 %v129_v24 }
  0x29   :  { %318 = vmatpush.bf16.msra.mxu2 %v132_v25  ;;  %331 = vmatpush.bf16.msra.mxu3 %v135_v26 }
  0x32   :  { %4573 = vmatmul.msk.bf16.vlgmr.msrb.gmra.mxu0 %vm120_vm1, %v108_v33  ;;  %4574 = vmatmul.msk.bf16.vlgmr.msrb.gmra.mxu1 %vm120_vm1, %v108_v33 }
  0x33   :  { %347 = vmatpush.bf16.msrb.mxu0 %v203_v28  ;;  %360 = vmatpush.bf16.msrb.mxu1 %v206_v29 }
  0x34   :  { %4575 = vmatmul.msk.bf16.vlgmr.msrb.gmra.mxu2 %vm120_vm1, %v108_v33  ;;  %4576 = vmatmul.msk.bf16.vlgmr.msrb.gmra.mxu3 %vm120_vm1, %v108_v33 }
  0x35   :  { %373 = vmatpush.bf16.msrb.mxu2 %v209_v30  ;;  %386 = vmatpush.bf16.msrb.mxu3 %v212_v31 }
  0x42   :  { %4577 = vmatmul.msk.bf16.vlgmr.msra.gmra.mxu0 %vm120_vm1, %v281_v34  ;;  %4578 = vmatmul.msk.bf16.vlgmr.msra.gmra.mxu1 %vm120_vm1, %v281_v34 }
  0x44   :  { %4579 = vmatmul.msk.bf16.vlgmr.msra.gmra.mxu2 %vm120_vm1, %v281_v34  ;;  %4580 = vmatmul.msk.bf16.vlgmr.msra.gmra.mxu3 %vm120_vm1, %v281_v34 }
  0x52   :  { %4581 = vmatmul.msk.bf16.vlgmr.msrb.gmra.mxu0 %vm120_vm1, %v280_v35  ;;  %4582 = vmatmul.msk.bf16.vlgmr.msrb.gmra.mxu1 %vm120_vm1, %v280_v35 }
  0x54   :  { %4583 = vmatmul.msk.bf16.vlgmr.msrb.gmra.mxu2 %vm120_vm1, %v280_v35  ;;  %4584 = vmatmul.msk.bf16.vlgmr.msrb.gmra.mxu3 %vm120_vm1, %v280_v35 }
  0x8e   :  { %v270_v48 = vpop.permute.xlu0 %269 }
  0x98   :  { %v415_v30 = vpop.permute.xlu0 %414 }
  0x9f   :  { %v146_v36 = vpop.f32.mrf.mxu0  ;;  %v159_v37 = vpop.f32.mrf.mxu1 }
  0xa7   :  { %v172_v38 = vpop.f32.mrf.mxu2  ;;  %v185_v39 = vpop.f32.mrf.mxu3 }
  0xa8   :  { %v148_v40 = vpop.f32.mrf.mxu0  ;;  %v161_v41 = vpop.f32.mrf.mxu1 }
  0xaf   :  { %v174_v42 = vpop.f32.mrf.mxu2  ;;  %v187_v43 = vpop.f32.mrf.mxu3 }
  0xb0   :  { %v223_v44 = vpop.f32.mrf.mxu0  ;;  %v236_v45 = vpop.f32.mrf.mxu1 }
  0xb1   :  { %v224_v46 = vadd.f32 %v223_v44, %v146_v36  ;;  %v237_v47 = vadd.f32 %v236_v45, %v159_v37 }
  0xb3   :  { %v272_v49 = vadd.f32 %v270_v48, %v224_v46  ;;  %v273_v50 = vadd.f32 %v270_v48, %v237_v47  ;;  %v498_v47 = vlaneseq }
  0xb5   :  { %v5143_v51 = vmax.f32 %v272_v49, 0.0  ;;  %v5145_v52 = vmax.f32 %v273_v50, 0.0  ;;  %v5198_v49 = vand.u32 127, %v498_v47  ;;  %v4590_v50 = vld [vmem:[%s10125_s29 + $0x4] ss:$8 sm:$0xf] }
  0xb6   :  { %v697_v47 = vld [vmem:[%s9756_s14] sm:$0xf] }
  0xb7   :  { %v406_v53 = vpack.c.bf16 %v5143_v51, %v5143_v51  ;;  %v407_v54 = vpack.c.bf16 %v5145_v52, %v5145_v52  ;;  %v249_v55 = vpop.f32.mrf.mxu2  ;;  %v262_v56 = vpop.f32.mrf.mxu3  ;;  %vm528_vm4 = vcmp.lt.s32.totalorder %v5198_v49, 127  ;;  %vm500_vm5 = vcmp.lt.s32.totalorder %v5198_v49, 1 }
  0xb8   :  { %v250_v57 = vadd.f32 %v249_v55, %v172_v38  ;;  %v263_v58 = vadd.f32 %v262_v56, %v185_v39  ;;  %v225_v59 = vpop.f32.mrf.mxu0  ;;  %v238_v60 = vpop.f32.mrf.mxu1  ;;  %v5208_v56 = vperm.slane %v4590_v50, 3  ;;  %vm624_vm6 = vcmp.lt.s32.totalorder %v5198_v49, 112 }
  0xb9   :  { %v423_v61 = vsel %vm421_vm2, %v406_v53, 0  ;;  %v426_v62 = vsel %vm421_vm2, %v407_v54, 0  ;;  %v5204_v53 = vperm.slane %v4590_v50, 2  ;;  %vm580_vm7 = vcmp.lt.s32.totalorder %v5198_v49, 16 }
  0xba   :  { %v274_v63 = vadd.f32 %v270_v48, %v250_v57  ;;  %v275_v0 = vadd.f32 %v270_v48, %v263_v58  ;;  %441 = vmatpush.bf16.msra.mxu0 %v423_v61  ;;  %454 = vmatpush.bf16.msra.mxu1 %v426_v62  ;;  %v5216_v62 = vperm.slane %v4590_v50, 0 }
  0xbb   :  { %10126 = vst [vmem:[#allocation12_spill] sm:$0xff] %v5204_v53 }
  0xbc   :  { %v5156_v2 = vmax.f32 %v274_v63, 0.0  ;;  %v5158_v3 = vmax.f32 %v275_v0, 0.0  ;;  %v4589_v0 = vld [vmem:[%s10125_s29 + $0x2] ss:$8 sm:$0xf] }
  0xbd   :  { %4585 = vmatmul.msk.bf16.vlgmr.msra.gmra.mxu0 %vm417_vm3, %v410_v1  ;;  %4586 = vmatmul.msk.bf16.vlgmr.msra.gmra.mxu1 %vm417_vm3, %v410_v1 }
  0xbe   :  { %v408_v4 = vpack.c.bf16 %v5156_v2, %v5156_v2  ;;  %v409_v5 = vpack.c.bf16 %v5158_v3, %v5158_v3 }
  0xbf   :  { %v264_v6 = vpop.f32.mrf.mxu3  ;;  %v251_v7 = vpop.f32.mrf.mxu2 }
  0xc0   :  { %v429_v8 = vsel %vm421_vm2, %v408_v4, 0  ;;  %v432_v9 = vsel %vm421_vm2, %v409_v5, 0  ;;  %v294_v10 = vpop.f32.mrf.mxu0  ;;  %v307_v11 = vpop.f32.mrf.mxu1  ;;  %v5226_v5 = vperm.slane %v4589_v0, 0  ;;  %v5228_v6 = vperm.slane %v4589_v0, 3 }
  0xc1   :  { %467 = vmatpush.bf16.msra.mxu2 %v429_v8  ;;  %480 = vmatpush.bf16.msra.mxu3 %v432_v9  ;;  %v5232_v7 = vperm.slane %v4590_v50, 1  ;;  %v1095_v50 = vld [vmem:[%s9761_s19 + $0x10] sm:$0xff] }
  0xc4   :  { %4587 = vmatmul.msk.bf16.vlgmr.msra.gmra.mxu2 %vm417_vm3, %v410_v1  ;;  %4588 = vmatmul.msk.bf16.vlgmr.msra.gmra.mxu3 %vm417_vm3, %v410_v1 }
  0xc7   :  { %v320_v12 = vpop.f32.mrf.mxu2  ;;  %v333_v13 = vpop.f32.mrf.mxu3 }
  0xc8   :  { %v296_v14 = vpop.f32.mrf.mxu0  ;;  %v309_v15 = vpop.f32.mrf.mxu1 }
  0xc9   :  { %v5241_v14 = vperm.slane %v4589_v0, 1  ;;  %v5243_v15 = vperm.slane %v4589_v0, 2 }
  0xcb   :  { %10127 = vst [vmem:[#allocation13_spill] sm:$0xff] %v5243_v15 }
  0xcf   :  { %v322_v16 = vpop.f32.mrf.mxu2  ;;  %v335_v17 = vpop.f32.mrf.mxu3 }
  0xd0   :  { %v349_v18 = vpop.f32.mrf.mxu0  ;;  %v362_v19 = vpop.f32.mrf.mxu1 }
  0xd1   :  { %v5170_v20 = vadd.f32 %v349_v18, %v294_v10  ;;  %v5172_v21 = vadd.f32 %v362_v19, %v307_v11 }
  0xd7   :  { %v375_v22 = vpop.f32.mrf.mxu2  ;;  %v388_v23 = vpop.f32.mrf.mxu3 }
  0xd8   :  { %v351_v24 = vpop.f32.mrf.mxu0  ;;  %v364_v25 = vpop.f32.mrf.mxu1  ;;  %v5174_v26 = vadd.f32 %v375_v22, %v320_v12  ;;  %v5176_v27 = vadd.f32 %v388_v23, %v333_v13 }
  0xdf   :  { %v377_v28 = vpop.f32.mrf.mxu2  ;;  %v390_v29 = vpop.f32.mrf.mxu3 }
 0x13a   :  { %v443_v31 = vpop.f32.mrf.mxu0  ;;  %v456_v32 = vpop.f32.mrf.mxu1 }
 0x13b   :  { %v444_v33 = vadd.f32 %v443_v31, %v415_v30  ;;  %v457_v35 = vadd.f32 %v456_v32, %v415_v30 }
 0x13d   :  { %v5178_v34 = vmax.f32 %v444_v33, 0.0  ;;  %v5184_v38 = vmax.f32 %v457_v35, 0.0 }
 0x13f   :  { %490 = vrot.lane.b32.xlu0 %v5178_v34, %s4933_s11  ;;  %520 = vrot.lane.b32.xlu1 %v5178_v34, %s4934_s28  ;;  %v552_v8 = vrot.slane %v5178_v34, 4  ;;  %v553_v16 = vrot.slane %v5184_v38, 4 }
 0x142   :  { %v445_v36 = vpop.f32.mrf.mxu0  ;;  %v458_v37 = vpop.f32.mrf.mxu1 }
 0x147   :  { %v469_v39 = vpop.f32.mrf.mxu2  ;;  %v482_v40 = vpop.f32.mrf.mxu3  ;;  %522 = vrot.lane.b32.xlu1 %v5184_v38, %s4934_s28 }
 0x148   :  { %v470_v41 = vadd.f32 %v469_v39, %v415_v30  ;;  %v483_v42 = vadd.f32 %v482_v40, %v415_v30 }
 0x14a   :  { %v5188_v43 = vmax.f32 %v470_v41, 0.0  ;;  %v489_v44 = vmax.f32 %v483_v42, 0.0 }
 0x14c   :  { %524 = vrot.lane.b32.xlu2 %v5188_v43, %s4934_s28  ;;  %496 = vrot.lane.b32.xlu0 %v489_v44, %s4933_s11  ;;  %v555_v17 = vrot.slane %v489_v44, 4  ;;  %v554_v22 = vrot.slane %v5188_v43, 4 }
 0x14f   :  { %492 = vrot.lane.b32.xlu1 %v5184_v38, %s4933_s11  ;;  %v484_v45 = vpop.f32.mrf.mxu3  ;;  %v471_v46 = vpop.f32.mrf.mxu2 }
 0x154   :  { %526 = vrot.lane.b32.xlu2 %v489_v44, %s4934_s28 }
 0x15c   :  { %494 = vrot.lane.b32.xlu2 %v5188_v43, %s4933_s11 }
 0x1a6   :  { %v525_v48 = vpop.permute.xlu2 %524 }
 0x1ae   :  { %v527_v54 = vpop.permute.xlu2 %526 }
 0x1af   :  { %v529_v55 = vsel %vm528_vm4, %v525_v48, %v527_v54 }
 0x1b0   :  { %v546_v57 = vmul.f32 %v5204_v53, %v529_v55 }
 0x1b1   :  { %v521_v58 = vpop.permute.xlu1 %520  ;;  %v491_v61 = vpop.permute.xlu0 %490 }
 0x1b2   :  { %618 = vrot.lane.b32.xlu2 %v546_v57, %s4935_s0  ;;  %v532_v59 = vsel %vm528_vm4, %v527_v54, %v521_v58  ;;  %v668_v41 = vrot.slane %v546_v57, 4  ;;  %v1098_v54 = vld [vmem:[%s9761_s19 + $0x28] sm:$0xff] }
 0x1b3   :  { %v547_v60 = vmul.f32 %v5208_v56, %v532_v59  ;;  %v5328_v59 = vld [vmem:[%s10129_s8 + $0x4] ss:$8 sm:$0xf] }
 0x1b5   :  { %622 = vrot.lane.b32.xlu0 %v547_v60, %s4935_s0  ;;  %v670_v23 = vrot.slane %v547_v60, 4 }
 0x1b6   :  { %v495_v9 = vpop.permute.xlu2 %494 }
 0x1b9   :  { %v523_v63 = vpop.permute.xlu1 %522 }
 0x1ba   :  { %574 = vrot.lane.b32.xlu2 %v546_v57, %s4936_s30  ;;  %v531_v1 = vsel %vm528_vm4, %v521_v58, %v523_v63  ;;  %v530_v10 = vsel %vm528_vm4, %v523_v63, %v525_v48  ;;  %v392_v48 = vld [vmem:[%s10128_s10] sm:$0xf] }
 0x1bb   :  { %v544_v4 = vmul.f32 %v5216_v62, %v531_v1  ;;  %v545_v28 = vmul.f32 %v5232_v7, %v530_v10 }
 0x1bd   :  { %578 = vrot.lane.b32.xlu0 %v547_v60, %s4936_s30  ;;  %610 = vrot.lane.b32.xlu1 %v544_v4, %s4935_s0  ;;  %v664_v24 = vrot.slane %v544_v4, 4  ;;  %v666_v44 = vrot.slane %v545_v28, 4  ;;  %v5332_v60 = vperm.slane %v5328_v59, 2 }
 0x1be   :  { %v497_v11 = vpop.permute.xlu0 %496 }
 0x1bf   :  { %v501_v12 = vsel %vm500_vm5, %v495_v9, %v497_v11  ;;  %v504_v13 = vsel %vm500_vm5, %v497_v11, %v491_v61  ;;  %10130 = vst [vmem:[#allocation14_spill] sm:$0xff] %v5332_v60 }
 0x1c0   :  { %v516_v18 = vmul.f32 %v5226_v5, %v504_v13  ;;  %v519_v19 = vmul.f32 %v5228_v6, %v501_v12 }
 0x1c1   :  { %v493_v25 = vpop.permute.xlu1 %492 }
 0x1c2   :  { %v502_v29 = vsel %vm500_vm5, %v493_v25, %v495_v9  ;;  %v503_v30 = vsel %vm500_vm5, %v491_v61, %v493_v25  ;;  %v5255_v31 = vsel %vm124_vm0, %v519_v19, %v555_v17  ;;  %v5258_v32 = vsel %vm124_vm0, %v516_v18, %v552_v8 }
 0x1c3   :  { %v517_v33 = vmul.f32 %v5241_v14, %v503_v30  ;;  %v518_v34 = vmul.f32 %v5243_v15, %v502_v29  ;;  %v663_v35 = vrot.slane %v5255_v31, 4  ;;  %v660_v36 = vrot.slane %v5258_v32, 4  ;;  %v4591_v30 = vld [vmem:[%s10129_s8 + $0x2] ss:$8 sm:$0xf] }
 0x1c4   :  { %v5340_v9 = vperm.slane %v5328_v59, 3 }
 0x1c5   :  { %620 = vrot.lane.b32.xlu0 %v5255_v31, %s4935_s0  ;;  %v5267_v37 = vsel %vm124_vm0, %v517_v33, %v553_v16  ;;  %v5270_v38 = vsel %vm124_vm0, %v518_v34, %v554_v22  ;;  %v5275_v39 = vsel %vm124_vm0, %v663_v35, %v670_v23  ;;  %v5280_v40 = vsel %vm124_vm0, %v660_v36, %v664_v24 }
 0x1c6   :  { %568 = vrot.lane.b32.xlu1 %v5267_v37, %s4936_s30  ;;  %v661_v42 = vrot.slane %v5267_v37, 4  ;;  %616 = vrot.lane.b32.xlu2 %v5270_v38, %s4935_s0  ;;  %v662_v43 = vrot.slane %v5270_v38, 4  ;;  %10131 = vst [vmem:[#allocation15_spill] sm:$0xff] %v5340_v9  ;;  %v5359_v33 = vperm.slane %v4591_v30, 2 }
 0x1c8   :  { %v669_v45 = vsel %vm124_vm0, %v662_v43, %v668_v41  ;;  %v5294_v46 = vsel %vm124_vm0, %v661_v42, %v666_v44  ;;  %10132 = vst [vmem:[#allocation16_spill] sm:$0xff] %v5359_v33 }
 0x1cd   :  { %576 = vrot.lane.b32.xlu0 %v5255_v31, %s4936_s30 }
 0x1ce   :  { %570 = vrot.lane.b32.xlu1 %v545_v28, %s4936_s30  ;;  %572 = vrot.lane.b32.xlu2 %v5270_v38, %s4936_s30 }
 0x1d5   :  { %566 = vrot.lane.b32.xlu0 %v544_v4, %s4936_s30 }
 0x1d6   :  { %612 = vrot.lane.b32.xlu2 %v5267_v37, %s4935_s0  ;;  %608 = vrot.lane.b32.xlu1 %v5258_v32, %s4935_s0  ;;  %v1093_v37 = vld [vmem:[%s9761_s19] sm:$0xff] }
 0x1dd   :  { %700 = vperm.xlu0 %4810, %v697_v47   ;;  %v1094_v47 = vld [vmem:[%s9761_s19 + $0x8] sm:$0xff] }
 0x1de   :  { %395 = vperm.xlu2 %4811, %v392_v48   ;;  %614 = vrot.lane.b32.xlu1 %v545_v28, %s4935_s0 }
 0x1e5   :  { %1113 = vperm.xlu0 %4810, %v1095_v50  }
 0x1e6   :  { %564 = vrot.lane.b32.xlu1 %v5258_v32, %s4936_s30  ;;  %1108 = vperm.xlu2 %4811, %v1094_v47   ;;  %v788_v32 = vld [vmem:[%s9758_s16] sm:$0xf]  ;;  %s4553_s16 = sshll.u32 %s9768_s26, 4  ;;  %s4947_s26 = smov [#allocation7]   ;;  %s4554_s16 = int_to_ptr.hbm [resolvable:$true] %s4553_s16 }
 0x1ed   :  { %1128 = vperm.xlu0 %4810, %v1098_v54  }
 0x20c   :  { %v5321_v55 = vpop.permute.xlu2 %618 }
 0x214   :  { %v575_v57 = vpop.permute.xlu2 %574 }
 0x220   :  { %v5323_v58 = vpop.permute.xlu2 %616 }
 0x227   :  { %v623_v61 = vpop.permute.xlu0 %622 }
 0x228   :  { %v626_v63 = vsel %vm624_vm6, %v5321_v55, %v623_v61  ;;  %v573_v0 = vpop.permute.xlu2 %572 }
 0x229   :  { %v650_v1 = vmul.f32 %v5332_v60, %v626_v63 }
 0x22b   :  { %v694_v4 = vpack.c.bf16 %v650_v1, %v650_v1 }
 0x22d   :  { %v714_v8 = vsel %vm421_vm2, %v694_v4, 0  ;;  %v5375_v4 = vperm.slane %v4591_v30, 3 }
 0x22e   :  { %750 = vmatpush.bf16.msrb.mxu2 %v714_v8 }
 0x22f   :  { %v5342_v10 = vpop.permute.xlu0 %578  ;;  %v611_v11 = vpop.permute.xlu1 %610  ;;  %10133 = vst [vmem:[#allocation17_spill] sm:$0xff] %v5375_v4 }
 0x230   :  { %v632_v12 = vsel %vm624_vm6, %v623_v61, %v611_v11  ;;  %v613_v13 = vpop.permute.xlu2 %612  ;;  %v582_v38 = vsel %vm580_vm7, %v575_v57, %v5342_v10 }
 0x231   :  { %v651_v16 = vmul.f32 %v5340_v9, %v632_v12  ;;  %v5381_v12 = vld [vmem:[%s9755_s13] sm:$0x3] }
 0x233   :  { %v695_v17 = vpack.c.bf16 %v651_v16, %v651_v16 }
 0x235   :  { %v717_v18 = vsel %vm421_vm2, %v695_v17, 0 }
 0x236   :  { %763 = vmatpush.bf16.msrb.mxu3 %v717_v18 }
 0x237   :  { %v621_v19 = vpop.permute.xlu0 %620 }
 0x238   :  { %v625_v22 = vsel %vm624_vm6, %v5323_v58, %v621_v19  ;;  %v396_v23 = vpop.permute.xlu2 %395  ;;  %v5351_v24 = vpop.permute.xlu1 %568 }
 0x239   :  { %v646_v25 = vmul.f32 %v5332_v60, %v625_v22  ;;  %v400_v29 = vadd.f32 %v396_v23, %v5174_v26  ;;  %v583_v41 = vsel %vm580_vm7, %v5351_v24, %v573_v0  ;;  %v401_v1 = vadd.f32 %v396_v23, %v5176_v27  ;;  %v1097_v27 = vld [vmem:[%s9761_s19 + $0x20] sm:$0xff] }
 0x23a   :  { %v602_v48 = vmul.f32 %v5359_v33, %v583_v41  ;;  %1123 = vperm.xlu2 %4811, %v1097_v27  }
 0x23b   :  { %v690_v28 = vpack.c.bf16 %v646_v25, %v669_v45  ;;  %v404_v34 = vmax.f32 %v400_v29, 0.0  ;;  %v405_v22 = vmax.f32 %v401_v1, 0.0  ;;  %v5427_v1 = vperm.slane %v4591_v30, 1 }
 0x23d   :  { %751 = vmatpush.bf16.msrb.mxu2 %v690_v28  ;;  %v786_v50 = vpack.c.bf16 %v404_v34, %v404_v34  ;;  %v787_v29 = vpack.c.bf16 %v405_v22, %v405_v22  ;;  %v5406_v34 = vperm.slane %v5328_v59, 0  ;;  %10135 = vst [vmem:[#allocation19_spill] sm:$0xff] %v5427_v1 }
 0x23f   :  { %v577_v63 = vpop.permute.xlu0 %576  ;;  %v799_v8 = vsel %vm421_vm2, %v786_v50, 0 }
 0x240   :  { %v571_v44 = vpop.permute.xlu1 %570  ;;  %v581_v16 = vsel %vm580_vm7, %v573_v0, %v577_v63 }
 0x241   :  { %v584_v45 = vsel %vm580_vm7, %v571_v44, %v575_v57  ;;  %v607_v57 = vmul.f32 %v5375_v4, %v582_v38  ;;  %v603_v25 = vmul.f32 %v5375_v4, %v581_v16 }
 0x242   :  { %v606_v26 = vmul.f32 %v5359_v33, %v584_v45 }
 0x243   :  { %v683_v0 = vsel %vm124_vm0, %v607_v57, %v663_v35 }
 0x244   :  { %v682_v54 = vsel %vm124_vm0, %v606_v26, %v662_v43  ;;  %v687_v45 = vpack.c.bf16 %v683_v0, %v603_v25  ;;  %v1100_v26 = vld [vmem:[%s9761_s19 + $0x38] sm:$0xff] }
 0x245   :  { %v686_v61 = vpack.c.bf16 %v682_v54, %v602_v48  ;;  %1138 = vperm.xlu2 %4811, %v1100_v26  }
 0x247   :  { %752 = vmatpush.bf16.msrb.mxu2 %v686_v61  ;;  %v567_v47 = vpop.permute.xlu0 %566  ;;  %v5425_v61 = vperm.slane %v4591_v30, 0 }
 0x248   :  { %v609_v43 = vpop.permute.xlu1 %608 }
 0x249   :  { %v631_v17 = vsel %vm624_vm6, %v621_v19, %v609_v43  ;;  %v5403_v19 = vperm.slane %v5328_v59, 1  ;;  %v398_v59 = vadd.f32 %v396_v23, %v5170_v20  ;;  %v629_v48 = vsel %vm624_vm6, %v609_v43, %v613_v13 }
 0x24a   :  { %v647_v18 = vmul.f32 %v5340_v9, %v631_v17  ;;  %4595 = vmatmul.msk.bf16.vlgmr.msrb.gmra.mxu2 %vm703_vm8, %v5381_v12  ;;  %v586_v20 = vsel %vm580_vm7, %v567_v47, %v571_v44  ;;  %v644_v43 = vmul.f32 %v5406_v34, %v629_v48 }
 0x24b   :  { %837 = vmatpush.bf16.msra.mxu2 %v799_v8  ;;  %10134 = vst [vmem:[#allocation18_spill] sm:$0xff] %v5403_v19  ;;  %v605_v27 = vmul.f32 %v5427_v1, %v586_v20 }
 0x24c   :  { %v691_v28 = vpack.c.bf16 %v647_v18, %v5275_v39  ;;  %v627_v39 = vsel %vm624_vm6, %v613_v13, %v5323_v58  ;;  %v802_v58 = vsel %vm421_vm2, %v787_v29, 0  ;;  %v688_v22 = vpack.c.bf16 %v644_v43, %v5280_v40 }
 0x24d   :  { %v645_v38 = vmul.f32 %v5403_v19, %v627_v39  ;;  %v1096_v39 = vld [vmem:[%s9761_s19 + $0x18] sm:$0xff] }
 0x24e   :  { %764 = vmatpush.bf16.msrb.mxu3 %v691_v28 }
 0x24f   :  { %v689_v57 = vpack.c.bf16 %v645_v38, %v5294_v46 }
 0x250   :  { %v615_v41 = vpop.permute.xlu1 %614 }
 0x251   :  { %v628_v31 = vsel %vm624_vm6, %v615_v41, %v5321_v55  ;;  %v630_v35 = vsel %vm624_vm6, %v611_v11, %v615_v41  ;;  %v399_v55 = vadd.f32 %v396_v23, %v5172_v21  ;;  %v588_v11 = vsel %vm580_vm7, %v5342_v10, %v567_v47 }
 0x252   :  { %v648_v50 = vmul.f32 %v5406_v34, %v630_v35  ;;  %v649_v54 = vmul.f32 %v5403_v19, %v628_v31  ;;  %765 = vmatpush.bf16.msrb.mxu3 %v687_v45  ;;  %v402_v23 = vmax.f32 %v398_v59, 0.0  ;;  %v604_v44 = vmul.f32 %v5425_v61, %v588_v11 }
 0x253   :  { %v403_v10 = vmax.f32 %v399_v55, 0.0 }
 0x254   :  { %v692_v13 = vpack.c.bf16 %v648_v50, %v648_v50  ;;  %v693_v8 = vpack.c.bf16 %v649_v54, %v649_v54  ;;  %v784_v29 = vpack.c.bf16 %v402_v23, %v402_v23  ;;  %v680_v0 = vsel %vm124_vm0, %v604_v44, %v660_v36  ;;  %v923_v36 = vld [vmem:[%s9759_s17] sm:$0xff]  ;;  %v1099_v54 = vld [vmem:[%s9761_s19 + $0x30] sm:$0xff] }
 0x255   :  { %4596 = vmatmul.msk.bf16.vlgmr.msrb.gmra.mxu3 %vm703_vm8, %v5381_v12  ;;  %926 = vperm.xlu1 %4812, %v923_v36   ;;  %v783_v50 = vld [vmem:[%s9757_s15] sm:$0xf]  ;;  %s4542_s15 = sshll.u32 %s4947_s26, 4  ;;  %s4543_s15 = int_to_ptr.vmem [resolvable:$true] %s4542_s15 }
 0x256   :  { %850 = vmatpush.bf16.msra.mxu3 %v802_v58  ;;  %v708_v30 = vsel %vm421_vm2, %v692_v13, 0  ;;  %v711_v21 = vsel %vm421_vm2, %v693_v8, 0  ;;  %v793_v46 = vsel %vm421_vm2, %v784_v29, 0 }
 0x257   :  { %724 = vmatpush.bf16.msrb.mxu0 %v708_v30  ;;  %737 = vmatpush.bf16.msrb.mxu1 %v711_v21 }
 0x258   :  { %v565_v16 = vpop.permute.xlu1 %564 }
 0x259   :  { %v585_v17 = vsel %vm580_vm7, %v565_v16, %v5351_v24  ;;  %v587_v18 = vsel %vm580_vm7, %v577_v63, %v565_v16  ;;  %v681_v24 = vsel %vm124_vm0, %v605_v27, %v661_v42  ;;  %v785_v63 = vpack.c.bf16 %v403_v10, %v403_v10  ;;  %v701_v42 = vpop.permute.xlu0 %700 }
 0x25a   :  { %v600_v25 = vmul.f32 %v5425_v61, %v587_v18  ;;  %v601_v28 = vmul.f32 %v5427_v1, %v585_v17  ;;  %4599 = vmatmul.msk.bf16.vlgmr.msra.gmra.mxu2 %vm417_vm3, %v788_v32 }
 0x25b   :  { %725 = vmatpush.bf16.msrb.mxu0 %v688_v22  ;;  %738 = vmatpush.bf16.msrb.mxu1 %v689_v57  ;;  %v796_v45 = vsel %vm421_vm2, %v785_v63, 0 }
 0x25c   :  { %v684_v41 = vpack.c.bf16 %v680_v0, %v600_v25  ;;  %v685_v40 = vpack.c.bf16 %v681_v24, %v601_v28 }
 0x25d   :  { %1103 = vperm.xlu1 %4812, %v1093_v37  }
 0x25f   :  { %726 = vmatpush.bf16.msrb.mxu0 %v684_v41  ;;  %739 = vmatpush.bf16.msrb.mxu1 %v685_v40 }
 0x262   :  { %4593 = vmatmul.msk.bf16.vlgmr.msrb.gmra.mxu0 %vm703_vm8, %v5381_v12  ;;  %4594 = vmatmul.msk.bf16.vlgmr.msrb.gmra.mxu1 %vm703_vm8, %v5381_v12 }
 0x263   :  { %811 = vmatpush.bf16.msra.mxu0 %v793_v46  ;;  %824 = vmatpush.bf16.msra.mxu1 %v796_v45 }
 0x265   :  { %4600 = vmatmul.msk.bf16.vlgmr.msra.gmra.mxu3 %vm417_vm3, %v788_v32  ;;  %1118 = vperm.xlu1 %4812, %v1096_v39  }
 0x26d   :  { %1133 = vperm.xlu1 %4812, %v1099_v54  }
 0x272   :  { %4598 = vmatmul.msk.bf16.vlgmr.msra.gmra.mxu1 %vm417_vm3, %v788_v32  ;;  %4597 = vmatmul.msk.bf16.vlgmr.msra.gmra.mxu0 %vm417_vm3, %v788_v32 }
 0x2cd   :  { %v754_v12 = vpop.f32.mrf.mxu2 }
 0x2ce   :  { %v755_v26 = vadd.f32 %v754_v12, %v701_v42 }
 0x2d0   :  { %v773_v47 = vmax.f32 %v755_v26, 0.0 }
 0x2d2   :  { %v777_v31 = vadd.f32 %v773_v47, %v5156_v2 }
 0x2d4   :  { %v781_v35 = vpack.c.bf16 %v777_v31, %v777_v31 }
 0x2d5   :  { %v756_v59 = vpop.f32.mrf.mxu2 }
 0x2d6   :  { %v866_v48 = vsel %vm421_vm2, %v781_v35, 0 }
 0x2d7   :  { %904 = vmatpush.bf16.msrb.mxu2 %v866_v48 }
 0x2d8   :  { %v767_v58 = vpop.f32.mrf.mxu3 }
 0x2d9   :  { %v768_v55 = vadd.f32 %v767_v58, %v701_v42 }
 0x2da   :  { %4603 = vmatmul.msk.bf16.vlgmr.msrb.gmra.mxu2 %vm417_vm3, %v783_v50 }
 0x2db   :  { %v774_v2 = vmax.f32 %v768_v55, 0.0 }
 0x2dd   :  { %v778_v20 = vadd.f32 %v774_v2, %v5158_v3  ;;  %v839_v28 = vpop.f32.mrf.mxu2 }
 0x2df   :  { %v782_v11 = vpack.c.bf16 %v778_v20, %v778_v20  ;;  %v728_v13 = vpop.f32.mrf.mxu0  ;;  %v741_v8 = vpop.f32.mrf.mxu1 }
 0x2e0   :  { %v729_v38 = vadd.f32 %v728_v13, %v701_v42  ;;  %v742_v43 = vadd.f32 %v741_v8, %v701_v42  ;;  %v769_v30 = vpop.f32.mrf.mxu3  ;;  %v927_v42 = vpop.permute.xlu1 %926 }
 0x2e1   :  { %v869_v21 = vsel %vm421_vm2, %v782_v11, 0  ;;  %v5538_v20 = vpop.permute.xlu2 %1108 }
 0x2e2   :  { %v771_v23 = vmax.f32 %v729_v38, 0.0  ;;  %v772_v44 = vmax.f32 %v742_v43, 0.0  ;;  %917 = vmatpush.bf16.msrb.mxu3 %v869_v21  ;;  %v5546_v43 = vpop.permute.xlu0 %1113 }
 0x2e4   :  { %v775_v27 = vadd.f32 %v771_v23, %v5143_v51  ;;  %v776_v10 = vadd.f32 %v772_v44, %v5145_v52 }
 0x2e5   :  { %4604 = vmatmul.msk.bf16.vlgmr.msrb.gmra.mxu3 %vm417_vm3, %v783_v50  ;;  %v841_v24 = vpop.f32.mrf.mxu2 }
 0x2e6   :  { %v779_v16 = vpack.c.bf16 %v775_v27, %v775_v27  ;;  %v780_v17 = vpack.c.bf16 %v776_v10, %v776_v10 }
 0x2e7   :  { %v730_v3 = vpop.f32.mrf.mxu0  ;;  %v743_v18 = vpop.f32.mrf.mxu1 }
 0x2e8   :  { %v860_v22 = vsel %vm421_vm2, %v779_v16, 0  ;;  %v863_v57 = vsel %vm421_vm2, %v780_v17, 0  ;;  %v852_v52 = vpop.f32.mrf.mxu3  ;;  %v5544_v8 = vpop.permute.xlu1 %1103 }
 0x2e9   :  { %878 = vmatpush.bf16.msrb.mxu0 %v860_v22  ;;  %891 = vmatpush.bf16.msrb.mxu1 %v863_v57  ;;  %v5540_v11 = vpop.permute.xlu2 %1123 }
 0x2ea   :  { %v5552_v23 = vpop.permute.xlu0 %1128 }
 0x2ec   :  { %4601 = vmatmul.msk.bf16.vlgmr.msrb.gmra.mxu0 %vm417_vm3, %v783_v50  ;;  %4602 = vmatmul.msk.bf16.vlgmr.msrb.gmra.mxu1 %vm417_vm3, %v783_v50 }
 0x2ef   :  { %v826_v25 = vpop.f32.mrf.mxu1  ;;  %v813_v51 = vpop.f32.mrf.mxu0 }
 0x2f0   :  { %v854_v63 = vpop.f32.mrf.mxu3  ;;  %v5548_v30 = vpop.permute.xlu1 %1118 }
 0x2f1   :  { %v5542_v13 = vpop.permute.xlu2 %1138 }
 0x2f7   :  { %v828_v29 = vpop.f32.mrf.mxu1  ;;  %v815_v0 = vpop.f32.mrf.mxu0 }
 0x2f8   :  { %v5556_v27 = vpop.permute.xlu1 %1133 }
 0x35d   :  { %v906_v41 = vpop.f32.mrf.mxu2 }
 0x35e   :  { %v907_v31 = vadd.f32 %v906_v41, %v839_v28 }
 0x360   :  { %v931_v50 = vadd.f32 %v927_v42, %v907_v31 }
 0x362   :  { %v5508_v54 = vmax.f32 %v931_v50, 0.0 }
 0x364   :  { %10138 = vst [vmem:[#allocation22_spill] sm:$0xff] %v5508_v54 }
 0x365   :  { %v908_v40 = vpop.f32.mrf.mxu2 }
 0x368   :  { %v919_v46 = vpop.f32.mrf.mxu3 }
 0x369   :  { %v880_v45 = vpop.f32.mrf.mxu0  ;;  %v893_v32 = vpop.f32.mrf.mxu1  ;;  %v920_v58 = vadd.f32 %v919_v46, %v852_v52 }
 0x36a   :  { %v881_v36 = vadd.f32 %v880_v45, %v813_v51  ;;  %v894_v37 = vadd.f32 %v893_v32, %v826_v25 }
 0x36b   :  { %v932_v55 = vadd.f32 %v927_v42, %v920_v58 }
 0x36c   :  { %v929_v12 = vadd.f32 %v927_v42, %v881_v36  ;;  %v930_v26 = vadd.f32 %v927_v42, %v894_v37 }
 0x36d   :  { %v5522_v2 = vmax.f32 %v932_v55, 0.0 }
 0x36e   :  { %v5498_v39 = vmax.f32 %v929_v12, 0.0  ;;  %v5500_v47 = vmax.f32 %v930_v26, 0.0 }
 0x36f   :  { %10139 = vst [vmem:[#allocation23_spill] sm:$0xff] %v5522_v2 }
 0x370   :  { %10136 = vst [vmem:[#allocation20_spill] sm:$0xff] %v5498_v39  ;;  %939 = vrot.lane.b32.xlu1 %v5500_v47, %s4933_s11  ;;  %955 = vrot.lane.b32.xlu0 %v5500_v47, %s4934_s28  ;;  %v921_v35 = vpop.f32.mrf.mxu3 }
 0x371   :  { %10137 = vst [vmem:[#allocation21_spill] sm:$0xff] %v5500_v47  ;;  %953 = vrot.lane.b32.xlu2 %v5498_v39, %s4934_s28  ;;  %v882_v59 = vpop.f32.mrf.mxu0  ;;  %v895_v48 = vpop.f32.mrf.mxu1 }
 0x378   :  { %957 = vrot.lane.b32.xlu1 %v5508_v54, %s4934_s28  ;;  %937 = vrot.lane.b32.xlu0 %v5498_v39, %s4933_s11 }
 0x379   :  { %1019 = vrot.lane.b32.xlu2 %v5498_v39, %s4935_s0 }
 0x380   :  { %1031 = vrot.lane.b32.xlu1 %v5508_v54, %s4935_s0  ;;  %1025 = vrot.lane.b32.xlu0 %v5500_v47, %s4935_s0 }
 0x381   :  { %977 = vrot.lane.b32.xlu2 %v5500_v47, %s4936_s30 }
 0x388   :  { %983 = vrot.lane.b32.xlu1 %v5508_v54, %s4936_s30  ;;  %971 = vrot.lane.b32.xlu0 %v5498_v39, %s4936_s30 }
 0x389   :  { %959 = vrot.lane.b32.xlu2 %v5522_v2, %s4934_s28 }
 0x390   :  { %943 = vrot.lane.b32.xlu0 %v5522_v2, %s4933_s11 }
 0x391   :  { %941 = vrot.lane.b32.xlu2 %v5508_v54, %s4933_s11 }
 0x398   :  { %1037 = vrot.lane.b32.xlu0 %v5522_v2, %s4935_s0 }
 0x3a0   :  { %989 = vrot.lane.b32.xlu0 %v5522_v2, %s4936_s30 }
 0x3cb   :  { %v954_v38 = vpop.permute.xlu2 %953 }
 0x3d3   :  { %v5550_v21 = vpop.permute.xlu2 %1019 }
 0x3db   :  { %v5554_v44 = vpop.permute.xlu2 %977 }
 0x3e2   :  { %v956_v10 = vpop.permute.xlu0 %955  ;;  %v940_v3 = vpop.permute.xlu1 %939 }
 0x3e3   :  { %v963_v16 = vsel %vm528_vm4, %v954_v38, %v956_v10  ;;  %v960_v17 = vpop.permute.xlu2 %959 }
 0x3e4   :  { %v964_v18 = vsel %vm528_vm4, %v960_v17, %v954_v38  ;;  %v5563_v22 = vmul.f32 %v963_v16, %v5216_v62 }
 0x3e5   :  { %v5566_v57 = vmul.f32 %v964_v18, %v5208_v56 }
 0x3e6   :  { %1021 = vrot.lane.b32.xlu1 %v5563_v22, %s4935_s0 }
 0x3e7   :  { %1039 = vrot.lane.b32.xlu0 %v5566_v57, %s4935_s0 }
 0x3ea   :  { %v938_v25 = vpop.permute.xlu0 %937  ;;  %v958_v24 = vpop.permute.xlu1 %957 }
 0x3eb   :  { %v947_v51 = vsel %vm500_vm5, %v938_v25, %v940_v3  ;;  %v942_v28 = vpop.permute.xlu2 %941  ;;  %v961_v63 = vsel %vm528_vm4, %v958_v24, %v960_v17  ;;  %v962_v12 = vsel %vm528_vm4, %v956_v10, %v958_v24 }
 0x3ec   :  { %v946_v52 = vsel %vm500_vm5, %v940_v3, %v942_v28  ;;  %v5577_v29 = vmul.f32 %v947_v51, %v5241_v14  ;;  %v967_v40 = vmul.f32 %v961_v63, %v5204_v53  ;;  %v5619_v26 = vmul.f32 %v962_v12, %v5232_v7 }
 0x3ed   :  { %v5580_v0 = vmul.f32 %v946_v52, %v5243_v15 }
 0x3ee   :  { %1023 = vrot.lane.b32.xlu2 %v5577_v29, %s4935_s0  ;;  %975 = vrot.lane.b32.xlu1 %v5577_v29, %s4936_s30 }
 0x3ef   :  { %1029 = vrot.lane.b32.xlu0 %v5580_v0, %s4935_s0 }
 0x3f2   :  { %v5590_v41 = vpop.permute.xlu0 %1025  ;;  %v1032_v31 = vpop.permute.xlu1 %1031 }
 0x3f6   :  { %973 = vrot.lane.b32.xlu1 %v5563_v22, %s4936_s30  ;;  %1033 = vrot.lane.b32.xlu2 %v967_v40, %s4935_s0 }
 0x3f7   :  { %991 = vrot.lane.b32.xlu0 %v5566_v57, %s4936_s30 }
 0x3fa   :  { %v5598_v46 = vpop.permute.xlu0 %971  ;;  %v5630_v48 = vpop.permute.xlu1 %983 }
 0x3ff   :  { %981 = vrot.lane.b32.xlu0 %v5580_v0, %s4936_s30 }
 0x402   :  { %v944_v45 = vpop.permute.xlu0 %943 }
 0x403   :  { %v945_v32 = vsel %vm500_vm5, %v942_v28, %v944_v45  ;;  %v948_v36 = vsel %vm500_vm5, %v944_v45, %v938_v25 }
 0x404   :  { %v5607_v37 = vmul.f32 %v948_v36, %v5226_v5  ;;  %v5610_v42 = vmul.f32 %v945_v32, %v5228_v6 }
 0x406   :  { %1017 = vrot.lane.b32.xlu1 %v5607_v37, %s4935_s0  ;;  %1035 = vrot.lane.b32.xlu2 %v5610_v42, %s4935_s0 }
 0x40a   :  { %v1038_v35 = vpop.permute.xlu0 %1037 }
 0x40b   :  { %v1042_v52 = vsel %vm624_vm6, %v1032_v31, %v1038_v35 }
 0x40c   :  { %v1059_v32 = vmul.f32 %v1042_v52, %v5332_v60 }
 0x40e   :  { %1027 = vrot.lane.b32.xlu1 %v5619_v26, %s4935_s0  ;;  %985 = vrot.lane.b32.xlu2 %v967_v40, %s4936_s30 }
 0x412   :  { %v5632_v50 = vpop.permute.xlu0 %989 }
 0x416   :  { %979 = vrot.lane.b32.xlu1 %v5619_v26, %s4936_s30  ;;  %987 = vrot.lane.b32.xlu2 %v5610_v42, %s4936_s30 }
 0x41e   :  { %969 = vrot.lane.b32.xlu2 %v5607_v37, %s4936_s30 }
 0x448   :  { %v1024_v59 = vpop.permute.xlu2 %1023 }
 0x450   :  { %v1034_v58 = vpop.permute.xlu2 %1033 }
 0x458   :  { %v1022_v55 = vpop.permute.xlu1 %1021 }
 0x459   :  { %v1040_v38 = vpop.permute.xlu0 %1039 }
 0x45a   :  { %v1043_v10 = vsel %vm624_vm6, %v1034_v58, %v1040_v38  ;;  %v1052_v16 = vsel %vm624_vm6, %v1040_v38, %v1022_v55 }
 0x45b   :  { %v1063_v17 = vmul.f32 %v1043_v10, %v5332_v60  ;;  %v1064_v3 = vmul.f32 %v1052_v16, %v5340_v9  ;;  %v1075_v10 = vpack.c.bf16 %v967_v40, %v5508_v54 }
 0x45d   :  { %v1083_v18 = vpack.c.bf16 %v1063_v17, %v1063_v17  ;;  %v1084_v25 = vpack.c.bf16 %v1064_v3, %v1064_v3 }
 0x45f   :  { %v1181_v51 = vsel %vm124_vm0, %v1083_v18, 0  ;;  %v1184_v28 = vsel %vm124_vm0, %v1084_v25, 0  ;;  %v1051_v18 = vsel %vm624_vm6, %v1038_v35, %v5550_v21  ;;  %v1076_v35 = vpack.c.bf16 %v5566_v57, %v5522_v2 }
 0x460   :  { %1247 = vmatpush.bf16.msra.mxu2 %v1181_v51  ;;  %1276 = vmatpush.bf16.msra.mxu3 %v1184_v28  ;;  %v1036_v24 = vpop.permute.xlu2 %1035  ;;  %v5648_v38 = vpop.permute.xlu1 %975  ;;  %v1060_v28 = vmul.f32 %v1051_v18, %v5340_v9  ;;  %v1045_v57 = vsel %vm624_vm6, %v5590_v41, %v1032_v31 }
 0x461   :  { %v1030_v63 = vpop.permute.xlu0 %1029  ;;  %v1058_v2 = vmul.f32 %v1045_v57, %v5403_v19 }
 0x462   :  { %v1041_v45 = vsel %vm624_vm6, %v1030_v63, %v1036_v24 }
 0x463   :  { %v1055_v36 = vmul.f32 %v1041_v45, %v5332_v60 }
 0x465   :  { %v1079_v12 = vpack.c.bf16 %v1059_v32, %v1055_v36 }
 0x467   :  { %1248 = vmatpush.bf16.msra.mxu2 %v1079_v12 }
 0x468   :  { %v974_v16 = vpop.permute.xlu1 %973  ;;  %v986_v3 = vpop.permute.xlu2 %985 }
 0x469   :  { %v992_v17 = vpop.permute.xlu0 %991 }
 0x46a   :  { %v995_v40 = vsel %vm580_vm7, %v986_v3, %v992_v17  ;;  %v1004_v57 = vsel %vm580_vm7, %v992_v17, %v974_v16 }
 0x46b   :  { %1249 = vmatpush.bf16.msra.mxu2 %v1075_v10  ;;  %v1016_v12 = vmul.f32 %v995_v40, %v5375_v4  ;;  %v1013_v17 = vmul.f32 %v1004_v57, %v5425_v61 }
 0x470   :  { %v988_v36 = vpop.permute.xlu2 %987 }
 0x471   :  { %v982_v32 = vpop.permute.xlu0 %981 }
 0x478   :  { %v1018_v25 = vpop.permute.xlu1 %1017 }
 0x479   :  { %v1050_v51 = vsel %vm624_vm6, %v1036_v24, %v1018_v25  ;;  %v993_v24 = vsel %vm580_vm7, %v982_v32, %v988_v36 }
 0x47a   :  { %v1056_v52 = vmul.f32 %v1050_v51, %v5340_v9 }
 0x47c   :  { %v1080_v45 = vpack.c.bf16 %v1060_v28, %v1056_v52  ;;  %v1044_v28 = vsel %vm624_vm6, %v1024_v59, %v1030_v63  ;;  %v1047_v52 = vsel %vm624_vm6, %v1018_v25, %v1024_v59  ;;  %v1008_v59 = vmul.f32 %v993_v24, %v5375_v4 }
 0x47d   :  { %v1053_v31 = vmul.f32 %v1047_v52, %v5406_v34 }
 0x47e   :  { %1277 = vmatpush.bf16.msra.mxu3 %v1080_v45 }
 0x480   :  { %v1028_v10 = vpop.permute.xlu1 %1027 }
 0x481   :  { %v1046_v18 = vsel %vm624_vm6, %v1028_v10, %v1034_v58  ;;  %v1049_v51 = vsel %vm624_vm6, %v1022_v55, %v1028_v10  ;;  %v1048_v58 = vsel %vm624_vm6, %v5550_v21, %v5590_v41  ;;  %v994_v55 = vsel %vm580_vm7, %v5630_v48, %v5632_v50 }
 0x482   :  { %v1061_v45 = vmul.f32 %v1049_v51, %v5406_v34  ;;  %v1062_v40 = vmul.f32 %v1046_v18, %v5403_v19  ;;  %1278 = vmatpush.bf16.msra.mxu3 %v1076_v35  ;;  %v1072_v10 = vpack.c.bf16 %v5610_v42, %v1016_v12  ;;  %v1054_v35 = vmul.f32 %v1044_v28, %v5403_v19 }
 0x483   :  { %v1012_v18 = vmul.f32 %v994_v55, %v5375_v4  ;;  %v1057_v51 = vmul.f32 %v1048_v58, %v5406_v34  ;;  %v996_v42 = vsel %vm580_vm7, %v5648_v38, %v982_v32 }
 0x484   :  { %v1081_v63 = vpack.c.bf16 %v1061_v45, %v1061_v45  ;;  %v1082_v25 = vpack.c.bf16 %v1062_v40, %v1062_v40  ;;  %v1078_v52 = vpack.c.bf16 %v1058_v2, %v1054_v35  ;;  %v4759_v40 = vld [vmem:[%s9760_s18] sm:$0xff]  ;;  %v970_v2 = vpop.permute.xlu2 %969  ;;  %v1007_v32 = vmul.f32 %v996_v42, %v5359_v33 }
 0x485   :  { %v1068_v45 = vpack.c.bf16 %v1012_v18, %v1008_v59  ;;  %v1077_v28 = vpack.c.bf16 %v1057_v51, %v1053_v31 }
 0x486   :  { %1279 = vmatpush.bf16.msra.mxu3 %v1072_v10  ;;  %v1175_v21 = vsel %vm124_vm0, %v1081_v63, 0  ;;  %v1178_v41 = vsel %vm124_vm0, %v1082_v25, 0  ;;  %v1073_v63 = vpack.c.bf16 %v5563_v22, %v5498_v39  ;;  %v1074_v25 = vpack.c.bf16 %v5619_v26, %v5500_v47 }
 0x487   :  { %1189 = vmatpush.bf16.msra.mxu0 %v1175_v21  ;;  %1218 = vmatpush.bf16.msra.mxu1 %v1178_v41  ;;  %v999_v10 = vsel %vm580_vm7, %v970_v2, %v5648_v38  ;;  %v1000_v22 = vsel %vm580_vm7, %v5598_v46, %v5554_v44  ;;  %v1003_v26 = vsel %vm580_vm7, %v5632_v50, %v5598_v46  ;;  %v4760_v50 = vld [vmem:[%s9760_s18 + $0x8] sm:$0xff] }
 0x488   :  { %v980_v24 = vpop.permute.xlu1 %979  ;;  %v1006_v38 = vmul.f32 %v999_v10, %v5427_v1  ;;  %v1010_v21 = vmul.f32 %v1000_v22, %v5427_v1  ;;  %v1009_v41 = vmul.f32 %v1003_v26, %v5425_v61 }
 0x489   :  { %v998_v12 = vsel %vm580_vm7, %v980_v24, %v986_v3  ;;  %v1001_v58 = vsel %vm580_vm7, %v974_v16, %v980_v24  ;;  %v997_v3 = vsel %vm580_vm7, %v5554_v44, %v5630_v48 }
 0x48a   :  { %v1015_v55 = vmul.f32 %v998_v12, %v5359_v33  ;;  %1280 = vmatpush.bf16.msra.mxu3 %v1068_v45  ;;  %v1014_v16 = vmul.f32 %v1001_v58, %v5427_v1  ;;  %v1011_v48 = vmul.f32 %v997_v3, %v5359_v33  ;;  %v1066_v46 = vpack.c.bf16 %v1010_v21, %v1006_v38 }
 0x48b   :  { %1190 = vmatpush.bf16.msra.mxu0 %v1077_v28  ;;  %1219 = vmatpush.bf16.msra.mxu1 %v1078_v52 }
 0x48c   :  { %v1071_v59 = vpack.c.bf16 %v5580_v0, %v1015_v55  ;;  %v1002_v0 = vsel %vm580_vm7, %v988_v36, %v970_v2  ;;  %v1067_v35 = vpack.c.bf16 %v1011_v48, %v1007_v32  ;;  %v1069_v36 = vpack.c.bf16 %v5607_v37, %v1013_v17  ;;  %v4762_v37 = vld [vmem:[%s9760_s18 + $0x18] sm:$0xff] }
 0x48d   :  { %4633 = vmatmul.msk.bf16.vlgmr.msra.gmra.mxu3 %vm1161_vm9, %v4759_v40  ;;  %v1005_v31 = vmul.f32 %v1002_v0, %v5425_v61  ;;  %v1070_v18 = vpack.c.bf16 %v5577_v29, %v1014_v16  ;;  %v4761_v29 = vld [vmem:[%s9760_s18 + $0x10] sm:$0xff]  ;;  %s4939_s18 = smov 126  }
 0x48e   :  { %1250 = vmatpush.bf16.msra.mxu2 %v1071_v59 }
 0x48f   :  { %1191 = vmatpush.bf16.msra.mxu0 %v1073_v63  ;;  %1220 = vmatpush.bf16.msra.mxu1 %v1074_v25  ;;  %v1065_v44 = vpack.c.bf16 %v1009_v41, %v1005_v31 }
 0x492   :  { %1251 = vmatpush.bf16.msra.mxu2 %v1067_v35 }
 0x493   :  { %1192 = vmatpush.bf16.msra.mxu0 %v1069_v36  ;;  %1221 = vmatpush.bf16.msra.mxu1 %v1070_v18 }
 0x495   :  { %4629 = vmatmul.msk.bf16.vlgmr.msra.gmra.mxu2 %vm1161_vm9, %v4759_v40 }
 0x497   :  { %1193 = vmatpush.bf16.msra.mxu0 %v1065_v44  ;;  %1222 = vmatpush.bf16.msra.mxu1 %v1066_v46 }
 0x49a   :  { %4621 = vmatmul.msk.bf16.vlgmr.msra.gmra.mxu0 %vm1161_vm9, %v4759_v40  ;;  %4625 = vmatmul.msk.bf16.vlgmr.msra.gmra.mxu1 %vm1161_vm9, %v4759_v40 }
 0x49d   :  { %4634 = vmatmul.msk.bf16.gmra.mxu3 %vm1161_vm9, %v4760_v50 }
 0x4a5   :  { %4630 = vmatmul.msk.bf16.gmra.mxu2 %vm1161_vm9, %v4760_v50 }
 0x4aa   :  { %4622 = vmatmul.msk.bf16.gmra.mxu0 %vm1161_vm9, %v4760_v50  ;;  %4626 = vmatmul.msk.bf16.gmra.mxu1 %vm1161_vm9, %v4760_v50 }
 0x4ad   :  { %4635 = vmatmul.msk.bf16.gmra.mxu3 %vm1161_vm9, %v4761_v29 }
 0x4b5   :  { %4631 = vmatmul.msk.bf16.gmra.mxu2 %vm1161_vm9, %v4761_v29 }
 0x4ba   :  { %4623 = vmatmul.msk.bf16.gmra.mxu0 %vm1161_vm9, %v4761_v29  ;;  %4627 = vmatmul.msk.bf16.gmra.mxu1 %vm1161_vm9, %v4761_v29 }
 0x4bd   :  { %4636 = vmatmul.msk.bf16.gmra.mxu3 %vm1161_vm9, %v4762_v37 }
 0x4c5   :  { %4632 = vmatmul.msk.bf16.gmra.mxu2 %vm1161_vm9, %v4762_v37 }
 0x4ca   :  { %4624 = vmatmul.msk.bf16.gmra.mxu0 %vm1161_vm9, %v4762_v37  ;;  %4628 = vmatmul.msk.bf16.gmra.mxu1 %vm1161_vm9, %v4762_v37 }
 0x510   :  { %v1282_v17 = vpop.f32.mrf.mxu3 }
 0x511   :  { %v1283_v25 = vadd.f32 %v1282_v17, %v5544_v8 }
 0x513   :  { %v5797_v48 = vmax.f32 %v1283_v25, 0.0 }
 0x515   :  { %10145 = vst [vmem:[#allocation29_spill] sm:$0xff] %v5797_v48 }
 0x517   :  { %v1195_v51 = vpop.f32.mrf.mxu0  ;;  %v1224_v24 = vpop.f32.mrf.mxu1 }
 0x518   :  { %v1196_v45 = vadd.f32 %v1195_v51, %v5544_v8  ;;  %v1225_v42 = vadd.f32 %v1224_v24, %v5544_v8  ;;  %v1253_v52 = vpop.f32.mrf.mxu2  ;;  %v1284_v22 = vpop.f32.mrf.mxu3 }
 0x519   :  { %v1254_v40 = vadd.f32 %v1253_v52, %v5544_v8  ;;  %v1285_v26 = vadd.f32 %v1284_v22, %v5538_v20 }
 0x51a   :  { %v5767_v12 = vmax.f32 %v1196_v45, 0.0  ;;  %v5769_v28 = vmax.f32 %v1225_v42, 0.0 }
 0x51b   :  { %v5780_v2 = vmax.f32 %v1254_v40, 0.0  ;;  %v5827_v35 = vmax.f32 %v1285_v26, 0.0 }
 0x51c   :  { %10140 = vst [vmem:[#allocation24_spill] sm:$0xff] %v5767_v12  ;;  %1334 = vrot.lane.b32.xlu0 %v5767_v12, %s4933_s11  ;;  %1478 = vrot.lane.b32.xlu1 %v5769_v28, %s4934_s28 }
 0x51d   :  { %10141 = vst [vmem:[#allocation25_spill] sm:$0xff] %v5769_v28  ;;  %1350 = vrot.lane.b32.xlu2 %v5769_v28, %s4933_s11 }
 0x51e   :  { %10142 = vst [vmem:[#allocation26_spill] sm:$0xff] %v5780_v2 }
 0x51f   :  { %v1197_v57 = vpop.f32.mrf.mxu0  ;;  %v1226_v58 = vpop.f32.mrf.mxu1  ;;  %10147 = vst [vmem:[#allocation31_spill] sm:$0xff] %v5827_v35 }
 0x520   :  { %v1198_v55 = vadd.f32 %v1197_v57, %v5538_v20  ;;  %v1227_v3 = vadd.f32 %v1226_v58, %v5538_v20  ;;  %v1255_v8 = vpop.f32.mrf.mxu2  ;;  %v1287_v18 = vpop.f32.mrf.mxu3 }
 0x521   :  { %v1256_v10 = vadd.f32 %v1255_v8, %v5538_v20  ;;  %v1288_v41 = vadd.f32 %v1287_v18, %v5546_v43 }
 0x522   :  { %v5782_v32 = vmax.f32 %v1198_v55, 0.0  ;;  %v5784_v59 = vmax.f32 %v1227_v3, 0.0 }
 0x523   :  { %v5818_v0 = vmax.f32 %v1256_v10, 0.0  ;;  %v5854_v46 = vmax.f32 %v1288_v41, 0.0 }
 0x524   :  { %10143 = vst [vmem:[#allocation27_spill] sm:$0xff] %v5782_v32  ;;  %1990 = vrot.lane.b32.xlu0 %v5767_v12, %s4935_s0  ;;  %1366 = vrot.lane.b32.xlu1 %v5780_v2, %s4933_s11 }
 0x525   :  { %10144 = vst [vmem:[#allocation28_spill] sm:$0xff] %v5784_v59  ;;  %1462 = vrot.lane.b32.xlu2 %v5767_v12, %s4934_s28 }
 0x526   :  { %10146 = vst [vmem:[#allocation30_spill] sm:$0xff] %v5818_v0 }
 0x527   :  { %v1200_v31 = vpop.f32.mrf.mxu0  ;;  %v1229_v36 = vpop.f32.mrf.mxu1  ;;  %10150 = vst [vmem:[#allocation34_spill] sm:$0xff] %v5854_v46 }
 0x528   :  { %v1201_v20 = vadd.f32 %v1200_v31, %v5546_v43  ;;  %v1230_v21 = vadd.f32 %v1229_v36, %v5546_v43  ;;  %v1258_v50 = vpop.f32.mrf.mxu2  ;;  %v1289_v58 = vpop.f32.mrf.mxu3 }
 0x529   :  { %v1259_v29 = vadd.f32 %v1258_v50, %v5546_v43  ;;  %v1290_v55 = vadd.f32 %v1289_v58, %v5548_v30 }
 0x52a   :  { %v5842_v38 = vmax.f32 %v1201_v20, 0.0  ;;  %v5852_v44 = vmax.f32 %v1230_v21, 0.0 }
 0x52b   :  { %v5877_v51 = vmax.f32 %v1259_v29, 0.0  ;;  %v5902_v17 = vmax.f32 %v1290_v55, 0.0 }
 0x52c   :  { %1654 = vrot.lane.b32.xlu0 %v5769_v28, %s4936_s30  ;;  %1750 = vrot.lane.b32.xlu1 %v5797_v48, %s4936_s30  ;;  %10148 = vst [vmem:[#allocation32_spill] sm:$0xff] %v5842_v38 }
 0x52d   :  { %1606 = vrot.lane.b32.xlu2 %v5767_v12, %s4936_s30  ;;  %10149 = vst [vmem:[#allocation33_spill] sm:$0xff] %v5852_v44 }
 0x52e   :  { %10152 = vst [vmem:[#allocation36_spill] sm:$0xff] %v5877_v51 }
 0x52f   :  { %v1202_v24 = vpop.f32.mrf.mxu0  ;;  %v1231_v45 = vpop.f32.mrf.mxu1  ;;  %10156 = vst [vmem:[#allocation40_spill] sm:$0xff] %v5902_v17 }
 0x530   :  { %v1203_v42 = vadd.f32 %v1202_v24, %v5548_v30  ;;  %v1232_v52 = vadd.f32 %v1231_v45, %v5548_v30  ;;  %v1260_v22 = vpop.f32.mrf.mxu2 }
 0x531   :  { %v1261_v26 = vadd.f32 %v1260_v22, %v5548_v30 }
 0x532   :  { %v5889_v40 = vmax.f32 %v1203_v42, 0.0  ;;  %v5891_v57 = vmax.f32 %v1232_v52, 0.0  ;;  %v1292_v52 = vpop.f32.mrf.mxu3 }
 0x533   :  { %v5929_v18 = vmax.f32 %v1261_v26, 0.0  ;;  %v1293_v55 = vadd.f32 %v1292_v52, %v5540_v11 }
 0x534   :  { %1382 = vrot.lane.b32.xlu0 %v5797_v48, %s4933_s11  ;;  %1494 = vrot.lane.b32.xlu1 %v5780_v2, %s4934_s28  ;;  %10153 = vst [vmem:[#allocation37_spill] sm:$0xff] %v5889_v40 }
 0x535   :  { %2038 = vrot.lane.b32.xlu2 %v5769_v28, %s4935_s0  ;;  %10154 = vst [vmem:[#allocation38_spill] sm:$0xff] %v5891_v57 }
 0x536   :  { %10160 = vst [vmem:[#allocation44_spill] sm:$0xff] %v5929_v18 }
 0x537   :  { %v1205_v21 = vpop.f32.mrf.mxu0  ;;  %v1234_v41 = vpop.f32.mrf.mxu1 }
 0x538   :  { %v1206_v30 = vadd.f32 %v1205_v21, %v5540_v11  ;;  %v1235_v24 = vadd.f32 %v1234_v41, %v5540_v11  ;;  %v5962_v41 = vmax.f32 %v1293_v55, 0.0  ;;  %v1263_v54 = vpop.f32.mrf.mxu2 }
 0x539   :  { %v1264_v39 = vadd.f32 %v1263_v54, %v5540_v11 }
 0x53a   :  { %v5945_v42 = vmax.f32 %v1206_v30, 0.0  ;;  %v5947_v58 = vmax.f32 %v1235_v24, 0.0  ;;  %10168 = vst [vmem:[#allocation52_spill] sm:$0xff] %v5962_v41 }
 0x53c   :  { %1510 = vrot.lane.b32.xlu0 %v5797_v48, %s4934_s28  ;;  %1336 = vrot.lane.b32.xlu1 %v5782_v32, %s4933_s11  ;;  %10164 = vst [vmem:[#allocation48_spill] sm:$0xff] %v5945_v42 }
 0x53d   :  { %1480 = vrot.lane.b32.xlu2 %v5784_v59, %s4934_s28  ;;  %10165 = vst [vmem:[#allocation49_spill] sm:$0xff] %v5947_v58 }
 0x53f   :  { %v1207_v47 = vpop.f32.mrf.mxu0  ;;  %v1236_v4 = vpop.f32.mrf.mxu1 }
 0x540   :  { %v1208_v19 = vadd.f32 %v1207_v47, %v5552_v23  ;;  %v1237_v47 = vadd.f32 %v1236_v4, %v5552_v23 }
 0x542   :  { %v6004_v48 = vmax.f32 %v1208_v19, 0.0 }
 0x544   :  { %1352 = vrot.lane.b32.xlu0 %v5784_v59, %s4933_s11  ;;  %1992 = vrot.lane.b32.xlu1 %v5782_v32, %s4935_s0  ;;  %10175 = vst [vmem:[#allocation59_spill] sm:$0xff] %v6004_v48 }
 0x545   :  { %1368 = vrot.lane.b32.xlu2 %v5818_v0, %s4933_s11 }
 0x547   :  { %v1210_v53 = vpop.f32.mrf.mxu0  ;;  %v1239_v15 = vpop.f32.mrf.mxu1 }
 0x54c   :  { %1464 = vrot.lane.b32.xlu0 %v5782_v32, %s4934_s28  ;;  %1656 = vrot.lane.b32.xlu1 %v5784_v59, %s4936_s30 }
 0x54d   :  { %1752 = vrot.lane.b32.xlu2 %v5827_v35, %s4936_s30 }
 0x554   :  { %1608 = vrot.lane.b32.xlu0 %v5782_v32, %s4936_s30  ;;  %1384 = vrot.lane.b32.xlu1 %v5827_v35, %s4933_s11 }
 0x555   :  { %1496 = vrot.lane.b32.xlu2 %v5818_v0, %s4934_s28 }
 0x55c   :  { %2040 = vrot.lane.b32.xlu0 %v5784_v59, %s4935_s0  ;;  %1512 = vrot.lane.b32.xlu1 %v5827_v35, %s4934_s28  ;;  %v6002_v35 = vmax.f32 %v1264_v39, 0.0  ;;  %v6022_v59 = vmax.f32 %v1237_v47, 0.0 }
 0x55d   :  { %1338 = vrot.lane.b32.xlu2 %v5842_v38, %s4933_s11 }
 0x55e   :  { %10174 = vst [vmem:[#allocation58_spill] sm:$0xff] %v6002_v35 }
 0x55f   :  { %10179 = vst [vmem:[#allocation63_spill] sm:$0xff] %v6022_v59 }
 0x564   :  { %1482 = vrot.lane.b32.xlu0 %v5852_v44, %s4934_s28  ;;  %1354 = vrot.lane.b32.xlu1 %v5852_v44, %s4933_s11 }
 0x565   :  { %1386 = vrot.lane.b32.xlu2 %v5854_v46, %s4933_s11 }
 0x56c   :  { %1610 = vrot.lane.b32.xlu0 %v5842_v38, %s4936_s30  ;;  %1466 = vrot.lane.b32.xlu1 %v5842_v38, %s4934_s28 }
 0x56d   :  { %1514 = vrot.lane.b32.xlu2 %v5854_v46, %s4934_s28 }
 0x574   :  { %2042 = vrot.lane.b32.xlu0 %v5852_v44, %s4935_s0  ;;  %1994 = vrot.lane.b32.xlu1 %v5842_v38, %s4935_s0  ;;  %v1241_v38 = vpop.f32.mrf.mxu1 }
 0x575   :  { %1754 = vrot.lane.b32.xlu2 %v5854_v46, %s4936_s30 }
 0x577   :  { %v5875_v37 = vpop.permute.xlu2 %1350 }
 0x578   :  { %10151 = vst [vmem:[#allocation35_spill] sm:$0xff] %v5875_v37 }
 0x57c   :  { %1370 = vrot.lane.b32.xlu0 %v5877_v51, %s4933_s11  ;;  %1658 = vrot.lane.b32.xlu1 %v5852_v44, %s4936_s30 }
 0x57d   :  { %1498 = vrot.lane.b32.xlu2 %v5877_v51, %s4934_s28 }
 0x57f   :  { %v5887_v43 = vpop.permute.xlu2 %1462 }
 0x584   :  { %1340 = vrot.lane.b32.xlu0 %v5889_v40, %s4933_s11  ;;  %1484 = vrot.lane.b32.xlu1 %v5891_v57, %s4934_s28 }
 0x585   :  { %1356 = vrot.lane.b32.xlu2 %v5891_v57, %s4933_s11 }
 0x587   :  { %v5900_v3 = vpop.permute.xlu2 %1606 }
 0x588   :  { %10155 = vst [vmem:[#allocation39_spill] sm:$0xff] %v5900_v3 }
 0x58c   :  { %1388 = vrot.lane.b32.xlu0 %v5902_v17, %s4933_s11  ;;  %1612 = vrot.lane.b32.xlu1 %v5889_v40, %s4936_s30 }
 0x58d   :  { %1468 = vrot.lane.b32.xlu2 %v5889_v40, %s4934_s28 }
 0x58e   :  { %v5910_v25 = vpop.permute.xlu0 %1334  ;;  %v5912_v8 = vpop.permute.xlu1 %1478 }
 0x58f   :  { %v5914_v10 = vpop.permute.xlu2 %2038 }
 0x590   :  { %10157 = vst [vmem:[#allocation41_spill] sm:$0xff] %v5914_v10  ;;  %v1242_v10 = vadd.f32 %v1241_v38, %v5542_v13 }
 0x594   :  { %1516 = vrot.lane.b32.xlu0 %v5902_v17, %s4934_s28  ;;  %2044 = vrot.lane.b32.xlu1 %v5891_v57, %s4935_s0 }
 0x595   :  { %1996 = vrot.lane.b32.xlu2 %v5889_v40, %s4935_s0  ;;  %v1212_v40 = vpop.f32.mrf.mxu0 }
 0x596   :  { %v5923_v31 = vpop.permute.xlu0 %1990  ;;  %v5925_v20 = vpop.permute.xlu1 %1366 }
 0x597   :  { %10158 = vst [vmem:[#allocation42_spill] sm:$0xff] %v5923_v31  ;;  %v5927_v36 = vpop.permute.xlu2 %1480 }
 0x598   :  { %10159 = vst [vmem:[#allocation43_spill] sm:$0xff] %v5925_v20 }
 0x59c   :  { %1756 = vrot.lane.b32.xlu0 %v5902_v17, %s4936_s30  ;;  %1372 = vrot.lane.b32.xlu1 %v5929_v18, %s4933_s11  ;;  %v1294_v17 = vpop.f32.mrf.mxu3 }
 0x59d   :  { %1660 = vrot.lane.b32.xlu2 %v5891_v57, %s4936_s30  ;;  %v1295_v54 = vadd.f32 %v1294_v17, %v5552_v23  ;;  %v1265_v57 = vpop.f32.mrf.mxu2 }
 0x59e   :  { %v5938_v50 = vpop.permute.xlu0 %1654  ;;  %v5940_v29 = vpop.permute.xlu1 %1750  ;;  %v1266_v44 = vadd.f32 %v1265_v57, %v5552_v23  ;;  %v1211_v23 = vadd.f32 %v1210_v53, %v5556_v27  ;;  %v1240_v57 = vadd.f32 %v1239_v15, %v5556_v27 }
 0x59f   :  { %10161 = vst [vmem:[#allocation45_spill] sm:$0xff] %v5938_v50  ;;  %v5943_v45 = vpop.permute.xlu2 %1368  ;;  %v6020_v28 = vmax.f32 %v1295_v54, 0.0 }
 0x5a0   :  { %10162 = vst [vmem:[#allocation46_spill] sm:$0xff] %v5940_v29  ;;  %v6061_v1 = vmax.f32 %v1266_v44, 0.0  ;;  %v6077_v2 = vmax.f32 %v1211_v23, 0.0  ;;  %v6079_v51 = vmax.f32 %v1240_v57, 0.0  ;;  %v1414_v29 = vsel %vm500_vm5, %v5910_v25, %v5875_v37 }
 0x5a1   :  { %10163 = vst [vmem:[#allocation47_spill] sm:$0xff] %v5943_v45  ;;  %v6227_v3 = vmul.f32 %v1414_v29, %v5241_v14 }
 0x5a2   :  { %10178 = vst [vmem:[#allocation62_spill] sm:$0xff] %v6020_v28 }
 0x5a3   :  { %10187 = vst [vmem:[#allocation71_spill] sm:$0xff] %v6061_v1 }
 0x5a4   :  { %1500 = vrot.lane.b32.xlu0 %v5929_v18, %s4934_s28  ;;  %1342 = vrot.lane.b32.xlu1 %v5945_v42, %s4933_s11  ;;  %10190 = vst [vmem:[#allocation74_spill] sm:$0xff] %v6077_v2 }
 0x5a5   :  { %1358 = vrot.lane.b32.xlu2 %v5947_v58, %s4933_s11  ;;  %10191 = vst [vmem:[#allocation75_spill] sm:$0xff] %v6079_v51 }
 0x5a6   :  { %v5956_v22 = vpop.permute.xlu0 %1382  ;;  %v5958_v26 = vpop.permute.xlu1 %1494  ;;  %10216 = vst [vmem:[#allocation100_spill] sm:$0xff] %v6227_v3 }
 0x5a7   :  { %10166 = vst [vmem:[#allocation50_spill] sm:$0xff] %v5958_v26  ;;  %v5960_v21 = vpop.permute.xlu2 %1752  ;;  %v1398_v29 = vsel %vm500_vm5, %v5925_v20, %v5956_v22 }
 0x5a8   :  { %10167 = vst [vmem:[#allocation51_spill] sm:$0xff] %v5960_v21 }
 0x5ac   :  { %1390 = vrot.lane.b32.xlu0 %v5962_v41, %s4933_s11  ;;  %1486 = vrot.lane.b32.xlu1 %v5947_v58, %s4934_s28 }
 0x5ad   :  { %1470 = vrot.lane.b32.xlu2 %v5945_v42, %s4934_s28 }
 0x5ae   :  { %v5970_v30 = vpop.permute.xlu0 %1510  ;;  %v5972_v24 = vpop.permute.xlu1 %1336 }
 0x5af   :  { %10169 = vst [vmem:[#allocation53_spill] sm:$0xff] %v5970_v30  ;;  %v5974_v52 = vpop.permute.xlu2 %1496 }
 0x5b0   :  { %10170 = vst [vmem:[#allocation54_spill] sm:$0xff] %v5974_v52 }
 0x5b4   :  { %1518 = vrot.lane.b32.xlu0 %v5962_v41, %s4934_s28  ;;  %1614 = vrot.lane.b32.xlu1 %v5945_v42, %s4936_s30 }
 0x5b5   :  { %1998 = vrot.lane.b32.xlu2 %v5945_v42, %s4935_s0 }
 0x5b6   :  { %v5982_v55 = vpop.permute.xlu0 %1352  ;;  %v5984_v63 = vpop.permute.xlu1 %1992 }
 0x5b7   :  { %10171 = vst [vmem:[#allocation55_spill] sm:$0xff] %v5982_v55  ;;  %v5986_v16 = vpop.permute.xlu2 %1338 }
 0x5b8   :  { %10172 = vst [vmem:[#allocation56_spill] sm:$0xff] %v5984_v63 }
 0x5bc   :  { %1758 = vrot.lane.b32.xlu0 %v5962_v41, %s4936_s30  ;;  %2046 = vrot.lane.b32.xlu1 %v5947_v58, %s4935_s0 }
 0x5bd   :  { %1662 = vrot.lane.b32.xlu2 %v5947_v58, %s4936_s30 }
 0x5be   :  { %v5995_v9 = vpop.permute.xlu0 %1464  ;;  %v5997_v60 = vpop.permute.xlu1 %1656 }
 0x5bf   :  { %10173 = vst [vmem:[#allocation57_spill] sm:$0xff] %v5997_v60  ;;  %v6000_v33 = vpop.permute.xlu2 %1386 }
 0x5c4   :  { %1502 = vrot.lane.b32.xlu0 %v6002_v35, %s4934_s28  ;;  %1374 = vrot.lane.b32.xlu1 %v6002_v35, %s4933_s11 }
 0x5c5   :  { %1344 = vrot.lane.b32.xlu2 %v6004_v48, %s4933_s11 }
 0x5c6   :  { %v6014_v11 = vpop.permute.xlu0 %1608  ;;  %v6016_v39 = vpop.permute.xlu1 %1384 }
 0x5c7   :  { %10176 = vst [vmem:[#allocation60_spill] sm:$0xff] %v6014_v11  ;;  %v6018_v19 = vpop.permute.xlu2 %1514 }
 0x5c8   :  { %10177 = vst [vmem:[#allocation61_spill] sm:$0xff] %v6018_v19 }
 0x5cc   :  { %1360 = vrot.lane.b32.xlu0 %v6022_v59, %s4933_s11  ;;  %1392 = vrot.lane.b32.xlu1 %v6020_v28, %s4933_s11 }
 0x5cd   :  { %1488 = vrot.lane.b32.xlu2 %v6022_v59, %s4934_s28 }
 0x5ce   :  { %v6030_v4 = vpop.permute.xlu0 %2040  ;;  %v6032_v17 = vpop.permute.xlu1 %1512 }
 0x5cf   :  { %10180 = vst [vmem:[#allocation64_spill] sm:$0xff] %v6030_v4  ;;  %v6034_v46 = vpop.permute.xlu2 %1754 }
 0x5d0   :  { %10181 = vst [vmem:[#allocation65_spill] sm:$0xff] %v6032_v17 }
 0x5d1   :  { %10182 = vst [vmem:[#allocation66_spill] sm:$0xff] %v6034_v46 }
 0x5d4   :  { %1472 = vrot.lane.b32.xlu0 %v6004_v48, %s4934_s28  ;;  %1520 = vrot.lane.b32.xlu1 %v6020_v28, %s4934_s28 }
 0x5d5   :  { %1616 = vrot.lane.b32.xlu2 %v6004_v48, %s4936_s30 }
 0x5d6   :  { %v6042_v54 = vpop.permute.xlu0 %1482  ;;  %v6044_v47 = vpop.permute.xlu1 %1354 }
 0x5d7   :  { %10183 = vst [vmem:[#allocation67_spill] sm:$0xff] %v6044_v47  ;;  %v6046_v41 = vpop.permute.xlu2 %1498 }
 0x5d8   :  { %10184 = vst [vmem:[#allocation68_spill] sm:$0xff] %v6046_v41 }
 0x5dc   :  { %2000 = vrot.lane.b32.xlu0 %v6004_v48, %s4935_s0  ;;  %1760 = vrot.lane.b32.xlu1 %v6020_v28, %s4936_s30  ;;  %v6139_v48 = vmax.f32 %v1242_v10, 0.0 }
 0x5dd   :  { %2048 = vrot.lane.b32.xlu2 %v6022_v59, %s4935_s0 }
 0x5de   :  { %v6055_v58 = vpop.permute.xlu0 %1610  ;;  %v6057_v50 = vpop.permute.xlu1 %1466  ;;  %10203 = vst [vmem:[#allocation87_spill] sm:$0xff] %v6139_v48 }
 0x5df   :  { %10185 = vst [vmem:[#allocation69_spill] sm:$0xff] %v6055_v58  ;;  %v6059_v60 = vpop.permute.xlu2 %1356 }
 0x5e0   :  { %10186 = vst [vmem:[#allocation70_spill] sm:$0xff] %v6059_v60 }
 0x5e4   :  { %1664 = vrot.lane.b32.xlu0 %v6022_v59, %s4936_s30  ;;  %1504 = vrot.lane.b32.xlu1 %v6061_v1, %s4934_s28  ;;  %v1268_v59 = vpop.f32.mrf.mxu2 }
 0x5e5   :  { %1376 = vrot.lane.b32.xlu2 %v6061_v1, %s4933_s11  ;;  %v1269_v53 = vadd.f32 %v1268_v59, %v5556_v27  ;;  %v1297_v1 = vpop.f32.mrf.mxu3 }
 0x5e6   :  { %v6071_v28 = vpop.permute.xlu0 %2042  ;;  %v6073_v0 = vpop.permute.xlu1 %1994  ;;  %v1298_v59 = vadd.f32 %v1297_v1, %v5556_v27 }
 0x5e7   :  { %10188 = vst [vmem:[#allocation72_spill] sm:$0xff] %v6071_v28  ;;  %v6075_v44 = vpop.permute.xlu2 %1468  ;;  %v6094_v57 = vmax.f32 %v1269_v53, 0.0 }
 0x5e8   :  { %10189 = vst [vmem:[#allocation73_spill] sm:$0xff] %v6073_v0  ;;  %v6109_v53 = vmax.f32 %v1298_v59, 0.0  ;;  %v1213_v59 = vadd.f32 %v1212_v40, %v5542_v13 }
 0x5e9   :  { %10195 = vst [vmem:[#allocation79_spill] sm:$0xff] %v6094_v57 }
 0x5ea   :  { %10197 = vst [vmem:[#allocation81_spill] sm:$0xff] %v6109_v53  ;;  %v6137_v4 = vmax.f32 %v1213_v59, 0.0 }
 0x5ec   :  { %1346 = vrot.lane.b32.xlu0 %v6077_v2, %s4933_s11  ;;  %1490 = vrot.lane.b32.xlu1 %v6079_v51, %s4934_s28  ;;  %10202 = vst [vmem:[#allocation86_spill] sm:$0xff] %v6137_v4  ;;  %v1270_v42 = vpop.f32.mrf.mxu2 }
 0x5ed   :  { %1362 = vrot.lane.b32.xlu2 %v6079_v51, %s4933_s11  ;;  %v1271_v38 = vadd.f32 %v1270_v42, %v5542_v13 }
 0x5ee   :  { %v6088_v15 = vpop.permute.xlu0 %1370  ;;  %v6090_v18 = vpop.permute.xlu1 %1658 }
 0x5ef   :  { %10192 = vst [vmem:[#allocation76_spill] sm:$0xff] %v6088_v15  ;;  %v6092_v23 = vpop.permute.xlu2 %1996  ;;  %v6154_v10 = vmax.f32 %v1271_v38, 0.0 }
 0x5f0   :  { %10193 = vst [vmem:[#allocation77_spill] sm:$0xff] %v6090_v18 }
 0x5f1   :  { %10194 = vst [vmem:[#allocation78_spill] sm:$0xff] %v6092_v23 }
 0x5f2   :  { %10207 = vst [vmem:[#allocation91_spill] sm:$0xff] %v6154_v10 }
 0x5f4   :  { %2002 = vrot.lane.b32.xlu0 %v6077_v2, %s4935_s0  ;;  %1378 = vrot.lane.b32.xlu1 %v6094_v57, %s4933_s11 }
 0x5f5   :  { %1474 = vrot.lane.b32.xlu2 %v6077_v2, %s4934_s28 }
 0x5f6   :  { %v6103_v35 = vpop.permute.xlu0 %1340  ;;  %v6105_v12 = vpop.permute.xlu1 %1484 }
 0x5f7   :  { %v6107_v18 = vpop.permute.xlu2 %1660 }
 0x5f8   :  { %10196 = vst [vmem:[#allocation80_spill] sm:$0xff] %v6107_v18 }
 0x5fc   :  { %1666 = vrot.lane.b32.xlu0 %v6079_v51, %s4936_s30  ;;  %1762 = vrot.lane.b32.xlu1 %v6109_v53, %s4936_s30 }
 0x5fd   :  { %1618 = vrot.lane.b32.xlu2 %v6077_v2, %s4936_s30 }
 0x5fe   :  { %v6117_v32 = vpop.permute.xlu0 %1388  ;;  %v6119_v1 = vpop.permute.xlu1 %1612 }
 0x5ff   :  { %10198 = vst [vmem:[#allocation82_spill] sm:$0xff] %v6119_v1  ;;  %v6121_v27 = vpop.permute.xlu2 %1358 }
 0x600   :  { %10199 = vst [vmem:[#allocation83_spill] sm:$0xff] %v6121_v27 }
 0x604   :  { %1394 = vrot.lane.b32.xlu0 %v6109_v53, %s4933_s11  ;;  %1506 = vrot.lane.b32.xlu1 %v6094_v57, %s4934_s28  ;;  %v1299_v57 = vpop.f32.mrf.mxu3 }
 0x605   :  { %2050 = vrot.lane.b32.xlu2 %v6079_v51, %s4935_s0  ;;  %v1300_v42 = vadd.f32 %v1299_v57, %v5542_v13 }
 0x606   :  { %v6130_v18 = vpop.permute.xlu0 %1516  ;;  %v6132_v31 = vpop.permute.xlu1 %2044 }
 0x607   :  { %10200 = vst [vmem:[#allocation84_spill] sm:$0xff] %v6130_v18  ;;  %v6135_v63 = vpop.permute.xlu2 %1470  ;;  %v6169_v38 = vmax.f32 %v1300_v42, 0.0 }
 0x608   :  { %10201 = vst [vmem:[#allocation85_spill] sm:$0xff] %v6132_v31 }
 0x609   :  { %10210 = vst [vmem:[#allocation94_spill] sm:$0xff] %v6169_v38 }
 0x60c   :  { %1522 = vrot.lane.b32.xlu0 %v6109_v53, %s4934_s28  ;;  %1348 = vrot.lane.b32.xlu1 %v6137_v4, %s4933_s11 }
 0x60d   :  { %1492 = vrot.lane.b32.xlu2 %v6139_v48, %s4934_s28 }
 0x60e   :  { %v6147_v40 = vpop.permute.xlu0 %1756  ;;  %v6149_v51 = vpop.permute.xlu1 %1372 }
 0x60f   :  { %10204 = vst [vmem:[#allocation88_spill] sm:$0xff] %v6147_v40  ;;  %v6152_v59 = vpop.permute.xlu2 %1998 }
 0x610   :  { %10205 = vst [vmem:[#allocation89_spill] sm:$0xff] %v6149_v51 }
 0x611   :  { %10206 = vst [vmem:[#allocation90_spill] sm:$0xff] %v6152_v59 }
 0x614   :  { %1364 = vrot.lane.b32.xlu0 %v6139_v48, %s4933_s11  ;;  %2004 = vrot.lane.b32.xlu1 %v6137_v4, %s4935_s0 }
 0x615   :  { %1380 = vrot.lane.b32.xlu2 %v6154_v10, %s4933_s11 }
 0x616   :  { %v6162_v53 = vpop.permute.xlu0 %1500  ;;  %v6164_v0 = vpop.permute.xlu1 %1342 }
 0x617   :  { %10208 = vst [vmem:[#allocation92_spill] sm:$0xff] %v6162_v53  ;;  %v6167_v28 = vpop.permute.xlu2 %1662 }
 0x618   :  { %10209 = vst [vmem:[#allocation93_spill] sm:$0xff] %v6167_v28  ;;  %v1422_v28 = vsel %vm500_vm5, %v5956_v22, %v5910_v25 }
 0x619   :  { %v6200_v2 = vmul.f32 %v1422_v28, %v5226_v5  ;;  %v1542_v28 = vsel %vm528_vm4, %v5887_v43, %v5912_v8 }
 0x61c   :  { %1476 = vrot.lane.b32.xlu0 %v6137_v4, %s4934_s28  ;;  %1668 = vrot.lane.b32.xlu1 %v6139_v48, %s4936_s30 }
 0x61d   :  { %1764 = vrot.lane.b32.xlu2 %v6169_v38, %s4936_s30 }
 0x61e   :  { %v6177_v23 = vpop.permute.xlu0 %1390  ;;  %v6179_v31 = vpop.permute.xlu1 %1486 }
 0x61f   :  { %v6181_v59 = vpop.permute.xlu2 %1344 }
 0x624   :  { %1620 = vrot.lane.b32.xlu0 %v6137_v4, %s4936_s30  ;;  %1396 = vrot.lane.b32.xlu1 %v6169_v38, %s4933_s11 }
 0x625   :  { %1508 = vrot.lane.b32.xlu2 %v6154_v10, %s4934_s28 }
 0x626   :  { %v6189_v13 = vpop.permute.xlu0 %1518  ;;  %v6191_v57 = vpop.permute.xlu1 %1614 }
 0x627   :  { %10211 = vst [vmem:[#allocation95_spill] sm:$0xff] %v6189_v13  ;;  %v6193_v42 = vpop.permute.xlu2 %1488 }
 0x628   :  { %10212 = vst [vmem:[#allocation96_spill] sm:$0xff] %v6191_v57 }
 0x62c   :  { %2052 = vrot.lane.b32.xlu0 %v6139_v48, %s4935_s0  ;;  %1524 = vrot.lane.b32.xlu1 %v6169_v38, %s4934_s28  ;;  %v1550_v38 = vsel %vm528_vm4, %v5970_v30, %v5887_v43  ;;  %v6256_v30 = vmul.f32 %v1398_v29, %v5228_v6 }
 0x62d   :  { %1974 = vrot.lane.b32.xlu2 %v6200_v2, %s4935_s0  ;;  %v6233_v25 = vmul.f32 %v1550_v38, %v5208_v56 }
 0x62e   :  { %v6208_v10 = vpop.permute.xlu0 %1758  ;;  %v6210_v4 = vpop.permute.xlu1 %2046  ;;  %10220 = vst [vmem:[#allocation104_spill] sm:$0xff] %v6256_v30 }
 0x62f   :  { %10213 = vst [vmem:[#allocation97_spill] sm:$0xff] %v6208_v10  ;;  %v6220_v48 = vpop.permute.xlu2 %1616 }
 0x630   :  { %10214 = vst [vmem:[#allocation98_spill] sm:$0xff] %v6210_v4  ;;  %v6230_v4 = vmul.f32 %v1542_v28, %v5216_v62  ;;  %v1534_v28 = vsel %vm528_vm4, %v5912_v8, %v5958_v26  ;;  %v1423_v8 = vsel %vm500_vm5, %v6016_v39, %v5972_v24 }
 0x631   :  { %10215 = vst [vmem:[#allocation99_spill] sm:$0xff] %v6220_v48 }
 0x632   :  { %10217 = vst [vmem:[#allocation101_spill] sm:$0xff] %v6233_v25 }
 0x634   :  { %2022 = vrot.lane.b32.xlu1 %v6227_v3, %s4935_s0  ;;  %1622 = vrot.lane.b32.xlu0 %v6230_v4, %s4936_s30 }
 0x635   :  { %1766 = vrot.lane.b32.xlu2 %v6233_v25, %s4936_s30  ;;  %v6259_v25 = vmul.f32 %v1534_v28, %v5232_v7  ;;  %v1415_v28 = vsel %vm500_vm5, %v5972_v24, %v5982_v55  ;;  %v1543_v24 = vsel %vm528_vm4, %v5995_v9, %v5927_v36 }
 0x636   :  { %v6241_v37 = vpop.permute.xlu0 %1502  ;;  %v6243_v43 = vpop.permute.xlu1 %1374  ;;  %v6285_v26 = vmul.f32 %v1415_v28, %v5241_v14  ;;  %v6308_v55 = vmul.f32 %v1543_v24, %v5216_v62  ;;  %v1535_v24 = vsel %vm528_vm4, %v5927_v36, %v5974_v52 }
 0x637   :  { %10218 = vst [vmem:[#allocation102_spill] sm:$0xff] %v6241_v37  ;;  %v6249_v38 = vpop.permute.xlu2 %2048 }
 0x638   :  { %10219 = vst [vmem:[#allocation103_spill] sm:$0xff] %v6249_v38 }
 0x639   :  { %10221 = vst [vmem:[#allocation105_spill] sm:$0xff] %v6259_v25 }
 0x63a   :  { %10224 = vst [vmem:[#allocation108_spill] sm:$0xff] %v6285_v26 }
 0x63c   :  { %2006 = vrot.lane.b32.xlu1 %v6230_v4, %s4935_s0  ;;  %1734 = vrot.lane.b32.xlu0 %v6256_v30, %s4936_s30  ;;  %v6282_v30 = vmul.f32 %v1423_v8, %v5226_v5  ;;  %v1551_v8 = vsel %vm528_vm4, %v6032_v17, %v5995_v9  ;;  %v1544_v17 = vsel %vm528_vm4, %v6057_v50, %v6042_v54 }
 0x63d   :  { %1670 = vrot.lane.b32.xlu2 %v6259_v25, %s4936_s30  ;;  %v6344_v36 = vmul.f32 %v1544_v17, %v5216_v62 }
 0x63e   :  { %v6267_v22 = vpop.permute.xlu0 %1360  ;;  %v6269_v20 = vpop.permute.xlu1 %1392 }
 0x63f   :  { %10222 = vst [vmem:[#allocation106_spill] sm:$0xff] %v6267_v22  ;;  %v6275_v29 = vpop.permute.xlu2 %1376 }
 0x640   :  { %10223 = vst [vmem:[#allocation107_spill] sm:$0xff] %v6275_v29 }
 0x644   :  { %1590 = vrot.lane.b32.xlu1 %v6200_v2, %s4936_s30  ;;  %1976 = vrot.lane.b32.xlu0 %v6282_v30, %s4935_s0 }
 0x645   :  { %2024 = vrot.lane.b32.xlu2 %v6285_v26, %s4935_s0  ;;  %v6311_v26 = vmul.f32 %v1551_v8, %v5208_v56  ;;  %v1399_v8 = vsel %vm500_vm5, %v5943_v45, %v6016_v39 }
 0x646   :  { %v6293_v25 = vpop.permute.xlu0 %1472  ;;  %v6295_v29 = vpop.permute.xlu1 %1520 }
 0x647   :  { %10225 = vst [vmem:[#allocation109_spill] sm:$0xff] %v6295_v29  ;;  %v6305_v28 = vpop.permute.xlu2 %1362  ;;  %v6338_v29 = vmul.f32 %v1535_v24, %v5232_v7  ;;  %v1416_v24 = vsel %vm500_vm5, %v5986_v16, %v6044_v47 }
 0x648   :  { %10226 = vst [vmem:[#allocation110_spill] sm:$0xff] %v6305_v28  ;;  %v6341_v28 = vmul.f32 %v1399_v8, %v5228_v6  ;;  %v1424_v8 = vsel %vm500_vm5, %v6000_v33, %v5986_v16 }
 0x649   :  { %10227 = vst [vmem:[#allocation111_spill] sm:$0xff] %v6311_v26  ;;  %v6370_v45 = vmul.f32 %v1424_v8, %v5226_v5 }
 0x64a   :  { %10230 = vst [vmem:[#allocation114_spill] sm:$0xff] %v6338_v29 }
 0x64b   :  { %10231 = vst [vmem:[#allocation115_spill] sm:$0xff] %v6341_v28 }
 0x64c   :  { %1768 = vrot.lane.b32.xlu0 %v6311_v26, %s4936_s30  ;;  %1624 = vrot.lane.b32.xlu1 %v6308_v55, %s4936_s30 }
 0x64d   :  { %1592 = vrot.lane.b32.xlu2 %v6282_v30, %s4936_s30 }
 0x64e   :  { %v6319_v3 = vpop.permute.xlu0 %2000  ;;  %v6321_v9 = vpop.permute.xlu1 %1760 }
 0x64f   :  { %10228 = vst [vmem:[#allocation112_spill] sm:$0xff] %v6319_v3  ;;  %v6331_v26 = vpop.permute.xlu2 %1474 }
 0x650   :  { %10229 = vst [vmem:[#allocation113_spill] sm:$0xff] %v6321_v9 }
 0x654   :  { %1736 = vrot.lane.b32.xlu1 %v6341_v28, %s4936_s30  ;;  %1672 = vrot.lane.b32.xlu0 %v6338_v29, %s4936_s30  ;;  %v6367_v28 = vmul.f32 %v1416_v24, %v5241_v14  ;;  %v1552_v24 = vsel %vm528_vm4, %v6018_v19, %v6057_v50  ;;  %v1536_v50 = vsel %vm528_vm4, %v6042_v54, %v6046_v41 }
 0x655   :  { %2010 = vrot.lane.b32.xlu2 %v6344_v36, %s4935_s0  ;;  %v6389_v8 = vmul.f32 %v1552_v24, %v5208_v56  ;;  %v1400_v24 = vsel %vm500_vm5, %v6088_v15, %v6000_v33 }
 0x656   :  { %v6352_v39 = vpop.permute.xlu0 %1664  ;;  %v6354_v52 = vpop.permute.xlu1 %1504  ;;  %10235 = vst [vmem:[#allocation119_spill] sm:$0xff] %v6367_v28 }
 0x657   :  { %10232 = vst [vmem:[#allocation116_spill] sm:$0xff] %v6352_v39  ;;  %v6360_v17 = vpop.permute.xlu2 %1618 }
 0x658   :  { %10233 = vst [vmem:[#allocation117_spill] sm:$0xff] %v6354_v52 }
 0x659   :  { %10234 = vst [vmem:[#allocation118_spill] sm:$0xff] %v6360_v17 }
 0x65a   :  { %10237 = vst [vmem:[#allocation121_spill] sm:$0xff] %v6389_v8 }
 0x65c   :  { %1626 = vrot.lane.b32.xlu0 %v6344_v36, %s4936_s30  ;;  %2026 = vrot.lane.b32.xlu1 %v6367_v28, %s4935_s0 }
 0x65d   :  { %1978 = vrot.lane.b32.xlu2 %v6370_v45, %s4935_s0 }
 0x65e   :  { %v6378_v39 = vpop.permute.xlu0 %1346  ;;  %v6380_v47 = vpop.permute.xlu1 %1490 }
 0x65f   :  { %v6382_v16 = vpop.permute.xlu2 %2050 }
 0x660   :  { %10236 = vst [vmem:[#allocation120_spill] sm:$0xff] %v6382_v16 }
 0x664   :  { %1642 = vrot.lane.b32.xlu0 %v6367_v28, %s4936_s30  ;;  %1594 = vrot.lane.b32.xlu1 %v6370_v45, %s4936_s30  ;;  %v6416_v28 = vmul.f32 %v1536_v50, %v5232_v7  ;;  %v1545_v50 = vsel %vm528_vm4, %v6075_v44, %v6105_v12 }
 0x665   :  { %1770 = vrot.lane.b32.xlu2 %v6389_v8, %s4936_s30  ;;  %v1417_v8 = vsel %vm500_vm5, %v6103_v35, %v6059_v60 }
 0x666   :  { %v6397_v29 = vpop.permute.xlu0 %2002  ;;  %v6399_v52 = vpop.permute.xlu1 %1378  ;;  %10241 = vst [vmem:[#allocation125_spill] sm:$0xff] %v6416_v28  ;;  %v6422_v54 = vmul.f32 %v1417_v8, %v5241_v14 }
 0x667   :  { %10238 = vst [vmem:[#allocation122_spill] sm:$0xff] %v6397_v29  ;;  %v6409_v19 = vpop.permute.xlu2 %1492 }
 0x668   :  { %10239 = vst [vmem:[#allocation123_spill] sm:$0xff] %v6399_v52  ;;  %v6419_v52 = vmul.f32 %v1400_v24, %v5228_v6  ;;  %v1425_v24 = vsel %vm500_vm5, %v6117_v32, %v6103_v35 }
 0x669   :  { %10240 = vst [vmem:[#allocation124_spill] sm:$0xff] %v6409_v19  ;;  %v6448_v15 = vmul.f32 %v1425_v24, %v5226_v5 }
 0x66a   :  { %10242 = vst [vmem:[#allocation126_spill] sm:$0xff] %v6419_v52 }
 0x66b   :  { %10243 = vst [vmem:[#allocation127_spill] sm:$0xff] %v6422_v54 }
 0x66c   :  { %1738 = vrot.lane.b32.xlu0 %v6419_v52, %s4936_s30  ;;  %2058 = vrot.lane.b32.xlu1 %v6416_v28, %s4935_s0  ;;  %v6445_v52 = vmul.f32 %v1545_v50, %v5216_v62  ;;  %v1537_v50 = vsel %vm528_vm4, %v6105_v12, %v6162_v53  ;;  %v1401_v12 = vsel %vm500_vm5, %v6149_v51, %v6117_v32 }
 0x66d   :  { %2028 = vrot.lane.b32.xlu2 %v6422_v54, %s4935_s0  ;;  %v6467_v24 = vmul.f32 %v1537_v50, %v5232_v7  ;;  %v1426_v53 = vsel %vm500_vm5, %v6177_v23, %v6164_v0 }
 0x66e   :  { %v6430_v33 = vpop.permute.xlu0 %1666  ;;  %v6432_v41 = vpop.permute.xlu1 %1762 }
 0x66f   :  { %10244 = vst [vmem:[#allocation128_spill] sm:$0xff] %v6430_v33  ;;  %v6438_v8 = vpop.permute.xlu2 %1380 }
 0x670   :  { %10245 = vst [vmem:[#allocation129_spill] sm:$0xff] %v6432_v41 }
 0x671   :  { %10246 = vst [vmem:[#allocation130_spill] sm:$0xff] %v6438_v8 }
 0x672   :  { %10249 = vst [vmem:[#allocation133_spill] sm:$0xff] %v6467_v24 }
 0x674   :  { %1674 = vrot.lane.b32.xlu0 %v6416_v28, %s4936_s30  ;;  %1628 = vrot.lane.b32.xlu1 %v6445_v52, %s4936_s30 }
 0x675   :  { %1596 = vrot.lane.b32.xlu2 %v6448_v15, %s4936_s30 }
 0x676   :  { %v6456_v33 = vpop.permute.xlu0 %1394  ;;  %v6458_v60 = vpop.permute.xlu1 %1506 }
 0x677   :  { %10247 = vst [vmem:[#allocation131_spill] sm:$0xff] %v6458_v60  ;;  %v6460_v35 = vpop.permute.xlu2 %1764  ;;  %v6490_v60 = vmul.f32 %v1401_v12, %v5228_v6  ;;  %v1553_v12 = vsel %vm528_vm4, %v6130_v18, %v6075_v44  ;;  %v1548_v44 = vsel %vm528_vm4, %v6331_v26, %v6380_v47 }
 0x678   :  { %10248 = vst [vmem:[#allocation132_spill] sm:$0xff] %v6460_v35  ;;  %v6558_v18 = vmul.f32 %v1548_v44, %v5216_v62 }
 0x679   :  { %10252 = vst [vmem:[#allocation136_spill] sm:$0xff] %v6490_v60 }
 0x67c   :  { %2012 = vrot.lane.b32.xlu0 %v6445_v52, %s4935_s0  ;;  %1644 = vrot.lane.b32.xlu1 %v6422_v54, %s4936_s30  ;;  %v6493_v54 = vmul.f32 %v1426_v53, %v5226_v5 }
 0x67d   :  { %2060 = vrot.lane.b32.xlu2 %v6467_v24, %s4935_s0 }
 0x67e   :  { %v6475_v28 = vpop.permute.xlu0 %1522  ;;  %v6477_v8 = vpop.permute.xlu1 %1348 }
 0x67f   :  { %10250 = vst [vmem:[#allocation134_spill] sm:$0xff] %v6475_v28  ;;  %v6483_v50 = vpop.permute.xlu2 %1508 }
 0x680   :  { %10251 = vst [vmem:[#allocation135_spill] sm:$0xff] %v6483_v50  ;;  %v1554_v50 = vsel %vm528_vm4, %v6189_v13, %v6135_v63 }
 0x681   :  { %v6519_v28 = vmul.f32 %v1554_v50, %v5208_v56  ;;  %v1418_v50 = vsel %vm500_vm5, %v6164_v0, %v6121_v27  ;;  %v1547_v0 = vsel %vm528_vm4, %v6293_v25, %v6193_v42 }
 0x682   :  { %v6564_v13 = vmul.f32 %v1418_v50, %v5241_v14  ;;  %v1427_v50 = vsel %vm500_vm5, %v6269_v20, %v6181_v59 }
 0x683   :  { %10256 = vst [vmem:[#allocation140_spill] sm:$0xff] %v6519_v28 }
 0x684   :  { %1980 = vrot.lane.b32.xlu0 %v6448_v15, %s4935_s0  ;;  %1740 = vrot.lane.b32.xlu1 %v6490_v60, %s4936_s30  ;;  %v6516_v60 = vmul.f32 %v1553_v12, %v5208_v56 }
 0x685   :  { %1982 = vrot.lane.b32.xlu2 %v6493_v54, %s4935_s0 }
 0x686   :  { %v6501_v32 = vpop.permute.xlu0 %1364  ;;  %v6503_v51 = vpop.permute.xlu1 %2004  ;;  %10255 = vst [vmem:[#allocation139_spill] sm:$0xff] %v6516_v60 }
 0x687   :  { %10253 = vst [vmem:[#allocation137_spill] sm:$0xff] %v6503_v51  ;;  %v6509_v53 = vpop.permute.xlu2 %1974 }
 0x688   :  { %10254 = vst [vmem:[#allocation138_spill] sm:$0xff] %v6509_v53 }
 0x68c   :  { %1772 = vrot.lane.b32.xlu0 %v6516_v60, %s4936_s30  ;;  %1676 = vrot.lane.b32.xlu1 %v6467_v24, %s4936_s30  ;;  %v1546_v60 = vsel %vm528_vm4, %v6135_v63, %v6179_v31 }
 0x68d   :  { %1774 = vrot.lane.b32.xlu2 %v6519_v28, %s4936_s30 }
 0x68e   :  { %v6531_v53 = vpop.permute.xlu0 %1476  ;;  %v6533_v12 = vpop.permute.xlu1 %1668 }
 0x68f   :  { %10257 = vst [vmem:[#allocation141_spill] sm:$0xff] %v6531_v53  ;;  %v1549_v24 = vsel %vm528_vm4, %v6531_v53, %v6409_v19  ;;  %v6547_v28 = vpop.permute.xlu2 %1766 }
 0x690   :  { %10258 = vst [vmem:[#allocation142_spill] sm:$0xff] %v6533_v12  ;;  %v1538_v12 = vsel %vm528_vm4, %v6179_v31, %v6241_v37  ;;  %v6561_v63 = vmul.f32 %v1549_v24, %v5216_v62  ;;  %v6573_v37 = vmul.f32 %v1547_v0, %v5216_v62  ;;  %v1868_v24 = vsel %vm580_vm7, %v6432_v41, %v6360_v17 }
 0x691   :  { %10259 = vst [vmem:[#allocation143_spill] sm:$0xff] %v6547_v28  ;;  %v1574_v28 = vmul.f32 %v1546_v60, %v5216_v62  ;;  %v6570_v31 = vmul.f32 %v1538_v12, %v5232_v7  ;;  %v1428_v60 = vsel %vm500_vm5, %v6456_v33, %v6378_v39  ;;  %v1419_v62 = vsel %vm500_vm5, %v6181_v59, %v6267_v22 }
 0x692   :  { %v2450_v27 = vpack.c.bf16 %v6561_v63, %v6558_v18  ;;  %v1934_v22 = vmul.f32 %v1868_v24, %v5425_v61  ;;  %v6613_v19 = vmul.f32 %v1428_v60, %v5226_v5  ;;  %v1866_v60 = vsel %vm580_vm7, %v6208_v10, %v6191_v57 }
 0x693   :  { %10260 = vst [vmem:[#allocation144_spill] sm:$0xff] %v6570_v31  ;;  %v2446_v17 = vpack.c.bf16 %v6573_v37, %v1574_v28 }
 0x694   :  { %2030 = vrot.lane.b32.xlu1 %v6564_v13, %s4935_s0  ;;  %1630 = vrot.lane.b32.xlu0 %v1574_v28, %s4936_s30 }
 0x695   :  { %2062 = vrot.lane.b32.xlu2 %v6570_v31, %s4935_s0  ;;  %2745 = vmatpush.bf16.msrb.mxu2 %v2450_v27 }
 0x696   :  { %v6592_v44 = vpop.permute.xlu0 %1620  ;;  %v6594_v12 = vpop.permute.xlu1 %1396 }
 0x697   :  { %10261 = vst [vmem:[#allocation145_spill] sm:$0xff] %v6592_v44  ;;  %v1869_v0 = vsel %vm580_vm7, %v6460_v35, %v6592_v44  ;;  %v1429_v27 = vsel %vm500_vm5, %v6594_v12, %v6477_v8  ;;  %v6608_v41 = vpop.permute.xlu2 %1670  ;;  %v1867_v35 = vsel %vm580_vm7, %v6321_v9, %v6220_v48 }
 0x698   :  { %10262 = vst [vmem:[#allocation146_spill] sm:$0xff] %v6608_v41  ;;  %v1938_v59 = vmul.f32 %v1869_v0, %v5425_v61  ;;  %v6617_v53 = vmul.f32 %v1429_v27, %v5226_v5  ;;  %v6624_v41 = vmul.f32 %v1427_v50, %v5226_v5  ;;  %v6633_v0 = vmul.f32 %v1419_v62, %v5241_v14 }
 0x699   :  { %2746 = vmatpush.bf16.msrb.mxu2 %v2446_v17  ;;  %v1930_v27 = vmul.f32 %v1867_v35, %v5425_v61  ;;  %v2442_v5 = vpack.c.bf16 %v6445_v52, %v6344_v36  ;;  %v1926_v17 = vmul.f32 %v1866_v60, %v5425_v61  ;;  %v2228_v35 = vsel %vm624_vm6, %v6397_v29, %v6382_v16 }
 0x69a   :  { %v2386_v44 = vpack.c.bf16 %v1938_v59, %v1934_v22  ;;  %v2418_v24 = vpack.c.bf16 %v6617_v53, %v6613_v19  ;;  %v1865_v22 = vsel %vm580_vm7, %v6147_v40, %v6119_v1  ;;  %v2414_v62 = vpack.c.bf16 %v6624_v41, %v6493_v54  ;;  %v10269_v40 = vld [vmem:[#allocation86_spill] sm:$0xff] }
 0x69b   :  { %v1402_v60 = vsel %vm500_vm5, %v6243_v43, %v6177_v23  ;;  %v2382_v29 = vpack.c.bf16 %v1930_v27, %v1926_v17  ;;  %v2410_v23 = vpack.c.bf16 %v6448_v15, %v6370_v45  ;;  %v10265_v27 = vld [vmem:[#allocation39_spill] sm:$0xff]  ;;  %v10266_v17 = vld [vmem:[#allocation46_spill] sm:$0xff] }
 0x69c   :  { %2716 = vmatpush.bf16.msrb.mxu1 %v2418_v24  ;;  %1646 = vrot.lane.b32.xlu1 %v6564_v13, %s4936_s30  ;;  %v1922_v24 = vmul.f32 %v1865_v22, %v5425_v61  ;;  %v2227_v22 = vsel %vm624_vm6, %v6319_v3, %v6249_v38  ;;  %v10270_v3 = vld [vmem:[#allocation98_spill] sm:$0xff] }
 0x69d   :  { %2014 = vrot.lane.b32.xlu0 %v1574_v28, %s4935_s0  ;;  %2032 = vrot.lane.b32.xlu2 %v6633_v0, %s4935_s0  ;;  %v1864_v28 = vsel %vm580_vm7, %v6034_v46, %v6055_v58  ;;  %v2318_v46 = vmul.f32 %v2228_v35, %v5406_v34  ;;  %v2314_v15 = vmul.f32 %v2227_v22, %v5406_v34  ;;  %v10365_v58 = vld [vmem:[#allocation12_spill] sm:$0xff] }
 0x69e   :  { %2687 = vmatpush.bf16.msrb.mxu0 %v2386_v44  ;;  %2747 = vmatpush.bf16.msrb.mxu2 %v2442_v5  ;;  %v6652_v52 = vpop.permute.xlu0 %2052  ;;  %v6654_v36 = vpop.permute.xlu1 %1524  ;;  %v2438_v44 = vpack.c.bf16 %v6308_v55, %v6230_v4  ;;  %v1918_v4 = vmul.f32 %v1864_v28, %v5425_v61  ;;  %v10268_v28 = vld [vmem:[#allocation74_spill] sm:$0xff] }
 0x69f   :  { %10263 = vst [vmem:[#allocation147_spill] sm:$0xff] %v6652_v52  ;;  %v2229_v50 = vsel %vm624_vm6, %v6503_v51, %v6652_v52  ;;  %v6666_v59 = vpop.permute.xlu2 %2024  ;;  %v1863_v51 = vsel %vm580_vm7, %v5960_v21, %v6014_v11  ;;  %v2434_v10 = vpack.c.bf16 %v10269_v40, %v10268_v28  ;;  %v10273_v40 = vld [vmem:[#allocation78_spill] sm:$0xff]  ;;  %v10347_v21 = vld [vmem:[#allocation36_spill] sm:$0xff] }
 0x6a0   :  { %10264 = vst [vmem:[#allocation148_spill] sm:$0xff] %v6666_v59  ;;  %v2322_v5 = vmul.f32 %v2229_v50, %v5406_v34  ;;  %2717 = vmatpush.bf16.msrb.mxu1 %v2414_v62  ;;  %v1862_v62 = vsel %vm580_vm7, %v10266_v17, %v10265_v27  ;;  %v6693_v50 = vmul.f32 %v1402_v60, %v5228_v6  ;;  %v10346_v17 = vld [vmem:[#allocation44_spill] sm:$0xff] }
 0x6a1   :  { %v1914_v9 = vmul.f32 %v1863_v51, %v5425_v61  ;;  %v2378_v45 = vpack.c.bf16 %v1922_v24, %v1918_v4  ;;  %v10272_v51 = vld [vmem:[#allocation85_spill] sm:$0xff]  ;;  %v10356_v27 = vld [vmem:[#allocation124_spill] sm:$0xff] }
 0x6a2   :  { %2688 = vmatpush.bf16.msrb.mxu0 %v2382_v29  ;;  %2748 = vmatpush.bf16.msrb.mxu2 %v2438_v44  ;;  %10267 = vst [vmem:[#allocation149_spill] sm:$0xff] %v6693_v50  ;;  %v2482_v35 = vpack.c.bf16 %v2322_v5, %v2318_v46  ;;  %v10271_v29 = vld [vmem:[#allocation90_spill] sm:$0xff]  ;;  %v1910_v46 = vmul.f32 %v1862_v62, %v5425_v61  ;;  %v10277_v62 = vld [vmem:[#allocation73_spill] sm:$0xff] }
 0x6a3   :  { %v2226_v44 = vsel %vm624_vm6, %v10271_v29, %v10270_v3  ;;  %v2225_v60 = vsel %vm624_vm6, %v10273_v40, %v10272_v51  ;;  %v2406_v5 = vpack.c.bf16 %v6282_v30, %v6200_v2  ;;  %v10280_v3 = vld [vmem:[#allocation64_spill] sm:$0xff] }
 0x6a4   :  { %1598 = vrot.lane.b32.xlu1 %v6493_v54, %s4936_s30  ;;  %2718 = vmatpush.bf16.msrb.mxu1 %v2410_v23  ;;  %v2310_v4 = vmul.f32 %v2226_v44, %v5406_v34  ;;  %v10276_v23 = vld [vmem:[#allocation72_spill] sm:$0xff]  ;;  %v2374_v40 = vpack.c.bf16 %v1914_v9, %v1910_v46  ;;  %v2306_v51 = vmul.f32 %v2225_v60, %v5406_v34  ;;  %v10282_v44 = vld [vmem:[#allocation41_spill] sm:$0xff]  ;;  %v10283_v46 = vld [vmem:[#allocation42_spill] sm:$0xff] }
 0x6a5   :  { %1742 = vrot.lane.b32.xlu0 %v6693_v50, %s4936_s30  ;;  %1648 = vrot.lane.b32.xlu2 %v6633_v0, %s4936_s30  ;;  %v2224_v28 = vsel %vm624_vm6, %v10277_v62, %v10276_v23  ;;  %v10281_v2 = vld [vmem:[#allocation56_spill] sm:$0xff]  ;;  %v10284_v60 = vld [vmem:[#allocation110_spill] sm:$0xff] }
 0x6a6   :  { %2689 = vmatpush.bf16.msrb.mxu0 %v2378_v45  ;;  %2749 = vmatpush.bf16.msrb.mxu2 %v2434_v10  ;;  %v6714_v54 = vpop.permute.xlu1 %2022  ;;  %v6716_v24 = vpop.permute.xlu0 %1622  ;;  %v10278_v10 = vld [vmem:[#allocation48_spill] sm:$0xff]  ;;  %v10279_v45 = vld [vmem:[#allocation59_spill] sm:$0xff]  ;;  %v2478_v38 = vpack.c.bf16 %v2314_v15, %v2310_v4  ;;  %v2223_v30 = vsel %vm624_vm6, %v10281_v2, %v10280_v3  ;;  %v2302_v9 = vmul.f32 %v2224_v28, %v5406_v34  ;;  %v10291_v2 = vld [vmem:[#allocation117_spill] sm:$0xff] }
 0x6a7   :  { %10274 = vst [vmem:[#allocation74_spill] sm:$0xff] %v6714_v54  ;;  %2774 = vmatpush.bf16.msrb.mxu3 %v2482_v35  ;;  %v6721_v22 = vpop.permute.xlu2 %1592  ;;  %v2430_v29 = vpack.c.bf16 %v10279_v45, %v10278_v10  ;;  %v1421_v35 = vsel %vm500_vm5, %v6477_v8, %v6501_v32  ;;  %v2222_v15 = vsel %vm624_vm6, %v10283_v46, %v10282_v44  ;;  %v10285_v4 = vld [vmem:[#allocation32_spill] sm:$0xff]  ;;  %v10286_v8 = vld [vmem:[#allocation37_spill] sm:$0xff] }
 0x6a8   :  { %10275 = vst [vmem:[#allocation86_spill] sm:$0xff] %v6716_v24  ;;  %2719 = vmatpush.bf16.msrb.mxu1 %v2406_v5  ;;  %v1420_v5 = vsel %vm500_vm5, %v6378_v39, %v10284_v60  ;;  %v2474_v28 = vpack.c.bf16 %v2306_v51, %v2302_v9  ;;  %v2294_v45 = vmul.f32 %v2222_v15, %v5406_v34  ;;  %v10293_v15 = vld [vmem:[#allocation24_spill] sm:$0xff] }
 0x6aa   :  { %2690 = vmatpush.bf16.msrb.mxu0 %v2374_v40  ;;  %2750 = vmatpush.bf16.msrb.mxu2 %v2430_v29  ;;  %v2426_v40 = vpack.c.bf16 %v10286_v8, %v10285_v4  ;;  %v2298_v29 = vmul.f32 %v2223_v30, %v5406_v34  ;;  %v1455_v4 = vmul.f32 %v1420_v5, %v5241_v14 }
 0x6ab   :  { %2775 = vmatpush.bf16.msrb.mxu3 %v2478_v38  ;;  %v6753_v38 = vmul.f32 %v1421_v35, %v5241_v14  ;;  %v10290_v35 = vld [vmem:[#allocation109_spill] sm:$0xff] }
 0x6ac   :  { %1678 = vrot.lane.b32.xlu1 %v6570_v31, %s4936_s30  ;;  %v1555_v8 = vsel %vm528_vm4, %v10290_v35, %v6293_v25  ;;  %v2470_v51 = vpack.c.bf16 %v2298_v29, %v2294_v45  ;;  %v10300_v45 = vld [vmem:[#allocation127_spill] sm:$0xff] }
 0x6ad   :  { %1984 = vrot.lane.b32.xlu0 %v6624_v41, %s4935_s0  ;;  %1600 = vrot.lane.b32.xlu2 %v6624_v41, %s4936_s30  ;;  %v1539_v41 = vsel %vm528_vm4, %v6193_v42, %v10291_v2  ;;  %v2419_v9 = vpack.c.bf16 %v6753_v38, %v1455_v4  ;;  %v6780_v14 = vmul.f32 %v1555_v8, %v5208_v56 }
 0x6ae   :  { %2751 = vmatpush.bf16.msrb.mxu2 %v2426_v40  ;;  %v6759_v39 = vpop.permute.xlu1 %2006  ;;  %v6761_v10 = vpop.permute.xlu0 %1734  ;;  %v10292_v40 = vld [vmem:[#allocation27_spill] sm:$0xff]  ;;  %v6783_v5 = vmul.f32 %v1539_v41, %v5232_v7  ;;  %v2415_v42 = vpack.c.bf16 %v6633_v0, %v6564_v13  ;;  %v10301_v13 = vld [vmem:[#allocation100_spill] sm:$0xff] }
 0x6af   :  { %10287 = vst [vmem:[#allocation48_spill] sm:$0xff] %v6759_v39  ;;  %2776 = vmatpush.bf16.msrb.mxu3 %v2474_v28  ;;  %v6765_v30 = vpop.permute.xlu2 %2010  ;;  %v10294_v46 = vpack.c.bf16 %v10292_v40, %v10293_v15  ;;  %v10299_v28 = vld [vmem:[#allocation119_spill] sm:$0xff]  ;;  %v10302_v0 = vld [vmem:[#allocation108_spill] sm:$0xff] }
 0x6b0   :  { %10288 = vst [vmem:[#allocation59_spill] sm:$0xff] %v6761_v10  ;;  %v2411_v8 = vpack.c.bf16 %v10300_v45, %v10299_v28  ;;  %v2407_v41 = vpack.c.bf16 %v10302_v0, %v10301_v13  ;;  %v10304_v40 = vld [vmem:[#allocation107_spill] sm:$0xff] }
 0x6b1   :  { %10289 = vst [vmem:[#allocation110_spill] sm:$0xff] %v6765_v30  ;;  %v1403_v15 = vsel %vm500_vm5, %v10304_v40, %v6269_v20 }
 0x6b2   :  { %2752 = vmatpush.bf16.msrb.mxu2 %v10294_v46  ;;  %10295 = vst [vmem:[#allocation32_spill] sm:$0xff] %v6780_v14 }
 0x6b3   :  { %10296 = vst [vmem:[#allocation37_spill] sm:$0xff] %v6783_v5  ;;  %2777 = vmatpush.bf16.msrb.mxu3 %v2470_v51 }
 0x6b4   :  { %1632 = vrot.lane.b32.xlu1 %v6573_v37, %s4936_s30 }
 0x6b5   :  { %1776 = vrot.lane.b32.xlu0 %v6780_v14, %s4936_s30  ;;  %1680 = vrot.lane.b32.xlu2 %v6783_v5, %s4936_s30 }
 0x6b6   :  { %2861 = vmatpush.bf16.msra.mxu2 %v2419_v9  ;;  %v6793_v25 = vpop.permute.xlu1 %1590  ;;  %v6795_v46 = vpop.permute.xlu0 %1976 }
 0x6b7   :  { %10297 = vst [vmem:[#allocation109_spill] sm:$0xff] %v6795_v46  ;;  %v6797_v29 = vpop.permute.xlu2 %1978 }
 0x6b8   :  { %10298 = vst [vmem:[#allocation117_spill] sm:$0xff] %v6797_v29 }
 0x6ba   :  { %2862 = vmatpush.bf16.msra.mxu2 %v2415_v42 }
 0x6bc   :  { %2016 = vrot.lane.b32.xlu1 %v6573_v37, %s4935_s0  ;;  %v6819_v37 = vmul.f32 %v1403_v15, %v5228_v6  ;;  %v10311_v15 = vld [vmem:[#allocation134_spill] sm:$0xff] }
 0x6bd   :  { %2064 = vrot.lane.b32.xlu0 %v6783_v5, %s4935_s0  ;;  %1650 = vrot.lane.b32.xlu2 %v1455_v4, %s4936_s30  ;;  %v1556_v62 = vsel %vm528_vm4, %v10311_v15, %v6331_v26  ;;  %v10315_v26 = vld [vmem:[#allocation131_spill] sm:$0xff] }
 0x6be   :  { %2863 = vmatpush.bf16.msra.mxu2 %v2411_v8  ;;  %v6808_v51 = vpop.permute.xlu0 %1768  ;;  %v6810_v9 = vpop.permute.xlu1 %1624  ;;  %10306 = vst [vmem:[#allocation119_spill] sm:$0xff] %v6819_v37  ;;  %v10310_v8 = vld [vmem:[#allocation123_spill] sm:$0xff]  ;;  %v6845_v44 = vmul.f32 %v1556_v62, %v5208_v56  ;;  %v1540_v62 = vsel %vm528_vm4, %v6380_v47, %v10315_v26 }
 0x6bf   :  { %10303 = vst [vmem:[#allocation27_spill] sm:$0xff] %v6808_v51  ;;  %v6816_v42 = vpop.permute.xlu2 %1770 }
 0x6c0   :  { %10305 = vst [vmem:[#allocation24_spill] sm:$0xff] %v6816_v42 }
 0x6c1   :  { %10313 = vst [vmem:[#allocation123_spill] sm:$0xff] %v6845_v44 }
 0x6c2   :  { %2864 = vmatpush.bf16.msra.mxu2 %v2407_v41  ;;  %v1404_v41 = vsel %vm500_vm5, %v10310_v8, %v6456_v33 }
 0x6c3   :  { %v6842_v3 = vmul.f32 %v1404_v41, %v5228_v6  ;;  %v6863_v41 = vmul.f32 %v1540_v62, %v5232_v7 }
 0x6c4   :  { %1744 = vrot.lane.b32.xlu1 %v6819_v37, %s4936_s30 }
 0x6c5   :  { %1986 = vrot.lane.b32.xlu2 %v6613_v19, %s4935_s0  ;;  %1634 = vrot.lane.b32.xlu0 %v6558_v18, %s4936_s30  ;;  %10312 = vst [vmem:[#allocation107_spill] sm:$0xff] %v6842_v3 }
 0x6c6   :  { %v6827_v28 = vpop.permute.xlu1 %1736  ;;  %v6829_v45 = vpop.permute.xlu0 %1672 }
 0x6c7   :  { %10307 = vst [vmem:[#allocation127_spill] sm:$0xff] %v6827_v28  ;;  %v6831_v20 = vpop.permute.xlu2 %2028 }
 0x6c8   :  { %10308 = vst [vmem:[#allocation100_spill] sm:$0xff] %v6829_v45  ;;  %v10321_v45 = vld [vmem:[#allocation105_spill] sm:$0xff] }
 0x6c9   :  { %10309 = vst [vmem:[#allocation108_spill] sm:$0xff] %v6831_v20 }
 0x6cc   :  { %2034 = vrot.lane.b32.xlu1 %v1455_v4, %s4935_s0 }
 0x6cd   :  { %1778 = vrot.lane.b32.xlu2 %v6845_v44, %s4936_s30  ;;  %1746 = vrot.lane.b32.xlu0 %v6842_v3, %s4936_s30  ;;  %v10341_v3 = vld [vmem:[#allocation58_spill] sm:$0xff] }
 0x6ce   :  { %v6852_v33 = vpop.permute.xlu0 %1626  ;;  %v6854_v23 = vpop.permute.xlu1 %2026 }
 0x6cf   :  { %10314 = vst [vmem:[#allocation134_spill] sm:$0xff] %v6854_v23  ;;  %v6856_v52 = vpop.permute.xlu2 %1596 }
 0x6d4   :  { %2018 = vrot.lane.b32.xlu1 %v6558_v18, %s4935_s0 }
 0x6d5   :  { %1682 = vrot.lane.b32.xlu2 %v6863_v41, %s4936_s30  ;;  %2066 = vrot.lane.b32.xlu0 %v6863_v41, %s4935_s0 }
 0x6d6   :  { %v6871_v4 = vpop.permute.xlu0 %1642  ;;  %v6873_v16 = vpop.permute.xlu1 %1594 }
 0x6d7   :  { %10316 = vst [vmem:[#allocation131_spill] sm:$0xff] %v6871_v4  ;;  %v6875_v39 = vpop.permute.xlu2 %2060 }
 0x6d8   :  { %10317 = vst [vmem:[#allocation150_spill] sm:$0xff] %v6875_v39 }
 0x6dc   :  { %1602 = vrot.lane.b32.xlu1 %v6613_v19, %s4936_s30 }
 0x6dd   :  { %2036 = vrot.lane.b32.xlu2 %v6753_v38, %s4935_s0  ;;  %1652 = vrot.lane.b32.xlu0 %v6753_v38, %s4936_s30  ;;  %v10323_v38 = vld [vmem:[#allocation130_spill] sm:$0xff] }
 0x6de   :  { %v6883_v18 = vpop.permute.xlu0 %1738  ;;  %v6885_v47 = vpop.permute.xlu1 %2058  ;;  %v1405_v50 = vsel %vm500_vm5, %v10323_v38, %v6594_v12  ;;  %v10329_v12 = vld [vmem:[#allocation141_spill] sm:$0xff] }
 0x6df   :  { %10318 = vst [vmem:[#allocation151_spill] sm:$0xff] %v6883_v18  ;;  %v6887_v62 = vpop.permute.xlu2 %1982  ;;  %v6906_v39 = vmul.f32 %v1405_v50, %v5228_v6  ;;  %v1557_v6 = vsel %vm528_vm4, %v6654_v36, %v10329_v12  ;;  %v10335_v12 = vld [vmem:[#allocation79_spill] sm:$0xff] }
 0x6e0   :  { %10319 = vst [vmem:[#allocation152_spill] sm:$0xff] %v6885_v47  ;;  %v6925_v50 = vmul.f32 %v1557_v6, %v5208_v56 }
 0x6e1   :  { %10320 = vst [vmem:[#allocation153_spill] sm:$0xff] %v6887_v62 }
 0x6e2   :  { %10325 = vst [vmem:[#allocation155_spill] sm:$0xff] %v6906_v39 }
 0x6e3   :  { %10330 = vst [vmem:[#allocation141_spill] sm:$0xff] %v6925_v50 }
 0x6e4   :  { %1636 = vrot.lane.b32.xlu1 %v6561_v63, %s4936_s30 }
 0x6e5   :  { %2054 = vrot.lane.b32.xlu0 %v10321_v45, %s4935_s0  ;;  %2020 = vrot.lane.b32.xlu2 %v6561_v63, %s4935_s0 }
 0x6e6   :  { %v6895_v19 = vpop.permute.xlu0 %1674  ;;  %v6897_v14 = vpop.permute.xlu1 %1628 }
 0x6e7   :  { %10322 = vst [vmem:[#allocation154_spill] sm:$0xff] %v6895_v19  ;;  %v6903_v37 = vpop.permute.xlu2 %1774 }
 0x6e8   :  { %10324 = vst [vmem:[#allocation130_spill] sm:$0xff] %v6903_v37 }
 0x6ec   :  { %1748 = vrot.lane.b32.xlu1 %v6906_v39, %s4936_s30  ;;  %v10331_v39 = vld [vmem:[#allocation114_spill] sm:$0xff] }
 0x6ed   :  { %1988 = vrot.lane.b32.xlu0 %v6617_v53, %s4935_s0  ;;  %1604 = vrot.lane.b32.xlu2 %v6617_v53, %s4936_s30 }
 0x6ee   :  { %v6914_v63 = vpop.permute.xlu0 %2012  ;;  %v6916_v19 = vpop.permute.xlu1 %1644 }
 0x6ef   :  { %10326 = vst [vmem:[#allocation156_spill] sm:$0xff] %v6914_v63  ;;  %v6918_v30 = vpop.permute.xlu2 %2062 }
 0x6f0   :  { %10327 = vst [vmem:[#allocation157_spill] sm:$0xff] %v6916_v19 }
 0x6f1   :  { %10328 = vst [vmem:[#allocation158_spill] sm:$0xff] %v6918_v30 }
 0x6f4   :  { %2056 = vrot.lane.b32.xlu1 %v10331_v39, %s4935_s0  ;;  %v1412_v39 = vsel %vm500_vm5, %v10284_v60, %v10310_v8 }
 0x6f5   :  { %1780 = vrot.lane.b32.xlu0 %v6925_v50, %s4936_s30  ;;  %2008 = vrot.lane.b32.xlu2 %v6308_v55, %s4935_s0  ;;  %v10339_v50 = vld [vmem:[#allocation91_spill] sm:$0xff] }
 0x6f6   :  { %v6933_v53 = vpop.permute.xlu0 %1980  ;;  %v6935_v63 = vpop.permute.xlu1 %1740 }
 0x6f7   :  { %10332 = vst [vmem:[#allocation159_spill] sm:$0xff] %v6933_v53  ;;  %v6937_v30 = vpop.permute.xlu2 %2032 }
 0x6f8   :  { %10333 = vst [vmem:[#allocation160_spill] sm:$0xff] %v6935_v63 }
 0x6f9   :  { %10334 = vst [vmem:[#allocation161_spill] sm:$0xff] %v6937_v30 }
 0x6fc   :  { %1714 = vrot.lane.b32.xlu1 %v10335_v12, %s4936_s30 }
 0x6fd   :  { %1640 = vrot.lane.b32.xlu0 %v10302_v0, %s4936_s30  ;;  %1638 = vrot.lane.b32.xlu2 %v10301_v13, %s4936_s30 }
 0x6fe   :  { %v6945_v56 = vpop.permute.xlu0 %1772  ;;  %v6947_v6 = vpop.permute.xlu1 %1676 }
 0x6ff   :  { %10336 = vst [vmem:[#allocation162_spill] sm:$0xff] %v6945_v56  ;;  %v6949_v55 = vpop.permute.xlu2 %1648 }
 0x700   :  { %10337 = vst [vmem:[#allocation163_spill] sm:$0xff] %v6947_v6  ;;  %v10342_v6 = vld [vmem:[#allocation71_spill] sm:$0xff] }
 0x701   :  { %10338 = vst [vmem:[#allocation164_spill] sm:$0xff] %v6949_v55  ;;  %v10350_v55 = vld [vmem:[#allocation26_spill] sm:$0xff] }
 0x704   :  { %2100 = vrot.lane.b32.xlu1 %v10339_v50, %s4935_s0 }
 0x705   :  { %2098 = vrot.lane.b32.xlu0 %v10335_v12, %s4935_s0  ;;  %1716 = vrot.lane.b32.xlu2 %v10339_v50, %s4936_s30 }
 0x706   :  { %v6957_v47 = vpop.permute.xlu1 %2030  ;;  %v6959_v0 = vpop.permute.xlu0 %1630 }
 0x707   :  { %10340 = vst [vmem:[#allocation165_spill] sm:$0xff] %v6957_v47  ;;  %v6961_v13 = vpop.permute.xlu2 %1600 }
 0x70c   :  { %2094 = vrot.lane.b32.xlu1 %v10341_v3, %s4935_s0 }
 0x70d   :  { %1712 = vrot.lane.b32.xlu0 %v10342_v6, %s4936_s30  ;;  %1710 = vrot.lane.b32.xlu2 %v10341_v3, %s4936_s30 }
 0x70e   :  { %v6969_v44 = vpop.permute.xlu1 %1646 }
 0x70f   :  { %10343 = vst [vmem:[#allocation166_spill] sm:$0xff] %v6969_v44  ;;  %v6971_v12 = vpop.permute.xlu0 %2014  ;;  %v6973_v50 = vpop.permute.xlu2 %1680  ;;  %v10354_v44 = vld [vmem:[#allocation30_spill] sm:$0xff] }
 0x710   :  { %10344 = vst [vmem:[#allocation167_spill] sm:$0xff] %v6971_v12 }
 0x711   :  { %10345 = vst [vmem:[#allocation168_spill] sm:$0xff] %v6973_v50 }
 0x714   :  { %1708 = vrot.lane.b32.xlu1 %v10346_v17, %s4936_s30 }
 0x715   :  { %1706 = vrot.lane.b32.xlu0 %v10347_v21, %s4936_s30  ;;  %2096 = vrot.lane.b32.xlu2 %v10342_v6, %s4935_s0 }
 0x716   :  { %v6981_v4 = vpop.permute.xlu1 %1598 }
 0x717   :  { %v6983_v19 = vpop.permute.xlu0 %1742  ;;  %v6985_v3 = vpop.permute.xlu2 %1650 }
 0x718   :  { %10348 = vst [vmem:[#allocation169_spill] sm:$0xff] %v6983_v19 }
 0x719   :  { %10349 = vst [vmem:[#allocation170_spill] sm:$0xff] %v6985_v3 }
 0x71c   :  { %1702 = vrot.lane.b32.xlu1 %v10350_v55, %s4936_s30 }
 0x71d   :  { %2092 = vrot.lane.b32.xlu0 %v10346_v17, %s4935_s0  ;;  %2090 = vrot.lane.b32.xlu2 %v10347_v21, %s4935_s0  ;;  %v10355_v17 = vld [vmem:[#allocation135_spill] sm:$0xff] }
 0x71e   :  { %v6993_v12 = vpop.permute.xlu1 %1678  ;;  %v1541_v21 = vsel %vm528_vm4, %v10356_v27, %v10355_v17 }
 0x71f   :  { %10351 = vst [vmem:[#allocation171_spill] sm:$0xff] %v6993_v12  ;;  %v6995_v50 = vpop.permute.xlu0 %1984  ;;  %v6997_v6 = vpop.permute.xlu2 %1986 }
 0x720   :  { %10352 = vst [vmem:[#allocation172_spill] sm:$0xff] %v6995_v50 }
 0x721   :  { %10353 = vst [vmem:[#allocation173_spill] sm:$0xff] %v6997_v6 }
 0x724   :  { %2088 = vrot.lane.b32.xlu1 %v10354_v44, %s4935_s0 }
 0x725   :  { %2086 = vrot.lane.b32.xlu0 %v10350_v55, %s4935_s0  ;;  %1704 = vrot.lane.b32.xlu2 %v10354_v44, %s4936_s30  ;;  %v7020_v55 = vmul.f32 %v1541_v21, %v5232_v7  ;;  %v10359_v44 = vld [vmem:[#allocation13_spill] sm:$0xff]  ;;  %v1532_v7 = vsel %vm528_vm4, %v10315_v26, %v10311_v15 }
 0x726   :  { %v7005_v3 = vpop.permute.xlu1 %1632  ;;  %v7023_v45 = vmul.f32 %v1412_v39, %v10359_v44  ;;  %v10364_v39 = vld [vmem:[#allocation83_spill] sm:$0xff]  ;;  %v7046_v1 = vmul.f32 %v1532_v7, %v10365_v58  ;;  %v10370_v7 = vld [vmem:[#allocation106_spill] sm:$0xff] }
 0x727   :  { %v7011_v12 = vpop.permute.xlu0 %1776  ;;  %v7013_v11 = vpop.permute.xlu2 %1778  ;;  %10358 = vst [vmem:[#allocation124_spill] sm:$0xff] %v7020_v55  ;;  %v1410_v8 = vsel %vm500_vm5, %v10364_v39, %v6243_v43  ;;  %v1411_v39 = vsel %vm500_vm5, %v10370_v7, %v10304_v40 }
 0x728   :  { %10357 = vst [vmem:[#allocation135_spill] sm:$0xff] %v7013_v11  ;;  %v7049_v57 = vmul.f32 %v1410_v8, %v10359_v44  ;;  %v7068_v8 = vmul.f32 %v1411_v39, %v10359_v44  ;;  %v10375_v39 = vld [vmem:[#allocation89_spill] sm:$0xff] }
 0x729   :  { %10360 = vst [vmem:[#allocation13_spill] sm:$0xff] %v7023_v45 }
 0x72a   :  { %10366 = vst [vmem:[#allocation83_spill] sm:$0xff] %v7046_v1 }
 0x72b   :  { %10367 = vst [vmem:[#allocation12_spill] sm:$0xff] %v7049_v57 }
 0x72c   :  { %2068 = vrot.lane.b32.xlu1 %v7020_v55, %s4935_s0  ;;  %10371 = vst [vmem:[#allocation106_spill] sm:$0xff] %v7068_v8 }
 0x72d   :  { %1698 = vrot.lane.b32.xlu2 %v7023_v45, %s4936_s30  ;;  %1684 = vrot.lane.b32.xlu0 %v7020_v55, %s4936_s30 }
 0x72e   :  { %v7031_v27 = vpop.permute.xlu1 %2016 }
 0x72f   :  { %10361 = vst [vmem:[#allocation174_spill] sm:$0xff] %v7031_v27  ;;  %v7037_v21 = vpop.permute.xlu0 %2064  ;;  %v7039_v60 = vpop.permute.xlu2 %1682 }
 0x730   :  { %10362 = vst [vmem:[#allocation175_spill] sm:$0xff] %v7037_v21  ;;  %v1531_v21 = vsel %vm528_vm4, %v10291_v2, %v10290_v35 }
 0x731   :  { %10363 = vst [vmem:[#allocation176_spill] sm:$0xff] %v7039_v60  ;;  %v10376_v60 = vld [vmem:[#allocation70_spill] sm:$0xff]  ;;  %v7095_v5 = vmul.f32 %v1531_v21, %v10365_v58 }
 0x733   :  { %10379 = vst [vmem:[#allocation89_spill] sm:$0xff] %v7095_v5 }
 0x734   :  { %1730 = vrot.lane.b32.xlu1 %v7046_v1, %s4936_s30 }
 0x735   :  { %1694 = vrot.lane.b32.xlu2 %v7049_v57, %s4936_s30  ;;  %2082 = vrot.lane.b32.xlu0 %v7023_v45, %s4935_s0  ;;  %v10378_v45 = vld [vmem:[#allocation102_spill] sm:$0xff] }
 0x736   :  { %v7057_v15 = vpop.permute.xlu1 %1744 }
 0x737   :  { %10368 = vst [vmem:[#allocation177_spill] sm:$0xff] %v7057_v15  ;;  %v7059_v26 = vpop.permute.xlu0 %1634  ;;  %v7061_v43 = vpop.permute.xlu2 %2036 }
 0x738   :  { %10369 = vst [vmem:[#allocation178_spill] sm:$0xff] %v7061_v43 }
 0x73c   :  { %2114 = vrot.lane.b32.xlu1 %v7046_v1, %s4935_s0  ;;  %v1409_v1 = vsel %vm500_vm5, %v10376_v60, %v10375_v39  ;;  %v10386_v60 = vld [vmem:[#allocation61_spill] sm:$0xff]  ;;  %v10387_v39 = vld [vmem:[#allocation68_spill] sm:$0xff] }
 0x73d   :  { %2078 = vrot.lane.b32.xlu2 %v7049_v57, %s4935_s0  ;;  %1696 = vrot.lane.b32.xlu0 %v7068_v8, %s4936_s30  ;;  %v10377_v57 = vld [vmem:[#allocation95_spill] sm:$0xff]  ;;  %v7098_v31 = vmul.f32 %v1409_v1, %v10359_v44 }
 0x73e   :  { %v7076_v27 = vpop.permute.xlu1 %2034  ;;  %v1530_v48 = vsel %vm528_vm4, %v10378_v45, %v10377_v57  ;;  %v10383_v57 = vld [vmem:[#allocation76_spill] sm:$0xff]  ;;  %v10384_v45 = vld [vmem:[#allocation67_spill] sm:$0xff] }
 0x73f   :  { %10372 = vst [vmem:[#allocation179_spill] sm:$0xff] %v7076_v27  ;;  %v7082_v40 = vpop.permute.xlu0 %1746  ;;  %v7084_v7 = vpop.permute.xlu2 %2020  ;;  %v7101_v2 = vmul.f32 %v1530_v48, %v10365_v58  ;;  %v1408_v1 = vsel %vm500_vm5, %v10384_v45, %v10383_v57 }
 0x740   :  { %10373 = vst [vmem:[#allocation180_spill] sm:$0xff] %v7082_v40  ;;  %v7124_v24 = vmul.f32 %v1408_v1, %v10359_v44 }
 0x741   :  { %10374 = vst [vmem:[#allocation181_spill] sm:$0xff] %v7084_v7  ;;  %v1528_v7 = vsel %vm528_vm4, %v10387_v39, %v10386_v60 }
 0x742   :  { %10380 = vst [vmem:[#allocation70_spill] sm:$0xff] %v7098_v31  ;;  %v7127_v55 = vmul.f32 %v1528_v7, %v10365_v58 }
 0x743   :  { %10381 = vst [vmem:[#allocation95_spill] sm:$0xff] %v7101_v2 }
 0x744   :  { %1728 = vrot.lane.b32.xlu1 %v7095_v5, %s4936_s30  ;;  %10388 = vst [vmem:[#allocation67_spill] sm:$0xff] %v7124_v24 }
 0x745   :  { %1692 = vrot.lane.b32.xlu2 %v7098_v31, %s4936_s30  ;;  %1726 = vrot.lane.b32.xlu0 %v7101_v2, %s4936_s30  ;;  %10389 = vst [vmem:[#allocation61_spill] sm:$0xff] %v7127_v55 }
 0x746   :  { %v7109_v35 = vpop.permute.xlu1 %2018 }
 0x747   :  { %10382 = vst [vmem:[#allocation102_spill] sm:$0xff] %v7109_v35  ;;  %v7115_v21 = vpop.permute.xlu0 %2066  ;;  %v7117_v48 = vpop.permute.xlu2 %1604  ;;  %v4647_v35 = vld [vmem:[#allocation3 + $0x8] sm:$0xf] }
 0x748   :  { %10385 = vst [vmem:[#allocation76_spill] sm:$0xff] %v7115_v21  ;;  %v4766_v21 = vld [vmem:[#allocation3 + $0x18] sm:$0xf0] }
 0x74c   :  { %1690 = vrot.lane.b32.xlu1 %v7124_v24, %s4936_s30 }
 0x74d   :  { %1722 = vrot.lane.b32.xlu2 %v7127_v55, %s4936_s30  ;;  %2080 = vrot.lane.b32.xlu0 %v7068_v8, %s4935_s0  ;;  %v10394_v8 = vld [vmem:[#allocation84_spill] sm:$0xff] }
 0x74e   :  { %v7135_v57 = vpop.permute.xlu1 %1602 }
 0x74f   :  { %v7137_v45 = vpop.permute.xlu0 %1652  ;;  %v7139_v60 = vpop.permute.xlu2 %2008 }
 0x750   :  { %10390 = vst [vmem:[#allocation68_spill] sm:$0xff] %v7137_v45  ;;  %v10395_v45 = vld [vmem:[#allocation92_spill] sm:$0xff] }
 0x751   :  { %10391 = vst [vmem:[#allocation182_spill] sm:$0xff] %v7139_v60  ;;  %v1529_v60 = vsel %vm528_vm4, %v10395_v45, %v10394_v8  ;;  %v2220_v8 = vsel %vm624_vm6, %v6997_v6, %v7076_v27  ;;  %v10400_v45 = vld [vmem:[#allocation35_spill] sm:$0xff] }
 0x754   :  { %2112 = vrot.lane.b32.xlu1 %v7095_v5, %s4935_s0  ;;  %v7157_v5 = vor.u32 %v4766_v21, %v4647_v35  ;;  %v10399_v21 = vld [vmem:[#allocation43_spill] sm:$0xff] }
 0x755   :  { %2076 = vrot.lane.b32.xlu2 %v7098_v31, %s4935_s0  ;;  %2110 = vrot.lane.b32.xlu0 %v7101_v2, %s4935_s0  ;;  %v7161_v31 = vmul.f32 %v1529_v60, %v10365_v58  ;;  %v1860_v2 = vsel %vm580_vm7, %v7082_v40, %v7135_v57  ;;  %v1406_v60 = vsel %vm500_vm5, %v10400_v45, %v10399_v21  ;;  %v10402_v40 = vld [vmem:[#allocation55_spill] sm:$0xff] }
 0x756   :  { %v7147_v7 = vpop.permute.xlu1 %1636  ;;  %10396 = vst [vmem:[#allocation84_spill] sm:$0xff] %v7157_v5  ;;  %2753 = vmatmul.bf16.vlgmr.msrb.gmra.mxu2 %v7157_v5  ;;  %v10401_v5 = vld [vmem:[#allocation47_spill] sm:$0xff]  ;;  %v1533_v21 = vsel %vm528_vm4, %v10355_v17, %v6654_v36  ;;  %v2286_v36 = vmul.f32 %v2220_v8, %v5406_v34  ;;  %v2218_v8 = vsel %vm624_vm6, %v6887_v62, %v6957_v47  ;;  %v10432_v47 = vld [vmem:[#allocation96_spill] sm:$0xff] }
 0x757   :  { %v7149_v1 = vpop.permute.xlu0 %2054  ;;  %v7151_v39 = vpop.permute.xlu2 %1638  ;;  %10397 = vst [vmem:[#allocation92_spill] sm:$0xff] %v7161_v31 }
 0x758   :  { %10392 = vst [vmem:[#allocation183_spill] sm:$0xff] %v7149_v1  ;;  %v1859_v1 = vsel %vm580_vm7, %v7057_v15, %v6961_v13  ;;  %v2219_v15 = vsel %vm624_vm6, %v6995_v50, %v6937_v30  ;;  %v1857_v50 = vsel %vm580_vm7, %v6935_v63, %v6856_v52  ;;  %v10449_v63 = vld [vmem:[#allocation87_spill] sm:$0xff] }
 0x759   :  { %10393 = vst [vmem:[#allocation184_spill] sm:$0xff] %v7151_v39 }
 0x75c   :  { %2074 = vrot.lane.b32.xlu1 %v7124_v24, %s4935_s0 }
 0x75d   :  { %2106 = vrot.lane.b32.xlu2 %v7127_v55, %s4935_s0  ;;  %1724 = vrot.lane.b32.xlu0 %v7161_v31, %s4936_s30  ;;  %v1407_v55 = vsel %vm500_vm5, %v10402_v40, %v10401_v5  ;;  %v1902_v5 = vmul.f32 %v1860_v2, %v5425_v61  ;;  %v7220_v2 = vmul.f32 %v1406_v60, %v10359_v44 }
 0x75e   :  { %v7177_v35 = vpop.permute.xlu1 %1748 }
 0x75f   :  { %10398 = vst [vmem:[#allocation185_spill] sm:$0xff] %v7177_v35  ;;  %v7191_v24 = vpop.permute.xlu0 %1988  ;;  %v1861_v6 = vsel %vm580_vm7, %v7177_v35, %v7117_v48  ;;  %v7197_v27 = vpop.permute.xlu2 %1716  ;;  %v1858_v35 = vsel %vm580_vm7, %v6983_v19, %v6981_v4  ;;  %v7227_v19 = vmul.f32 %v1533_v21, %v10365_v58  ;;  %v1856_v21 = vsel %vm580_vm7, %v6883_v18, %v6873_v16  ;;  %v10438_v18 = vld [vmem:[#allocation82_spill] sm:$0xff] }
 0x760   :  { %10403 = vst [vmem:[#allocation43_spill] sm:$0xff] %v7191_v24  ;;  %v2221_v40 = vsel %vm624_vm6, %v7191_v24, %v7061_v43  ;;  %v1906_v45 = vmul.f32 %v1861_v6, %v5425_v61  ;;  %v7223_v24 = vmul.f32 %v1407_v55, %v10359_v44  ;;  %v1898_v6 = vmul.f32 %v1859_v1, %v5425_v61 }
 0x761   :  { %v2290_v17 = vmul.f32 %v2221_v40, %v5406_v34  ;;  %10404 = vst [vmem:[#allocation35_spill] sm:$0xff] %v7227_v19  ;;  %v1894_v55 = vmul.f32 %v1858_v35, %v5425_v61  ;;  %v2282_v40 = vmul.f32 %v2219_v15, %v5406_v34  ;;  %v1413_v1 = vsel %vm500_vm5, %v6501_v32, %v10323_v38 }
 0x762   :  { %v2370_v43 = vpack.c.bf16 %v1906_v45, %v1902_v5  ;;  %v2217_v35 = vsel %vm624_vm6, %v6933_v53, %v6831_v20  ;;  %v1890_v15 = vmul.f32 %v1857_v50, %v5425_v61  ;;  %v2278_v32 = vmul.f32 %v2218_v8, %v5406_v34 }
 0x763   :  { %v2466_v60 = vpack.c.bf16 %v2290_v17, %v2286_v36  ;;  %v1876_v38 = vsel %vm580_vm7, %v7013_v11, %v7059_v26  ;;  %v2366_v5 = vpack.c.bf16 %v1898_v6, %v1894_v55  ;;  %v1854_v45 = vsel %vm580_vm7, %v6761_v10, %v6793_v25  ;;  %v4771_v55 = vld [vmem:[#allocation3 + $0x40] sm:$0xf0] }
 0x764   :  { %1688 = vrot.lane.b32.xlu1 %v7223_v24, %s4936_s30  ;;  %2691 = vmatpush.bf16.msrb.mxu0 %v2370_v43  ;;  %v2215_v50 = vsel %vm624_vm6, %v6795_v46, %v6666_v59  ;;  %v1855_v36 = vsel %vm580_vm7, %v6827_v28, %v6721_v22  ;;  %v2216_v17 = vsel %vm624_vm6, %v6797_v29, %v6854_v23 }
 0x765   :  { %1686 = vrot.lane.b32.xlu0 %v7220_v2, %s4936_s30  ;;  %1732 = vrot.lane.b32.xlu2 %v7227_v19, %s4936_s30  ;;  %v1886_v53 = vmul.f32 %v1856_v21, %v5425_v61  ;;  %v2274_v46 = vmul.f32 %v2217_v35, %v5406_v34  ;;  %v2462_v10 = vpack.c.bf16 %v2282_v40, %v2278_v32  ;;  %v10408_v32 = vld [vmem:[#allocation138_spill] sm:$0xff] }
 0x766   :  { %2778 = vmatpush.bf16.msrb.mxu3 %v2466_v60  ;;  %v7263_v43 = vpop.permute.xlu1 %2056  ;;  %v4667_v60 = vld [vmem:[#allocation3 + $0x30] sm:$0xf]  ;;  %v1875_v29 = vsel %vm580_vm7, %v7011_v12, %v7005_v3  ;;  %v1966_v28 = vmul.f32 %v1876_v38, %v5425_v61  ;;  %v7300_v21 = vmul.f32 %v1413_v1, %v10359_v44  ;;  %v1882_v35 = vmul.f32 %v1855_v36, %v5425_v61  ;;  %v4765_v36 = vld [vmem:[#allocation3 + $0x10] sm:$0xf0] }
 0x767   :  { %10405 = vst [vmem:[#allocation47_spill] sm:$0xff] %v7263_v43  ;;  %v7281_v6 = vpop.permute.xlu0 %1780  ;;  %v7283_v8 = vpop.permute.xlu2 %1710  ;;  %v7297_v20 = vor.u32 %v4771_v55, %v4667_v60  ;;  %v2270_v23 = vmul.f32 %v2216_v17, %v5406_v34  ;;  %v2362_v40 = vpack.c.bf16 %v1890_v15, %v1886_v53  ;;  %v1878_v38 = vmul.f32 %v1854_v45, %v5425_v61  ;;  %v4639_v15 = vld [vmem:[#allocation3] sm:$0xf]  ;;  %v10409_v17 = vld [vmem:[#allocation53_spill] sm:$0xff] }
 0x768   :  { %10406 = vst [vmem:[#allocation55_spill] sm:$0xff] %v7281_v6  ;;  %v1877_v62 = vsel %vm580_vm7, %v7281_v6, %v7147_v7  ;;  %2692 = vmatpush.bf16.msrb.mxu0 %v2366_v5  ;;  %v2214_v5 = vsel %vm624_vm6, %v10408_v32, %v6714_v54  ;;  %v2266_v1 = vmul.f32 %v2215_v50, %v5406_v34  ;;  %v4649_v50 = vld [vmem:[#allocation3 + $0x1c] sm:$0xf0]  ;;  %v10413_v32 = vld [vmem:[#allocation65_spill] sm:$0xff]  ;;  %v10437_v6 = vld [vmem:[#allocation80_spill] sm:$0xff] }
 0x769   :  { %v1970_v59 = vmul.f32 %v1877_v62, %v5425_v61  ;;  %10407 = vst [vmem:[#allocation186_spill] sm:$0xff] %v7297_v20  ;;  %v1874_v62 = vsel %vm580_vm7, %v6903_v37, %v6959_v0  ;;  %2758 = vmatmul.bf16.gmra.mxu2 %v7297_v20  ;;  %v2458_v53 = vpack.c.bf16 %v2274_v46, %v2270_v23  ;;  %v10410_v60 = vld [vmem:[#allocation50_spill] sm:$0xff]  ;;  %v10452_v37 = vld [vmem:[#allocation68_spill] sm:$0xff] }
 0x76a   :  { %2779 = vmatpush.bf16.msrb.mxu3 %v2462_v10  ;;  %v1962_v10 = vmul.f32 %v1875_v29, %v5425_v61  ;;  %v1873_v45 = vsel %vm580_vm7, %v6945_v56, %v6897_v14  ;;  %v1958_v29 = vmul.f32 %v1874_v62, %v5425_v61  ;;  %v2358_v46 = vpack.c.bf16 %v1882_v35, %v1878_v38 }
 0x76b   :  { %v2402_v44 = vpack.c.bf16 %v1970_v59, %v1966_v28  ;;  %v2262_v59 = vmul.f32 %v2214_v5, %v5406_v34  ;;  %v4764_v28 = vld [vmem:[#allocation3 + $0xc] sm:$0xf]  ;;  %v1526_v55 = vsel %vm528_vm4, %v10410_v60, %v10409_v17  ;;  %v1954_v35 = vmul.f32 %v1873_v45, %v5425_v61 }
 0x76c   :  { %2084 = vrot.lane.b32.xlu1 %v7300_v21, %s4935_s0  ;;  %2693 = vmatpush.bf16.msrb.mxu0 %v2362_v40  ;;  %v1872_v40 = vsel %vm580_vm7, %v6816_v42, %v6852_v33  ;;  %v2398_v38 = vpack.c.bf16 %v1962_v10, %v1958_v29  ;;  %v1871_v60 = vsel %vm580_vm7, %v6808_v51, %v6810_v9  ;;  %v10418_v10 = vld [vmem:[#allocation142_spill] sm:$0xff]  ;;  %v4776_v51 = vld [vmem:[#allocation3 + $0x68] sm:$0xf0]  ;;  %v10434_v42 = vld [vmem:[#allocation125_spill] sm:$0xff] }
 0x76d   :  { %2108 = vrot.lane.b32.xlu0 %v7161_v31, %s4935_s0  ;;  %2116 = vrot.lane.b32.xlu2 %v7227_v19, %s4935_s0  ;;  %v10414_v31 = vld [vmem:[#allocation54_spill] sm:$0xff]  ;;  %v10415_v19 = vld [vmem:[#allocation124_spill] sm:$0xff]  ;;  %v1841_v11 = vsel %vm580_vm7, %v10438_v18, %v10437_v6 }
 0x76e   :  { %2720 = vmatpush.bf16.msrb.mxu1 %v2402_v44  ;;  %2780 = vmatpush.bf16.msrb.mxu3 %v2458_v53  ;;  %v7328_v23 = vpop.permute.xlu1 %1714  ;;  %v7342_v44 = vor.u32 %v4765_v36, %v4639_v15  ;;  %v2454_v53 = vpack.c.bf16 %v2266_v1, %v2262_v59  ;;  %v1527_v17 = vsel %vm528_vm4, %v10414_v31, %v10413_v32  ;;  %v10419_v1 = vld [vmem:[#allocation145_spill] sm:$0xff]  ;;  %v10420_v32 = vld [vmem:[#allocation86_spill] sm:$0xff]  ;;  %v10421_v59 = vld [vmem:[#allocation143_spill] sm:$0xff] }
 0x76f   :  { %v7338_v5 = vpop.permute.xlu0 %1640  ;;  %v7340_v62 = vpop.permute.xlu2 %2096  ;;  %v2451_v54 = vpack.c.bf16 %v10415_v19, %v6863_v41  ;;  %v7355_v15 = vor.u32 %v4764_v28, %v4649_v50  ;;  %v7358_v36 = vmul.f32 %v1526_v55, %v10365_v58  ;;  %v1845_v45 = vsel %vm580_vm7, %v10419_v1, %v10418_v10  ;;  %v10423_v19 = vld [vmem:[#allocation128_spill] sm:$0xff]  ;;  %v10429_v1 = vld [vmem:[#allocation99_spill] sm:$0xff] }
 0x770   :  { %10411 = vst [vmem:[#allocation53_spill] sm:$0xff] %v7338_v5  ;;  %2694 = vmatpush.bf16.msrb.mxu0 %v2358_v46  ;;  %v1950_v31 = vmul.f32 %v1872_v40, %v5425_v61  ;;  %v1870_v29 = vsel %vm580_vm7, %v10421_v59, %v10420_v32  ;;  %v7371_v41 = vmul.f32 %v1527_v17, %v10365_v58  ;;  %v10424_v46 = vld [vmem:[#allocation118_spill] sm:$0xff]  ;;  %v10425_v40 = vld [vmem:[#allocation19_spill] sm:$0xff]  ;;  %v10426_v58 = vld [vmem:[#allocation144_spill] sm:$0xff] }
 0x771   :  { %10412 = vst [vmem:[#allocation50_spill] sm:$0xff] %v7342_v44  ;;  %v1844_v28 = vsel %vm580_vm7, %v10424_v46, %v10423_v19  ;;  %v1946_v50 = vmul.f32 %v1871_v60, %v5425_v61  ;;  %v10428_v17 = vld [vmem:[#allocation116_spill] sm:$0xff]  ;;  %v1942_v60 = vmul.f32 %v1870_v29, %v5425_v61 }
 0x772   :  { %10416 = vst [vmem:[#allocation65_spill] sm:$0xff] %v7355_v15  ;;  %2721 = vmatpush.bf16.msrb.mxu1 %v2398_v38  ;;  %2781 = vmatpush.bf16.msrb.mxu3 %v2454_v53  ;;  %v2394_v55 = vpack.c.bf16 %v1954_v35, %v1950_v31  ;;  %v1939_v38 = vmul.f32 %v1845_v45, %v10425_v40  ;;  %v4763_v45 = vld [vmem:[#allocation3 + $0x4] sm:$0xf]  ;;  %v4641_v31 = vld [vmem:[#allocation3 + $0x14] sm:$0xf0] }
 0x773   :  { %10417 = vst [vmem:[#allocation54_spill] sm:$0xff] %v7358_v36  ;;  %2695 = vmatmul.bf16.vlgmr.msrb.gmra.mxu0 %v7342_v44  ;;  %v1843_v46 = vsel %vm580_vm7, %v10429_v1, %v10428_v17  ;;  %v10431_v1 = vld [vmem:[#allocation93_spill] sm:$0xff]  ;;  %v2390_v29 = vpack.c.bf16 %v1946_v50, %v1942_v60  ;;  %v7409_v20 = vor.u32 %v4763_v45, %v4641_v31  ;;  %v10442_v50 = vld [vmem:[#allocation114_spill] sm:$0xff]  ;;  %v10444_v31 = vld [vmem:[#allocation60_spill] sm:$0xff] }
 0x774   :  { %10422 = vst [vmem:[#allocation124_spill] sm:$0xff] %v7371_v41  ;;  %1718 = vrot.lane.b32.xlu1 %v7358_v36, %s4936_s30  ;;  %v1842_v61 = vsel %vm580_vm7, %v10432_v47, %v10431_v1  ;;  %v1931_v30 = vmul.f32 %v1843_v46, %v10425_v40  ;;  %v10440_v47 = vld [vmem:[#allocation69_spill] sm:$0xff]  ;;  %v4659_v46 = vld [vmem:[#allocation3 + $0x28] sm:$0xf] }
 0x775   :  { %2782 = vmatmul.bf16.vlgmr.msrb.gmra.mxu3 %v7355_v15  ;;  %1700 = vrot.lane.b32.xlu0 %v7300_v21, %s4936_s30  ;;  %v1935_v15 = vmul.f32 %v1844_v28, %v10425_v40  ;;  %v10435_v28 = vld [vmem:[#allocation133_spill] sm:$0xff]  ;;  %10436 = vst [vmem:[#allocation86_spill] sm:$0xff] %v7409_v20  ;;  %v1927_v44 = vmul.f32 %v1842_v61, %v10425_v40  ;;  %v4769_v61 = vld [vmem:[#allocation3 + $0x34] sm:$0xf] }
 0x776   :  { %2890 = vmatpush.bf16.msra.mxu3 %v2451_v54  ;;  %v10427_v54 = vld [vmem:[#allocation37_spill] sm:$0xff]  ;;  %1720 = vrot.lane.b32.xlu2 %v7371_v41, %s4936_s30  ;;  %v7393_v35 = vpop.permute.xlu1 %2100 }
 0x777   :  { %v2447_v53 = vpack.c.bf16 %v10427_v54, %v10426_v58  ;;  %2722 = vmatpush.bf16.msrb.mxu1 %v2394_v55  ;;  %v7396_v59 = vpop.permute.xlu0 %2098  ;;  %v7398_v58 = vpop.permute.xlu2 %2090  ;;  %v4687_v54 = vld [vmem:[#allocation3 + $0x58] sm:$0xf]  ;;  %v2387_v56 = vpack.c.bf16 %v1939_v38, %v1935_v15  ;;  %v2383_v18 = vpack.c.bf16 %v1931_v30, %v1927_v44  ;;  %v4770_v60 = vld [vmem:[#allocation3 + $0x38] sm:$0xf0] }
 0x778   :  { %10430 = vst [vmem:[#allocation142_spill] sm:$0xff] %v7396_v59  ;;  %v7404_v55 = vor.u32 %v4776_v51, %v4687_v54  ;;  %v10439_v51 = vld [vmem:[#allocation77_spill] sm:$0xff] }
 0x779   :  { %v1840_v15 = vsel %vm580_vm7, %v10440_v47, %v10439_v51  ;;  %v10443_v45 = vld [vmem:[#allocation57_spill] sm:$0xff]  ;;  %v10446_v47 = vld [vmem:[#allocation39_spill] sm:$0xff] }
 0x77a   :  { %2891 = vmatpush.bf16.msra.mxu3 %v2447_v53  ;;  %10433 = vst [vmem:[#allocation145_spill] sm:$0xff] %v7404_v55  ;;  %v2443_v53 = vpack.c.bf16 %v10435_v28, %v10434_v42  ;;  %2763 = vmatmul.bf16.gmra.mxu2 %v7404_v55  ;;  %v1923_v42 = vmul.f32 %v1841_v11, %v10425_v40  ;;  %v10448_v55 = vld [vmem:[#allocation75_spill] sm:$0xff] }
 0x77b   :  { %2723 = vmatpush.bf16.msrb.mxu1 %v2390_v29  ;;  %v1839_v54 = vsel %vm580_vm7, %v10444_v31, %v10443_v45  ;;  %v4669_v29 = vld [vmem:[#allocation3 + $0x44] sm:$0xf0]  ;;  %v1919_v28 = vmul.f32 %v1840_v15, %v10425_v40  ;;  %v2435_v45 = vpack.c.bf16 %v10449_v63, %v10448_v55  ;;  %v10453_v63 = vld [vmem:[#allocation81_spill] sm:$0xff] }
 0x77c   :  { %2072 = vrot.lane.b32.xlu1 %v7223_v24, %s4935_s0  ;;  %v1915_v31 = vmul.f32 %v1839_v54, %v10425_v40  ;;  %v7451_v15 = vor.u32 %v4769_v61, %v4669_v29  ;;  %v10454_v55 = vld [vmem:[#allocation49_spill] sm:$0xff]  ;;  %v10457_v61 = vld [vmem:[#allocation94_spill] sm:$0xff] }
 0x77d   :  { %2070 = vrot.lane.b32.xlu0 %v7220_v2, %s4935_s0 }
 0x77e   :  { %2892 = vmatpush.bf16.msra.mxu3 %v2443_v53  ;;  %2724 = vmatmul.bf16.vlgmr.msrb.gmra.mxu1 %v7409_v20  ;;  %v7435_v11 = vpop.permute.xlu1 %2094  ;;  %v10445_v53 = vld [vmem:[#allocation45_spill] sm:$0xff]  ;;  %10450 = vst [vmem:[#allocation118_spill] sm:$0xff] %v7451_v15 }
 0x77f   :  { %2832 = vmatpush.bf16.msra.mxu1 %v2387_v56  ;;  %v10441_v56 = vld [vmem:[#allocation105_spill] sm:$0xff]  ;;  %2102 = vrot.lane.b32.xlu2 %v7358_v36, %s4935_s0  ;;  %v7438_v30 = vpop.permute.xlu0 %1712  ;;  %v7440_v44 = vpop.permute.xlu2 %1704  ;;  %v2379_v36 = vpack.c.bf16 %v1923_v42, %v1919_v28  ;;  %v10455_v42 = vld [vmem:[#allocation63_spill] sm:$0xff] }
 0x780   :  { %v2439_v38 = vpack.c.bf16 %v10442_v50, %v10441_v56  ;;  %v1838_v56 = vsel %vm580_vm7, %v10446_v47, %v10445_v53  ;;  %v7446_v50 = vor.u32 %v4770_v60, %v4659_v46  ;;  %v1837_v47 = vsel %vm580_vm7, %v7117_v48, %v10452_v37  ;;  %v4768_v28 = vld [vmem:[#allocation3 + $0x2c] sm:$0xf] }
 0x781   :  { %v1911_v46 = vmul.f32 %v1838_v56, %v10425_v40  ;;  %v2431_v60 = vpack.c.bf16 %v10455_v42, %v10454_v55  ;;  %v4661_v56 = vld [vmem:[#allocation3 + $0x3c] sm:$0xf0] }
 0x782   :  { %2893 = vmatpush.bf16.msra.mxu3 %v2439_v38  ;;  %10447 = vst [vmem:[#allocation128_spill] sm:$0xff] %v7446_v50  ;;  %v4707_v55 = vld [vmem:[#allocation3 + $0x80] sm:$0xf] }
 0x783   :  { %2833 = vmatpush.bf16.msra.mxu1 %v2383_v18  ;;  %v10451_v18 = vld [vmem:[#allocation170_spill] sm:$0xff]  ;;  %2700 = vmatmul.bf16.gmra.mxu0 %v7446_v50  ;;  %v2375_v48 = vpack.c.bf16 %v1915_v31, %v1911_v46  ;;  %v4781_v31 = vld [vmem:[#allocation3 + $0x90] sm:$0xf0] }
 0x784   :  { %v1836_v38 = vsel %vm580_vm7, %v7135_v57, %v10451_v18  ;;  %2146 = vrot.lane.b32.xlu1 %v10453_v63, %s4935_s0  ;;  %v1907_v57 = vmul.f32 %v1837_v47, %v10425_v40  ;;  %v10459_v46 = vld [vmem:[#allocation164_spill] sm:$0xff]  ;;  %v10460_v63 = vld [vmem:[#allocation33_spill] sm:$0xff]  ;;  %v7497_v37 = vor.u32 %v4781_v31, %v4707_v55 }
 0x785   :  { %v1903_v54 = vmul.f32 %v1836_v38, %v10425_v40  ;;  %2787 = vmatmul.bf16.gmra.mxu3 %v7451_v15  ;;  %2104 = vrot.lane.b32.xlu0 %v7371_v41, %s4935_s0  ;;  %v10461_v15 = vld [vmem:[#allocation38_spill] sm:$0xff]  ;;  %v10470_v31 = vld [vmem:[#allocation13_spill] sm:$0xff] }
 0x786   :  { %2894 = vmatpush.bf16.msra.mxu3 %v2435_v45  ;;  %v7478_v29 = vpop.permute.xlu1 %1708  ;;  %v2427_v41 = vpack.c.bf16 %v10461_v15, %v10460_v63  ;;  %10464 = vst [vmem:[#allocation37_spill] sm:$0xff] %v7497_v37  ;;  %v10466_v15 = vld [vmem:[#allocation62_spill] sm:$0xff] }
 0x787   :  { %2834 = vmatpush.bf16.msra.mxu1 %v2379_v36  ;;  %v10456_v36 = vld [vmem:[#allocation166_spill] sm:$0xff]  ;;  %2148 = vrot.lane.b32.xlu2 %v10457_v61, %s4935_s0  ;;  %v7480_v38 = vpop.permute.xlu0 %1706  ;;  %v7482_v47 = vpop.permute.xlu2 %1698  ;;  %v2371_v61 = vpack.c.bf16 %v1907_v57, %v1903_v54  ;;  %v10467_v57 = vld [vmem:[#allocation51_spill] sm:$0xff] }
 0x788   :  { %v1834_v45 = vsel %vm580_vm7, %v6981_v4, %v10456_v36  ;;  %10458 = vst [vmem:[#allocation19_spill] sm:$0xff] %v7482_v47  ;;  %v1835_v4 = vsel %vm580_vm7, %v6961_v13, %v10459_v46  ;;  %v7491_v36 = vor.u32 %v4768_v28, %v4661_v56  ;;  %v10465_v13 = vld [vmem:[#allocation131_spill] sm:$0xff]  ;;  %v1831_v28 = vsel %vm580_vm7, %v6721_v22, %v7338_v5  ;;  %v10469_v56 = vld [vmem:[#allocation34_spill] sm:$0xff] }
 0x789   :  { %v1895_v42 = vmul.f32 %v1834_v45, %v10425_v40  ;;  %v1899_v18 = vmul.f32 %v1835_v4, %v10425_v40  ;;  %v1832_v54 = vsel %vm580_vm7, %v6873_v16, %v10465_v13  ;;  %v4775_v16 = vld [vmem:[#allocation3 + $0x60] sm:$0xf0]  ;;  %v2420_v4 = vpack.c.bf16 %v7300_v21, %v10470_v31  ;;  %v10480_v13 = vld [vmem:[#allocation12_spill] sm:$0xff] }
 0x78a   :  { %2895 = vmatpush.bf16.msra.mxu3 %v2431_v60  ;;  %10462 = vst [vmem:[#allocation144_spill] sm:$0xff] %v7491_v36  ;;  %v10463_v60 = vld [vmem:[#allocation157_spill] sm:$0xff]  ;;  %2768 = vmatmul.bf16.gmra.mxu2 %v7497_v37  ;;  %v10474_v22 = vld [vmem:[#allocation46_spill] sm:$0xff]  ;;  %v1830_v21 = vsel %vm580_vm7, %v6793_v25, %v7151_v39  ;;  %v10491_v25 = vld [vmem:[#allocation76_spill] sm:$0xff] }
 0x78b   :  { %2835 = vmatpush.bf16.msra.mxu1 %v2375_v48  ;;  %v1833_v48 = vsel %vm580_vm7, %v6856_v52, %v10463_v60  ;;  %v1791_v52 = vsel %vm580_vm7, %v7440_v44, %v10467_v57  ;;  %v2367_v45 = vpack.c.bf16 %v1899_v18, %v1895_v42  ;;  %v4689_v57 = vld [vmem:[#allocation3 + $0x6c] sm:$0xf0]  ;;  %v10472_v42 = vld [vmem:[#allocation25_spill] sm:$0xff]  ;;  %v10481_v46 = vld [vmem:[#allocation106_spill] sm:$0xff] }
 0x78c   :  { %2144 = vrot.lane.b32.xlu1 %v10466_v15, %s4935_s0  ;;  %v1891_v63 = vmul.f32 %v1833_v48, %v10425_v40  ;;  %v4774_v48 = vld [vmem:[#allocation3 + $0x5c] sm:$0xf]  ;;  %v1887_v15 = vmul.f32 %v1832_v54, %v10425_v40  ;;  %v10471_v18 = vld [vmem:[#allocation28_spill] sm:$0xff]  ;;  %v2416_v47 = vpack.c.bf16 %v10481_v46, %v10480_v13  ;;  %v10484_v46 = vld [vmem:[#allocation31_spill] sm:$0xff] }
 0x78d   :  { %v10475_v54 = vld [vmem:[#allocation17_spill] sm:$0xff] }
 0x78e   :  { %2896 = vmatpush.bf16.msra.mxu3 %v2427_v41  ;;  %2729 = vmatmul.bf16.gmra.mxu1 %v7491_v36  ;;  %v10468_v41 = vld [vmem:[#allocation52_spill] sm:$0xff]  ;;  %v7521_v55 = vpop.permute.xlu1 %1702 }
 0x78f   :  { %2836 = vmatpush.bf16.msra.mxu1 %v2371_v61  ;;  %2142 = vrot.lane.b32.xlu0 %v10468_v41, %s4935_s0  ;;  %v4679_v61 = vld [vmem:[#allocation3 + $0x50] sm:$0xf]  ;;  %v10473_v41 = vpack.c.bf16 %v10471_v18, %v10472_v42  ;;  %v7529_v60 = vpop.permute.xlu0 %2092  ;;  %v7535_v5 = vpop.permute.xlu2 %1694  ;;  %v1883_v18 = vmul.f32 %v1831_v28, %v10425_v40  ;;  %v2363_v42 = vpack.c.bf16 %v1891_v63, %v1887_v15  ;;  %v10486_v28 = vld [vmem:[#allocation70_spill] sm:$0xff] }
 0x790   :  { %2138 = vrot.lane.b32.xlu2 %v10469_v56, %s4935_s0  ;;  %v1790_v56 = vsel %vm580_vm7, %v7521_v55, %v10474_v22  ;;  %v7550_v22 = vor.u32 %v4774_v48, %v4689_v57  ;;  %v10483_v63 = vld [vmem:[#allocation40_spill] sm:$0xff] }
 0x791   :  { %v7545_v31 = vmul.f32 %v1790_v56, %v10475_v54 }
 0x792   :  { %2897 = vmatpush.bf16.msra.mxu3 %v10473_v41  ;;  %v7547_v41 = vor.u32 %v4775_v16, %v4679_v61  ;;  %10479 = vst [vmem:[#allocation96_spill] sm:$0xff] %v7550_v22  ;;  %v10482_v61 = vld [vmem:[#allocation29_spill] sm:$0xff]  ;;  %v10485_v16 = vld [vmem:[#allocation67_spill] sm:$0xff] }
 0x793   :  { %2837 = vmatpush.bf16.msra.mxu1 %v2367_v45  ;;  %v7542_v45 = vmul.f32 %v1791_v52, %v10475_v54  ;;  %10477 = vst [vmem:[#allocation99_spill] sm:$0xff] %v7545_v31  ;;  %v1879_v52 = vmul.f32 %v1830_v21, %v10425_v40  ;;  %v2412_v56 = vpack.c.bf16 %v10486_v28, %v10485_v16  ;;  %v4780_v16 = vld [vmem:[#allocation3 + $0x88] sm:$0xf0]  ;;  %v10490_v28 = vld [vmem:[#allocation176_spill] sm:$0xff] }
 0x794   :  { %10478 = vst [vmem:[#allocation93_spill] sm:$0xff] %v7547_v41  ;;  %2705 = vmatmul.bf16.gmra.mxu0 %v7547_v41  ;;  %2134 = vrot.lane.b32.xlu1 %v10482_v61, %s4935_s0  ;;  %v10495_v61 = vld [vmem:[#allocation181_spill] sm:$0xff]  ;;  %v10500_v41 = vld [vmem:[#allocation174_spill] sm:$0xff] }
 0x795   :  { %10476 = vst [vmem:[#allocation116_spill] sm:$0xff] %v7542_v45  ;;  %2792 = vmatmul.bf16.gmra.mxu3 %v7550_v22  ;;  %v2359_v15 = vpack.c.bf16 %v1883_v18, %v1879_v52  ;;  %v2408_v18 = vpack.c.bf16 %v7223_v24, %v7220_v2  ;;  %v4699_v52 = vld [vmem:[#allocation3 + $0x78] sm:$0xf]  ;;  %v10493_v24 = vld [vmem:[#allocation123_spill] sm:$0xff] }
 0x796   :  { %3006 = vmatpush.bf16.msrb.mxu3 %v2420_v4  ;;  %v7565_v13 = vpop.permute.xlu1 %2088  ;;  %v4681_v4 = vld [vmem:[#allocation3 + $0x64] sm:$0xf0]  ;;  %v7611_v31 = vor.u32 %v4780_v16, %v4699_v52 }
 0x797   :  { %2838 = vmatpush.bf16.msra.mxu1 %v2363_v42  ;;  %2140 = vrot.lane.b32.xlu0 %v10483_v63, %s4935_s0  ;;  %v7569_v48 = vpop.permute.xlu0 %2086  ;;  %v7571_v57 = vpop.permute.xlu2 %2078  ;;  %v10489_v42 = vld [vmem:[#allocation140_spill] sm:$0xff]  ;;  %v10494_v2 = vld [vmem:[#allocation107_spill] sm:$0xff] }
 0x798   :  { %2136 = vrot.lane.b32.xlu2 %v10484_v46, %s4935_s0  ;;  %10487 = vst [vmem:[#allocation125_spill] sm:$0xff] %v7571_v57  ;;  %v4709_v46 = vld [vmem:[#allocation3 + $0x94] sm:$0xf0]  ;;  %v10499_v57 = vld [vmem:[#allocation175_spill] sm:$0xff] }
 0x799   :  { %10497 = vst [vmem:[#allocation80_spill] sm:$0xff] %v7611_v31 }
 0x79a   :  { %3007 = vmatpush.bf16.msrb.mxu3 %v2416_v47  ;;  %v4773_v47 = vld [vmem:[#allocation3 + $0x54] sm:$0xf] }
 0x79b   :  { %2839 = vmatpush.bf16.msra.mxu1 %v2359_v15  ;;  %v7573_v21 = vor.u32 %v4773_v47, %v4681_v4  ;;  %v1852_v15 = vsel %vm580_vm7, %v7059_v26, %v10490_v28 }
 0x79c   :  { %2158 = vrot.lane.b32.xlu1 %v10489_v42, %s4935_s0 }
 0x79d   :  { %10488 = vst [vmem:[#allocation133_spill] sm:$0xff] %v7573_v21 }
 0x79e   :  { %3008 = vmatpush.bf16.msrb.mxu3 %v2412_v56  ;;  %2734 = vmatmul.bf16.gmra.mxu1 %v7573_v21  ;;  %v10492_v56 = vld [vmem:[#allocation102_spill] sm:$0xff]  ;;  %v7592_v4 = vpop.permute.xlu1 %2068  ;;  %v10502_v21 = vld [vmem:[#allocation152_spill] sm:$0xff] }
 0x79f   :  { %v2236_v47 = vsel %vm624_vm6, %v10492_v56, %v10491_v25  ;;  %2162 = vrot.lane.b32.xlu0 %v10493_v24, %s4935_s0  ;;  %v2237_v26 = vsel %vm624_vm6, %v10495_v61, %v7592_v4  ;;  %v7598_v63 = vpop.permute.xlu0 %1684  ;;  %v7600_v42 = vpop.permute.xlu2 %1692  ;;  %v10496_v56 = vld [vmem:[#allocation168_spill] sm:$0xff]  ;;  %v1967_v61 = vmul.f32 %v1852_v15, %v10425_v40  ;;  %v10503_v15 = vld [vmem:[#allocation110_spill] sm:$0xff] }
 0x7a0   :  { %2130 = vrot.lane.b32.xlu2 %v10494_v2, %s4935_s0  ;;  %v1851_v24 = vsel %vm580_vm7, %v7005_v3, %v10496_v56  ;;  %v2354_v22 = vmul.f32 %v2237_v26, %v5406_v34  ;;  %v1853_v2 = vsel %vm580_vm7, %v7147_v7, %v7598_v63  ;;  %v2350_v45 = vmul.f32 %v2236_v47, %v5406_v34  ;;  %v10501_v26 = vld [vmem:[#allocation171_spill] sm:$0xff] }
 0x7a1   :  { %v1971_v39 = vmul.f32 %v1853_v2, %v10425_v40  ;;  %v2235_v3 = vsel %vm624_vm6, %v10500_v41, %v10499_v57  ;;  %v1850_v7 = vsel %vm580_vm7, %v6959_v0, %v10501_v26  ;;  %v2232_v47 = vsel %vm624_vm6, %v10503_v15, %v10502_v21  ;;  %v10504_v2 = vld [vmem:[#allocation158_spill] sm:$0xff]  ;;  %v10507_v57 = vld [vmem:[#allocation156_spill] sm:$0xff] }
 0x7a2   :  { %3009 = vmatpush.bf16.msrb.mxu3 %v2408_v18  ;;  %v4779_v18 = vld [vmem:[#allocation3 + $0x84] sm:$0xf]  ;;  %v2498_v52 = vpack.c.bf16 %v2354_v22, %v2350_v45  ;;  %v1963_v50 = vmul.f32 %v1851_v24, %v10425_v40  ;;  %v2346_v22 = vmul.f32 %v2235_v3, %v5406_v34  ;;  %v4778_v3 = vld [vmem:[#allocation3 + $0x7c] sm:$0xf] }
 0x7a3   :  { %v7616_v37 = vor.u32 %v4779_v18, %v4709_v46  ;;  %v2403_v16 = vpack.c.bf16 %v1971_v39, %v1967_v61  ;;  %v10505_v46 = vld [vmem:[#allocation167_spill] sm:$0xff]  ;;  %v10506_v41 = vld [vmem:[#allocation150_spill] sm:$0xff] }
 0x7a4   :  { %v2234_v18 = vsel %vm624_vm6, %v10505_v46, %v10504_v2  ;;  %2710 = vmatmul.bf16.gmra.mxu0 %v7611_v31  ;;  %v2233_v0 = vsel %vm624_vm6, %v10507_v57, %v10506_v41  ;;  %v10508_v39 = vld [vmem:[#allocation163_spill] sm:$0xff]  ;;  %v10510_v24 = vld [vmem:[#allocation146_spill] sm:$0xff]  ;;  %v1959_v46 = vmul.f32 %v1850_v7, %v10425_v40  ;;  %v10511_v57 = vld [vmem:[#allocation149_spill] sm:$0xff] }
 0x7a5   :  { %10498 = vst [vmem:[#allocation82_spill] sm:$0xff] %v7616_v37  ;;  %v1849_v45 = vsel %vm580_vm7, %v6897_v14, %v10508_v39  ;;  %2797 = vmatmul.bf16.gmra.mxu3 %v7616_v37  ;;  %v10509_v61 = vld [vmem:[#allocation119_spill] sm:$0xff]  ;;  %v1846_v15 = vsel %vm580_vm7, %v10420_v32, %v10510_v24  ;;  %v10512_v31 = vld [vmem:[#allocation32_spill] sm:$0xff]  ;;  %v10514_v21 = vld [vmem:[#allocation154_spill] sm:$0xff]  ;;  %v2342_v7 = vmul.f32 %v2234_v18, %v5406_v34 }
 0x7a6   :  { %2128 = vrot.lane.b32.xlu1 %v10509_v61, %s4935_s0  ;;  %v7657_v14 = vpop.permute.xlu1 %1730  ;;  %v4701_v37 = vld [vmem:[#allocation3 + $0x8c] sm:$0xf0]  ;;  %v1848_v32 = vsel %vm580_vm7, %v6852_v33, %v10514_v21  ;;  %2807 = vmatpush.bf16.msra.mxu0 %v2498_v52  ;;  %v2334_v24 = vmul.f32 %v2232_v47, %v5406_v34  ;;  %v2338_v39 = vmul.f32 %v2233_v0, %v5406_v34 }
 0x7a7   :  { %2126 = vrot.lane.b32.xlu0 %v10511_v57, %s4935_s0  ;;  %v10513_v41 = vld [vmem:[#allocation100_spill] sm:$0xff]  ;;  %2865 = vmatpush.bf16.msra.mxu2 %v2403_v16  ;;  %v7668_v57 = vpop.permute.xlu0 %2082  ;;  %v1955_v2 = vmul.f32 %v1849_v45, %v10425_v40  ;;  %v1820_v52 = vsel %vm580_vm7, %v10423_v19, %v7328_v23  ;;  %v2494_v16 = vpack.c.bf16 %v2346_v22, %v2342_v7 }
 0x7a8   :  { %2160 = vrot.lane.b32.xlu2 %v10512_v31, %s4935_s0  ;;  %v1847_v61 = vsel %vm580_vm7, %v6810_v9, %v10513_v41  ;;  %10515 = vst [vmem:[#allocation77_spill] sm:$0xff] %v7668_v57  ;;  %v7670_v31 = vpop.permute.xlu2 %1722  ;;  %v2399_v9 = vpack.c.bf16 %v1963_v50, %v1959_v46  ;;  %v10516_v41 = vld [vmem:[#allocation182_spill] sm:$0xff]  ;;  %v7683_v18 = vor.u32 %v4778_v3, %v4701_v37  ;;  %v10518_v57 = vld [vmem:[#allocation183_spill] sm:$0xff]  ;;  %v10519_v0 = vld [vmem:[#allocation48_spill] sm:$0xff] }
 0x7a9   :  { %v2231_v33 = vsel %vm624_vm6, %v10516_v41, %v7263_v43  ;;  %v1951_v47 = vmul.f32 %v1848_v32, %v10425_v40  ;;  %v2230_v50 = vsel %vm624_vm6, %v10519_v0, %v10518_v57  ;;  %v10520_v46 = vld [vmem:[#allocation120_spill] sm:$0xff]  ;;  %v10521_v41 = vld [vmem:[#allocation147_spill] sm:$0xff]  ;;  %v1943_v37 = vmul.f32 %v1846_v15, %v10425_v40 }
 0x7aa   :  { %10517 = vst [vmem:[#allocation69_spill] sm:$0xff] %v7683_v18  ;;  %v2204_v45 = vsel %vm624_vm6, %v10520_v46, %v7396_v59  ;;  %v2205_v19 = vsel %vm624_vm6, %v10521_v41, %v7393_v35  ;;  %v1947_v22 = vmul.f32 %v1847_v61, %v10425_v40  ;;  %v1821_v3 = vsel %vm580_vm7, %v10418_v10, %v7197_v27  ;;  %v10522_v7 = vld [vmem:[#allocation16_spill] sm:$0xff]  ;;  %v10523_v41 = vld [vmem:[#allocation18_spill] sm:$0xff]  ;;  %v10524_v40 = vld [vmem:[#allocation141_spill] sm:$0xff] }
 0x7ab   :  { %2808 = vmatpush.bf16.msra.mxu0 %v2494_v16  ;;  %2866 = vmatpush.bf16.msra.mxu2 %v2399_v9  ;;  %v2330_v32 = vmul.f32 %v2231_v33, %v5406_v34  ;;  %v1936_v46 = vmul.f32 %v1820_v52, %v10522_v7  ;;  %v2490_v0 = vpack.c.bf16 %v2338_v39, %v2334_v24  ;;  %v10525_v61 = vld [vmem:[#allocation98_spill] sm:$0xff]  ;;  %v10526_v39 = vld [vmem:[#allocation169_spill] sm:$0xff] }
 0x7ac   :  { %v2395_v43 = vpack.c.bf16 %v1955_v2, %v1951_v47  ;;  %v2326_v59 = vmul.f32 %v2230_v50, %v5406_v34  ;;  %v2319_v57 = vmul.f32 %v2204_v45, %v10523_v41  ;;  %v2323_v15 = vmul.f32 %v2205_v19, %v10523_v41  ;;  %v10527_v2 = vld [vmem:[#allocation139_spill] sm:$0xff]  ;;  %v10528_v24 = vld [vmem:[#allocation121_spill] sm:$0xff]  ;;  %v4655_v19 = vld [vmem:[#allocation3 + $0x10] sm:$0xf] }
 0x7ad   :  { %v1940_v10 = vmul.f32 %v1821_v3, %v10522_v7  ;;  %v2202_v9 = vsel %vm624_vm6, %v10525_v61, %v7435_v11  ;;  %v1786_v34 = vsel %vm580_vm7, %v7535_v5, %v10526_v39  ;;  %v1818_v52 = vsel %vm580_vm7, %v10431_v1, %v7283_v8  ;;  %v4767_v3 = vld [vmem:[#allocation3 + $0x20] sm:$0xf0]  ;;  %v10531_v39 = vld [vmem:[#allocation103_spill] sm:$0xff] }
 0x7ae   :  { %2739 = vmatmul.bf16.gmra.mxu1 %v7683_v18  ;;  %2164 = vrot.lane.b32.xlu1 %v10524_v40, %s4935_s0  ;;  %v7725_v33 = vpop.permute.xlu1 %2114  ;;  %v1819_v16 = vsel %vm580_vm7, %v10428_v17, %v7438_v30  ;;  %v2391_v45 = vpack.c.bf16 %v1947_v22, %v1943_v37  ;;  %v2203_v1 = vsel %vm624_vm6, %v10531_v39, %v7340_v62 }
 0x7af   :  { %2156 = vrot.lane.b32.xlu0 %v10527_v2, %s4935_s0  ;;  %10529 = vst [vmem:[#allocation105_spill] sm:$0xff] %v7725_v33  ;;  %2809 = vmatpush.bf16.msra.mxu0 %v2490_v0  ;;  %v7735_v47 = vpop.permute.xlu0 %1696  ;;  %v2388_v61 = vpack.c.bf16 %v1940_v10, %v1936_v46  ;;  %v10532_v2 = vld [vmem:[#allocation177_spill] sm:$0xff]  ;;  %v2486_v0 = vpack.c.bf16 %v2330_v32, %v2326_v59 }
 0x7b0   :  { %2154 = vrot.lane.b32.xlu2 %v10528_v24, %s4935_s0  ;;  %2867 = vmatpush.bf16.msra.mxu2 %v2395_v43  ;;  %v7737_v50 = vpop.permute.xlu2 %2076  ;;  %v1787_v17 = vsel %vm580_vm7, %v7735_v47, %v10532_v2  ;;  %v2483_v43 = vpack.c.bf16 %v2323_v15, %v2319_v57  ;;  %v2311_v24 = vmul.f32 %v2202_v9, %v10523_v41  ;;  %v10533_v15 = vld [vmem:[#allocation85_spill] sm:$0xff] }
 0x7b1   :  { %10530 = vst [vmem:[#allocation114_spill] sm:$0xff] %v7737_v50  ;;  %v7749_v40 = vmul.f32 %v1786_v34, %v10475_v54  ;;  %v7752_v37 = vmul.f32 %v1787_v17, %v10475_v54  ;;  %v1932_v22 = vmul.f32 %v1819_v16, %v10522_v7  ;;  %v1816_v46 = vsel %vm580_vm7, %v10439_v51, %v7480_v38  ;;  %v10534_v34 = vld [vmem:[#allocation72_spill] sm:$0xff] }
 0x7b2   :  { %v1817_v59 = vsel %vm580_vm7, %v10437_v6, %v7478_v29  ;;  %v7763_v57 = vor.u32 %v4767_v3, %v4655_v19  ;;  %v2315_v32 = vmul.f32 %v2203_v1, %v10523_v41  ;;  %v2201_v10 = vsel %vm624_vm6, %v10533_v15, %v7529_v60  ;;  %v10535_v19 = vld [vmem:[#allocation84_spill] sm:$0xff] }
 0x7b3   :  { %2810 = vmatpush.bf16.msra.mxu0 %v2486_v0  ;;  %v1928_v9 = vmul.f32 %v1818_v52, %v10522_v7  ;;  %v2200_v6 = vsel %vm624_vm6, %v10534_v34, %v7398_v58  ;;  %v1920_v2 = vmul.f32 %v1816_v46, %v10522_v7  ;;  %v1924_v16 = vmul.f32 %v1817_v59, %v10522_v7  ;;  %v10538_v0 = vld [vmem:[#allocation41_spill] sm:$0xff] }
 0x7b4   :  { %2868 = vmatpush.bf16.msra.mxu2 %v2391_v45  ;;  %v10536_v45 = vld [vmem:[#allocation126_spill] sm:$0xff]  ;;  %v2479_v3 = vpack.c.bf16 %v2315_v32, %v2311_v24  ;;  %v2307_v39 = vmul.f32 %v2201_v10, %v10523_v41  ;;  %v1814_v52 = vsel %vm580_vm7, %v10445_v53, %v7521_v55  ;;  %v2198_v24 = vsel %vm624_vm6, %v10538_v0, %v7569_v48  ;;  %v10540_v53 = vld [vmem:[#allocation136_spill] sm:$0xff]  ;;  %v10544_v34 = vld [vmem:[#allocation57_spill] sm:$0xff] }
 0x7b5   :  { %2898 = vmatmul.bf16.vlgmr.msra.gmra.mxu3 %v10535_v19  ;;  %v2384_v1 = vpack.c.bf16 %v1932_v22, %v1928_v9  ;;  %v2303_v32 = vmul.f32 %v2200_v6, %v10523_v41  ;;  %v10543_v10 = vld [vmem:[#allocation130_spill] sm:$0xff]  ;;  %v1912_v6 = vmul.f32 %v1814_v52, %v10522_v7  ;;  %v10546_v19 = vld [vmem:[#allocation160_spill] sm:$0xff]  ;;  %v4675_v52 = vld [vmem:[#allocation3 + $0x38] sm:$0xf] }
 0x7b6   :  { %2122 = vrot.lane.b32.xlu1 %v10536_v45, %s4935_s0  ;;  %4717 = vmatmul.msk.bf16.vlgmr.msra.gmra.mxu0 %vm2674_vm10, %v7763_v57  ;;  %v1729_v17 = vpop.permute.xlu1 %1728 }
 0x7b7   :  { %2919 = vmatpush.bf16.msrb.mxu0 %v2483_v43  ;;  %v10539_v43 = vld [vmem:[#allocation64_spill] sm:$0xff]  ;;  %v1803_v55 = vsel %vm580_vm7, %v1729_v17, %v7011_v12  ;;  %v1727_v59 = vpop.permute.xlu0 %1726  ;;  %2869 = vmatmul.bf16.vlgmr.msra.gmra.mxu2 %v7409_v20  ;;  %v1815_v12 = vsel %vm580_vm7, %v10544_v34, %v7440_v44  ;;  %v1785_v44 = vsel %vm580_vm7, %v7600_v42, %v10546_v19  ;;  %v10550_v19 = vld [vmem:[#allocation101_spill] sm:$0xff] }
 0x7b8   :  { %2977 = vmatpush.bf16.msrb.mxu2 %v2388_v61  ;;  %v10537_v61 = vld [vmem:[#allocation155_spill] sm:$0xff]  ;;  %v2199_v46 = vsel %vm624_vm6, %v10539_v43, %v7565_v13  ;;  %2124 = vrot.lane.b32.xlu2 %v10540_v53, %s4935_s0  ;;  %v7804_v22 = vpop.permute.xlu2 %2106  ;;  %v7809_v15 = vmul.f32 %v1803_v55, %v10475_v54  ;;  %v1802_v9 = vsel %vm580_vm7, %v1727_v59, %v10543_v10 }
 0x7b9   :  { %2132 = vrot.lane.b32.xlu0 %v10537_v61, %s4935_s0  ;;  %10541 = vst [vmem:[#allocation60_spill] sm:$0xff] %v7804_v22  ;;  %v7819_v0 = vmul.f32 %v1802_v9, %v10475_v54  ;;  %v2380_v43 = vpack.c.bf16 %v1924_v16, %v1920_v2  ;;  %v2475_v55 = vpack.c.bf16 %v2307_v39, %v2303_v32  ;;  %v10547_v16 = vld [vmem:[#allocation50_spill] sm:$0xff]  ;;  %v10548_v39 = vld [vmem:[#allocation111_spill] sm:$0xff] }
 0x7ba   :  { %10542 = vst [vmem:[#allocation45_spill] sm:$0xff] %v7809_v15  ;;  %v1916_v10 = vmul.f32 %v1815_v12, %v10522_v7  ;;  %v1828_v2 = vsel %vm580_vm7, %v10490_v28, %v7657_v14  ;;  %v7847_v28 = vmul.f32 %v1785_v44, %v10475_v54  ;;  %v10556_v44 = vld [vmem:[#allocation55_spill] sm:$0xff] }
 0x7bb   :  { %2920 = vmatpush.bf16.msrb.mxu0 %v2479_v3  ;;  %10545 = vst [vmem:[#allocation39_spill] sm:$0xff] %v7819_v0  ;;  %v2295_v3 = vmul.f32 %v2198_v24, %v10523_v41  ;;  %v4772_v24 = vld [vmem:[#allocation3 + $0x48] sm:$0xf0] }
 0x7bc   :  { %2978 = vmatpush.bf16.msrb.mxu2 %v2384_v1  ;;  %v2299_v1 = vmul.f32 %v2199_v46, %v10523_v41  ;;  %v10549_v46 = vld [vmem:[#allocation135_spill] sm:$0xff]  ;;  %v2376_v34 = vpack.c.bf16 %v1916_v10, %v1912_v6  ;;  %v1827_v10 = vsel %vm580_vm7, %v10496_v56, %v1729_v17  ;;  %v2530_v17 = vld [vmem:[%s9763_s21 + $0x20] sm:$0xff] }
 0x7bd   :  { %v1804_v32 = vsel %vm580_vm7, %v7657_v14, %v10549_v46  ;;  %v1968_v46 = vmul.f32 %v1828_v2, %v10522_v7  ;;  %v2532_v56 = vld [vmem:[%s9763_s21 + $0x30] sm:$0xff] }
 0x7be   :  { %2840 = vmatmul.bf16.vlgmr.msra.gmra.mxu1 %v10547_v16  ;;  %2152 = vrot.lane.b32.xlu1 %v10548_v39, %s4935_s0  ;;  %v2471_v9 = vpack.c.bf16 %v2299_v1, %v2295_v3  ;;  %v7844_v12 = vpop.permute.xlu1 %1690  ;;  %v7861_v3 = vor.u32 %v4772_v24, %v4675_v52  ;;  %v7864_v1 = vmul.f32 %v1804_v32, %v10475_v54  ;;  %v10569_v0 = vld [vmem:[#allocation163_spill] sm:$0xff] }
 0x7bf   :  { %2921 = vmatpush.bf16.msrb.mxu0 %v2475_v55  ;;  %v10552_v55 = vld [vmem:[#allocation151_spill] sm:$0xff]  ;;  %v7855_v39 = vpop.permute.xlu0 %2080 }
 0x7c0   :  { %2979 = vmatpush.bf16.msrb.mxu2 %v2380_v43  ;;  %v10551_v43 = vld [vmem:[#allocation104_spill] sm:$0xff]  ;;  %v1784_v51 = vsel %vm580_vm7, %v7844_v12, %v10552_v55  ;;  %10553 = vst [vmem:[#allocation75_spill] sm:$0xff] %v7855_v39  ;;  %v1733_v14 = vpop.permute.xlu2 %1732 }
 0x7c1   :  { %2150 = vrot.lane.b32.xlu0 %v10550_v19, %s4935_s0  ;;  %2118 = vrot.lane.b32.xlu2 %v10551_v43, %s4935_s0  ;;  %v7859_v6 = vmul.f32 %v1784_v51, %v10475_v54  ;;  %10554 = vst [vmem:[#allocation87_spill] sm:$0xff] %v7861_v3  ;;  %v1805_v55 = vsel %vm580_vm7, %v1733_v14, %v10556_v44 }
 0x7c2   :  { %10555 = vst [vmem:[#allocation49_spill] sm:$0xff] %v7864_v1  ;;  %v1829_v2 = vsel %vm580_vm7, %v7598_v63, %v1733_v14  ;;  %v1826_v51 = vsel %vm580_vm7, %v10501_v26, %v1727_v59  ;;  %v7880_v24 = vmul.f32 %v1805_v55, %v10475_v54  ;;  %v2533_v63 = vld [vmem:[%s9763_s21 + $0x38] sm:$0xff]  ;;  %v2212_v59 = vsel %vm624_vm6, %v10491_v25, %v7725_v33  ;;  %v10558_v14 = vld [vmem:[#allocation186_spill] sm:$0xff] }
 0x7c3   :  { %2922 = vmatpush.bf16.msrb.mxu0 %v2471_v9  ;;  %v1972_v52 = vmul.f32 %v1829_v2, %v10522_v7  ;;  %v1964_v9 = vmul.f32 %v1827_v10, %v10522_v7  ;;  %v2351_v10 = vmul.f32 %v2212_v59, %v10523_v41  ;;  %v2531_v26 = vld [vmem:[%s9763_s21 + $0x28] sm:$0xff] }
 0x7c4   :  { %2980 = vmatpush.bf16.msrb.mxu2 %v2376_v34  ;;  %10557 = vst [vmem:[#allocation63_spill] sm:$0xff] %v7880_v24  ;;  %v1960_v34 = vmul.f32 %v1826_v51, %v10522_v7  ;;  %v10563_v51 = vld [vmem:[#allocation175_spill] sm:$0xff]  ;;  %v10588_v33 = vld [vmem:[#allocation134_spill] sm:$0xff] }
 0x7c5   :  { %v2404_v32 = vpack.c.bf16 %v1972_v52, %v1968_v46  ;;  %2903 = vmatmul.bf16.gmra.mxu3 %v10558_v14  ;;  %v10559_v46 = vld [vmem:[#allocation115_spill] sm:$0xff]  ;;  %v10568_v14 = vld [vmem:[#allocation162_spill] sm:$0xff] }
 0x7c6   :  { %2566 = vperm.xlu1 %4812, %v2532_v56   ;;  %4718 = vmatmul.msk.bf16.gmra.mxu0 %vm2674_vm10, %v7861_v3  ;;  %v7903_v44 = vpop.permute.xlu1 %2112  ;;  %v10564_v56 = vld [vmem:[#allocation158_spill] sm:$0xff]  ;;  %v2400_v59 = vpack.c.bf16 %v1964_v9, %v1960_v34  ;;  %v10566_v9 = vld [vmem:[#allocation24_spill] sm:$0xff] }
 0x7c7   :  { %10560 = vst [vmem:[#allocation33_spill] sm:$0xff] %v7903_v44  ;;  %3010 = vmatpush.bf16.msrb.mxu3 %v2404_v32  ;;  %v7905_v55 = vpop.permute.xlu0 %2110  ;;  %2874 = vmatmul.bf16.gmra.mxu2 %v7491_v36  ;;  %v2211_v52 = vsel %vm624_vm6, %v10563_v51, %v7903_v44  ;;  %v1800_v34 = vsel %vm580_vm7, %v7670_v31, %v10566_v9 }
 0x7c8   :  { %10561 = vst [vmem:[#allocation38_spill] sm:$0xff] %v7905_v55  ;;  %v7907_v25 = vpop.permute.xlu2 %2116  ;;  %v2347_v51 = vmul.f32 %v2211_v52, %v10523_v41 }
 0x7c9   :  { %2120 = vrot.lane.b32.xlu0 %v10559_v46, %s4935_s0  ;;  %2571 = vperm.xlu2 %4811, %v2533_v63   ;;  %10562 = vst [vmem:[#allocation51_spill] sm:$0xff] %v7907_v25  ;;  %v2213_v2 = vsel %vm624_vm6, %v7592_v4, %v7907_v25  ;;  %v2210_v63 = vsel %vm624_vm6, %v10564_v56, %v7905_v55  ;;  %v2528_v56 = vld [vmem:[%s9763_s21 + $0x10] sm:$0xff]  ;;  %v10586_v55 = vld [vmem:[#allocation129_spill] sm:$0xff] }
 0x7ca   :  { %v2355_v32 = vmul.f32 %v2213_v2, %v10523_v41  ;;  %v2343_v19 = vmul.f32 %v2210_v63, %v10523_v41  ;;  %v10565_v2 = vld [vmem:[#allocation128_spill] sm:$0xff] }
 0x7cb   :  { %3011 = vmatpush.bf16.msrb.mxu3 %v2400_v59  ;;  %v4777_v59 = vld [vmem:[#allocation3 + $0x70] sm:$0xf0] }
 0x7cc   :  { %v2499_v4 = vpack.c.bf16 %v2355_v32, %v2351_v10  ;;  %v1824_v10 = vsel %vm580_vm7, %v10514_v21, %v7670_v31  ;;  %v4695_v32 = vld [vmem:[#allocation3 + $0x60] sm:$0xf]  ;;  %v2495_v1 = vpack.c.bf16 %v2347_v51, %v2343_v19  ;;  %v7954_v21 = vmul.f32 %v1800_v34, %v10475_v54  ;;  %v2527_v34 = vld [vmem:[%s9763_s21 + $0x8] sm:$0xff] }
 0x7cd   :  { %v1952_v31 = vmul.f32 %v1824_v10, %v10522_v7  ;;  %v10573_v10 = vld [vmem:[#allocation145_spill] sm:$0xff] }
 0x7ce   :  { %2845 = vmatmul.bf16.gmra.mxu1 %v10565_v2  ;;  %2561 = vperm.xlu1 %4812, %v2531_v26   ;;  %v7944_v52 = vpop.permute.xlu1 %2074  ;;  %10570 = vst [vmem:[#allocation28_spill] sm:$0xff] %v7954_v21 }
 0x7cf   :  { %2952 = vmatpush.bf16.msrb.mxu1 %v2499_v4  ;;  %10567 = vst [vmem:[#allocation13_spill] sm:$0xff] %v7944_v52  ;;  %v1725_v63 = vpop.permute.xlu0 %1724 }
 0x7d0   :  { %v1801_v26 = vsel %vm580_vm7, %v1725_v63, %v10568_v14  ;;  %v1825_v9 = vsel %vm580_vm7, %v10569_v0, %v1725_v63  ;;  %v1721_v15 = vpop.permute.xlu2 %1720  ;;  %v2526_v14 = vld [vmem:[%s9763_s21] sm:$0xff]  ;;  %v2529_v0 = vld [vmem:[%s9763_s21 + $0x18] sm:$0xff]  ;;  %s4944_s21 = smov 32  }
 0x7d1   :  { %2556 = vperm.xlu0 %4810, %v2530_v17   ;;  %2546 = vperm.xlu2 %4811, %v2528_v56   ;;  %v1956_v17 = vmul.f32 %v1825_v9, %v10522_v7  ;;  %v7958_v4 = vmul.f32 %v1801_v26, %v10475_v54  ;;  %v7960_v56 = vor.u32 %v4777_v59, %v4695_v32  ;;  %v10574_v59 = vld [vmem:[#allocation133_spill] sm:$0xff]  ;;  %v10576_v9 = vld [vmem:[#allocation179_spill] sm:$0xff] }
 0x7d2   :  { %v10575_v26 = vld [vmem:[#allocation77_spill] sm:$0xff] }
 0x7d3   :  { %10571 = vst [vmem:[#allocation25_spill] sm:$0xff] %v7958_v4  ;;  %2953 = vmatpush.bf16.msrb.mxu1 %v2495_v1  ;;  %v2396_v19 = vpack.c.bf16 %v1956_v17, %v1952_v31  ;;  %v2196_v31 = vsel %vm624_vm6, %v10576_v9, %v10575_v26  ;;  %v10577_v17 = vld [vmem:[#allocation93_spill] sm:$0xff]  ;;  %v4715_v4 = vld [vmem:[#allocation3 + $0x88] sm:$0xf] }
 0x7d4   :  { %10572 = vst [vmem:[#allocation46_spill] sm:$0xff] %v7960_v56  ;;  %v4782_v26 = vld [vmem:[#allocation3 + $0x98] sm:$0xf0]  ;;  %v2287_v24 = vmul.f32 %v2196_v31, %v10523_v41 }
 0x7d5   :  { %2908 = vmatmul.bf16.gmra.mxu3 %v10573_v10  ;;  %v10581_v10 = vld [vmem:[#allocation178_spill] sm:$0xff]  ;;  %v8023_v46 = vor.u32 %v4782_v26, %v4715_v4  ;;  %v10592_v4 = vld [vmem:[#allocation37_spill] sm:$0xff]  ;;  %v10594_v26 = vld [vmem:[#allocation19_spill] sm:$0xff] }
 0x7d6   :  { %2536 = vperm.xlu1 %4812, %v2526_v14   ;;  %4719 = vmatmul.msk.bf16.gmra.mxu0 %vm2674_vm10, %v7960_v56  ;;  %v7976_v1 = vpop.permute.xlu1 %1688  ;;  %v10578_v14 = vld [vmem:[#allocation152_spill] sm:$0xff] }
 0x7d7   :  { %3012 = vmatpush.bf16.msrb.mxu3 %v2396_v19  ;;  %v7978_v63 = vpop.permute.xlu0 %1686  ;;  %2879 = vmatmul.bf16.gmra.mxu2 %v10574_v59  ;;  %v10580_v19 = vld [vmem:[#allocation161_spill] sm:$0xff]  ;;  %10587 = vst [vmem:[#allocation106_spill] sm:$0xff] %v8023_v46 }
 0x7d8   :  { %v2195_v51 = vsel %vm624_vm6, %v10580_v19, %v7855_v39  ;;  %v10584_v19 = vld [vmem:[#allocation125_spill] sm:$0xff] }
 0x7d9   :  { %2551 = vperm.xlu0 %4810, %v2529_v0   ;;  %2541 = vperm.xlu2 %4811, %v2527_v34   ;;  %v7980_v32 = vpop.permute.xlu2 %2102  ;;  %v2208_v0 = vsel %vm624_vm6, %v10578_v14, %v7804_v22  ;;  %v10583_v22 = vld [vmem:[#allocation150_spill] sm:$0xff]  ;;  %v10585_v39 = vld [vmem:[#allocation165_spill] sm:$0xff]  ;;  %v2283_v31 = vmul.f32 %v2195_v51, %v10523_v41 }
 0x7de   :  { %2850 = vmatmul.bf16.gmra.mxu1 %v10577_v17  ;;  %v7992_v34 = vpop.permute.xlu1 %2084 }
 0x7df   :  { %10579 = vst [vmem:[#allocation17_spill] sm:$0xff] %v7992_v34  ;;  %v2197_v21 = vsel %vm624_vm6, %v10581_v10, %v7992_v34  ;;  %v8002_v9 = vpop.permute.xlu0 %2108  ;;  %v2194_v10 = vsel %vm624_vm6, %v10585_v39, %v10584_v19  ;;  %v2335_v34 = vmul.f32 %v2208_v0, %v10523_v41  ;;  %v2192_v39 = vsel %vm624_vm6, %v10588_v33, %v7944_v52  ;;  %v10589_v0 = vld [vmem:[#allocation100_spill] sm:$0xff]  ;;  %v10593_v33 = vld [vmem:[#allocation113_spill] sm:$0xff] }
 0x7e0   :  { %10582 = vst [vmem:[#allocation12_spill] sm:$0xff] %v8002_v9  ;;  %v2291_v14 = vmul.f32 %v2197_v21, %v10523_v41  ;;  %v2209_v44 = vsel %vm624_vm6, %v10583_v22, %v8002_v9  ;;  %v1796_v21 = vsel %vm580_vm7, %v7328_v23, %v10586_v55  ;;  %v2279_v43 = vmul.f32 %v2194_v10, %v10523_v41  ;;  %v10590_v19 = vld [vmem:[#allocation132_spill] sm:$0xff]  ;;  %v10591_v55 = vld [vmem:[#allocation27_spill] sm:$0xff] }
 0x7e1   :  { %v8010_v56 = vpop.permute.xlu2 %2148  ;;  %v2339_v25 = vmul.f32 %v2209_v44, %v10523_v41  ;;  %v1823_v44 = vsel %vm580_vm7, %v10589_v0, %v1721_v15  ;;  %v1797_v23 = vsel %vm580_vm7, %v7197_v27, %v10590_v19  ;;  %v1795_v51 = vsel %vm580_vm7, %v7438_v30, %v10593_v33  ;;  %v10596_v27 = vld [vmem:[#allocation108_spill] sm:$0xff]  ;;  %v10597_v30 = vld [vmem:[#allocation143_spill] sm:$0xff]  ;;  %v10598_v0 = vld [vmem:[#allocation146_spill] sm:$0xff] }
 0x7e2   :  { %v2467_v22 = vpack.c.bf16 %v2291_v14, %v2287_v24  ;;  %v1937_v24 = vmul.f32 %v1796_v21, %v10475_v54  ;;  %v2193_v19 = vsel %vm624_vm6, %v10596_v27, %v7737_v50  ;;  %v2271_v10 = vmul.f32 %v2192_v39, %v10523_v41  ;;  %v10600_v39 = vld [vmem:[#allocation68_spill] sm:$0xff] }
 0x7e3   :  { %v2491_v9 = vpack.c.bf16 %v2339_v25, %v2335_v34  ;;  %v1799_v25 = vsel %vm580_vm7, %v1721_v15, %v10591_v55  ;;  %v10595_v34 = vld [vmem:[#allocation170_spill] sm:$0xff]  ;;  %v1948_v21 = vmul.f32 %v1823_v44, %v10522_v7  ;;  %v1933_v50 = vmul.f32 %v1795_v51, %v10475_v54  ;;  %v10605_v51 = vld [vmem:[#allocation131_spill] sm:$0xff] }
 0x7e4   :  { %2923 = vmatpush.bf16.msrb.mxu0 %v2467_v22  ;;  %v1812_v14 = vsel %vm580_vm7, %v10595_v34, %v10594_v26  ;;  %v8066_v34 = vpop.f32.mrf.mxu2  ;;  %v8069_v27 = vmul.f32 %v1799_v25, %v10475_v54 }
 0x7e5   :  { %2913 = vmatmul.bf16.gmra.mxu3 %v10592_v4  ;;  %2954 = vmatpush.bf16.msrb.mxu1 %v2491_v9  ;;  %v2463_v9 = vpack.c.bf16 %v2283_v31, %v2279_v43  ;;  %10599 = vst [vmem:[#allocation67_spill] sm:$0xff] %v8066_v34  ;;  %v1941_v4 = vmul.f32 %v1797_v23, %v10475_v54  ;;  %v10602_v34 = vld [vmem:[#allocation97_spill] sm:$0xff]  ;;  %v10604_v23 = vld [vmem:[#allocation88_spill] sm:$0xff] }
 0x7e6   :  { %4720 = vmatmul.msk.bf16.gmra.mxu0 %vm2674_vm10, %v8023_v46  ;;  %v1719_v15 = vpop.permute.xlu1 %1718  ;;  %v1793_v52 = vsel %vm580_vm7, %v7478_v29, %v10604_v23  ;;  %v10613_v23 = vld [vmem:[#allocation184_spill] sm:$0xff] }
 0x7e7   :  { %v1798_v22 = vsel %vm580_vm7, %v1719_v15, %v10597_v30  ;;  %v1822_v55 = vsel %vm580_vm7, %v10598_v0, %v1719_v15  ;;  %v8064_v33 = vpop.permute.xlu0 %1700  ;;  %2884 = vmatmul.bf16.gmra.mxu2 %v7683_v18  ;;  %v1904_v15 = vmul.f32 %v1812_v14, %v10522_v7  ;;  %v10601_v0 = vld [vmem:[#allocation164_spill] sm:$0xff] }
 0x7e8   :  { %v1944_v43 = vmul.f32 %v1822_v55, %v10522_v7  ;;  %v8073_v31 = vmul.f32 %v1798_v22, %v10475_v54  ;;  %v1813_v44 = vsel %vm580_vm7, %v10600_v39, %v8064_v33  ;;  %v1811_v25 = vsel %vm580_vm7, %v10601_v0, %v7735_v47  ;;  %2924 = vmatpush.bf16.msrb.mxu0 %v2463_v9  ;;  %v10603_v47 = vld [vmem:[#allocation166_spill] sm:$0xff]  ;;  %v10627_v14 = vld [vmem:[#allocation116_spill] sm:$0xff] }
 0x7e9   :  { %v2275_v55 = vmul.f32 %v2193_v19, %v10523_v41  ;;  %v1908_v22 = vmul.f32 %v1813_v44, %v10522_v7  ;;  %v1794_v39 = vsel %vm580_vm7, %v7283_v8, %v10602_v34  ;;  %v1810_v19 = vsel %vm580_vm7, %v10603_v47, %v7535_v5  ;;  %v10607_v5 = vld [vmem:[#allocation66_spill] sm:$0xff] }
 0x7ea   :  { %v8079_v30 = vpop.permute.xlu2 %2138  ;;  %v2392_v46 = vpack.c.bf16 %v1948_v21, %v1944_v43  ;;  %v2389_v0 = vpack.c.bf16 %v1941_v4, %v1937_v24  ;;  %v1900_v8 = vmul.f32 %v1811_v25, %v10522_v7  ;;  %v1929_v21 = vmul.f32 %v1794_v39, %v10475_v54  ;;  %v10606_v43 = vld [vmem:[#allocation80_spill] sm:$0xff]  ;;  %v10610_v47 = vld [vmem:[#allocation74_spill] sm:$0xff] }
 0x7eb   :  { %v2459_v44 = vpack.c.bf16 %v2275_v55, %v2271_v10  ;;  %v2372_v9 = vpack.c.bf16 %v1908_v22, %v1904_v15  ;;  %v1808_v34 = vsel %vm580_vm7, %v10605_v51, %v7844_v12  ;;  %v1792_v24 = vsel %vm580_vm7, %v7480_v38, %v10607_v5  ;;  %v10608_v10 = vld [vmem:[#allocation157_spill] sm:$0xff]  ;;  %v10609_v15 = vld [vmem:[#allocation148_spill] sm:$0xff] }
 0x7ec   :  { %3013 = vmatpush.bf16.msrb.mxu3 %v2392_v46  ;;  %v1896_v29 = vmul.f32 %v1810_v19, %v10522_v7  ;;  %v1925_v4 = vmul.f32 %v1793_v52, %v10475_v54  ;;  %v1809_v12 = vsel %vm580_vm7, %v10608_v10, %v7600_v42  ;;  %v2385_v38 = vpack.c.bf16 %v1933_v50, %v1929_v21 }
 0x7ed   :  { %2925 = vmatpush.bf16.msrb.mxu0 %v2459_v44  ;;  %2981 = vmatpush.bf16.msrb.mxu2 %v2372_v9  ;;  %v1888_v22 = vmul.f32 %v1808_v34, %v10522_v7  ;;  %v1921_v9 = vmul.f32 %v1792_v24, %v10475_v54  ;;  %v1806_v21 = vsel %vm580_vm7, %v10613_v23, %v7978_v63  ;;  %v8150_v34 = vpop.f32.mrf.mxu2  ;;  %v10620_v23 = vld [vmem:[#allocation14_spill] sm:$0xff] }
 0x7ee   :  { %2855 = vmatmul.bf16.gmra.mxu1 %v10606_v43  ;;  %v8117_v46 = vpop.permute.xlu1 %2072  ;;  %v2368_v44 = vpack.c.bf16 %v1900_v8, %v1896_v29  ;;  %v1892_v5 = vmul.f32 %v1809_v12, %v10522_v7  ;;  %v1880_v29 = vmul.f32 %v1806_v21, %v10522_v7 }
 0x7ef   :  { %v2191_v25 = vsel %vm624_vm6, %v10609_v15, %v8117_v46  ;;  %v8128_v55 = vpop.permute.xlu0 %2070  ;;  %v10614_v15 = vld [vmem:[#allocation83_spill] sm:$0xff]  ;;  %v2381_v12 = vpack.c.bf16 %v1925_v4, %v1921_v9  ;;  %v10619_v4 = vld [vmem:[#allocation142_spill] sm:$0xff] }
 0x7f0   :  { %3122 = vmatpush.bf16.msra.mxu3 %v2389_v0  ;;  %v2267_v39 = vmul.f32 %v2191_v25, %v10523_v41  ;;  %v2190_v52 = vsel %vm624_vm6, %v10610_v47, %v8128_v55  ;;  %v8138_v42 = vpop.f32.mrf.mxu0  ;;  %v10612_v0 = vld [vmem:[#allocation53_spill] sm:$0xff]  ;;  %v2364_v10 = vpack.c.bf16 %v1892_v5, %v1888_v22  ;;  %v10615_v25 = vld [vmem:[#allocation35_spill] sm:$0xff] }
 0x7f1   :  { %10611 = vst [vmem:[#allocation70_spill] sm:$0xff] %v8138_v42  ;;  %v1807_v50 = vsel %vm580_vm7, %v10612_v0, %v7976_v1  ;;  %v2263_v51 = vmul.f32 %v2190_v52, %v10523_v41  ;;  %2982 = vmatpush.bf16.msrb.mxu2 %v2368_v44  ;;  %v2452_v47 = vpack.c.bf16 %v10615_v25, %v10614_v15  ;;  %v10617_v44 = vld [vmem:[#allocation185_spill] sm:$0xff]  ;;  %v10618_v0 = vld [vmem:[#allocation180_spill] sm:$0xff] }
 0x7f2   :  { %v8136_v19 = vpop.permute.xlu2 %2136  ;;  %v1884_v24 = vmul.f32 %v1807_v50, %v10522_v7  ;;  %v2181_v52 = vsel %vm624_vm6, %v7393_v35, %v8010_v56  ;;  %v1789_v7 = vsel %vm580_vm7, %v8064_v33, %v10617_v44  ;;  %v1788_v35 = vsel %vm580_vm7, %v10594_v26, %v10618_v0  ;;  %v10625_v44 = vld [vmem:[#allocation89_spill] sm:$0xff] }
 0x7f3   :  { %v2455_v8 = vpack.c.bf16 %v2267_v39, %v2263_v51  ;;  %v2324_v21 = vmul.f32 %v2181_v52, %v10620_v23  ;;  %v10621_v51 = vld [vmem:[#allocation47_spill] sm:$0xff]  ;;  %v10673_v42 = vld [vmem:[#allocation49_spill] sm:$0xff] }
 0x7f4   :  { %3123 = vmatpush.bf16.msra.mxu3 %v2385_v38  ;;  %v10616_v38 = vld [vmem:[#allocation183_spill] sm:$0xff]  ;;  %v2360_v15 = vpack.c.bf16 %v1884_v24, %v1880_v29 }
 0x7f5   :  { %3014 = vmatmul.bf16.vlgmr.msrb.gmra.mxu3 %v7409_v20  ;;  %2926 = vmatpush.bf16.msrb.mxu0 %v2455_v8  ;;  %v2206_v39 = vsel %vm624_vm6, %v10616_v38, %v7980_v32  ;;  %v10624_v38 = vld [vmem:[#allocation95_spill] sm:$0xff] }
 0x7f6   :  { %2983 = vmatpush.bf16.msrb.mxu2 %v2364_v10  ;;  %v8170_v22 = vpop.permute.xlu1 %2146  ;;  %v10623_v10 = vld [vmem:[#allocation65_spill] sm:$0xff]  ;;  %v2327_v25 = vmul.f32 %v2206_v39, %v10523_v41  ;;  %v2448_v0 = vpack.c.bf16 %v10625_v44, %v10624_v38  ;;  %v10628_v24 = vld [vmem:[#allocation99_spill] sm:$0xff] }
 0x7f7   :  { %v2180_v9 = vsel %vm624_vm6, %v10619_v4, %v8170_v22  ;;  %v8180_v50 = vpop.permute.xlu0 %2104  ;;  %v10629_v29 = vpack.c.bf16 %v10627_v14, %v10628_v24  ;;  %v10634_v24 = vld [vmem:[#allocation127_spill] sm:$0xff] }
 0x7f8   :  { %3124 = vmatpush.bf16.msra.mxu3 %v2381_v12  ;;  %v2320_v33 = vmul.f32 %v2180_v9, %v10620_v23  ;;  %v2207_v5 = vsel %vm624_vm6, %v10621_v51, %v8180_v50  ;;  %v8188_v8 = vpop.f32.mrf.mxu3  ;;  %2927 = vmatmul.bf16.vlgmr.msrb.gmra.mxu0 %v10623_v10  ;;  %v8196_v12 = vpop.f32.mrf.mxu0  ;;  %v1905_v51 = vmul.f32 %v1788_v35, %v10475_v54 }
 0x7f9   :  { %3035 = vmatpush.bf16.msra.mxu0 %v2452_v47  ;;  %10622 = vst [vmem:[#allocation176_spill] sm:$0xff] %v8188_v8  ;;  %v1909_v47 = vmul.f32 %v1789_v7, %v10475_v54  ;;  %v2331_v52 = vmul.f32 %v2207_v5, %v10523_v41  ;;  %v8206_v7 = vpop.f32.mrf.mxu2  ;;  %v10630_v41 = vld [vmem:[#allocation61_spill] sm:$0xff]  ;;  %v10631_v5 = vld [vmem:[#allocation92_spill] sm:$0xff]  ;;  %v10661_v8 = vld [vmem:[#allocation38_spill] sm:$0xff] }
 0x7fa   :  { %v8190_v26 = vpop.permute.xlu2 %2130  ;;  %v2484_v4 = vpack.c.bf16 %v2324_v21, %v2320_v33  ;;  %2984 = vmatpush.bf16.msrb.mxu2 %v2360_v15  ;;  %v2444_v38 = vpack.c.bf16 %v10631_v5, %v10630_v41  ;;  %v10636_v5 = vpack.c.bf16 %v7752_v37, %v7749_v40  ;;  %v10640_v40 = vpack.c.bf16 %v7847_v28, %v7859_v6 }
 0x7fb   :  { %v8200_v9 = vpop.f32.mrf.mxu1  ;;  %v2487_v39 = vpack.c.bf16 %v2331_v52, %v2327_v25  ;;  %v2373_v21 = vpack.c.bf16 %v1909_v47, %v1905_v51 }
 0x7fc   :  { %10626 = vst [vmem:[#allocation76_spill] sm:$0xff] %v8200_v9  ;;  %3125 = vmatpush.bf16.msra.mxu3 %v10629_v29  ;;  %v1783_v29 = vsel %vm580_vm7, %v7976_v1, %v10634_v24  ;;  %v10637_v1 = vld [vmem:[#allocation79_spill] sm:$0xff]  ;;  %v10643_v24 = vld [vmem:[#allocation58_spill] sm:$0xff] }
 0x7fd   :  { %3036 = vmatpush.bf16.msra.mxu0 %v2448_v0  ;;  %2985 = vmatmul.bf16.vlgmr.msrb.gmra.mxu2 %v10547_v16 }
 0x7fe   :  { %2955 = vmatpush.bf16.msrb.mxu1 %v2487_v39  ;;  %v8211_v33 = vpop.permute.xlu1 %2144 }
 0x7ff   :  { %v2179_v14 = vsel %vm624_vm6, %v7340_v62, %v8211_v33  ;;  %v10632_v62 = vld [vmem:[#allocation54_spill] sm:$0xff] }
 0x800   :  { %3126 = vmatpush.bf16.msra.mxu3 %v2373_v21  ;;  %v2316_v15 = vmul.f32 %v2179_v14, %v10620_v23  ;;  %v8224_v47 = vpop.f32.mrf.mxu3  ;;  %v8231_v0 = vpop.f32.mrf.mxu0  ;;  %v1885_v21 = vmul.f32 %v1783_v29, %v10475_v54  ;;  %v10644_v29 = vld [vmem:[#allocation71_spill] sm:$0xff] }
 0x801   :  { %3037 = vmatpush.bf16.msra.mxu0 %v2444_v38  ;;  %v8217_v35 = vpop.permute.xlu0 %2142  ;;  %4721 = vmatmul.msk.bf16.vlgmr.msrb.gmra.mxu1 %vm2674_vm10, %v7763_v57 }
 0x802   :  { %3064 = vmatpush.bf16.msra.mxu1 %v2484_v4  ;;  %v2178_v25 = vsel %vm624_vm6, %v7435_v11, %v8217_v35  ;;  %v8226_v52 = vpop.permute.xlu2 %2160  ;;  %v10633_v4 = vld [vmem:[#allocation124_spill] sm:$0xff]  ;;  %v10635_v11 = vld [vmem:[#allocation59_spill] sm:$0xff] }
 0x803   :  { %v2312_v44 = vmul.f32 %v2178_v25, %v10620_v23  ;;  %v2440_v51 = vpack.c.bf16 %v10633_v4, %v10632_v62  ;;  %v1782_v39 = vsel %vm580_vm7, %v7978_v63, %v10635_v11  ;;  %v8243_v41 = vpop.f32.mrf.mxu1  ;;  %v10638_v25 = vld [vmem:[#allocation91_spill] sm:$0xff]  ;;  %v8253_v4 = vpop.f32.mrf.mxu2  ;;  %v2176_v63 = vsel %vm624_vm6, %v7398_v58, %v8079_v30 }
 0x804   :  { %3127 = vmatpush.bf16.msra.mxu3 %v10636_v5  ;;  %v1881_v14 = vmul.f32 %v1782_v39, %v10475_v54  ;;  %v2436_v62 = vpack.c.bf16 %v10638_v25, %v10637_v1  ;;  %10639 = vst [vmem:[#allocation168_spill] sm:$0xff] %v8253_v4  ;;  %v2432_v11 = vpack.c.bf16 %v10644_v29, %v10643_v24 }
 0x805   :  { %3038 = vmatpush.bf16.msra.mxu0 %v2440_v51  ;;  %v2480_v38 = vpack.c.bf16 %v2316_v15, %v2312_v44  ;;  %3019 = vmatmul.bf16.gmra.mxu3 %v7491_v36  ;;  %v10641_v44 = vld [vmem:[#allocation118_spill] sm:$0xff]  ;;  %v2304_v5 = vmul.f32 %v2176_v63, %v10620_v23 }
 0x806   :  { %v8262_v37 = vpop.permute.xlu1 %2134  ;;  %v2361_v39 = vpack.c.bf16 %v1885_v21, %v1881_v14  ;;  %v10646_v21 = vld [vmem:[#allocation44_spill] sm:$0xff] }
 0x807   :  { %3065 = vmatpush.bf16.msra.mxu1 %v2480_v38  ;;  %v2174_v51 = vsel %vm624_vm6, %v7569_v48, %v8262_v37  ;;  %v2175_v48 = vsel %vm624_vm6, %v7565_v13, %v8136_v19 }
 0x808   :  { %3128 = vmatpush.bf16.msra.mxu3 %v10640_v40  ;;  %v8266_v15 = vpop.f32.mrf.mxu3  ;;  %2932 = vmatmul.bf16.gmra.mxu0 %v10641_v44  ;;  %v8279_v6 = vpop.f32.mrf.mxu0  ;;  %v2300_v63 = vmul.f32 %v2175_v48, %v10620_v23 }
 0x809   :  { %3039 = vmatpush.bf16.msra.mxu0 %v2436_v62  ;;  %v8264_v54 = vpop.permute.xlu0 %2140  ;;  %10642 = vst [vmem:[#allocation171_spill] sm:$0xff] %v8279_v6  ;;  %v10645_v62 = vld [vmem:[#allocation36_spill] sm:$0xff] }
 0x80a   :  { %v2177_v58 = vsel %vm624_vm6, %v7529_v60, %v8264_v54  ;;  %v8277_v28 = vpop.permute.xlu2 %2154  ;;  %v2296_v60 = vmul.f32 %v2174_v51, %v10620_v23  ;;  %v2428_v14 = vpack.c.bf16 %v10646_v21, %v10645_v62  ;;  %v10653_v21 = vld [vmem:[#allocation149_spill] sm:$0xff] }
 0x80b   :  { %v2308_v38 = vmul.f32 %v2177_v58, %v10620_v23  ;;  %v8285_v1 = vpop.f32.mrf.mxu1  ;;  %v8296_v58 = vpop.f32.mrf.mxu2 }
 0x80c   :  { %3129 = vmatpush.bf16.msra.mxu3 %v2361_v39  ;;  %10647 = vst [vmem:[#allocation154_spill] sm:$0xff] %v8296_v58  ;;  %v2472_v13 = vpack.c.bf16 %v2300_v63, %v2296_v60  ;;  %v10649_v39 = vld [vmem:[#allocation26_spill] sm:$0xff] }
 0x80d   :  { %3040 = vmatpush.bf16.msra.mxu0 %v2432_v11  ;;  %v2476_v25 = vpack.c.bf16 %v2308_v38, %v2304_v5  ;;  %2990 = vmatmul.bf16.gmra.mxu2 %v10565_v2  ;;  %v10650_v5 = vld [vmem:[#allocation30_spill] sm:$0xff] }
 0x80e   :  { %v2159_v40 = vpop.permute.xlu1 %2158  ;;  %v2424_v38 = vpack.c.bf16 %v10650_v5, %v10649_v39 }
 0x80f   :  { %3066 = vmatpush.bf16.msra.mxu1 %v2476_v25  ;;  %v10652_v25 = vld [vmem:[#allocation107_spill] sm:$0xff] }
 0x810   :  { %v8298_v29 = vpop.f32.mrf.mxu3  ;;  %v2421_v62 = vpack.c.bf16 %v10537_v61, %v10652_v25 }
 0x811   :  { %3041 = vmatpush.bf16.msra.mxu0 %v2428_v14  ;;  %v2163_v24 = vpop.permute.xlu0 %2162  ;;  %10648 = vst [vmem:[#allocation120_spill] sm:$0xff] %v8298_v29  ;;  %4722 = vmatmul.msk.bf16.gmra.mxu1 %vm2674_vm10, %v7861_v3  ;;  %v8304_v11 = vpop.f32.mrf.mxu0  ;;  %v10654_v14 = vld [vmem:[#allocation119_spill] sm:$0xff] }
 0x812   :  { %v8302_v51 = vpop.permute.xlu2 %2124  ;;  %v2417_v60 = vpack.c.bf16 %v10654_v14, %v10653_v21  ;;  %v10658_v14 = vld [vmem:[#allocation102_spill] sm:$0xff] }
 0x813   :  { %v8308_v48 = vpop.f32.mrf.mxu1  ;;  %3067 = vmatpush.bf16.msra.mxu1 %v2472_v13  ;;  %v10656_v13 = vld [vmem:[#allocation96_spill] sm:$0xff]  ;;  %v8330_v25 = vpop.f32.mrf.mxu2 }
 0x814   :  { %10651 = vst [vmem:[#allocation147_spill] sm:$0xff] %v8308_v48 }
 0x815   :  { %3042 = vmatpush.bf16.msra.mxu0 %v2424_v38  ;;  %3024 = vmatmul.bf16.gmra.mxu3 %v10574_v59  ;;  %v2413_v38 = vpack.c.bf16 %v10540_v53, %v10536_v45  ;;  %v10659_v59 = vld [vmem:[#allocation104_spill] sm:$0xff]  ;;  %v2186_v45 = vsel %vm624_vm6, %v10661_v8, %v2159_v40  ;;  %v10662_v53 = vld [vmem:[#allocation51_spill] sm:$0xff] }
 0x818   :  { %v8315_v63 = vpop.permute.xlu1 %2128  ;;  %v8319_v20 = vpop.f32.mrf.mxu3  ;;  %2937 = vmatmul.bf16.gmra.mxu0 %v10656_v13  ;;  %v10660_v13 = vld [vmem:[#allocation115_spill] sm:$0xff] }
 0x819   :  { %3151 = vmatpush.bf16.msrb.mxu0 %v2421_v62  ;;  %v8317_v36 = vpop.permute.xlu0 %2126  ;;  %10655 = vst [vmem:[#allocation16_spill] sm:$0xff] %v8319_v20  ;;  %v8324_v5 = vpop.f32.mrf.mxu0  ;;  %v10657_v62 = vld [vmem:[#allocation105_spill] sm:$0xff]  ;;  %v2409_v44 = vpack.c.bf16 %v10660_v13, %v10659_v59  ;;  %v10666_v13 = vld [vmem:[#allocation15_spill] sm:$0xff] }
 0x81a   :  { %v2188_v21 = vsel %vm624_vm6, %v10657_v62, %v2163_v24 }
 0x81b   :  { %v8321_v39 = vpop.permute.xlu2 %2118  ;;  %v8326_v61 = vpop.f32.mrf.mxu1  ;;  %v2352_v59 = vmul.f32 %v2188_v21, %v10620_v23 }
 0x81d   :  { %3152 = vmatpush.bf16.msrb.mxu0 %v2417_v60  ;;  %2995 = vmatmul.bf16.gmra.mxu2 %v10577_v17  ;;  %v2260_v60 = vsel %vm624_vm6, %v2163_v24, %v10658_v14  ;;  %v10663_v17 = vld [vmem:[#allocation181_spill] sm:$0xff]  ;;  %v10665_v24 = vld [vmem:[#allocation46_spill] sm:$0xff] }
 0x81e   :  { %v2353_v14 = vmul.f32 %v2260_v60, %v10666_v13 }
 0x820   :  { %v2165_v29 = vpop.permute.xlu1 %2164  ;;  %v8350_v4 = vpop.f32.mrf.mxu3 }
 0x821   :  { %3153 = vmatpush.bf16.msrb.mxu0 %v2413_v38  ;;  %v2189_v38 = vsel %vm624_vm6, %v10662_v53, %v2165_v29  ;;  %v2261_v62 = vsel %vm624_vm6, %v2165_v29, %v10663_v17  ;;  %v2157_v3 = vpop.permute.xlu0 %2156  ;;  %10664 = vst [vmem:[#allocation18_spill] sm:$0xff] %v8350_v4  ;;  %4723 = vmatmul.msk.bf16.gmra.mxu1 %vm2674_vm10, %v10665_v24  ;;  %v8360_v9 = vpop.f32.mrf.mxu0  ;;  %v10669_v17 = vld [vmem:[#allocation167_spill] sm:$0xff]  ;;  %v10670_v24 = vld [vmem:[#allocation33_spill] sm:$0xff] }
 0x822   :  { %v2356_v8 = vmul.f32 %v2189_v38, %v10620_v23  ;;  %v2357_v48 = vmul.f32 %v2261_v62, %v10666_v13  ;;  %10668 = vst [vmem:[#allocation169_spill] sm:$0xff] %v8360_v9  ;;  %v2258_v29 = vsel %vm624_vm6, %v2159_v40, %v10669_v17  ;;  %v2187_v21 = vsel %vm624_vm6, %v10670_v24, %v8226_v52  ;;  %v10671_v38 = vld [vmem:[#allocation174_spill] sm:$0xff]  ;;  %v10672_v9 = vld [vmem:[#allocation63_spill] sm:$0xff]  ;;  %v10675_v17 = vld [vmem:[#allocation12_spill] sm:$0xff] }
 0x823   :  { %v8358_v53 = vpop.permute.xlu2 %2571  ;;  %v2259_v62 = vsel %vm624_vm6, %v8226_v52, %v10671_v38  ;;  %v10674_v20 = vpack.c.bf16 %v10672_v9, %v10673_v42  ;;  %v2345_v40 = vmul.f32 %v2258_v29, %v10666_v13  ;;  %v2185_v4 = vsel %vm624_vm6, %v10675_v17, %v2157_v3  ;;  %v10677_v52 = vld [vmem:[#allocation156_spill] sm:$0xff] }
 0x824   :  { %10667 = vst [vmem:[#allocation98_spill] sm:$0xff] %v8358_v53  ;;  %v2500_v60 = vpack.c.bf16 %v2356_v8, %v2352_v59  ;;  %v2501_v6 = vpack.c.bf16 %v2357_v48, %v2353_v14  ;;  %v2344_v53 = vmul.f32 %v2186_v45, %v10620_v23  ;;  %v8384_v48 = vpop.f32.mrf.mxu2  ;;  %v2348_v24 = vmul.f32 %v2187_v21, %v10620_v23  ;;  %v10679_v59 = vld [vmem:[#allocation60_spill] sm:$0xff]  ;;  %v10680_v8 = vld [vmem:[#allocation110_spill] sm:$0xff] }
 0x825   :  { %3154 = vmatpush.bf16.msrb.mxu0 %v2409_v44  ;;  %v8365_v44 = vpop.f32.mrf.mxu1  ;;  %3029 = vmatmul.bf16.gmra.mxu3 %v7683_v18  ;;  %10676 = vst [vmem:[#allocation103_spill] sm:$0xff] %v8384_v48  ;;  %v2257_v45 = vsel %vm624_vm6, %v2157_v3, %v10677_v52  ;;  %v2349_v9 = vmul.f32 %v2259_v62, %v10666_v13  ;;  %v10681_v3 = vld [vmem:[#allocation75_spill] sm:$0xff] }
 0x826   :  { %3097 = vmatpush.bf16.msra.mxu2 %v2500_v60  ;;  %3242 = vmatpush.bf16.msrb.mxu3 %v2501_v6  ;;  %v2184_v14 = vsel %vm624_vm6, %v10679_v59, %v8277_v28  ;;  %v2256_v29 = vsel %vm624_vm6, %v8277_v28, %v10680_v8  ;;  %v2171_v6 = vsel %vm624_vm6, %v10681_v3, %v8315_v63  ;;  %v10682_v60 = vld [vmem:[#allocation125_spill] sm:$0xff]  ;;  %v10685_v28 = vld [vmem:[#allocation39_spill] sm:$0xff] }
 0x827   :  { %v2170_v38 = vsel %vm624_vm6, %v10682_v60, %v8317_v36  ;;  %v2340_v62 = vmul.f32 %v2185_v4, %v10620_v23  ;;  %v2496_v8 = vpack.c.bf16 %v2348_v24, %v2344_v53  ;;  %v2341_v18 = vmul.f32 %v2257_v45, %v10666_v13  ;;  %v10687_v3 = vld [vmem:[#allocation17_spill] sm:$0xff]  ;;  %v10688_v60 = vld [vmem:[#allocation82_spill] sm:$0xff] }
 0x828   :  { %v8403_v21 = vpop.permute.xlu1 %2122  ;;  %v8416_v52 = vpop.f32.mrf.mxu3  ;;  %2942 = vmatmul.bf16.gmra.mxu0 %v10688_v60  ;;  %v2497_v2 = vpack.c.bf16 %v2349_v9, %v2345_v40  ;;  %v2284_v40 = vmul.f32 %v2171_v6, %v10620_v23  ;;  %v10692_v9 = vld [vmem:[#allocation25_spill] sm:$0xff] }
 0x829   :  { %3155 = vmatpush.bf16.msrb.mxu0 %v10674_v20  ;;  %v10678_v20 = vld [vmem:[#allocation77_spill] sm:$0xff]  ;;  %10683 = vst [vmem:[#allocation177_spill] sm:$0xff] %v8416_v52  ;;  %v8429_v4 = vpop.f32.mrf.mxu0 }
 0x82a   :  { %v2172_v42 = vsel %vm624_vm6, %v10678_v20, %v8190_v26  ;;  %v10684_v20 = vld [vmem:[#allocation45_spill] sm:$0xff]  ;;  %3098 = vmatpush.bf16.msra.mxu2 %v2496_v8  ;;  %3243 = vmatpush.bf16.msrb.mxu3 %v2497_v2 }
 0x82b   :  { %v8414_v17 = vpop.permute.xlu0 %2132  ;;  %v10686_v59 = vpack.c.bf16 %v10684_v20, %v10685_v28  ;;  %v8426_v58 = vpop.permute.xlu2 %2546  ;;  %v2288_v52 = vmul.f32 %v2172_v42, %v10620_v23  ;;  %v2336_v20 = vmul.f32 %v2184_v14, %v10620_v23  ;;  %v10690_v28 = vld [vmem:[#allocation122_spill] sm:$0xff]  ;;  %v2280_v42 = vmul.f32 %v2170_v38, %v10620_v23  ;;  %v10693_v14 = vld [vmem:[#allocation28_spill] sm:$0xff] }
 0x82c   :  { %v2173_v48 = vsel %vm624_vm6, %v10687_v3, %v8414_v17  ;;  %v2702_v24 = vadd.f32 %v8231_v0, %v8426_v58  ;;  %v2337_v3 = vmul.f32 %v2256_v29, %v10666_v13  ;;  %v10694_v8 = vpack.c.bf16 %v10692_v9, %v10693_v14  ;;  %v10696_v38 = vld [vmem:[#allocation112_spill] sm:$0xff] }
 0x82d   :  { %3156 = vmatpush.bf16.msrb.mxu0 %v10686_v59  ;;  %v2292_v53 = vmul.f32 %v2173_v48, %v10620_v23  ;;  %v8436_v45 = vpop.f32.mrf.mxu1  ;;  %v2252_v59 = vsel %vm624_vm6, %v8170_v22, %v10690_v28  ;;  %v10691_v48 = vld [vmem:[#allocation13_spill] sm:$0xff]  ;;  %3000 = vmatmul.bf16.gmra.mxu2 %v10606_v43  ;;  %v10702_v14 = vld [vmem:[#allocation48_spill] sm:$0xff] }
 0x82e   :  { %10689 = vst [vmem:[#allocation85_spill] sm:$0xff] %v8436_v45  ;;  %v2168_v0 = vsel %vm624_vm6, %v10691_v48, %v8403_v21  ;;  %v2492_v45 = vpack.c.bf16 %v2340_v62, %v2336_v20  ;;  %v2731_v22 = vadd.f32 %v8285_v1, %v2702_v24  ;;  %v10695_v28 = vld [vmem:[#allocation137_spill] sm:$0xff]  ;;  %v2493_v2 = vpack.c.bf16 %v2341_v18, %v2337_v3  ;;  %v10697_v1 = vld [vmem:[#allocation90_spill] sm:$0xff] }
 0x82f   :  { %v2468_v60 = vpack.c.bf16 %v2292_v53, %v2288_v52  ;;  %v2253_v29 = vsel %vm624_vm6, %v8010_v56, %v10695_v28  ;;  %v2321_v6 = vmul.f32 %v2252_v59, %v10666_v13  ;;  %v2251_v48 = vsel %vm624_vm6, %v8211_v33, %v10696_v38  ;;  %v10698_v56 = vld [vmem:[#allocation114_spill] sm:$0xff]  ;;  %v8473_v33 = vpop.f32.mrf.mxu2 }
 0x830   :  { %3099 = vmatpush.bf16.msra.mxu2 %v2492_v45  ;;  %v2760_v62 = vadd.f32 %v8206_v7, %v2731_v22  ;;  %v2250_v52 = vsel %vm624_vm6, %v8217_v35, %v10697_v1  ;;  %v2169_v18 = vsel %vm624_vm6, %v10698_v56, %v8302_v51  ;;  %v2272_v20 = vmul.f32 %v2168_v0, %v10620_v23  ;;  %v2153_v53 = vpop.permute.xlu1 %2152  ;;  %v8481_v59 = vpop.f32.mrf.mxu3  ;;  %v10701_v0 = vld [vmem:[#allocation106_spill] sm:$0xff] }
 0x831   :  { %3157 = vmatpush.bf16.msrb.mxu0 %v10694_v8  ;;  %3068 = vmatpush.bf16.msra.mxu1 %v2468_v60  ;;  %v2464_v24 = vpack.c.bf16 %v2284_v40, %v2280_v42  ;;  %v2183_v7 = vsel %vm624_vm6, %v8180_v50, %v2153_v53  ;;  %v10699_v60 = vld [vmem:[#allocation182_spill] sm:$0xff]  ;;  %v10700_v3 = vpack.c.bf16 %v8069_v27, %v8073_v31 }
 0x832   :  { %3244 = vmatpush.bf16.msrb.mxu3 %v2493_v2  ;;  %v2255_v35 = vsel %vm624_vm6, %v2153_v53, %v10699_v60  ;;  %4724 = vmatmul.msk.bf16.gmra.mxu1 %vm2674_vm10, %v10701_v0  ;;  %v8489_v40 = vadd.f32 %v8266_v15, %v2760_v62  ;;  %v2332_v42 = vmul.f32 %v2183_v7, %v10620_v23 }
 0x833   :  { %v2151_v45 = vpop.permute.xlu0 %2150  ;;  %v2333_v50 = vmul.f32 %v2255_v35, %v10666_v13  ;;  %v8499_v27 = vpop.permute.xlu2 %2541  ;;  %v2276_v31 = vmul.f32 %v2169_v18, %v10620_v23  ;;  %v2317_v7 = vmul.f32 %v2251_v48, %v10666_v13  ;;  %v2313_v60 = vmul.f32 %v2250_v52, %v10666_v13  ;;  %v10704_v48 = vld [vmem:[#allocation73_spill] sm:$0xff]  ;;  %v10705_v35 = vld [vmem:[#allocation84_spill] sm:$0xff] }
 0x834   :  { %v2182_v9 = vsel %vm624_vm6, %v7980_v32, %v2151_v45  ;;  %v2254_v8 = vsel %vm624_vm6, %v2151_v45, %v10702_v14  ;;  %v2699_v28 = vadd.f32 %v8196_v12, %v8499_v27  ;;  %v2325_v32 = vmul.f32 %v2253_v29, %v10666_v13  ;;  %v8509_v38 = vpop.f32.mrf.mxu0  ;;  %v10703_v12 = vld [vmem:[#allocation78_spill] sm:$0xff] }
 0x835   :  { %3158 = vmatpush.bf16.msrb.mxu0 %v10700_v3  ;;  %v2328_v22 = vmul.f32 %v2182_v9, %v10620_v23  ;;  %v2329_v15 = vmul.f32 %v2254_v8, %v10666_v13  ;;  %v8506_v2 = vpop.f32.mrf.mxu1  ;;  %3069 = vmatpush.bf16.msra.mxu1 %v2464_v24  ;;  %v2460_v62 = vpack.c.bf16 %v2276_v31, %v2272_v20  ;;  %v10706_v3 = vld [vmem:[#allocation42_spill] sm:$0xff] }
 0x836   :  { %v2728_v53 = vadd.f32 %v8243_v41, %v2699_v28  ;;  %v2485_v18 = vpack.c.bf16 %v2325_v32, %v2321_v6  ;;  %3130 = vmatmul.bf16.vlgmr.msra.gmra.mxu3 %v10547_v16  ;;  %v2249_v24 = vsel %vm624_vm6, %v8264_v54, %v10703_v12  ;;  %v2166_v41 = vsel %vm624_vm6, %v8128_v55, %v8321_v39 }
 0x837   :  { %v2488_v1 = vpack.c.bf16 %v2332_v42, %v2328_v22  ;;  %v2489_v56 = vpack.c.bf16 %v2333_v50, %v2329_v15  ;;  %v2248_v16 = vsel %vm624_vm6, %v8079_v30, %v10704_v48  ;;  %v2309_v20 = vmul.f32 %v2249_v24, %v10666_v13  ;;  %v10709_v15 = vld [vmem:[#allocation141_spill] sm:$0xff]  ;;  %v10712_v24 = vld [vmem:[#allocation140_spill] sm:$0xff] }
 0x838   :  { %v2757_v29 = vadd.f32 %v8150_v34, %v2728_v53  ;;  %v8524_v6 = vpop.permute.xlu1 %2566  ;;  %v8532_v54 = vpop.f32.mrf.mxu3  ;;  %3043 = vmatmul.bf16.vlgmr.msra.gmra.mxu0 %v10705_v35  ;;  %v2481_v45 = vpack.c.bf16 %v2317_v7, %v2313_v60  ;;  %v2246_v30 = vsel %vm624_vm6, %v8262_v37, %v10706_v3  ;;  %v2264_v42 = vmul.f32 %v2166_v41, %v10620_v23  ;;  %v10711_v53 = vld [vmem:[#allocation173_spill] sm:$0xff]  ;;  %v10714_v41 = vld [vmem:[#allocation172_spill] sm:$0xff] }
 0x839   :  { %3070 = vmatpush.bf16.msra.mxu1 %v2460_v62  ;;  %3100 = vmatpush.bf16.msra.mxu2 %v2488_v1  ;;  %v2305_v14 = vmul.f32 %v2248_v16, %v10666_v13  ;;  %v2297_v37 = vmul.f32 %v2246_v30, %v10666_v13  ;;  %v10710_v62 = vld [vmem:[#allocation43_spill] sm:$0xff]  ;;  %v2243_v48 = vsel %vm624_vm6, %v8315_v63, %v10714_v41 }
 0x83a   :  { %3245 = vmatpush.bf16.msrb.mxu3 %v2489_v56  ;;  %v8535_v34 = vadd.f32 %v8224_v47, %v2757_v29  ;;  %v8549_v9 = vpop.f32.mrf.mxu2  ;;  %v2245_v1 = vsel %vm624_vm6, %v8414_v17, %v10710_v62  ;;  %v10713_v17 = vld [vmem:[#allocation32_spill] sm:$0xff]  ;;  %v10720_v62 = vld [vmem:[#allocation117_spill] sm:$0xff] }
 0x83b   :  { %v8530_v52 = vpop.permute.xlu0 %2120  ;;  %v2477_v32 = vpack.c.bf16 %v2309_v20, %v2305_v14  ;;  %v2449_v29 = vpack.c.bf16 %v10713_v17, %v10712_v24  ;;  %v2293_v16 = vmul.f32 %v2245_v1, %v10666_v13  ;;  %v2285_v14 = vmul.f32 %v2243_v48, %v10666_v13  ;;  %v10721_v1 = vld [vmem:[#allocation18_spill] sm:$0xff] }
 0x83c   :  { %v2167_v55 = vsel %vm624_vm6, %v8117_v46, %v8530_v52  ;;  %v8552_v8 = vpop.f32.mrf.mxu0  ;;  %v10707_v46 = vld [vmem:[#allocation56_spill] sm:$0xff] }
 0x83d   :  { %3209 = vmatpush.bf16.msrb.mxu2 %v2485_v18  ;;  %v2268_v47 = vmul.f32 %v2167_v55, %v10620_v23  ;;  %v2841_v50 = vpop.f32.mrf.mxu1  ;;  %v2247_v31 = vsel %vm624_vm6, %v8136_v19, %v10707_v46  ;;  %v10708_v23 = vld [vmem:[#allocation123_spill] sm:$0xff]  ;;  %v2244_v18 = vsel %vm624_vm6, %v8190_v26, %v10711_v53  ;;  %v10716_v46 = vld [vmem:[#allocation121_spill] sm:$0xff] }
 0x83e   :  { %4725 = vmatmul.msk.bf16.vlgmr.msra.gmra.mxu2 %vm2674_vm10, %v7763_v57  ;;  %v2453_v28 = vpack.c.bf16 %v10709_v15, %v10708_v23  ;;  %v2301_v56 = vmul.f32 %v2247_v31, %v10666_v13  ;;  %v10717_v31 = vld [vmem:[#allocation139_spill] sm:$0xff] }
 0x83f   :  { %v2456_v22 = vpack.c.bf16 %v2268_v47, %v2264_v42  ;;  %v2289_v42 = vmul.f32 %v2244_v18, %v10666_v13  ;;  %v10722_v53 = vld [vmem:[#allocation159_spill] sm:$0xff] }
 0x840   :  { %v8568_v19 = vpop.permute.xlu1 %2561  ;;  %v2901_v12 = vpop.f32.mrf.mxu3  ;;  %v2473_v26 = vpack.c.bf16 %v2301_v56, %v2297_v37 }
 0x841   :  { %3210 = vmatpush.bf16.msrb.mxu2 %v2481_v45  ;;  %3071 = vmatpush.bf16.msra.mxu1 %v2456_v22  ;;  %v2709_v7 = vadd.f32 %v8324_v5, %v8568_v19  ;;  %v10715_v5 = vld [vmem:[#allocation153_spill] sm:$0xff]  ;;  %v2445_v22 = vpack.c.bf16 %v10717_v31, %v10716_v46  ;;  %v2469_v15 = vpack.c.bf16 %v2293_v16, %v2289_v42 }
 0x842   :  { %v2242_v55 = vsel %vm624_vm6, %v8317_v36, %v10715_v5  ;;  %v2872_v3 = vpop.f32.mrf.mxu2  ;;  %v10726_v5 = vld [vmem:[#allocation186_spill] sm:$0xff]  ;;  %v10729_v42 = vld [vmem:[#allocation109_spill] sm:$0xff] }
 0x843   :  { %v8576_v60 = vpop.permute.xlu0 %2556  ;;  %v2738_v30 = vadd.f32 %v8365_v44, %v2709_v7  ;;  %v2281_v37 = vmul.f32 %v2242_v55, %v10666_v13  ;;  %v10718_v44 = vld [vmem:[#allocation128_spill] sm:$0xff]  ;;  %v10727_v55 = vld [vmem:[#allocation101_spill] sm:$0xff] }
 0x844   :  { %v2707_v20 = vadd.f32 %v8304_v11, %v8576_v60  ;;  %3072 = vmatmul.bf16.vlgmr.msra.gmra.mxu1 %v10623_v10  ;;  %v2817_v63 = vpop.f32.mrf.mxu0  ;;  %v10723_v7 = vld [vmem:[#allocation16_spill] sm:$0xff] }
 0x845   :  { %3180 = vmatpush.bf16.msrb.mxu1 %v2453_v28  ;;  %3211 = vmatpush.bf16.msrb.mxu2 %v2477_v32  ;;  %v2843_v45 = vpop.f32.mrf.mxu1  ;;  %v2767_v36 = vadd.f32 %v8330_v25, %v2738_v30  ;;  %v10719_v28 = vld [vmem:[#allocation154_spill] sm:$0xff]  ;;  %v2241_v25 = vsel %vm624_vm6, %v8302_v51, %v10722_v53  ;;  %v10725_v51 = vld [vmem:[#allocation171_spill] sm:$0xff]  ;;  %v10736_v53 = vld [vmem:[#allocation168_spill] sm:$0xff] }
 0x846   :  { %v2844_v47 = vadd.f32 %v2843_v45, %v8499_v27  ;;  %v2736_v11 = vadd.f32 %v8326_v61, %v2707_v20  ;;  %3135 = vmatmul.bf16.gmra.mxu3 %v10718_v44  ;;  %v2240_v61 = vsel %vm624_vm6, %v8403_v21, %v10720_v62  ;;  %v10728_v45 = vld [vmem:[#allocation111_spill] sm:$0xff]  ;;  %v2277_v30 = vmul.f32 %v2241_v25, %v10666_v13  ;;  %v10735_v62 = vld [vmem:[#allocation94_spill] sm:$0xff] }
 0x847   :  { %v8608_v56 = vadd.f32 %v10721_v1, %v2767_v36  ;;  %v2273_v20 = vmul.f32 %v2240_v61, %v10666_v13 }
 0x848   :  { %v2873_v23 = vadd.f32 %v2872_v3, %v2844_v47  ;;  %v2765_v32 = vadd.f32 %v10719_v28, %v2736_v11  ;;  %v8614_v18 = vpop.permute.xlu1 %2536  ;;  %v2904_v16 = vpop.f32.mrf.mxu3  ;;  %3048 = vmatmul.bf16.gmra.mxu0 %v10726_v5  ;;  %v2441_v3 = vpack.c.bf16 %v10728_v45, %v10727_v55  ;;  %v10730_v47 = vld [vmem:[#allocation76_spill] sm:$0xff]  ;;  %v10733_v28 = vld [vmem:[#allocation67_spill] sm:$0xff]  ;;  %v2818_v55 = vadd.f32 %v2817_v63, %v8489_v40 }
 0x849   :  { %3181 = vmatpush.bf16.msrb.mxu1 %v2449_v29  ;;  %3212 = vmatpush.bf16.msrb.mxu2 %v2473_v26  ;;  %v10724_v29 = vld [vmem:[#allocation70_spill] sm:$0xff]  ;;  %v2842_v41 = vadd.f32 %v2841_v50, %v8614_v18  ;;  %v2239_v50 = vsel %vm624_vm6, %v8530_v52, %v10729_v42 }
 0x84a   :  { %v8617_v24 = vadd.f32 %v10723_v7, %v2765_v32  ;;  %v8619_v17 = vadd.f32 %v2901_v12, %v2873_v23  ;;  %v2697_v21 = vadd.f32 %v10724_v29, %v8614_v18  ;;  %v2465_v12 = vpack.c.bf16 %v2285_v14, %v2281_v37  ;;  %v10732_v23 = vld [vmem:[#allocation147_spill] sm:$0xff]  ;;  %v10734_v32 = vld [vmem:[#allocation81_spill] sm:$0xff] }
 0x84b   :  { %v8624_v48 = vpop.permute.xlu0 %2551  ;;  %v2871_v31 = vadd.f32 %v8549_v9, %v2842_v41  ;;  %v2437_v61 = vpack.c.bf16 %v10735_v62, %v10734_v32  ;;  %v2269_v1 = vmul.f32 %v2239_v50, %v10666_v13  ;;  %v10737_v7 = vld [vmem:[#allocation87_spill] sm:$0xff]  ;;  %v2461_v29 = vpack.c.bf16 %v2277_v30, %v2273_v20  ;;  %v10740_v20 = vld [vmem:[#allocation118_spill] sm:$0xff]  ;;  %v10746_v32 = vld [vmem:[#allocation145_spill] sm:$0xff] }
 0x84c   :  { %v2704_v26 = vadd.f32 %v10725_v51, %v8624_v48  ;;  %v2726_v11 = vadd.f32 %v10730_v47, %v2697_v21  ;;  %v2819_v14 = vpop.f32.mrf.mxu0  ;;  %v2815_v41 = vadd.f32 %v8552_v8, %v8535_v34  ;;  %v10738_v51 = vld [vmem:[#allocation176_spill] sm:$0xff]  ;;  %v10742_v30 = vld [vmem:[#allocation62_spill] sm:$0xff]  ;;  %v3275_v40 = vmax.f32 %v2818_v55, 0.0  ;;  %v10747_v62 = vld [vmem:[#allocation29_spill] sm:$0xff] }
 0x84d   :  { %3182 = vmatpush.bf16.msrb.mxu1 %v2445_v22  ;;  %3213 = vmatpush.bf16.msrb.mxu2 %v2469_v15  ;;  %v2846_v46 = vpop.f32.mrf.mxu1  ;;  %v10731_v22 = vld [vmem:[#allocation138_spill] sm:$0xff]  ;;  %v2875_v15 = vpop.f32.mrf.mxu2  ;;  %v8649_v9 = vadd.f32 %v8532_v54, %v2871_v31  ;;  %v10739_v54 = vld [vmem:[#allocation120_spill] sm:$0xff] }
 0x84e   :  { %v2238_v36 = vsel %vm624_vm6, %v8321_v39, %v10731_v22  ;;  %v2733_v44 = vadd.f32 %v10732_v23, %v2704_v26  ;;  %v2847_v37 = vadd.f32 %v2846_v46, %v8426_v58  ;;  %v2755_v52 = vadd.f32 %v10733_v28, %v2726_v11  ;;  %4726 = vmatmul.msk.bf16.gmra.mxu2 %vm2674_vm10, %v10737_v7  ;;  %v10743_v23 = vld [vmem:[#allocation93_spill] sm:$0xff] }
 0x84f   :  { %v2265_v21 = vmul.f32 %v2238_v36, %v10666_v13  ;;  %v10741_v13 = vld [vmem:[#allocation52_spill] sm:$0xff]  ;;  %v3271_v8 = vmax.f32 %v2815_v41, 0.0  ;;  %v10749_v41 = vld [vmem:[#allocation169_spill] sm:$0xff] }
 0x850   :  { %v2762_v39 = vadd.f32 %v10736_v53, %v2733_v44  ;;  %v2876_v25 = vadd.f32 %v2875_v15, %v2847_v37  ;;  %v2784_v26 = vadd.f32 %v10738_v51, %v2755_v52  ;;  %v2433_v47 = vpack.c.bf16 %v10742_v30, %v10741_v13  ;;  %v10744_v44 = vld [vmem:[#allocation34_spill] sm:$0xff]  ;;  %v10752_v30 = vld [vmem:[#allocation85_spill] sm:$0xff] }
 0x851   :  { %3183 = vmatpush.bf16.msrb.mxu1 %v2441_v3  ;;  %3214 = vmatpush.bf16.msrb.mxu2 %v2465_v12  ;;  %v2906_v12 = vpop.f32.mrf.mxu3  ;;  %v2457_v34 = vpack.c.bf16 %v2269_v1, %v2265_v21  ;;  %v2712_v51 = vadd.f32 %v10749_v41, %v8524_v6 }
 0x852   :  { %v2791_v45 = vadd.f32 %v10739_v54, %v2762_v39  ;;  %v8661_v3 = vadd.f32 %v2904_v16, %v2876_v25  ;;  %v2813_v42 = vadd.f32 %v8509_v38, %v2784_v26  ;;  %v10750_v54 = vld [vmem:[#allocation46_spill] sm:$0xff] }
 0x854   :  { %v2820_v50 = vadd.f32 %v2819_v14, %v2791_v45  ;;  %3077 = vmatmul.bf16.gmra.mxu1 %v10740_v20  ;;  %v3267_v46 = vmax.f32 %v2813_v42, 0.0  ;;  %v2822_v31 = vpop.f32.mrf.mxu0  ;;  %v10745_v14 = vld [vmem:[#allocation40_spill] sm:$0xff] }
 0x855   :  { %3184 = vmatpush.bf16.msrb.mxu1 %v2437_v61  ;;  %3215 = vmatpush.bf16.msrb.mxu2 %v2461_v29  ;;  %v2848_v11 = vpop.f32.mrf.mxu1  ;;  %v2877_v16 = vpop.f32.mrf.mxu2  ;;  %v2429_v37 = vpack.c.bf16 %v10745_v14, %v10744_v44  ;;  %v10748_v61 = vld [vmem:[#allocation31_spill] sm:$0xff]  ;;  %v2823_v53 = vadd.f32 %v2822_v31, %v8617_v24  ;;  %v10751_v24 = vld [vmem:[#allocation98_spill] sm:$0xff] }
 0x856   :  { %v3279_v63 = vmax.f32 %v2820_v50, 0.0  ;;  %v2849_v22 = vadd.f32 %v2848_v11, %v8624_v48  ;;  %v8668_v36 = vpack.c.bf16 %v3271_v8, %v3267_v46  ;;  %3140 = vmatmul.bf16.gmra.mxu3 %v10743_v23  ;;  %v2425_v1 = vpack.c.bf16 %v10748_v61, %v10747_v62  ;;  %v10753_v8 = vld [vmem:[#allocation96_spill] sm:$0xff]  ;;  %v10754_v31 = vld [vmem:[#allocation103_spill] sm:$0xff]  ;;  %v10755_v23 = vld [vmem:[#allocation177_spill] sm:$0xff] }
 0x857   :  { %v3283_v45 = vmax.f32 %v2823_v53, 0.0  ;;  %v2714_v50 = vadd.f32 %v8429_v4, %v10751_v24 }
 0x858   :  { %v2878_v38 = vadd.f32 %v2877_v16, %v2849_v22  ;;  %v3303_v15 = vpack.c.bf16 %v3279_v63, %v3275_v40  ;;  %3053 = vmatmul.bf16.gmra.mxu0 %v10746_v32 }
 0x859   :  { %3185 = vmatpush.bf16.msrb.mxu1 %v2433_v47  ;;  %3216 = vmatpush.bf16.msrb.mxu2 %v2457_v34  ;;  %v2909_v52 = vpop.f32.mrf.mxu3  ;;  %v2741_v47 = vadd.f32 %v10752_v30, %v2712_v51  ;;  %v2743_v11 = vadd.f32 %v8506_v2, %v2714_v50 }
 0x85a   :  { %v8673_v28 = vadd.f32 %v2906_v12, %v2878_v38 }
 0x85b   :  { %v2770_v22 = vadd.f32 %v10754_v31, %v2741_v47  ;;  %v2772_v4 = vadd.f32 %v8473_v33, %v2743_v11 }
 0x85c   :  { %v2824_v25 = vpop.f32.mrf.mxu0 }
 0x85d   :  { %3186 = vmatpush.bf16.msrb.mxu1 %v2429_v37  ;;  %v2851_v39 = vpop.f32.mrf.mxu1  ;;  %v2880_v21 = vpop.f32.mrf.mxu2  ;;  %v2825_v26 = vadd.f32 %v2824_v25, %v8608_v56  ;;  %v2799_v44 = vadd.f32 %v10755_v23, %v2770_v22  ;;  %v10756_v37 = vld [vmem:[#allocation37_spill] sm:$0xff] }
 0x85e   :  { %v2852_v29 = vadd.f32 %v2851_v39, %v8576_v60  ;;  %4727 = vmatmul.msk.bf16.gmra.mxu2 %vm2674_vm10, %v10750_v54 }
 0x85f   :  { %v3287_v12 = vmax.f32 %v2825_v26, 0.0 }
 0x860   :  { %v2881_v55 = vadd.f32 %v2880_v21, %v2852_v29  ;;  %v10757_v29 = vld [vmem:[#allocation82_spill] sm:$0xff] }
 0x861   :  { %3187 = vmatpush.bf16.msrb.mxu1 %v2425_v1  ;;  %v2911_v13 = vpop.f32.mrf.mxu3  ;;  %v3307_v34 = vpack.c.bf16 %v3287_v12, %v3283_v45 }
 0x862   :  { %v8685_v42 = vadd.f32 %v2909_v52, %v2881_v55  ;;  %v2801_v52 = vadd.f32 %v8481_v59, %v2772_v4  ;;  %v10758_v55 = vld [vmem:[#allocation86_spill] sm:$0xff] }
 0x864   :  { %3082 = vmatmul.bf16.gmra.mxu1 %v10753_v8  ;;  %v2827_v46 = vpop.f32.mrf.mxu0 }
 0x865   :  { %v2853_v56 = vpop.f32.mrf.mxu1  ;;  %v2882_v63 = vpop.f32.mrf.mxu2  ;;  %v2828_v2 = vadd.f32 %v2827_v46, %v2799_v44  ;;  %v10759_v46 = vld [vmem:[#allocation144_spill] sm:$0xff] }
 0x866   :  { %v2854_v40 = vadd.f32 %v2853_v56, %v8568_v19  ;;  %3145 = vmatmul.bf16.gmra.mxu3 %v10606_v43 }
 0x867   :  { %v3291_v43 = vmax.f32 %v2828_v2, 0.0 }
 0x868   :  { %v2883_v16 = vadd.f32 %v2882_v63, %v2854_v40  ;;  %3058 = vmatmul.bf16.gmra.mxu0 %v10756_v37 }
 0x869   :  { %v8699_v14 = vpop.f32.mrf.mxu3 }
 0x86a   :  { %v8696_v38 = vadd.f32 %v2911_v13, %v2883_v16 }
 0x86c   :  { %v2829_v62 = vpop.f32.mrf.mxu0 }
 0x86d   :  { %v8703_v61 = vpop.f32.mrf.mxu1  ;;  %v2830_v1 = vadd.f32 %v2829_v62, %v2801_v52  ;;  %v8707_v53 = vpop.f32.mrf.mxu2 }
 0x86e   :  { %4728 = vmatmul.msk.bf16.gmra.mxu2 %vm2674_vm10, %v10701_v0 }
 0x86f   :  { %v3295_v33 = vmax.f32 %v2830_v1, 0.0 }
 0x871   :  { %v3311_v39 = vpack.c.bf16 %v3295_v33, %v3291_v43  ;;  %v8709_v25 = vpop.f32.mrf.mxu3 }
 0x873   :  { %3323 = vmatpush.bf16.msra.mxu0 %v3311_v39  ;;  %v10760_v39 = vld [vmem:[#allocation133_spill] sm:$0xff] }
 0x874   :  { %3087 = vmatmul.bf16.gmra.mxu1 %v10757_v29 }
 0x875   :  { %v8712_v21 = vpop.f32.mrf.mxu1  ;;  %v2928_v59 = vpop.f32.mrf.mxu0 }
 0x876   :  { %4729 = vmatmul.msk.bf16.vlgmr.msrb.gmra.mxu3 %vm2674_vm10, %v7763_v57  ;;  %v2929_v41 = vadd.f32 %v2928_v59, %v8649_v9  ;;  %v8717_v51 = vpop.f32.mrf.mxu2 }
 0x877   :  { %3324 = vmatpush.bf16.msra.mxu0 %v3307_v34 }
 0x878   :  { %3159 = vmatmul.bf16.vlgmr.msrb.gmra.mxu0 %v10758_v55 }
 0x879   :  { %v3015_v26 = vpop.f32.mrf.mxu3 }
 0x87b   :  { %3325 = vmatpush.bf16.msra.mxu0 %v3303_v15 }
 0x87d   :  { %v2930_v45 = vpop.f32.mrf.mxu0 }
 0x87e   :  { %3217 = vmatmul.bf16.vlgmr.msrb.gmra.mxu2 %v10623_v10  ;;  %v2957_v12 = vpop.f32.mrf.mxu1  ;;  %v2931_v50 = vadd.f32 %v2930_v45, %v8619_v17 }
 0x87f   :  { %3326 = vmatpush.bf16.msra.mxu0 %v8668_v36  ;;  %v2958_v13 = vadd.f32 %v2957_v12, %v2929_v41 }
 0x880   :  { %v2986_v30 = vpop.f32.mrf.mxu2 }
 0x881   :  { %v8723_v57 = vpop.f32.mrf.mxu3  ;;  %v2987_v9 = vadd.f32 %v2986_v30, %v8614_v18  ;;  %v3268_v11 = vmax.f32 %v2958_v13, 0.0  ;;  %v2857_v30 = vadd.f32 %v8703_v61, %v8524_v6 }
 0x883   :  { %v8727_v47 = vadd.f32 %v3015_v26, %v2987_v9 }
 0x884   :  { %3188 = vmatmul.bf16.vlgmr.msrb.gmra.mxu1 %v10705_v35 }
 0x885   :  { %v2933_v34 = vpop.f32.mrf.mxu0 }
 0x886   :  { %v2959_v15 = vpop.f32.mrf.mxu1  ;;  %4730 = vmatmul.msk.bf16.gmra.mxu3 %vm2674_vm10, %v10737_v7  ;;  %v2934_v7 = vadd.f32 %v2933_v34, %v8661_v3 }
 0x887   :  { %v2960_v10 = vadd.f32 %v2959_v15, %v2931_v50 }
 0x888   :  { %v8731_v56 = vpop.f32.mrf.mxu2  ;;  %3164 = vmatmul.bf16.gmra.mxu0 %v10759_v46 }
 0x889   :  { %v3272_v36 = vmax.f32 %v2960_v10, 0.0  ;;  %v3020_v17 = vpop.f32.mrf.mxu3  ;;  %v10761_v10 = vld [vmem:[#allocation69_spill] sm:$0xff] }
 0x88b   :  { %v8734_v40 = vpack.c.bf16 %v3272_v36, %v3268_v11 }
 0x88d   :  { %v2935_v35 = vpop.f32.mrf.mxu0 }
 0x88e   :  { %3222 = vmatmul.bf16.gmra.mxu2 %v10740_v20  ;;  %v2962_v63 = vpop.f32.mrf.mxu1  ;;  %v2936_v23 = vadd.f32 %v2935_v35, %v8673_v28 }
 0x88f   :  { %v2963_v44 = vadd.f32 %v2962_v63, %v2934_v7 }
 0x890   :  { %v2991_v31 = vpop.f32.mrf.mxu2 }
 0x891   :  { %v8737_v22 = vpop.f32.mrf.mxu3  ;;  %v2992_v16 = vadd.f32 %v2991_v31, %v8426_v58  ;;  %v3276_v62 = vmax.f32 %v2963_v44, 0.0 }
 0x893   :  { %v8742_v4 = vadd.f32 %v3020_v17, %v2992_v16 }
 0x894   :  { %3193 = vmatmul.bf16.gmra.mxu1 %v10726_v5 }
 0x895   :  { %v2938_v20 = vpop.f32.mrf.mxu0 }
 0x896   :  { %v2964_v2 = vpop.f32.mrf.mxu1  ;;  %4731 = vmatmul.msk.bf16.gmra.mxu3 %vm2674_vm10, %v10750_v54  ;;  %v2939_v54 = vadd.f32 %v2938_v20, %v8685_v42 }
 0x897   :  { %v2965_v52 = vadd.f32 %v2964_v2, %v2936_v23 }
 0x898   :  { %v8747_v43 = vpop.f32.mrf.mxu2  ;;  %3169 = vmatmul.bf16.gmra.mxu0 %v10760_v39 }
 0x899   :  { %v3280_v1 = vmax.f32 %v2965_v52, 0.0  ;;  %v3025_v33 = vpop.f32.mrf.mxu3 }
 0x89b   :  { %v3304_v5 = vpack.c.bf16 %v3280_v1, %v3276_v62 }
 0x89d   :  { %v2940_v59 = vpop.f32.mrf.mxu0 }
 0x89e   :  { %3227 = vmatmul.bf16.gmra.mxu2 %v10753_v8  ;;  %v2967_v3 = vpop.f32.mrf.mxu1  ;;  %v2941_v45 = vadd.f32 %v2940_v59, %v8696_v38  ;;  %v2859_v38 = vadd.f32 %v8712_v21, %v10751_v24 }
 0x89f   :  { %v2968_v12 = vadd.f32 %v2967_v3, %v2939_v54  ;;  %v2989_v3 = vadd.f32 %v8731_v56, %v8499_v27 }
 0x8a0   :  { %v2996_v28 = vpop.f32.mrf.mxu2  ;;  %v2888_v61 = vadd.f32 %v8717_v51, %v2859_v38 }
 0x8a1   :  { %v3027_v41 = vpop.f32.mrf.mxu3  ;;  %v2997_v26 = vadd.f32 %v2996_v28, %v8576_v60  ;;  %v3284_v9 = vmax.f32 %v2968_v12, 0.0 }
 0x8a2   :  { %v2917_v7 = vadd.f32 %v8709_v25, %v2888_v61 }
 0x8a3   :  { %v8754_v55 = vadd.f32 %v3025_v33, %v2997_v26  ;;  %v3018_v26 = vadd.f32 %v8723_v57, %v2989_v3 }
 0x8a4   :  { %3198 = vmatmul.bf16.gmra.mxu1 %v10746_v32 }
 0x8a5   :  { %v2943_v8 = vpop.f32.mrf.mxu0 }
 0x8a6   :  { %v2969_v50 = vpop.f32.mrf.mxu1  ;;  %4732 = vmatmul.msk.bf16.gmra.mxu3 %vm2674_vm10, %v10701_v0  ;;  %v2886_v0 = vadd.f32 %v8707_v53, %v2857_v30 }
 0x8a7   :  { %v2970_v13 = vadd.f32 %v2969_v50, %v2941_v45 }
 0x8a8   :  { %v2998_v15 = vpop.f32.mrf.mxu2  ;;  %3174 = vmatmul.bf16.gmra.mxu0 %v10761_v10  ;;  %v2915_v35 = vadd.f32 %v8699_v14, %v2886_v0  ;;  %v8781_v14 = vld [vmem:[%s9764_s22] sm:$0x1] }
 0x8a9   :  { %v3288_v34 = vmax.f32 %v2970_v13, 0.0  ;;  %v3030_v32 = vpop.f32.mrf.mxu3  ;;  %v2999_v42 = vadd.f32 %v2998_v15, %v8568_v19 }
 0x8aa   :  { %v2944_v21 = vadd.f32 %v2943_v8, %v2915_v35 }
 0x8ab   :  { %v3308_v11 = vpack.c.bf16 %v3288_v34, %v3284_v9  ;;  %v8765_v36 = vadd.f32 %v3027_v41, %v2999_v42 }
 0x8ad   :  { %v2945_v46 = vpop.f32.mrf.mxu0 }
 0x8ae   :  { %3232 = vmatmul.bf16.gmra.mxu2 %v10757_v29  ;;  %v2946_v53 = vadd.f32 %v2945_v46, %v2917_v7 }
 0x8af   :  { %v2972_v17 = vpop.f32.mrf.mxu1 }
 0x8b0   :  { %v3001_v63 = vpop.f32.mrf.mxu2  ;;  %v2973_v29 = vadd.f32 %v2972_v17, %v2944_v21 }
 0x8b1   :  { %v8771_v31 = vpop.f32.mrf.mxu3  ;;  %v3002_v16 = vadd.f32 %v3001_v63, %v8524_v6 }
 0x8b2   :  { %v3292_v52 = vmax.f32 %v2973_v29, 0.0 }
 0x8b3   :  { %v8776_v23 = vadd.f32 %v3030_v32, %v3002_v16 }
 0x8b4   :  { %3203 = vmatmul.bf16.gmra.mxu1 %v10756_v37 }
 0x8b5   :  { %v3044_v51 = vpop.f32.mrf.mxu0 }
 0x8b6   :  { %v3045_v20 = vadd.f32 %v3044_v51, %v8727_v47 }
 0x8b7   :  { %v2974_v44 = vpop.f32.mrf.mxu1 }
 0x8b8   :  { %v2975_v2 = vadd.f32 %v2974_v44, %v2946_v53  ;;  %v3003_v37 = vpop.f32.mrf.mxu2  ;;  %4733 = vmatmul.msk.bf16.vlgmr.msra.gmra.mxu0 %vm2674_vm10, %v8781_v14 }
 0x8b9   :  { %v3131_v1 = vpop.f32.mrf.mxu3 }
 0x8ba   :  { %v3296_v62 = vmax.f32 %v2975_v2, 0.0 }
 0x8bc   :  { %v3312_v25 = vpack.c.bf16 %v3296_v62, %v3292_v52 }
 0x8bd   :  { %v3046_v33 = vpop.f32.mrf.mxu0 }
 0x8be   :  { %3336 = vmatpush.bf16.msra.mxu1 %v3312_v25  ;;  %v3047_v54 = vadd.f32 %v3046_v33, %v3018_v26  ;;  %v3004_v33 = vadd.f32 %v3003_v37, %v10751_v24 }
 0x8c1   :  { %v3073_v39 = vpop.f32.mrf.mxu1  ;;  %v3102_v28 = vpop.f32.mrf.mxu2 }
 0x8c2   :  { %v3074_v59 = vadd.f32 %v3073_v39, %v3045_v20  ;;  %v8788_v41 = vpop.f32.mrf.mxu3  ;;  %3337 = vmatpush.bf16.msra.mxu1 %v3308_v11 }
 0x8c4   :  { %v3103_v47 = vadd.f32 %v3102_v28, %v3074_v59  ;;  %v3033_v59 = vadd.f32 %v8771_v31, %v3004_v33 }
 0x8c5   :  { %v3049_v45 = vpop.f32.mrf.mxu0 }
 0x8c6   :  { %3338 = vmatpush.bf16.msra.mxu1 %v3304_v5  ;;  %v3269_v56 = vmax.f32 %v3103_v47, 0.0  ;;  %v3132_v47 = vadd.f32 %v3131_v1, %v8614_v18  ;;  %v3134_v18 = vadd.f32 %v8788_v41, %v8499_v27 }
 0x8c9   :  { %v3075_v12 = vpop.f32.mrf.mxu1  ;;  %v3104_v8 = vpop.f32.mrf.mxu2 }
 0x8ca   :  { %v3076_v50 = vadd.f32 %v3075_v12, %v3047_v54  ;;  %v8791_v13 = vpop.f32.mrf.mxu3  ;;  %3339 = vmatpush.bf16.msra.mxu1 %v8734_v40 }
 0x8cc   :  { %v3105_v30 = vadd.f32 %v3104_v8, %v3076_v50 }
 0x8cd   :  { %4734 = vmatmul.msk.bf16.vlgmr.msra.gmra.mxu1 %vm2674_vm10, %v8781_v14  ;;  %v3051_v15 = vpop.f32.mrf.mxu0 }
 0x8ce   :  { %v3273_v9 = vmax.f32 %v3105_v30, 0.0 }
 0x8d0   :  { %v8796_v34 = vpack.c.bf16 %v3273_v9, %v3269_v56 }
 0x8d1   :  { %v3078_v57 = vpop.f32.mrf.mxu1  ;;  %v3107_v5 = vpop.f32.mrf.mxu2 }
 0x8d2   :  { %v8798_v32 = vpop.f32.mrf.mxu3 }
 0x8d5   :  { %v3054_v42 = vpop.f32.mrf.mxu0 }
 0x8d6   :  { %v3055_v46 = vadd.f32 %v3054_v42, %v8754_v55 }
 0x8d9   :  { %v3080_v10 = vpop.f32.mrf.mxu1  ;;  %v3109_v38 = vpop.f32.mrf.mxu2 }
 0x8da   :  { %v8800_v11 = vpop.f32.mrf.mxu3 }
 0x8dd   :  { %v3056_v0 = vpop.f32.mrf.mxu0 }
 0x8de   :  { %v3057_v63 = vadd.f32 %v3056_v0, %v8765_v36  ;;  %v2994_v36 = vadd.f32 %v8747_v43, %v8624_v48  ;;  %v3050_v43 = vadd.f32 %v3049_v45, %v8742_v4 }
 0x8e0   :  { %v3023_v26 = vadd.f32 %v8737_v22, %v2994_v36 }
 0x8e1   :  { %v3083_v40 = vpop.f32.mrf.mxu1  ;;  %v3112_v17 = vpop.f32.mrf.mxu2 }
 0x8e2   :  { %v8802_v61 = vpop.f32.mrf.mxu3  ;;  %v3084_v35 = vadd.f32 %v3083_v40, %v3055_v46  ;;  %v3052_v8 = vadd.f32 %v3051_v15, %v3023_v26  ;;  %v3079_v40 = vadd.f32 %v3078_v57, %v3050_v43 }
 0x8e4   :  { %v3113_v7 = vadd.f32 %v3112_v17, %v3084_v35  ;;  %v3081_v0 = vadd.f32 %v3080_v10, %v3052_v8  ;;  %v3108_v15 = vadd.f32 %v3107_v5, %v3079_v40  ;;  %v3137_v5 = vadd.f32 %v8791_v13, %v8426_v58 }
 0x8e5   :  { %v3059_v16 = vpop.f32.mrf.mxu0 }
 0x8e6   :  { %v3285_v51 = vmax.f32 %v3113_v7, 0.0  ;;  %v3060_v3 = vadd.f32 %v3059_v16, %v8776_v23  ;;  %v3110_v22 = vadd.f32 %v3109_v38, %v3081_v0  ;;  %v3277_v45 = vmax.f32 %v3108_v15, 0.0 }
 0x8e9   :  { %v3085_v21 = vpop.f32.mrf.mxu1  ;;  %v3114_v29 = vpop.f32.mrf.mxu2 }
 0x8ea   :  { %v3086_v53 = vadd.f32 %v3085_v21, %v3057_v63  ;;  %v8806_v44 = vpop.f32.mrf.mxu3 }
 0x8ec   :  { %v3115_v2 = vadd.f32 %v3114_v29, %v3086_v53  ;;  %v3281_v53 = vmax.f32 %v3110_v22, 0.0 }
 0x8ed   :  { %v3061_v62 = vpop.f32.mrf.mxu0 }
 0x8ee   :  { %v3289_v20 = vmax.f32 %v3115_v2, 0.0  ;;  %v3062_v54 = vadd.f32 %v3061_v62, %v3033_v59  ;;  %v3305_v57 = vpack.c.bf16 %v3281_v53, %v3277_v45 }
 0x8f0   :  { %v3309_v52 = vpack.c.bf16 %v3289_v20, %v3285_v51 }
 0x8f1   :  { %v3088_v25 = vpop.f32.mrf.mxu1  ;;  %v3117_v39 = vpop.f32.mrf.mxu2 }
 0x8f2   :  { %v8809_v55 = vpop.f32.mrf.mxu3  ;;  %v3089_v28 = vadd.f32 %v3088_v25, %v3060_v3 }
 0x8f4   :  { %v3118_v37 = vadd.f32 %v3117_v39, %v3089_v28 }
 0x8f5   :  { %v3160_v50 = vpop.f32.mrf.mxu0 }
 0x8f6   :  { %v3161_v56 = vadd.f32 %v3160_v50, %v3132_v47  ;;  %v3293_v31 = vmax.f32 %v3118_v37, 0.0  ;;  %v3139_v47 = vadd.f32 %v8798_v32, %v8624_v48 }
 0x8f9   :  { %v3090_v12 = vpop.f32.mrf.mxu1  ;;  %v3119_v9 = vpop.f32.mrf.mxu2 }
 0x8fa   :  { %v3091_v30 = vadd.f32 %v3090_v12, %v3062_v54  ;;  %v3247_v42 = vpop.f32.mrf.mxu3 }
 0x8fc   :  { %v3120_v23 = vadd.f32 %v3119_v9, %v3091_v30 }
 0x8fd   :  { %v3162_v46 = vpop.f32.mrf.mxu0 }
 0x8fe   :  { %v3297_v17 = vmax.f32 %v3120_v23, 0.0  ;;  %v3163_v63 = vadd.f32 %v3162_v46, %v3134_v18 }
 0x900   :  { %v3313_v1 = vpack.c.bf16 %v3297_v17, %v3293_v31  ;;  %v3144_v31 = vadd.f32 %v8802_v61, %v8568_v19 }
 0x901   :  { %v3189_v35 = vpop.f32.mrf.mxu1  ;;  %v3218_v21 = vpop.f32.mrf.mxu2 }
 0x902   :  { %v3190_v16 = vadd.f32 %v3189_v35, %v3161_v56  ;;  %3349 = vmatpush.bf16.msra.mxu2 %v3313_v1  ;;  %v3249_v7 = vpop.f32.mrf.mxu3  ;;  %v3142_v56 = vadd.f32 %v8800_v11, %v8576_v60 }
 0x904   :  { %v3219_v4 = vadd.f32 %v3218_v21, %v3190_v16  ;;  %v3147_v16 = vadd.f32 %v8806_v44, %v8524_v6 }
 0x905   :  { %v3165_v29 = vpop.f32.mrf.mxu0 }
 0x906   :  { %v3248_v10 = vadd.f32 %v3247_v42, %v3219_v4  ;;  %3350 = vmatpush.bf16.msra.mxu2 %v3309_v52  ;;  %v3166_v52 = vadd.f32 %v3165_v29, %v3137_v5  ;;  %v3149_v29 = vadd.f32 %v8809_v55, %v10751_v24  ;;  %v4937_v55 = vmov 8.0  }
 0x908   :  { %v3270_v62 = vmax.f32 %v3248_v10, 0.0 }
 0x909   :  { %v3191_v2 = vpop.f32.mrf.mxu1  ;;  %v3220_v27 = vpop.f32.mrf.mxu2 }
 0x90a   :  { %v3192_v51 = vadd.f32 %v3191_v2, %v3163_v63  ;;  %3351 = vmatpush.bf16.msra.mxu2 %v3305_v57  ;;  %v3252_v41 = vpop.f32.mrf.mxu3 }
 0x90c   :  { %v3221_v38 = vadd.f32 %v3220_v27, %v3192_v51 }
 0x90d   :  { %v3167_v33 = vpop.f32.mrf.mxu0 }
 0x90e   :  { %v3250_v20 = vadd.f32 %v3249_v7, %v3221_v38  ;;  %3352 = vmatpush.bf16.msra.mxu2 %v8796_v34  ;;  %v3168_v34 = vadd.f32 %v3167_v33, %v3139_v47 }
 0x910   :  { %v3274_v25 = vmax.f32 %v3250_v20, 0.0 }
 0x911   :  { %v3194_v39 = vpop.f32.mrf.mxu1  ;;  %4735 = vmatmul.msk.bf16.vlgmr.msra.gmra.mxu2 %vm2674_vm10, %v8781_v14  ;;  %v3223_v3 = vpop.f32.mrf.mxu2 }
 0x912   :  { %v8825_v36 = vpack.c.bf16 %v3274_v25, %v3270_v62  ;;  %v3254_v59 = vpop.f32.mrf.mxu3  ;;  %v3195_v28 = vadd.f32 %v3194_v39, %v3166_v52 }
 0x914   :  { %v3224_v26 = vadd.f32 %v3223_v3, %v3195_v28 }
 0x915   :  { %v3170_v54 = vpop.f32.mrf.mxu0 }
 0x916   :  { %v3253_v50 = vadd.f32 %v3252_v41, %v3224_v26  ;;  %v3171_v23 = vadd.f32 %v3170_v54, %v3142_v56 }
 0x918   :  { %v3278_v9 = vmax.f32 %v3253_v50, 0.0 }
 0x919   :  { %v3196_v58 = vpop.f32.mrf.mxu1  ;;  %v3225_v12 = vpop.f32.mrf.mxu2 }
 0x91a   :  { %v3197_v13 = vadd.f32 %v3196_v58, %v3168_v34  ;;  %v3257_v37 = vpop.f32.mrf.mxu3 }
 0x91c   :  { %v3226_v8 = vadd.f32 %v3225_v12, %v3197_v13 }
 0x91d   :  { %v3172_v43 = vpop.f32.mrf.mxu0 }
 0x91e   :  { %v3255_v30 = vadd.f32 %v3254_v59, %v3226_v8  ;;  %v3173_v18 = vadd.f32 %v3172_v43, %v3144_v31  ;;  %v10762_v31 = vld [vmem:[#allocation20_spill] sm:$0xff] }
 0x920   :  { %v3282_v42 = vmax.f32 %v3255_v30, 0.0 }
 0x921   :  { %v3199_v0 = vpop.f32.mrf.mxu1  ;;  %v3228_v48 = vpop.f32.mrf.mxu2 }
 0x922   :  { %v3306_v40 = vpack.c.bf16 %v3282_v42, %v3278_v9  ;;  %v3200_v32 = vadd.f32 %v3199_v0, %v3171_v23  ;;  %v3259_v17 = vpop.f32.mrf.mxu3 }
 0x924   :  { %v3229_v22 = vadd.f32 %v3228_v48, %v3200_v32 }
 0x925   :  { %v3175_v1 = vpop.f32.mrf.mxu0 }
 0x926   :  { %v3258_v63 = vadd.f32 %v3257_v37, %v3229_v22  ;;  %v3176_v10 = vadd.f32 %v3175_v1, %v3147_v16 }
 0x928   :  { %v3286_v21 = vmax.f32 %v3258_v63, 0.0  ;;  %v8860_v63 = vld [vmem:[%s10763_s6] sm:$0xf] }
 0x929   :  { %v3201_v46 = vpop.f32.mrf.mxu1  ;;  %v3230_v15 = vpop.f32.mrf.mxu2 }
 0x92a   :  { %v3202_v35 = vadd.f32 %v3201_v46, %v3173_v18  ;;  %v3262_v53 = vpop.f32.mrf.mxu3 }
 0x92c   :  { %v3231_v60 = vadd.f32 %v3230_v15, %v3202_v35 }
 0x92d   :  { %v3177_v4 = vpop.f32.mrf.mxu0 }
 0x92e   :  { %v3260_v11 = vadd.f32 %v3259_v17, %v3231_v60  ;;  %v3178_v2 = vadd.f32 %v3177_v4, %v3149_v29  ;;  %v3456_v4 = vperm.slane %v8860_v63, 0 }
 0x930   :  { %v3290_v7 = vmax.f32 %v3260_v11, 0.0 }
 0x931   :  { %v3204_v45 = vpop.f32.mrf.mxu1  ;;  %v3233_v61 = vpop.f32.mrf.mxu2 }
 0x932   :  { %v3310_v19 = vpack.c.bf16 %v3290_v7, %v3286_v21  ;;  %v3205_v57 = vadd.f32 %v3204_v45, %v3176_v10  ;;  %v3264_v20 = vpop.f32.mrf.mxu3 }
 0x934   :  { %v3234_v51 = vadd.f32 %v3233_v61, %v3205_v57 }
 0x935   :  { %v8837_v41 = vpop.f32.mrf.mxu0 }
 0x936   :  { %v4737_v6 = vmul.f32 -1.442695, %v8837_v41  ;;  %v3263_v5 = vadd.f32 %v3262_v53, %v3234_v51 }
 0x938   :  { %4813 = vpow2.f32 %v4737_v6  ;;  %v3294_v33 = vmax.f32 %v3263_v5, 0.0 }
 0x939   :  { %v3206_v27 = vpop.f32.mrf.mxu1  ;;  %v3235_v44 = vpop.f32.mrf.mxu2 }
 0x93a   :  { %v3207_v38 = vadd.f32 %v3206_v27, %v3178_v2  ;;  %v3457_v2 = vperm.slane %v8860_v63, 1 }
 0x93c   :  { %v3236_v62 = vadd.f32 %v3235_v44, %v3207_v38 }
 0x93d   :  { %v3330_v52 = vpop.f32.mrf.mxu0 }
 0x93e   :  { %v3265_v25 = vadd.f32 %v3264_v20, %v3236_v62  ;;  %v4814_v3 = vpop.eup %4813 }
 0x93f   :  { %v3383_v24 = vadd.f32 1.0, %v4814_v3  ;;  %v10764_v3 = vld [vmem:[#allocation21_spill] sm:$0xff] }
 0x940   :  { %v3298_v39 = vmax.f32 %v3265_v25, 0.0 }
 0x941   :  { %4815 = vrcp.f32 %v3383_v24  ;;  %v3398_v13 = vand.u32 2147483648, %v3383_v24  ;;  %v3396_v37 = vand.u32 2147483647, %v3383_v24  ;;  %vm3392_vm13 = vweird.f32 %v3383_v24 }
 0x942   :  { %v3314_v59 = vpack.c.bf16 %v3298_v39, %v3294_v33  ;;  %4817 = vrcp.f32 %v4937_v55 }
 0x943   :  { %v3399_v56 = vor.u32 1.1754944e-38, %v3398_v13  ;;  %vm3397_vm15 = vcmp.eq.f32.partialorder %v3396_v37, 8.507059e+37 }
 0x944   :  { %3362 = vmatpush.bf16.msra.mxu3 %v3314_v59 }
 0x947   :  { %v4816_v28 = vpop.eup %4815 }
 0x948   :  { %3363 = vmatpush.bf16.msra.mxu3 %v3310_v19  ;;  %v3388_v34 = vmul.f32 %v4816_v28, %v3383_v24  ;;  %v4818_v50 = vpop.eup %4817  ;;  %vm3393_vm12 = vweird.f32 %v4816_v28 }
 0x949   :  { %vm3394_vm14 = vmor %vm3392_vm13, %vm3393_vm12  ;;  %v3652_v9 = vmul.f32 8.0, %v4818_v50  ;;  %vm3656_vm1 = vweird.f32 %v4818_v50 }
 0x94a   :  { %v8840_v47 = vpop.f32.mrf.mxu1  ;;  %v3389_v58 = vsub.f32 1.0, %v3388_v34 }
 0x94b   :  { %v4738_v26 = vmul.f32 -1.442695, %v8840_v47  ;;  %v3563_v54 = vrot.slane %v8840_v47, 7  ;;  %v3653_v32 = vsub.f32 1.0, %v3652_v9 }
 0x94c   :  { %3364 = vmatpush.bf16.msra.mxu3 %v3306_v40  ;;  %v3390_v8 = vmul.f32 %v4816_v28, %v3389_v58 }
 0x94d   :  { %4819 = vpow2.f32 %v4738_v26  ;;  %v8846_v12 = vsel %vm3468_vm11, %v8837_v41, %v3563_v54  ;;  %v3654_v18 = vmul.f32 %v4818_v50, %v3653_v32 }
 0x94e   :  { %v3391_v30 = vadd.f32 %v4816_v28, %v3390_v8 }
 0x94f   :  { %v3655_v60 = vadd.f32 %v4818_v50, %v3654_v18 }
 0x950   :  { %3365 = vmatpush.bf16.msra.mxu3 %v8825_v36  ;;  %v3395_v0 = vsel %vm3394_vm14, %v4816_v28, %v3391_v30 }
 0x951   :  { %v3400_v23 = vsel %vm3397_vm15, %v3399_v56, %v3395_v0  ;;  %v8863_v61 = vsel %vm3656_vm1, %v4818_v50, %v3655_v60  ;;  %vm3567_vm1 = vcmask 1042434  }
 0x952   :  { %v3343_v42 = vpop.f32.mrf.mxu1  ;;  %v3447_v48 = vperm.slane %v3400_v23, 0  ;;  %v3464_v27 = vmul.f32 %v3456_v4, %v3400_v23  ;;  %v3487_v5 = vsel %vm3468_vm11, %v3400_v23, 0.0 }
 0x953   :  { %4736 = vmatmul.msk.bf16.vlgmr.msra.gmra.mxu3 %vm2674_vm10, %v8781_v14  ;;  %v4820_v43 = vpop.eup %4819 }
 0x954   :  { %v3384_v40 = vadd.f32 1.0, %v4820_v43  ;;  %v8852_v17 = vmul.f32 %v3447_v48, %v10762_v31  ;;  %v3469_v24 = vsel %vm3468_vm11, %v3464_v27, 0.0  ;;  %v3528_v27 = vand.u32 2147483647, %v8840_v47 }
 0x956   :  { %4821 = vrcp.f32 %v3384_v40  ;;  %v3603_v36 = vrot.slane %v8852_v17, 4  ;;  %v3411_v7 = vand.u32 2147483647, %v3384_v40  ;;  %v3413_v53 = vand.u32 2147483648, %v3384_v40 }
 0x957   :  { %vm3407_vm8 = vweird.f32 %v3384_v40 }
 0x958   :  { %v3604_v22 = vmax.f32 %v8852_v17, %v3603_v36  ;;  %v3628_v14 = vadd.f32 %v3603_v36, %v8852_v17  ;;  %v3414_v51 = vor.u32 1.1754944e-38, %v3413_v53  ;;  %vm3412_vm10 = vcmp.eq.f32.partialorder %v3411_v7, 8.507059e+37 }
 0x95a   :  { %v3605_v35 = vrot.slane %v3604_v22, 2  ;;  %v3629_v15 = vrot.slane %v3628_v14, 2 }
 0x95c   :  { %v4822_v1 = vpop.eup %4821  ;;  %v3606_v16 = vmax.f32 %v3604_v22, %v3605_v35  ;;  %v3630_v21 = vadd.f32 %v3629_v15, %v3628_v14  ;;  %v10104_v15 = vperm.slane %v8860_v63, 2 }
 0x95d   :  { %v3403_v46 = vmul.f32 %v4822_v1, %v3384_v40  ;;  %vm3408_vm3 = vweird.f32 %v4822_v1 }
 0x95e   :  { %v3607_v10 = vrot.slane %v3606_v16, 1  ;;  %v3631_v19 = vrot.slane %v3630_v21, 1  ;;  %vm3409_vm9 = vmor %vm3407_vm8, %vm3408_vm3  ;;  %vm3809_vm3 = vcmp.lt.s32.totalorder %v5198_v49, 125  ;;  %vm3781_vm8 = vcmp.lt.s32.totalorder %v5198_v49, 126 }
 0x95f   :  { %v3404_v11 = vsub.f32 1.0, %v3403_v46 }
 0x960   :  { %v3632_v29 = vadd.f32 %v3631_v19, %v3630_v21  ;;  %v3608_v6 = vmax.f32 %v3606_v16, %v3607_v10 }
 0x961   :  { %v3405_v45 = vmul.f32 %v4822_v1, %v3404_v11 }
 0x962   :  { %v3658_v44 = vmul.f32 %v8863_v61, %v3632_v29 }
 0x963   :  { %v3406_v57 = vadd.f32 %v4822_v1, %v3405_v45  ;;  %v10765_v45 = vld [vmem:[#allocation22_spill] sm:$0xff] }
 0x964   :  { %v8871_v25 = vsel %vm3468_vm11, %v3608_v6, %v3658_v44 }
 0x965   :  { %v3410_v38 = vsel %vm3409_vm9, %v4822_v1, %v3406_v57  ;;  %3747 = vrot.lane.b32.xlu2 %v8871_v25, %s4934_s28  ;;  %3801 = vrot.lane.b32.xlu1 %v8871_v25, %s4938_s1 }
 0x966   :  { %v3415_v20 = vsel %vm3412_vm10, %v3414_v51, %v3410_v38  ;;  %3773 = vrot.lane.b32.xlu0 %v8871_v25, %s4939_s18  ;;  %v3527_v51 = vand.u32 2147483647, %v8837_v41 }
 0x967   :  { %v3448_v62 = vperm.slane %v3415_v20, 0  ;;  %v3488_v33 = vsel %vm3468_vm11, %v3415_v20, 0.0  ;;  %v3465_v39 = vmul.f32 %v3457_v2, %v3415_v20 }
 0x968   :  { %v3489_v52 = vadd.f32 %v3488_v33, %v3487_v5  ;;  %v3532_v33 = vsub.f32 0.0, %v3528_v27 }
 0x969   :  { %v8881_v59 = vmul.f32 %v3448_v62, %v10764_v3  ;;  %v3470_v55 = vsel %vm3468_vm11, %v3465_v39, 0.0  ;;  %v3531_v62 = vsub.f32 0.0, %v3527_v51 }
 0x96a   :  { %v3471_v28 = vadd.f32 %v3470_v55, %v3469_v24 }
 0x96b   :  { %v3609_v34 = vrot.slane %v8881_v59, 4 }
 0x96d   :  { %v3610_v26 = vmax.f32 %v8881_v59, %v3609_v34  ;;  %v3634_v54 = vadd.f32 %v3609_v34, %v8881_v59  ;;  %3666 = vrot.lane.b32.xlu2 %v8871_v25, %s4940_s27  ;;  %3721 = vrot.lane.b32.xlu1 %v8871_v25, %s4933_s11  ;;  %v3537_v34 = vmul.f32 1.442695, %v3532_v33 }
 0x96e   :  { %3693 = vrot.lane.b32.xlu0 %v8871_v25, %s4941_s3 }
 0x96f   :  { %v3611_v58 = vrot.slane %v3610_v26, 2  ;;  %v3635_v13 = vrot.slane %v3634_v54, 2 }
 0x971   :  { %v3612_v50 = vmax.f32 %v3610_v26, %v3611_v58  ;;  %v3636_v8 = vadd.f32 %v3635_v13, %v3634_v54 }
 0x973   :  { %v3613_v37 = vrot.slane %v3612_v50, 1  ;;  %v3637_v30 = vrot.slane %v3636_v8, 1 }
 0x975   :  { %v3638_v56 = vadd.f32 %v3637_v30, %v3636_v8  ;;  %v3614_v9 = vmax.f32 %v3612_v50, %v3613_v37 }
 0x977   :  { %v3659_v42 = vmul.f32 %v8863_v61, %v3638_v56 }
 0x979   :  { %v8898_v43 = vsel %vm3468_vm11, %v3614_v9, %v3659_v42 }
 0x97a   :  { %3749 = vrot.lane.b32.xlu0 %v8898_v43, %s4934_s28  ;;  %3803 = vrot.lane.b32.xlu2 %v8898_v43, %s4938_s1 }
 0x97b   :  { %3775 = vrot.lane.b32.xlu1 %v8898_v43, %s4939_s18 }
 0x982   :  { %3668 = vrot.lane.b32.xlu0 %v8898_v43, %s4940_s27  ;;  %3723 = vrot.lane.b32.xlu2 %v8898_v43, %s4933_s11 }
 0x983   :  { %3695 = vrot.lane.b32.xlu1 %v8898_v43, %s4941_s3 }
 0x994   :  { %v8912_v0 = vpop.f32.mrf.mxu2 }
 0x995   :  { %v4739_v23 = vmul.f32 -1.442695, %v8912_v0  ;;  %v3529_v44 = vand.u32 2147483647, %v8912_v0 }
 0x997   :  { %4823 = vpow2.f32 %v4739_v23  ;;  %v3533_v3 = vsub.f32 0.0, %v3529_v44 }
 0x999   :  { %v3539_v54 = vmul.f32 1.442695, %v3533_v3 }
 0x99c   :  { %v3356_v40 = vpop.f32.mrf.mxu2 }
 0x99d   :  { %v4824_v48 = vpop.eup %4823 }
 0x99e   :  { %v3385_v32 = vadd.f32 1.0, %v4824_v48 }
 0x9a0   :  { %4825 = vrcp.f32 %v3385_v32  ;;  %v3428_v18 = vand.u32 2147483648, %v3385_v32  ;;  %vm3422_vm12 = vweird.f32 %v3385_v32  ;;  %v3426_v14 = vand.u32 2147483647, %v3385_v32 }
 0x9a2   :  { %v3429_v46 = vor.u32 1.1754944e-38, %v3428_v18  ;;  %vm3427_vm15 = vcmp.eq.f32.partialorder %v3426_v14, 8.507059e+37 }
 0x9a6   :  { %v4826_v31 = vpop.eup %4825 }
 0x9a7   :  { %v3418_v36 = vmul.f32 %v4826_v31, %v3385_v32  ;;  %vm3423_vm13 = vweird.f32 %v4826_v31 }
 0x9a8   :  { %vm3424_vm14 = vmor %vm3422_vm12, %vm3423_vm13  ;;  %vm3674_vm13 = vcmp.lt.s32.totalorder %v5198_v49, 3 }
 0x9a9   :  { %v3419_v22 = vsub.f32 1.0, %v3418_v36 }
 0x9ab   :  { %v3420_v1 = vmul.f32 %v4826_v31, %v3419_v22 }
 0x9ad   :  { %v3421_v35 = vadd.f32 %v4826_v31, %v3420_v1 }
 0x9af   :  { %v3425_v60 = vsel %vm3424_vm14, %v4826_v31, %v3421_v35  ;;  %v3564_v31 = vrot.slane %v8912_v0, 6  ;;  %vm3701_vm14 = vcmp.lt.s32.totalorder %v5198_v49, 2 }
 0x9b0   :  { %v3430_v11 = vsel %vm3427_vm15, %v3429_v46, %v3425_v60 }
 0x9b1   :  { %v3449_v16 = vperm.slane %v3430_v11, 0  ;;  %v3490_v21 = vsel %vm3468_vm11, %v3430_v11, 0.0  ;;  %v3466_v7 = vmul.f32 %v10104_v15, %v3430_v11  ;;  %v3523_v11 = vmax.f32 %v8837_v41, 0.0 }
 0x9b2   :  { %v8919_v53 = vadd.f32 %v3490_v21, %v3489_v52 }
 0x9b3   :  { %v8922_v10 = vmul.f32 %v3449_v16, %v10765_v45  ;;  %v3472_v19 = vsel %vm3468_vm11, %v3466_v7, 0.0  ;;  %v3525_v16 = vmax.f32 %v8912_v0, 0.0  ;;  %v3524_v45 = vmax.f32 %v8840_v47, 0.0 }
 0x9b4   :  { %v8925_v57 = vadd.f32 %v3472_v19, %v3471_v28  ;;  %v3535_v28 = vmul.f32 1.442695, %v3531_v62 }
 0x9b5   :  { %v3615_v29 = vrot.slane %v8922_v10, 4 }
 0x9b6   :  { %4827 = vpow2.f32 %v3535_v28 }
 0x9b7   :  { %v3616_v38 = vmax.f32 %v8922_v10, %v3615_v29  ;;  %v3640_v6 = vadd.f32 %v3615_v29, %v8922_v10  ;;  %4829 = vpow2.f32 %v3537_v34 }
 0x9b8   :  { %4831 = vpow2.f32 %v3539_v54 }
 0x9b9   :  { %v3617_v20 = vrot.slane %v3616_v38, 2  ;;  %v3641_v5 = vrot.slane %v3640_v6, 2 }
 0x9bb   :  { %v3618_v39 = vmax.f32 %v3616_v38, %v3617_v20  ;;  %v3642_v52 = vadd.f32 %v3641_v5, %v3640_v6 }
 0x9bc   :  { %v4828_v8 = vpop.eup %4827 }
 0x9bd   :  { %v3619_v24 = vrot.slane %v3618_v39, 1  ;;  %v3643_v55 = vrot.slane %v3642_v52, 1  ;;  %v4830_v37 = vpop.eup %4829  ;;  %v3543_v56 = vadd.f32 1.0, %v4828_v8  ;;  %v8984_v8 = vld [vmem:[%s10125_s29 + $0x6] ss:$8 sm:$0xf] }
 0x9be   :  { %v4832_v30 = vpop.eup %4831  ;;  %v3544_v9 = vadd.f32 1.0, %v4830_v37 }
 0x9bf   :  { %v3644_v26 = vadd.f32 %v3643_v55, %v3642_v52  ;;  %v3620_v58 = vmax.f32 %v3618_v39, %v3619_v24  ;;  %v3545_v42 = vadd.f32 1.0, %v4832_v30  ;;  %4833 = vlog2.f32 %v3543_v56  ;;  %v8952_v36 = vpop.permute.xlu2 %3747  ;;  %v8990_v30 = vld [vmem:[%s10125_s29 + $0x2] ss:$8 sm:$0xf] }
 0x9c0   :  { %4835 = vlog2.f32 %v3544_v9 }
 0x9c1   :  { %v3660_v13 = vmul.f32 %v8863_v61, %v3644_v26  ;;  %4837 = vlog2.f32 %v3545_v42  ;;  %v8997_v42 = vld [vmem:[%s10125_s29 + $0x5] ss:$8 sm:$0xf] }
 0x9c3   :  { %v8935_v50 = vsel %vm3468_vm11, %v3620_v58, %v3660_v13 }
 0x9c4   :  { %3805 = vrot.lane.b32.xlu0 %v8935_v50, %s4938_s1  ;;  %3777 = vrot.lane.b32.xlu2 %v8935_v50, %s4939_s18 }
 0x9c5   :  { %3751 = vrot.lane.b32.xlu1 %v8935_v50, %s4934_s28  ;;  %v4834_v23 = vpop.eup %4833 }
 0x9c6   :  { %v4836_v40 = vpop.eup %4835  ;;  %v3548_v1 = vmul.f32 0.6931472, %v4834_v23  ;;  %v3817_v23 = vperm.slane %v8984_v8, 0 }
 0x9c7   :  { %v4838_v32 = vpop.eup %4837  ;;  %v3550_v46 = vmul.f32 0.6931472, %v4836_v40  ;;  %v8972_v52 = vpop.permute.xlu2 %3666 }
 0x9c8   :  { %v3552_v21 = vmul.f32 0.6931472, %v4838_v32  ;;  %v3555_v51 = vadd.f32 %v3548_v1, %v3523_v11 }
 0x9c9   :  { %v3556_v6 = vadd.f32 %v3550_v46, %v3524_v45  ;;  %v3789_v46 = vperm.slane %v8997_v42, 0 }
 0x9ca   :  { %v3557_v44 = vadd.f32 %v3552_v21, %v3525_v16 }
 0x9cc   :  { %3725 = vrot.lane.b32.xlu0 %v8935_v50, %s4933_s11  ;;  %3697 = vrot.lane.b32.xlu2 %v8935_v50, %s4941_s3 }
 0x9cd   :  { %3670 = vrot.lane.b32.xlu1 %v8935_v50, %s4940_s27 }
 0x9d4   :  { %v8992_v9 = vpop.permute.xlu2 %3803 }
 0x9d6   :  { %v8949_v48 = vpop.f32.mrf.mxu3 }
 0x9d7   :  { %v4740_v18 = vmul.f32 -1.442695, %v8949_v48  ;;  %v3530_v22 = vand.u32 2147483647, %v8949_v48  ;;  %v3565_v14 = vrot.slane %v8949_v48, 5  ;;  %v8965_v27 = vpop.permute.xlu1 %3801  ;;  %v3526_v1 = vmax.f32 %v8949_v48, 0.0 }
 0x9d8   :  { %v8967_v38 = vpop.permute.xlu0 %3773  ;;  %v3812_v32 = vsel %vm3809_vm3, %v8965_v27, %v8992_v9  ;;  %v10103_v48 = vperm.slane %v8860_v63, 3 }
 0x9d9   :  { %4839 = vpow2.f32 %v4740_v18  ;;  %v3534_v35 = vsub.f32 0.0, %v3530_v22  ;;  %v3568_v60 = vsel %vm3567_vm1, %v3564_v31, %v3565_v14  ;;  %v3736_v31 = vperm.slane %v8990_v30, 1  ;;  %v9008_v18 = vld [vmem:[%s10125_s29 + $0x4] ss:$8 sm:$0xf] }
 0x9da   :  { %v3569_v7 = vsel %vm421_vm2, %v8846_v12, %v3568_v60  ;;  %v3825_v21 = vmul.f32 %v3817_v23, %v3812_v32  ;;  %vm3897_vm1 = vcmask 1045504  }
 0x9db   :  { %v3541_v19 = vmul.f32 1.442695, %v3534_v35  ;;  %v8963_v29 = vmul.f32 %v3569_v7, %v8860_v63  ;;  %v3761_v7 = vperm.slane %v9008_v18, 0 }
 0x9dd   :  { %4841 = vpow2.f32 %v3541_v19  ;;  %v3573_v41 = vperm.slane %v8963_v29, 0  ;;  %v3574_v0 = vperm.slane %v8963_v29, 1  ;;  %v3575_v12 = vperm.slane %v8963_v29, 2  ;;  %v9021_v19 = vld [vmem:[%s10125_s29 + $0x1] ss:$8 sm:$0xf] }
 0x9de   :  { %v3369_v20 = vpop.f32.mrf.mxu3  ;;  %v3712_v15 = vperm.slane %v9021_v19, 3 }
 0x9df   :  { %v4840_v47 = vpop.eup %4839  ;;  %v3581_v5 = vsub.f32 %v3555_v51, %v3573_v41  ;;  %v3582_v62 = vsub.f32 %v3556_v6, %v3574_v0  ;;  %v3583_v39 = vsub.f32 %v3557_v44, %v3575_v12  ;;  %v8979_v13 = vpop.permute.xlu1 %3721  ;;  %v3576_v51 = vperm.slane %v8963_v29, 3 }
 0x9e0   :  { %v3386_v33 = vadd.f32 1.0, %v4840_v47  ;;  %v8977_v54 = vpop.permute.xlu0 %3693  ;;  %v3710_v47 = vperm.slane %v9021_v19, 1 }
 0x9e1   :  { %v3585_v3 = vsel %vm3468_vm11, %v3581_v5, 0.0  ;;  %v3586_v24 = vsel %vm3468_vm11, %v3582_v62, 0.0  ;;  %v3588_v26 = vsel %vm3468_vm11, %v3583_v39, 0.0  ;;  %v3881_v39 = vrot.slane %v3825_v21, 4 }
 0x9e2   :  { %4843 = vrcp.f32 %v3386_v33  ;;  %v3587_v28 = vadd.f32 %v3586_v24, %v3585_v3  ;;  %vm3437_vm9 = vweird.f32 %v3386_v33  ;;  %v3443_v14 = vand.u32 2147483648, %v3386_v33 }
 0x9e3   :  { %v4842_v55 = vpop.eup %4841  ;;  %v3441_v60 = vand.u32 2147483647, %v3386_v33 }
 0x9e4   :  { %v3546_v34 = vadd.f32 1.0, %v4842_v55  ;;  %v3589_v58 = vadd.f32 %v3588_v26, %v3587_v28  ;;  %v3444_v20 = vor.u32 1.1754944e-38, %v3443_v14  ;;  %v9037_v28 = vpop.permute.xlu2 %3723 }
 0x9e5   :  { %vm3442_vm15 = vcmp.eq.f32.partialorder %v3441_v60, 8.507059e+37 }
 0x9e6   :  { %4845 = vlog2.f32 %v3546_v34 }
 0x9e8   :  { %v4844_v37 = vpop.eup %4843 }
 0x9e9   :  { %v3433_v56 = vmul.f32 %v4844_v37, %v3386_v33  ;;  %vm3438_vm10 = vweird.f32 %v4844_v37  ;;  %v9042_v33 = vld [vmem:[%s10125_s29] ss:$8 sm:$0xf]  ;;  %s4942_s29 = smov 80  }
 0x9ea   :  { %vm3439_vm12 = vmor %vm3437_vm9, %vm3438_vm10  ;;  %v3682_v60 = vperm.slane %v9042_v33, 1 }
 0x9eb   :  { %v3434_v40 = vsub.f32 1.0, %v3433_v56  ;;  %v3731_v56 = vsel %vm500_vm5, %v8979_v13, %v9037_v28 }
 0x9ec   :  { %v4846_v22 = vpop.eup %4845  ;;  %v9013_v16 = vpop.permute.xlu0 %3749 }
 0x9ed   :  { %v3435_v35 = vmul.f32 %v4844_v37, %v3434_v40  ;;  %v3554_v11 = vmul.f32 0.6931472, %v4846_v22  ;;  %v9016_v45 = vpop.permute.xlu1 %3775  ;;  %v3757_v0 = vsel %vm528_vm4, %v8952_v36, %v9013_v16  ;;  %v10766_v22 = vld [vmem:[#allocation23_spill] sm:$0xff] }
 0x9ee   :  { %v3784_v44 = vsel %vm3781_vm8, %v8967_v38, %v9016_v45  ;;  %v3769_v3 = vmul.f32 %v3761_v7, %v3757_v0 }
 0x9ef   :  { %v3436_v6 = vadd.f32 %v4844_v37, %v3435_v35  ;;  %v3558_v41 = vadd.f32 %v3554_v11, %v3526_v1  ;;  %v3797_v12 = vmul.f32 %v3789_v46, %v3784_v44  ;;  %v3744_v11 = vmul.f32 %v3736_v31, %v3731_v56 }
 0x9f0   :  { %v3790_v56 = vperm.slane %v8997_v42, 1 }
 0x9f1   :  { %v3440_v29 = vsel %vm3439_vm12, %v4844_v37, %v3436_v6  ;;  %v3584_v5 = vsub.f32 %v3558_v41, %v3576_v51  ;;  %v3869_v24 = vrot.slane %v3797_v12, 6 }
 0x9f2   :  { %v3445_v62 = vsel %vm3442_vm15, %v3444_v20, %v3440_v29  ;;  %v3846_v20 = vrot.slane %v3744_v11, 4  ;;  %v3858_v29 = vrot.slane %v8898_v43, 2 }
 0x9f3   :  { %v3450_v55 = vperm.slane %v3445_v62, 0  ;;  %v3492_v34 = vsel %vm3468_vm11, %v3445_v62, 0.0  ;;  %v3590_v26 = vsel %vm3468_vm11, %v3584_v5, 0.0  ;;  %v3467_v37 = vmul.f32 %v10103_v48, %v3445_v62 }
 0x9f4   :  { %v3902_v23 = vsel %vm421_vm2, %v3769_v3, %v3869_v24  ;;  %v9054_v40 = vadd.f32 %v3492_v34, %v8919_v53  ;;  %v9056_v32 = vadd.f32 %v3590_v26, %v3589_v58  ;;  %v9064_v46 = vpop.permute.xlu0 %3668 }
 0x9f5   :  { %v9059_v14 = vmul.f32 %v3450_v55, %v10766_v22  ;;  %v9062_v1 = vsel %vm124_vm0, %v3902_v23, %v3881_v39  ;;  %v3474_v35 = vsel %vm3468_vm11, %v3467_v37, 0.0  ;;  %v3696_v53 = vpop.permute.xlu1 %3695  ;;  %v3677_v21 = vsel %vm3674_vm13, %v8972_v52, %v9064_v46 }
 0x9f6   :  { %4041 = vrot.lane.b32.xlu1 %v9062_v1, %s4935_s0  ;;  %4127 = vrot.lane.b32.xlu0 %v9062_v1, %s4942_s29  ;;  %v9073_v58 = vadd.f32 %v3474_v35, %v8925_v57  ;;  %v3704_v7 = vsel %vm3701_vm14, %v8977_v54, %v3696_v53  ;;  %v3690_v0 = vmul.f32 %v3682_v60, %v3677_v21  ;;  %v3818_v22 = vperm.slane %v8984_v8, 1 }
 0x9f7   :  { %v3621_v51 = vrot.slane %v9059_v14, 4  ;;  %v3718_v6 = vmul.f32 %v3710_v47, %v3704_v7  ;;  %v3762_v60 = vperm.slane %v9008_v18, 1 }
 0x9f9   :  { %v3646_v41 = vadd.f32 %v3621_v51, %v9059_v14  ;;  %v3834_v44 = vrot.slane %v3718_v6, 6  ;;  %v3622_v57 = vmax.f32 %v9059_v14, %v3621_v51 }
 0x9fb   :  { %v3647_v31 = vrot.slane %v3646_v41, 2  ;;  %v3890_v12 = vsel %vm421_vm2, %v3690_v0, %v3834_v44  ;;  %v3623_v39 = vrot.slane %v3622_v57, 2 }
 0x9fc   :  { %v3894_v5 = vsel %vm124_vm0, %v3890_v12, %v3846_v20 }
 0x9fd   :  { %v3648_v62 = vadd.f32 %v3647_v31, %v3646_v41  ;;  %v9093_v47 = vsel %vm3897_vm1, %v3894_v5, %v3858_v29  ;;  %v3624_v24 = vmax.f32 %v3622_v57, %v3623_v39 }
 0x9fe   :  { %3999 = vrot.lane.b32.xlu1 %v9062_v1, %s4936_s30  ;;  %4083 = vrot.lane.b32.xlu0 %v9062_v1, %s4943_s20 }
 0x9ff   :  { %4129 = vrot.lane.b32.xlu2 %v9093_v47, %s4942_s29  ;;  %v3649_v3 = vrot.slane %v3648_v62, 1  ;;  %v3625_v55 = vrot.slane %v3624_v24, 1 }
 0xa01   :  { %v3650_v43 = vadd.f32 %v3649_v3, %v3648_v62  ;;  %v3626_v26 = vmax.f32 %v3624_v24, %v3625_v55 }
 0xa03   :  { %v3661_v34 = vmul.f32 %v8863_v61, %v3650_v43 }
 0xa05   :  { %v9105_v37 = vsel %vm3468_vm11, %v3626_v26, %v3661_v34  ;;  %v3859_v26 = vrot.slane %v8935_v50, 2 }
 0xa06   :  { %4001 = vrot.lane.b32.xlu1 %v9093_v47, %s4936_s30  ;;  %4085 = vrot.lane.b32.xlu0 %v9093_v47, %s4943_s20 }
 0xa07   :  { %3957 = vrot.lane.b32.xlu2 %v9093_v47, %s4944_s21 }
 0xa0e   :  { %3807 = vrot.lane.b32.xlu1 %v9105_v37, %s4938_s1  ;;  %3779 = vrot.lane.b32.xlu0 %v9105_v37, %s4939_s18 }
 0xa0f   :  { %4043 = vrot.lane.b32.xlu2 %v9093_v47, %s4935_s0 }
 0xa16   :  { %3727 = vrot.lane.b32.xlu1 %v9105_v37, %s4933_s11  ;;  %3699 = vrot.lane.b32.xlu0 %v9105_v37, %s4941_s3  ;;  %s4945_s11 = smov 48  }
 0xa17   :  { %3753 = vrot.lane.b32.xlu2 %v9105_v37, %s4934_s28 }
 0xa1e   :  { %v9121_v61 = vpop.permute.xlu2 %3777 }
 0xa1f   :  { %3672 = vrot.lane.b32.xlu2 %v9105_v37, %s4940_s27  ;;  %v3783_v23 = vsel %vm3781_vm8, %v9016_v45, %v9121_v61  ;;  %v3711_v45 = vperm.slane %v9021_v19, 2 }
 0xa20   :  { %v3798_v35 = vmul.f32 %v3790_v56, %v3783_v23 }
 0xa22   :  { %v3870_v0 = vrot.slane %v3798_v35, 6 }
 0xa26   :  { %v9130_v21 = vpop.permute.xlu2 %3697 }
 0xa27   :  { %v3703_v20 = vsel %vm3701_vm14, %v3696_v53, %v9130_v21 }
 0xa28   :  { %v3719_v29 = vmul.f32 %v3711_v45, %v3703_v20  ;;  %v3819_v45 = vperm.slane %v8984_v8, 2  ;;  %v3791_v20 = vperm.slane %v8997_v42, 2 }
 0xa2a   :  { %v3835_v24 = vrot.slane %v3719_v29, 6 }
 0xa36   :  { %v3806_v11 = vpop.permute.xlu0 %3805 }
 0xa37   :  { %v3811_v7 = vsel %vm3809_vm3, %v8992_v9, %v3806_v11  ;;  %v3752_v51 = vpop.permute.xlu1 %3751  ;;  %v3737_v9 = vperm.slane %v8990_v30, 2 }
 0xa38   :  { %v3826_v6 = vmul.f32 %v3818_v22, %v3811_v7  ;;  %v3756_v41 = vsel %vm528_vm4, %v9013_v16, %v3752_v51  ;;  %v3683_v16 = vperm.slane %v9042_v33, 2 }
 0xa39   :  { %v3770_v44 = vmul.f32 %v3762_v60, %v3756_v41 }
 0xa3a   :  { %v3882_v57 = vrot.slane %v3826_v6, 4 }
 0xa3b   :  { %v3903_v31 = vsel %vm421_vm2, %v3770_v44, %v3870_v0  ;;  %v3820_v44 = vperm.slane %v8984_v8, 3 }
 0xa3c   :  { %v9144_v12 = vsel %vm124_vm0, %v3903_v31, %v3882_v57  ;;  %v3792_v57 = vperm.slane %v8997_v42, 3  ;;  %v3763_v31 = vperm.slane %v9008_v18, 2 }
 0xa3d   :  { %4087 = vrot.lane.b32.xlu1 %v9144_v12, %s4943_s20  ;;  %4131 = vrot.lane.b32.xlu0 %v9144_v12, %s4942_s29 }
 0xa3e   :  { %4003 = vrot.lane.b32.xlu2 %v9144_v12, %s4936_s30  ;;  %v9154_v53 = vpop.permute.xlu0 %3725 }
 0xa3f   :  { %v3730_v5 = vsel %vm500_vm5, %v9037_v28, %v9154_v53  ;;  %v9160_v62 = vpop.permute.xlu1 %3670 }
 0xa40   :  { %v3745_v39 = vmul.f32 %v3737_v9, %v3730_v5  ;;  %v3676_v3 = vsel %vm3674_vm13, %v9064_v46, %v9160_v62  ;;  %v3764_v9 = vperm.slane %v9008_v18, 3 }
 0xa41   :  { %v3691_v43 = vmul.f32 %v3683_v16, %v3676_v3 }
 0xa42   :  { %v3847_v55 = vrot.slane %v3745_v39, 4 }
 0xa43   :  { %v3891_v34 = vsel %vm421_vm2, %v3691_v43, %v3835_v24 }
 0xa44   :  { %v3895_v56 = vsel %vm124_vm0, %v3891_v34, %v3847_v55 }
 0xa45   :  { %4045 = vrot.lane.b32.xlu1 %v9144_v12, %s4935_s0  ;;  %3959 = vrot.lane.b32.xlu0 %v9144_v12, %s4944_s21  ;;  %v9174_v28 = vsel %vm3897_vm1, %v3895_v56, %v3859_v26 }
 0xa46   :  { %3916 = vrot.lane.b32.xlu2 %v9144_v12, %s4945_s11 }
 0xa4d   :  { %4133 = vrot.lane.b32.xlu1 %v9174_v28, %s4942_s29  ;;  %4005 = vrot.lane.b32.xlu0 %v9174_v28, %s4936_s30 }
 0xa4e   :  { %4089 = vrot.lane.b32.xlu2 %v9174_v28, %s4943_s20 }
 0xa55   :  { %3961 = vrot.lane.b32.xlu1 %v9174_v28, %s4944_s21 }
 0xa56   :  { %4047 = vrot.lane.b32.xlu2 %v9174_v28, %s4935_s0 }
 0xa59   :  { %v9188_v50 = vpop.permute.xlu2 %4129 }
 0xa61   :  { %v9190_v46 = vpop.permute.xlu2 %3957 }
 0xa68   :  { %v9192_v23 = vpop.permute.xlu0 %4127  ;;  %v9194_v22 = vpop.permute.xlu1 %4041 }
 0xa69   :  { %v9200_v7 = vpop.permute.xlu2 %4043 }
 0xa70   :  { %v9196_v35 = vpop.permute.xlu0 %4083  ;;  %v9198_v60 = vpop.permute.xlu1 %3999 }
 0xa71   :  { %v3754_v0 = vpop.permute.xlu2 %3753 }
 0xa72   :  { %v3755_v29 = vsel %vm528_vm4, %v3752_v51, %v3754_v0  ;;  %v3758_v16 = vsel %vm528_vm4, %v3754_v0, %v8952_v36  ;;  %vm4141_vm4 = vcmp.lt.s32.totalorder %v5198_v49, 80 }
 0xa73   :  { %v3771_v55 = vmul.f32 %v3763_v31, %v3755_v29  ;;  %v3772_v34 = vmul.f32 %v3764_v9, %v3758_v16 }
 0xa78   :  { %v9202_v6 = vpop.permute.xlu1 %4001  ;;  %v9204_v41 = vpop.permute.xlu0 %4085 }
 0xa79   :  { %v3673_v48 = vpop.permute.xlu2 %3672 }
 0xa7a   :  { %v3675_v31 = vsel %vm3674_vm13, %v9160_v62, %v3673_v48 }
 0xa80   :  { %v3808_v5 = vpop.permute.xlu1 %3807  ;;  %v3780_v39 = vpop.permute.xlu0 %3779 }
 0xa81   :  { %v3810_v8 = vsel %vm3809_vm3, %v3806_v11, %v3808_v5  ;;  %v3813_v42 = vsel %vm3809_vm3, %v3808_v5, %v8965_v27  ;;  %v3782_v18 = vsel %vm3781_vm8, %v9121_v61, %v3780_v39  ;;  %v3785_v51 = vsel %vm3781_vm8, %v3780_v39, %v8967_v38 }
 0xa82   :  { %v3827_v3 = vmul.f32 %v3819_v45, %v3810_v8  ;;  %v3828_v24 = vmul.f32 %v3820_v44, %v3813_v42  ;;  %v3799_v36 = vmul.f32 %v3791_v20, %v3782_v18  ;;  %v3800_v43 = vmul.f32 %v3792_v57, %v3785_v51 }
 0xa83   :  { %v3738_v61 = vperm.slane %v8990_v30, 3  ;;  %v3684_v44 = vperm.slane %v9042_v33, 3  ;;  %v3709_v51 = vperm.slane %v9021_v19, 0  ;;  %vm4381_vm3 = vcmask 801792  }
 0xa84   :  { %v3883_v26 = vrot.slane %v3827_v3, 4  ;;  %v3884_v11 = vrot.slane %v3828_v24, 4  ;;  %v3871_v56 = vrot.slane %v3799_v36, 6  ;;  %v3872_v0 = vrot.slane %v3800_v43, 6 }
 0xa85   :  { %v3692_v8 = vmul.f32 %v3684_v44, %v3675_v31  ;;  %v3860_v3 = vrot.slane %v9105_v37, 2  ;;  %v3735_v24 = vperm.slane %v8990_v30, 0  ;;  %v3681_v30 = vperm.slane %v9042_v33, 0 }
 0xa86   :  { %v3904_v27 = vsel %vm421_vm2, %v3771_v55, %v3871_v56  ;;  %v3905_v5 = vsel %vm421_vm2, %v3772_v34, %v3872_v0  ;;  %v3678_v55 = vsel %vm3674_vm13, %v3673_v48, %v8972_v52  ;;  %v3857_v0 = vrot.slane %v8871_v25, 2  ;;  %v9304_v25 = vld [vmem:[%s10129_s8 + $0x6] ss:$8 sm:$0xf] }
 0xa87   :  { %v9233_v38 = vsel %vm124_vm0, %v3904_v27, %v3883_v26  ;;  %v3909_v45 = vsel %vm124_vm0, %v3905_v5, %v3884_v11  ;;  %v3689_v26 = vmul.f32 %v3681_v30, %v3678_v55  ;;  %v4153_v48 = vperm.slane %v9304_v25, 0 }
 0xa88   :  { %v3728_v20 = vpop.permute.xlu1 %3727  ;;  %v3700_v57 = vpop.permute.xlu0 %3699  ;;  %4053 = vrot.lane.b32.xlu0 %v3909_v45, %s4935_s0  ;;  %4139 = vrot.lane.b32.xlu2 %v3909_v45, %s4942_s29  ;;  %v4251_v36 = vrot.slane %v3909_v45, 6  ;;  %v10768_v55 = vperm.slane %v8860_v63, 3 }
 0xa89   :  { %v3729_v9 = vsel %vm500_vm5, %v9154_v53, %v3728_v20  ;;  %v3702_v29 = vsel %vm3701_vm14, %v9130_v21, %v3700_v57  ;;  %4135 = vrot.lane.b32.xlu1 %v9233_v38, %s4942_s29  ;;  %v3705_v62 = vsel %vm3701_vm14, %v3700_v57, %v8977_v54  ;;  %v3732_v19 = vsel %vm500_vm5, %v3728_v20, %v8979_v13 }
 0xa8a   :  { %v3746_v16 = vmul.f32 %v3738_v61, %v3729_v9  ;;  %v3720_v39 = vmul.f32 %v3712_v15, %v3702_v29  ;;  %v3717_v54 = vmul.f32 %v3709_v51, %v3705_v62  ;;  %v3743_v34 = vmul.f32 %v3735_v24, %v3732_v19 }
 0xa8b   :  { %v3505_v51 = vsel %vm3468_vm11, %v3456_v4, 0.0  ;;  %v3506_v62 = vsel %vm3468_vm11, %v3457_v2, 0.0  ;;  %v10767_v24 = vperm.slane %v8860_v63, 2  ;;  %vm4097_vm5 = vcmp.lt.s32.totalorder %v5198_v49, 96 }
 0xa8c   :  { %v3848_v42 = vrot.slane %v3746_v16, 4  ;;  %v3836_v18 = vrot.slane %v3720_v39, 6  ;;  %v3833_v13 = vrot.slane %v3717_v54, 6  ;;  %v3845_v11 = vrot.slane %v3743_v34, 4 }
 0xa8d   :  { %v3508_v19 = vsel %vm3468_vm11, %v10767_v24, 0.0  ;;  %v3510_v34 = vsel %vm3468_vm11, %v10768_v55, 0.0 }
 0xa8e   :  { %v3892_v53 = vsel %vm421_vm2, %v3692_v8, %v3836_v18  ;;  %v3889_v33 = vsel %vm421_vm2, %v3689_v26, %v3833_v13  ;;  %v4156_v8 = vperm.slane %v9304_v25, 3 }
 0xa8f   :  { %v3896_v21 = vsel %vm124_vm0, %v3892_v53, %v3848_v42  ;;  %v3893_v56 = vsel %vm124_vm0, %v3889_v33, %v3845_v11 }
 0xa90   :  { %4011 = vrot.lane.b32.xlu0 %v3909_v45, %s4936_s30  ;;  %4095 = vrot.lane.b32.xlu2 %v3909_v45, %s4943_s20  ;;  %v9261_v15 = vsel %vm3897_vm1, %v3896_v21, %v3860_v3  ;;  %v9288_v52 = vsel %vm3897_vm1, %v3893_v56, %v3857_v0  ;;  %v3507_v21 = vadd.f32 %v3506_v62, %v3505_v51  ;;  %v4155_v56 = vperm.slane %v9304_v25, 2 }
 0xa91   :  { %4091 = vrot.lane.b32.xlu1 %v9233_v38, %s4943_s20  ;;  %v10105_v37 = vrot.slane %v9261_v15, 6 }
 0xa92   :  { %v3509_v30 = vadd.f32 %v3508_v19, %v3507_v21 }
 0xa93   :  { %v9273_v43 = vsel %vm421_vm2, %v10105_v37, %v4251_v36 }
 0xa94   :  { %v3511_v13 = vadd.f32 %v3510_v34, %v3509_v30 }
 0xa98   :  { %3920 = vrot.lane.b32.xlu0 %v9233_v38, %s4945_s11  ;;  %4049 = vrot.lane.b32.xlu2 %v9233_v38, %s4935_s0  ;;  %v9329_v31 = vpop.permute.xlu2 %4003 }
 0xa99   :  { %4007 = vrot.lane.b32.xlu1 %v9233_v38, %s4936_s30 }
 0xaa0   :  { %3963 = vrot.lane.b32.xlu2 %v9233_v38, %s4944_s21  ;;  %4125 = vrot.lane.b32.xlu0 %v9288_v52, %s4942_s29  ;;  %v9337_v9 = vpop.permute.xlu2 %3916 }
 0xaa1   :  { %3967 = vrot.lane.b32.xlu1 %v3909_v45, %s4944_s21 }
 0xaa8   :  { %4093 = vrot.lane.b32.xlu0 %v9261_v15, %s4943_s20  ;;  %4137 = vrot.lane.b32.xlu2 %v9261_v15, %s4942_s29  ;;  %s4544_s29 = sshll.u32 %s9767_s25, 4  ;;  %s4545_s29 = int_to_ptr.hbm [resolvable:$true] %s4544_s29 }
 0xaa9   :  { %4081 = vrot.lane.b32.xlu1 %v9288_v52, %s4943_s20 }
 0xaaf   :  { %v4132_v27 = vpop.permute.xlu0 %4131  ;;  %v9349_v29 = vpop.permute.xlu1 %4087 }
 0xab0   :  { %v4147_v5 = vsel %vm4141_vm4, %v9192_v23, %v4132_v27  ;;  %3955 = vrot.lane.b32.xlu0 %v9062_v1, %s4944_s21  ;;  %4009 = vrot.lane.b32.xlu2 %v9261_v15, %s4936_s30 }
 0xab1   :  { %v4165_v61 = vmul.f32 %v4153_v48, %v4147_v5  ;;  %4039 = vrot.lane.b32.xlu1 %v9288_v52, %s4935_s0  ;;  %v4154_v5 = vperm.slane %v9304_v25, 1 }
 0xab3   :  { %v9319_v44 = vrot.slane %v4165_v61, 4 }
 0xab5   :  { %v4369_v20 = vpack.c.bf16 %v9319_v44, %v9319_v44 }
 0xab7   :  { %v4386_v57 = vsel %vm3468_vm11, %v4369_v20, 0  ;;  %v9353_v39 = vpop.permute.xlu1 %4045  ;;  %v9372_v54 = vpop.permute.xlu0 %3959 }
 0xab8   :  { %4398 = vmatpush.bf16.msrb.mxu0 %v4386_v57  ;;  %4051 = vrot.lane.b32.xlu0 %v9261_v15, %s4935_s0 }
 0xab9   :  { %3924 = vrot.lane.b32.xlu1 %v3909_v45, %s4945_s11  ;;  %3918 = vrot.lane.b32.xlu2 %v9174_v28, %s4945_s11  ;;  %v9345_v45 = vpop.permute.xlu2 %4089 }
 0xabf   :  { %v4134_v4 = vpop.permute.xlu1 %4133  ;;  %v9382_v26 = vpop.permute.xlu0 %4005 }
 0xac0   :  { %3965 = vrot.lane.b32.xlu0 %v9261_v15, %s4944_s21 }
 0xac1   :  { %3914 = vrot.lane.b32.xlu1 %v9093_v47, %s4945_s11  ;;  %3953 = vrot.lane.b32.xlu2 %v9288_v52, %s4944_s21  ;;  %v9351_v16 = vpop.permute.xlu2 %4047 }
 0xac7   :  { %v9386_v33 = vpop.permute.xlu1 %3961 }
 0xac8   :  { %3997 = vrot.lane.b32.xlu0 %v9288_v52, %s4936_s30 }
 0xac9   :  { %3912 = vrot.lane.b32.xlu1 %v9062_v1, %s4945_s11  ;;  %3910 = vrot.lane.b32.xlu2 %v9288_v52, %s4945_s11 }
 0xad0   :  { %3922 = vrot.lane.b32.xlu0 %v9261_v15, %s4945_s11 }
 0xae2   :  { %v4140_v42 = vpop.permute.xlu2 %4139 }
 0xae3   :  { %v4149_v18 = vsel %vm4141_vm4, %v4140_v42, %v9192_v23 }
 0xae4   :  { %v4168_v53 = vmul.f32 %v4156_v8, %v4149_v18 }
 0xae6   :  { %v9367_v3 = vrot.slane %v4168_v53, 4 }
 0xae8   :  { %v4372_v23 = vpack.c.bf16 %v9367_v3, %v9367_v3 }
 0xaea   :  { %v9376_v36 = vpop.permute.xlu2 %4095  ;;  %v4395_v2 = vsel %vm3468_vm11, %v4372_v23, 0 }
 0xaeb   :  { %4437 = vmatpush.bf16.msrb.mxu3 %v4395_v2 }
 0xaf2   :  { %3512 = vadd.xlane.f32.xlu2 %v3511_v13  ;;  %v9384_v11 = vpop.permute.xlu2 %4049 }
 0xaf3   :  { %3494 = vadd.xlane.f32.xlu1 %v9054_v40  ;;  %v9404_v40 = vld [vmem:[%s10129_s8 + $0x5] ss:$8 sm:$0xf] }
 0xaf4   :  { %v4110_v62 = vperm.slane %v9404_v40, 1  ;;  %v10106_v24 = vperm.slane %v9404_v40, 2 }
 0xafa   :  { %3592 = vadd.xlane.f32.xlu2 %v9056_v32  ;;  %v9391_v0 = vpop.permute.xlu0 %4053  ;;  %3476 = vadd.xlane.f32.xlu0 %v9073_v58  ;;  %v9394_v63 = vpop.permute.xlu2 %3963 }
 0xafb   :  { %v4136_v61 = vpop.permute.xlu1 %4135 }
 0xafc   :  { %v4143_v20 = vsel %vm4141_vm4, %v4136_v61, %v4140_v42  ;;  %v4145_v57 = vsel %vm4141_vm4, %v4132_v27, %v4136_v61  ;;  %v4144_v42 = vsel %vm4141_vm4, %v9188_v50, %v4134_v4  ;;  %v4100_v27 = vsel %vm4097_vm5, %v9204_v41, %v9345_v45 }
 0xafd   :  { %v4166_v32 = vmul.f32 %v4154_v5, %v4145_v57  ;;  %v4167_v18 = vmul.f32 %v4155_v56, %v4143_v20  ;;  %v4162_v2 = vmul.f32 %v4154_v5, %v4144_v42  ;;  %v4118_v61 = vmul.f32 %v4110_v62, %v4100_v27  ;;  %v9425_v20 = vld [vmem:[%s10129_s8 + $0x4] ss:$8 sm:$0xf] }
 0xafe   :  { %v4058_v42 = vsel %vm624_vm6, %v9353_v39, %v9384_v11  ;;  %v4067_v25 = vperm.slane %v9425_v20, 2 }
 0xaff   :  { %v4307_v58 = vrot.slane %v4166_v32, 4  ;;  %v4309_v51 = vrot.slane %v4167_v18, 4 }
 0xb01   :  { %v4370_v53 = vpack.c.bf16 %v4307_v58, %v4307_v58  ;;  %v4371_v21 = vpack.c.bf16 %v4309_v51, %v4309_v51 }
 0xb02   :  { %v9416_v19 = vpop.permute.xlu0 %4011  ;;  %v4138_v23 = vpop.permute.xlu2 %4137 }
 0xb03   :  { %v4092_v30 = vpop.permute.xlu1 %4091  ;;  %v4142_v55 = vsel %vm4141_vm4, %v4134_v4, %v4138_v23  ;;  %v4389_v34 = vsel %vm3468_vm11, %v4370_v53, 0  ;;  %v4392_v13 = vsel %vm3468_vm11, %v4371_v21, 0  ;;  %v4066_v53 = vperm.slane %v9425_v20, 1 }
 0xb04   :  { %v4099_v57 = vsel %vm4097_vm5, %v4092_v30, %v9376_v36  ;;  %v4101_v5 = vsel %vm4097_vm5, %v9349_v29, %v4092_v30  ;;  %v4163_v32 = vmul.f32 %v4155_v56, %v4142_v55  ;;  %4411 = vmatpush.bf16.msrb.mxu1 %v4389_v34  ;;  %4424 = vmatpush.bf16.msrb.mxu2 %v4392_v13  ;;  %v4302_v21 = vrot.slane %v4162_v2, 4 }
 0xb05   :  { %v4122_v4 = vmul.f32 %v4110_v62, %v4101_v5  ;;  %v9435_v18 = vmul.f32 %v10106_v24, %v4099_v57  ;;  %v4270_v56 = vrot.slane %v4118_v61, 2  ;;  %v4078_v55 = vmul.f32 %v4066_v53, %v4058_v42 }
 0xb06   :  { %v4303_v27 = vrot.slane %v4163_v32, 4  ;;  %v4308_v34 = vsel %vm124_vm0, %v4302_v21, %v4307_v58  ;;  %v4057_v2 = vsel %vm624_vm6, %v9200_v7, %v9351_v16  ;;  %v4247_v42 = vrot.slane %v9144_v12, 6 }
 0xb07   :  { %v4275_v37 = vrot.slane %v4122_v4, 2  ;;  %v4277_v30 = vrot.slane %v9435_v18, 2  ;;  %v4338_v4 = vsel %vm3897_vm1, %v4078_v55, %v4270_v56  ;;  %v4241_v18 = vrot.slane %v9288_v52, 6 }
 0xb08   :  { %v4310_v62 = vsel %vm124_vm0, %v4303_v27, %v4309_v51  ;;  %v4374_v51 = vld [vmem:[#allocation2] sm:$0x1]  ;;  %vm3969_vm11 = vcmp.lt.s32.totalorder %v5198_v49, 32 }
 0xb09   :  { %v4342_v13 = vsel %vm124_vm0, %v4275_v37, %v4302_v21  ;;  %v4343_v57 = vsel %vm124_vm0, %v4277_v30, %v4303_v27  ;;  %v4276_v58 = vsel %vm3897_vm1, %v4270_v56, %v4275_v37  ;;  %v4109_v27 = vperm.slane %v9404_v40, 0 }
 0xb0a   :  { %v9449_v5 = vpop.permute.xlu0 %3920  ;;  %v4366_v32 = vpack.c.bf16 %v4308_v34, %v4342_v13  ;;  %v4367_v24 = vpack.c.bf16 %v4310_v62, %v4343_v57  ;;  %v4074_v21 = vmul.f32 %v4066_v53, %v4057_v2  ;;  %v4112_v62 = vperm.slane %v9404_v40, 3 }
 0xb0b   :  { %v9455_v61 = vpop.permute.xlu1 %4007  ;;  %v4362_v34 = vpack.c.bf16 %v4276_v58, %v4338_v4  ;;  %v4103_v13 = vsel %vm4097_vm5, %v9196_v35, %v9349_v29  ;;  %v4105_v37 = vsel %vm4097_vm5, %v9376_v36, %v9196_v35 }
 0xb0c   :  { %4412 = vmatpush.bf16.msrb.mxu1 %v4366_v32  ;;  %4425 = vmatpush.bf16.msrb.mxu2 %v4367_v24  ;;  %v4242_v24 = vrot.slane %v9093_v47, 6  ;;  %v4121_v53 = vmul.f32 %v4109_v27, %v4103_v13  ;;  %v4124_v56 = vmul.f32 %v4112_v62, %v4105_v37  ;;  %v4065_v37 = vperm.slane %v9425_v20, 0 }
 0xb0e   :  { %4377 = vperm.xlu0 %4810, %v4374_v51   ;;  %v4248_v12 = vsel %vm421_vm2, %v4242_v24, %v4247_v42  ;;  %v4273_v51 = vrot.slane %v4121_v53, 2  ;;  %v4279_v58 = vrot.slane %v4124_v56, 2  ;;  %v4068_v56 = vperm.slane %v9425_v20, 3  ;;  %v9610_v20 = vld [vmem:[%s10129_s8] ss:$8 sm:$0xf] }
 0xb0f   :  { %v4358_v57 = vpack.c.bf16 %v4074_v21, %v4248_v12  ;;  %v4060_v12 = vsel %vm624_vm6, %v9194_v22, %v9353_v39 }
 0xb10   :  { %4413 = vmatpush.bf16.msrb.mxu1 %v4362_v34 }
 0xb12   :  { %v4126_v55 = vpop.permute.xlu0 %4125 }
 0xb13   :  { %v9474_v32 = vpop.permute.xlu1 %3967  ;;  %v4146_v29 = vsel %vm4141_vm4, %v4126_v55, %v9188_v50  ;;  %v4148_v35 = vsel %vm4141_vm4, %v4138_v23, %v4126_v55 }
 0xb14   :  { %v4161_v36 = vmul.f32 %v4153_v48, %v4146_v29  ;;  %v4164_v2 = vmul.f32 %v4156_v8, %v4148_v35  ;;  %4414 = vmatpush.bf16.msrb.mxu1 %v4358_v57  ;;  %v10769_v57 = vperm.slane %v9404_v40, 2 }
 0xb16   :  { %v4301_v4 = vrot.slane %v4161_v36, 4  ;;  %v4304_v42 = vrot.slane %v4164_v2, 4 }
 0xb18   :  { %v4306_v21 = vsel %vm124_vm0, %v4301_v4, %v9319_v44  ;;  %v4341_v34 = vsel %vm124_vm0, %v4273_v51, %v4301_v4  ;;  %v4312_v50 = vsel %vm124_vm0, %v4304_v42, %v9367_v3  ;;  %v4344_v23 = vsel %vm124_vm0, %v4279_v58, %v4304_v42 }
 0xb19   :  { %v4365_v13 = vpack.c.bf16 %v4306_v21, %v4341_v34  ;;  %v4368_v48 = vpack.c.bf16 %v4312_v50, %v4344_v23  ;;  %v4056_v44 = vsel %vm624_vm6, %v9384_v11, %v9391_v0  ;;  %v4062_v11 = vsel %vm624_vm6, %v9391_v0, %v9194_v22  ;;  %v9524_v50 = vpop.permute.xlu2 %4009 }
 0xb1a   :  { %v4094_v8 = vpop.permute.xlu0 %4093  ;;  %v4079_v36 = vmul.f32 %v4067_v25, %v4056_v44  ;;  %v4077_v4 = vmul.f32 %v4065_v37, %v4060_v12  ;;  %v4080_v21 = vmul.f32 %v4068_v56, %v4062_v11 }
 0xb1b   :  { %v4082_v3 = vpop.permute.xlu1 %4081  ;;  %v4098_v53 = vsel %vm4097_vm5, %v9345_v45, %v4094_v8  ;;  %4399 = vmatpush.bf16.msrb.mxu0 %v4365_v13  ;;  %4438 = vmatpush.bf16.msrb.mxu3 %v4368_v48 }
 0xb1c   :  { %v4102_v55 = vsel %vm4097_vm5, %v4082_v3, %v9204_v41  ;;  %v4104_v39 = vsel %vm4097_vm5, %v4094_v8, %v4082_v3  ;;  %v4119_v29 = vmul.f32 %v10769_v57, %v4098_v53  ;;  %v4245_v3 = vrot.slane %v9062_v1, 6  ;;  %v9563_v1 = vld [vmem:[%s10129_s8 + $0x1] ss:$8 sm:$0xf] }
 0xb1d   :  { %v4117_v45 = vmul.f32 %v4109_v27, %v4102_v55  ;;  %v4120_v35 = vmul.f32 %v4112_v62, %v4104_v39  ;;  %v4014_v55 = vsel %vm580_vm7, %v9455_v61, %v9416_v19  ;;  %v4013_v39 = vsel %vm580_vm7, %v9382_v26, %v9524_v50 }
 0xb1e   :  { %v4271_v2 = vrot.slane %v4119_v29, 2 }
 0xb1f   :  { %v4269_v42 = vrot.slane %v4117_v45, 2  ;;  %v4272_v41 = vrot.slane %v4120_v35, 2 }
 0xb20   :  { %v4278_v40 = vsel %vm3897_vm1, %v4271_v2, %v4277_v30  ;;  %v4339_v34 = vsel %vm3897_vm1, %v4079_v36, %v4271_v2  ;;  %v9536_v30 = vld [vmem:[%s10129_s8 + $0x2] ss:$8 sm:$0xf]  ;;  %v3983_v36 = vperm.slane %v9563_v1, 2  ;;  %v4249_v2 = vrot.slane %v9233_v38, 6 }
 0xb21   :  { %v4274_v22 = vsel %vm3897_vm1, %v4269_v42, %v4273_v51  ;;  %v4337_v0 = vsel %vm3897_vm1, %v4077_v4, %v4269_v42  ;;  %v4363_v27 = vpack.c.bf16 %v4278_v40, %v4339_v34  ;;  %v4280_v62 = vsel %vm3897_vm1, %v4272_v41, %v4279_v58 }
 0xb22   :  { %v9529_v23 = vpop.permute.xlu0 %3955  ;;  %v4361_v13 = vpack.c.bf16 %v4274_v22, %v4337_v0  ;;  %v4340_v48 = vsel %vm3897_vm1, %v4080_v21, %v4272_v41  ;;  %v4026_v12 = vperm.slane %v9536_v30, 3  ;;  %v4016_v58 = vsel %vm580_vm7, %v9329_v31, %v9455_v61  ;;  %v9583_v22 = vpop.permute.xlu2 %3918 }
 0xb23   :  { %v4040_v8 = vpop.permute.xlu1 %4039  ;;  %4426 = vmatpush.bf16.msrb.mxu2 %v4363_v27  ;;  %v4364_v51 = vpack.c.bf16 %v4280_v62, %v4340_v48  ;;  %v4025_v53 = vperm.slane %v9536_v30, 2  ;;  %v4246_v61 = vsel %vm421_vm2, %v4241_v18, %v4245_v3  ;;  %v3972_v4 = vsel %vm3969_vm11, %v9190_v46, %v9386_v33 }
 0xb24   :  { %v4059_v44 = vsel %vm624_vm6, %v4040_v8, %v9200_v7  ;;  %4400 = vmatpush.bf16.msrb.mxu0 %v4361_v13  ;;  %v4015_v7 = vsel %vm580_vm7, %v9202_v6, %v9382_v26  ;;  %v4038_v45 = vmul.f32 %v4026_v12, %v4014_v55  ;;  %v9573_v26 = vmul.f32 %v4026_v12, %v4013_v39 }
 0xb25   :  { %v4073_v57 = vmul.f32 %v4065_v37, %v4059_v44  ;;  %4439 = vmatpush.bf16.msrb.mxu3 %v4364_v51  ;;  %v4037_v29 = vmul.f32 %v4025_v53, %v4016_v58  ;;  %v3973_v37 = vsel %vm3969_vm11, %v9372_v54, %v9394_v63  ;;  %v4033_v35 = vmul.f32 %v4025_v53, %v4015_v7 }
 0xb26   :  { %v3984_v42 = vperm.slane %v9563_v1, 3  ;;  %v4243_v21 = vrot.slane %v9174_v28, 6  ;;  %v3995_v40 = vmul.f32 %v3983_v36, %v3973_v37  ;;  %v4219_v62 = vrot.slane %v4038_v45, 4 }
 0xb27   :  { %v4357_v11 = vpack.c.bf16 %v4073_v57, %v4246_v61  ;;  %v4217_v34 = vrot.slane %v4037_v29, 4  ;;  %v4212_v13 = vrot.slane %v9573_v26, 4  ;;  %v4211_v51 = vrot.slane %v4033_v35, 4 }
 0xb28   :  { %v3991_v12 = vmul.f32 %v3983_v36, %v3972_v4  ;;  %v3971_v58 = vsel %vm3969_vm11, %v9394_v63, %v9474_v32  ;;  %v4018_v44 = vsel %vm580_vm7, %v9198_v60, %v9329_v31  ;;  %v4185_v3 = vrot.slane %v3995_v40, 2 }
 0xb29   :  { %4401 = vmatpush.bf16.msrb.mxu0 %v4357_v11  ;;  %v4218_v63 = vsel %vm124_vm0, %v4211_v51, %v4217_v34  ;;  %v4335_v53 = vsel %vm421_vm2, %v4217_v34, %v4243_v21  ;;  %v3996_v55 = vmul.f32 %v3984_v42, %v3971_v58  ;;  %v4220_v31 = vsel %vm124_vm0, %v4212_v13, %v4219_v62 }
 0xb2a   :  { %v4052_v41 = vpop.permute.xlu0 %4051  ;;  %v10770_v39 = vrot.slane %v9261_v15, 6  ;;  %v4179_v7 = vrot.slane %v3991_v12, 2  ;;  %v4023_v61 = vperm.slane %v9536_v30, 0  ;;  %v4020_v11 = vsel %vm580_vm7, %v9416_v19, %v9198_v60  ;;  %v3954_v40 = vpop.permute.xlu2 %3953 }
 0xb2b   :  { %v9585_v0 = vpop.permute.xlu1 %3924  ;;  %v4055_v38 = vsel %vm624_vm6, %v9351_v16, %v4052_v41  ;;  %v4061_v27 = vsel %vm624_vm6, %v4052_v41, %v4040_v8  ;;  %v4250_v16 = vsel %vm421_vm2, %v4243_v21, %v4249_v2  ;;  %v4024_v8 = vperm.slane %v9536_v30, 1 }
 0xb2c   :  { %v4075_v48 = vmul.f32 %v4067_v25, %v4055_v38  ;;  %v4076_v28 = vmul.f32 %v4068_v56, %v4061_v27  ;;  %vm3926_vm6 = vcmp.lt.s32.totalorder %v5198_v49, 48  ;;  %v4336_v57 = vsel %vm421_vm2, %v4219_v62, %v10770_v39  ;;  %v4373_v39 = vld [vmem:[%s9765_s23] sm:$0x1] }
 0xb2d   :  { %v9622_v29 = vmul.f32 %v4024_v8, %v4018_v44  ;;  %v3930_v37 = vsel %vm3926_vm6, %v9337_v9, %v9449_v5  ;;  %v4355_v45 = vpack.c.bf16 %v4335_v53, %v4218_v63  ;;  %v4356_v35 = vpack.c.bf16 %v4336_v57, %v4220_v31 }
 0xb2e   :  { %v4359_v25 = vpack.c.bf16 %v4075_v48, %v4250_v16  ;;  %v4360_v56 = vpack.c.bf16 %v4076_v28, %v9273_v43  ;;  %v3939_v43 = vperm.slane %v9610_v20, 2  ;;  %v4186_v36 = vsel %vm3897_vm1, %v4179_v7, %v4185_v3 }
 0xb2f   :  { %v4331_v2 = vsel %vm124_vm0, %v4185_v3, %v4211_v51  ;;  %v4187_v4 = vrot.slane %v3996_v55, 2  ;;  %v4035_v41 = vmul.f32 %v4023_v61, %v4020_v11  ;;  %v4215_v27 = vrot.slane %v9622_v29, 4 }
 0xb30   :  { %4427 = vmatpush.bf16.msrb.mxu2 %v4359_v25  ;;  %4440 = vmatpush.bf16.msrb.mxu3 %v4360_v56  ;;  %v3951_v21 = vmul.f32 %v3939_v43, %v3930_v37  ;;  %v4351_v38 = vpack.c.bf16 %v4331_v2, %v4186_v36  ;;  %v3982_v62 = vperm.slane %v9563_v1, 1  ;;  %v3981_v48 = vperm.slane %v9563_v1, 0 }
 0xb31   :  { %v3974_v28 = vsel %vm3969_vm11, %v3954_v40, %v9190_v46  ;;  %v3977_v51 = vsel %vm3969_vm11, %v9474_v32, %v9529_v23  ;;  %v4332_v1 = vsel %vm124_vm0, %v4187_v4, %v4212_v13  ;;  %v4213_v58 = vrot.slane %v4035_v41, 4 }
 0xb32   :  { %v3966_v15 = vpop.permute.xlu0 %3965  ;;  %v4327_v44 = vsel %vm3897_vm1, %v3951_v21, %v4179_v7  ;;  %v3990_v3 = vmul.f32 %v3982_v62, %v3974_v28  ;;  %v3993_v63 = vmul.f32 %v3981_v48, %v3977_v51  ;;  %v3940_v57 = vperm.slane %v9610_v20, 3 }
 0xb33   :  { %v9632_v26 = vpop.permute.xlu1 %3914  ;;  %v3970_v30 = vsel %vm3969_vm11, %v9386_v33, %v3966_v15  ;;  %v3937_v37 = vperm.slane %v9610_v20, 0  ;;  %v3928_v47 = vsel %vm3926_vm6, %v9449_v5, %v9585_v0 }
 0xb34   :  { %v3929_v60 = vsel %vm3926_vm6, %v9632_v26, %v9583_v22  ;;  %v9643_v19 = vmul.f32 %v3984_v42, %v3970_v30  ;;  %4428 = vmatpush.bf16.msrb.mxu2 %v4355_v45  ;;  %4441 = vmatpush.bf16.msrb.mxu3 %v4356_v35  ;;  %v3975_v42 = vsel %vm3969_vm11, %v9529_v23, %v9372_v54  ;;  %v4178_v29 = vrot.slane %v3990_v3, 2  ;;  %v3911_v35 = vpop.permute.xlu2 %3910 }
 0xb35   :  { %v3947_v34 = vmul.f32 %v3939_v43, %v3929_v60  ;;  %v3976_v54 = vsel %vm3969_vm11, %v3966_v15, %v3954_v40  ;;  %v3994_v46 = vmul.f32 %v3982_v62, %v3975_v42  ;;  %v4181_v11 = vrot.slane %v3993_v63, 2 }
 0xb36   :  { %v4180_v33 = vrot.slane %v9643_v19, 2  ;;  %v3989_v13 = vmul.f32 %v3981_v48, %v3976_v54  ;;  %v3952_v60 = vmul.f32 %v3940_v57, %v3928_v47 }
 0xb37   :  { %v4347_v56 = vpack.c.bf16 %v4327_v44, %v3947_v34  ;;  %v4183_v7 = vrot.slane %v3994_v46, 2 }
 0xb38   :  { %4429 = vmatpush.bf16.msrb.mxu2 %v4351_v38  ;;  %v4188_v12 = vsel %vm3897_vm1, %v4180_v33, %v4187_v4  ;;  %v4177_v52 = vrot.slane %v3989_v13, 2 }
 0xb39   :  { %v4352_v16 = vpack.c.bf16 %v4332_v1, %v4188_v12  ;;  %v4184_v4 = vsel %vm3897_vm1, %v4178_v29, %v4183_v7 }
 0xb3a   :  { %v3998_v25 = vpop.permute.xlu0 %3997  ;;  %v4182_v38 = vsel %vm3897_vm1, %v4177_v52, %v4181_v11 }
 0xb3b   :  { %v4017_v32 = vsel %vm580_vm7, %v3998_v25, %v9202_v6  ;;  %v4019_v23 = vsel %vm580_vm7, %v9524_v50, %v3998_v25  ;;  %4442 = vmatpush.bf16.msrb.mxu3 %v4352_v16  ;;  %v3913_v53 = vpop.permute.xlu1 %3912  ;;  %v4333_v6 = vsel %vm421_vm2, %v4213_v58, %v4241_v18  ;;  %v4334_v50 = vsel %vm421_vm2, %v4215_v27, %v4242_v24 }
 0xb3c   :  { %v4031_v55 = vmul.f32 %v4023_v61, %v4019_v23  ;;  %v4032_v31 = vmul.f32 %v4024_v8, %v4017_v32  ;;  %4430 = vmatpush.bf16.msrb.mxu2 %v4347_v56  ;;  %v3938_v61 = vperm.slane %v9610_v20, 1  ;;  %v3932_v15 = vsel %vm3926_vm6, %v3913_v53, %v9337_v9 }
 0xb3d   :  { %v3934_v20 = vsel %vm3926_vm6, %v9585_v0, %v3913_v53  ;;  %v3931_v0 = vsel %vm3926_vm6, %v3911_v35, %v9632_v26 }
 0xb3e   :  { %v4209_v8 = vrot.slane %v4031_v55, 4  ;;  %v4210_v43 = vrot.slane %v4032_v31, 4  ;;  %v3950_v9 = vmul.f32 %v3938_v61, %v3932_v15  ;;  %v3949_v40 = vmul.f32 %v3937_v37, %v3934_v20 }
 0xb3f   :  { %4753 = vmatmul.msk.bf16.vlgmr.msrb.gmra.mxu2 %vm4381_vm3, %v4373_v39  ;;  %v3946_v51 = vmul.f32 %v3938_v61, %v3931_v0 }
 0xb40   :  { %v4214_v24 = vsel %vm124_vm0, %v4209_v8, %v4213_v58  ;;  %v4216_v18 = vsel %vm124_vm0, %v4210_v43, %v4215_v27  ;;  %v4329_v2 = vsel %vm124_vm0, %v4181_v11, %v4209_v8  ;;  %v4330_v5 = vsel %vm124_vm0, %v4183_v7, %v4210_v43 }
 0xb41   :  { %v4353_v45 = vpack.c.bf16 %v4333_v6, %v4214_v24  ;;  %v4354_v30 = vpack.c.bf16 %v4334_v50, %v4216_v18  ;;  %v4349_v62 = vpack.c.bf16 %v4329_v2, %v4182_v38  ;;  %v4350_v48 = vpack.c.bf16 %v4330_v5, %v4184_v4 }
 0xb42   :  { %v3923_v36 = vpop.permute.xlu0 %3922  ;;  %v4326_v28 = vsel %vm3897_vm1, %v3950_v9, %v4178_v29  ;;  %v4325_v49 = vsel %vm3897_vm1, %v3949_v40, %v4177_v52 }
 0xb43   :  { %v3927_v41 = vsel %vm3926_vm6, %v9583_v22, %v3923_v36  ;;  %v3933_v21 = vsel %vm3926_vm6, %v3923_v36, %v3911_v35  ;;  %4402 = vmatpush.bf16.msrb.mxu0 %v4353_v45  ;;  %4415 = vmatpush.bf16.msrb.mxu1 %v4354_v30  ;;  %v4328_v22 = vsel %vm3897_vm1, %v3952_v60, %v4180_v33 }
 0xb44   :  { %v3948_v34 = vmul.f32 %v3940_v57, %v3927_v41  ;;  %v3945_v27 = vmul.f32 %v3937_v37, %v3933_v21  ;;  %v4346_v12 = vpack.c.bf16 %v4326_v28, %v3946_v51 }
 0xb46   :  { %v4348_v42 = vpack.c.bf16 %v4328_v22, %v3948_v34  ;;  %v4345_v26 = vpack.c.bf16 %v4325_v49, %v3945_v27 }
 0xb47   :  { %4403 = vmatpush.bf16.msrb.mxu0 %v4349_v62  ;;  %4416 = vmatpush.bf16.msrb.mxu1 %v4350_v48 }
 0xb48   :  { %4443 = vmatpush.bf16.msrb.mxu3 %v4348_v42 }
 0xb4b   :  { %4404 = vmatpush.bf16.msrb.mxu0 %v4345_v26  ;;  %4417 = vmatpush.bf16.msrb.mxu1 %v4346_v12 }
 0xb4c   :  { %4754 = vmatmul.msk.bf16.vlgmr.msrb.gmra.mxu3 %vm4381_vm3, %v4373_v39 }
 0xb4e   :  { %4751 = vmatmul.msk.bf16.vlgmr.msrb.gmra.mxu0 %vm4381_vm3, %v4373_v39  ;;  %4752 = vmatmul.msk.bf16.vlgmr.msrb.gmra.mxu1 %vm4381_vm3, %v4373_v39 }
 0xb65   :  { %v3513_v19 = vpop.xlane.xlu2 %3512 }
 0xb66   :  { %v3514_v33 = vrot.slane %v3513_v19, 4  ;;  %v3495_v1 = vpop.xlane.xlu1 %3494 }
 0xb67   :  { %v3496_v58 = vrot.slane %v3495_v1, 4 }
 0xb68   :  { %v3515_v54 = vadd.f32 %v3514_v33, %v3513_v19 }
 0xb69   :  { %v3497_v16 = vadd.f32 %v3496_v58, %v3495_v1 }
 0xb6a   :  { %v3516_v44 = vrot.slane %v3515_v54, 2 }
 0xb6b   :  { %v3498_v46 = vrot.slane %v3497_v16, 2 }
 0xb6c   :  { %v3517_v13 = vadd.f32 %v3516_v44, %v3515_v54 }
 0xb6d   :  { %v3593_v25 = vpop.xlane.xlu2 %3592  ;;  %v3477_v56 = vpop.xlane.xlu0 %3476  ;;  %v3499_v53 = vadd.f32 %v3498_v46, %v3497_v16 }
 0xb6e   :  { %v3594_v3 = vrot.slane %v3593_v25, 4  ;;  %v3478_v63 = vrot.slane %v3477_v56, 4  ;;  %v3518_v6 = vrot.slane %v3517_v13, 1 }
 0xb6f   :  { %v3500_v50 = vrot.slane %v3499_v53, 1 }
 0xb70   :  { %v3595_v32 = vadd.f32 %v3594_v3, %v3593_v25  ;;  %v3479_v23 = vadd.f32 %v3478_v63, %v3477_v56  ;;  %v3519_v43 = vadd.f32 %v3518_v6, %v3517_v13 }
 0xb71   :  { %v3501_v29 = vadd.f32 %v3500_v50, %v3499_v53 }
 0xb72   :  { %v3596_v55 = vrot.slane %v3595_v32, 2  ;;  %v3480_v31 = vrot.slane %v3479_v23, 2 }
 0xb74   :  { %v3597_v57 = vadd.f32 %v3596_v55, %v3595_v32  ;;  %v3481_v39 = vadd.f32 %v3480_v31, %v3479_v23 }
 0xb76   :  { %v3482_v7 = vrot.slane %v3481_v39, 1  ;;  %v3598_v61 = vrot.slane %v3597_v57, 1 }
 0xb78   :  { %v3483_v8 = vadd.f32 %v3482_v7, %v3481_v39  ;;  %v3599_v11 = vadd.f32 %v3598_v61, %v3597_v57 }
 0xb7a   :  { %4783 = vpush %v3483_v8 }
 0xb7b   :  { %4785 = vpush %v3501_v29 }
 0xb7c   :  { %4787 = vpush %v3519_v43 }
 0xb7d   :  { %4789 = vpush %v3599_v11 }
 0xb80   :  { %v4378_v37 = vpop.permute.xlu0 %4377 }
 0xb81   :  { %v4380_v15 = vperm.slane %v4378_v37, 0 }
 0xbab   :  { %s4784_s9 = spop %4783 }
 0xbac   :  { %3486 = sst [smem:[#allocation8]] %s4784_s9  ;;  %s4786_s17 = spop %4785 }
 0xbad   :  { %3504 = sst [smem:[#allocation8 + $0x1]] %s4786_s17  ;;  %s4788_s24 = spop %4787 }
 0xbae   :  { %3522 = sst [smem:[#allocation8 + $0x2]] %s4788_s24  ;;  %s4790_s2 = spop %4789 }
 0xbaf   :  { %3602 = sst [smem:[#allocation8 + $0x3]] %s4790_s2 }
 0xbb0   :  { %4556 = dma.smem_to_hbm %s4946_s5, 16, %s4554_s16, [#allocation6]  }
 0xbc2   :  { %v4432_v47 = vpop.f32.mrf.mxu2 }
 0xbc3   :  { %v4433_v52 = vadd.f32 %v4432_v47, %v4380_v15 }
 0xbc5   :  { %v4757_v24 = vmul.f32 -1.442695, %v4433_v52 }
 0xbc7   :  { %4847 = vpow2.f32 %v4757_v24 }
 0xbca   :  { %v4434_v18 = vpop.f32.mrf.mxu2 }
 0xbcb   :  { %v4406_v20 = vpop.f32.mrf.mxu0  ;;  %v4419_v45 = vpop.f32.mrf.mxu1 }
 0xbcc   :  { %v4407_v30 = vadd.f32 %v4406_v20, %v4380_v15  ;;  %v4420_v35 = vadd.f32 %v4419_v45, %v4380_v15 }
 0xbcd   :  { %v4848_v9 = vpop.eup %4847 }
 0xbce   :  { %v4463_v36 = vadd.f32 1.0, %v4848_v9  ;;  %v4755_v2 = vmul.f32 -1.442695, %v4407_v30  ;;  %v4756_v4 = vmul.f32 -1.442695, %v4420_v35 }
 0xbcf   :  { %v4445_v5 = vpop.f32.mrf.mxu3 }
 0xbd0   :  { %4849 = vrcp.f32 %v4463_v36  ;;  %v4446_v60 = vadd.f32 %v4445_v5, %v4380_v15  ;;  %v4506_v49 = vand.u32 2147483648, %v4463_v36  ;;  %v4504_v19 = vand.u32 2147483647, %v4463_v36 }
 0xbd1   :  { %4851 = vpow2.f32 %v4755_v2  ;;  %vm4500_vm0 = vweird.f32 %v4463_v36 }
 0xbd2   :  { %4853 = vpow2.f32 %v4756_v4  ;;  %v4758_v41 = vmul.f32 -1.442695, %v4446_v60  ;;  %v4507_v58 = vor.u32 1.1754944e-38, %v4506_v49  ;;  %vm9721_vm7 = vcmp.eq.f32.partialorder %v4504_v19, 8.507059e+37 }
 0xbd3   :  { %v4408_v21 = vpop.f32.mrf.mxu0  ;;  %v4421_v0 = vpop.f32.mrf.mxu1 }
 0xbd4   :  { %4855 = vpow2.f32 %v4758_v41 }
 0xbd6   :  { %v4850_v40 = vpop.eup %4849 }
 0xbd7   :  { %v4852_v34 = vpop.eup %4851  ;;  %v4496_v38 = vmul.f32 %v4850_v40, %v4463_v36  ;;  %v4447_v27 = vpop.f32.mrf.mxu3  ;;  %vm4501_vm2 = vweird.f32 %v4850_v40 }
 0xbd8   :  { %v4854_v62 = vpop.eup %4853  ;;  %v4461_v48 = vadd.f32 1.0, %v4852_v34  ;;  %vm9726_vm13 = vmor %vm4500_vm0, %vm4501_vm2 }
 0xbd9   :  { %v4462_v22 = vadd.f32 1.0, %v4854_v62  ;;  %v4497_v28 = vsub.f32 1.0, %v4496_v38 }
 0xbda   :  { %v4856_v42 = vpop.eup %4855  ;;  %4857 = vrcp.f32 %v4461_v48  ;;  %v4476_v44 = vand.u32 2147483648, %v4461_v48  ;;  %v4474_v63 = vand.u32 2147483647, %v4461_v48  ;;  %vm4470_vm8 = vweird.f32 %v4461_v48 }
 0xbdb   :  { %4859 = vrcp.f32 %v4462_v22  ;;  %v4464_v51 = vadd.f32 1.0, %v4856_v42  ;;  %v4498_v26 = vmul.f32 %v4850_v40, %v4497_v28  ;;  %v4491_v3 = vand.u32 2147483648, %v4462_v22 }
 0xbdc   :  { %vm4485_vm10 = vweird.f32 %v4462_v22  ;;  %v4489_v55 = vand.u32 2147483647, %v4462_v22  ;;  %v4477_v57 = vor.u32 1.1754944e-38, %v4476_v44  ;;  %vm4475_vm15 = vcmp.eq.f32.partialorder %v4474_v63, 8.507059e+37 }
 0xbdd   :  { %4861 = vrcp.f32 %v4464_v51  ;;  %v4499_v46 = vadd.f32 %v4850_v40, %v4498_v26  ;;  %v4492_v7 = vor.u32 1.1754944e-38, %v4491_v3  ;;  %v4521_v61 = vand.u32 2147483648, %v4464_v51 }
 0xbde   :  { %v4519_v11 = vand.u32 2147483647, %v4464_v51  ;;  %vm4490_vm5 = vcmp.eq.f32.partialorder %v4489_v55, 8.507059e+37  ;;  %vm4515_vm11 = vweird.f32 %v4464_v51 }
 0xbdf   :  { %v4503_v50 = vsel %vm9726_vm13, %v4850_v40, %v4499_v46  ;;  %v4522_v20 = vor.u32 1.1754944e-38, %v4521_v61 }
 0xbe0   :  { %v4858_v12 = vpop.eup %4857  ;;  %v4508_v47 = vsel %vm9721_vm7, %v4507_v58, %v4503_v50  ;;  %vm4520_vm3 = vcmp.eq.f32.partialorder %v4519_v11, 8.507059e+37 }
 0xbe1   :  { %v4860_v33 = vpop.eup %4859  ;;  %v4466_v1 = vmul.f32 %v4858_v12, %v4461_v48  ;;  %vm4471_vm9 = vweird.f32 %v4858_v12  ;;  %v4527_v35 = vperm.slane %v4508_v47, 0 }
 0xbe2   :  { %v4481_v54 = vmul.f32 %v4860_v33, %v4462_v22  ;;  %vm4486_vm12 = vweird.f32 %v4860_v33  ;;  %vm4472_vm14 = vmor %vm4470_vm8, %vm4471_vm9 }
 0xbe3   :  { %v4467_v16 = vsub.f32 1.0, %v4466_v1  ;;  %v4862_v25 = vpop.eup %4861  ;;  %vm4487_vm1 = vmor %vm4485_vm10, %vm4486_vm12  ;;  %v4531_v60 = vmul.f32 %v4527_v35, %v8922_v10 }
 0xbe4   :  { %v4482_v56 = vsub.f32 1.0, %v4481_v54  ;;  %v4511_v13 = vmul.f32 %v4862_v25, %v4464_v51  ;;  %vm4516_vm4 = vweird.f32 %v4862_v25 }
 0xbe5   :  { %v4468_v23 = vmul.f32 %v4858_v12, %v4467_v16  ;;  %vm4517_vm6 = vmor %vm4515_vm11, %vm4516_vm4 }
 0xbe6   :  { %v4483_v53 = vmul.f32 %v4860_v33, %v4482_v56  ;;  %v4512_v39 = vsub.f32 1.0, %v4511_v13 }
 0xbe7   :  { %v4469_v6 = vadd.f32 %v4858_v12, %v4468_v23 }
 0xbe8   :  { %v4484_v8 = vadd.f32 %v4860_v33, %v4483_v53  ;;  %v4513_v43 = vmul.f32 %v4862_v25, %v4512_v39 }
 0xbe9   :  { %v4473_v29 = vsel %vm4472_vm14, %v4858_v12, %v4469_v6 }
 0xbea   :  { %v4478_v37 = vsel %vm4475_vm15, %v4477_v57, %v4473_v29  ;;  %v4488_v15 = vsel %vm4487_vm1, %v4860_v33, %v4484_v8  ;;  %v4514_v24 = vadd.f32 %v4862_v25, %v4513_v43 }
 0xbeb   :  { %v4493_v52 = vsel %vm4490_vm5, %v4492_v7, %v4488_v15  ;;  %v4525_v18 = vperm.slane %v4478_v37, 0 }
 0xbec   :  { %v4526_v45 = vperm.slane %v4493_v52, 0  ;;  %v4518_v30 = vsel %vm4517_vm6, %v4862_v25, %v4514_v24 }
 0xbed   :  { %v4529_v9 = vmul.f32 %v4525_v18, %v8852_v17  ;;  %v4523_v36 = vsel %vm4520_vm3, %v4522_v20, %v4518_v30 }
 0xbee   :  { %v4530_v2 = vmul.f32 %v4526_v45, %v8881_v59  ;;  %v4528_v4 = vperm.slane %v4523_v36, 0 }
 0xbf0   :  { %v4533_v5 = vpack.c.bf16 %v4530_v2, %v4529_v9  ;;  %v4532_v41 = vmul.f32 %v4528_v4, %v9059_v14 }
 0xbf2   :  { %4535 = vst [vmem:[#allocation7] sm:$0xff] %v4533_v5  ;;  %v4534_v21 = vpack.c.bf16 %v4532_v41, %v4531_v60 }
 0xbf4   :  { %4536 = vst [vmem:[#allocation7 + $0x8] sm:$0xff] %v4534_v21 }
 0xbf5   :  { %4547 = dma.vmem_to_hbm [thread:$0]  %s4543_s15, 256, %s4545_s29, [#allocation5]  }
 0xbf6   :  { %4925 = dma.done.wait [#allocation5], 256  }
 0xbf7   :  { %4926 = vsyncadd [#allocation5], 4294967040 }
 0xbf8   :  { %4927 = dma.done.wait [#allocation6], 16  }
 0xbf9   :  { %4928 = vsyncadd [#allocation6], 4294967280 }
 0xbfa   :  { %4565 = sfence }
 0xbfb   :  { %4566 = vsyncpa [#allocation4], 1 }
 0xbfc   :  { %4567 = vsyncpa [#allocation5], 1 }
 0xbfd   :  { %4568 = vsyncpa [#allocation6], 1 }

</bundles_post_ra>
